<compile_context>
chip_gen: v7x
topology: tpu7x:2x2x1
jax: 0.10.0
libtpu: 0.0.40
codegen_flags: <defaults>
</compile_context>

<pallas_src>
import jax
import jax.numpy as jnp
from jax.experimental import pallas as pl
from jax.experimental.pallas import tpu as pltpu


# ---------------------------------------------------------------------------
# Config (small, consistent with the module's forward)
# ---------------------------------------------------------------------------
BATCH = 2           # batch_size
NUM_SENT = 8        # #file_in_commit (sentence axis the convs slide over)
SEQ_LEN = 8         # #line_in_file token length fed to the sentence encoder
VOCAB = 100
EMBED = 16          # ALBERT embedding size (factorized)
HIDDEN = 32         # sentence_encoder.config.hidden_size
N_HEADS = 4
HEAD_DIM = HIDDEN // N_HEADS
INTERMEDIATE = 64
N_LAYERS = 2        # ALBERT: parameters shared across layers
OUT_CH = 8          # config.output_channel
NUM_LABELS = 4      # config.num_labels
MAX_POS = 16
LN_EPS = 1e-12
MAX_PAD = 4         # largest conv padding = 5 - 1
KSIZES = (3, 4, 5)
C3 = 3 * OUT_CH
NUM_WIN = NUM_SENT + MAX_PAD        # 12 five-tap windows per batch element
ENC_GROUPS = 2                      # grid over the sentence axis (parallel across v7x TensorCores)


# ---------------------------------------------------------------------------
# Fused ALBERT sentence-encoder kernel (all B*NS sentences at once)
# ---------------------------------------------------------------------------
def _ln(x, g, b):
    mu = jnp.mean(x, axis=-1, keepdims=True)
    var = jnp.mean((x - mu) ** 2, axis=-1, keepdims=True)
    return (x - mu) * jax.lax.rsqrt(var + LN_EPS) * g + b


def _encoder_kernel(emb_ref, mask_ref,
                    emb_ln_ref, emb_proj_w_ref, emb_proj_b_ref,
                    qkv_w_ref, qkv_b_ref, attn_o_w_ref, attn_o_b_ref, ln1_ref,
                    ffn_w_ref, ffn_b_ref, ffn_o_w_ref, ffn_o_b_ref, ln2_ref,
                    pooler_w_ref, pooler_b_ref,
                    pooled_ref):
    """One block = a group of sentences (nsb sentences x SEQ_LEN tokens = T token rows)."""
    T = emb_ref.shape[0]
    nsb = T // SEQ_LEN

    # embedding LayerNorm + factorized projection E -> H
    emb = _ln(emb_ref[...], emb_ln_ref[0:1, :], emb_ln_ref[1:2, :])
    h = jnp.dot(emb, emb_proj_w_ref[...], preferred_element_type=jnp.float32) + emb_proj_b_ref[...]

    mask_bias = (1.0 - mask_ref[...])[:, None, :] * -1e9          # [nsb, 1, L]
    scale = 1.0 / jnp.sqrt(float(HEAD_DIM))

    qkv_w = qkv_w_ref[...]
    qkv_b = qkv_b_ref[...]
    o_w = attn_o_w_ref[...]
    o_b = attn_o_b_ref[...]
    ffn_w = ffn_w_ref[...]
    ffn_b = ffn_b_ref[...]
    ffn_o_w = ffn_o_w_ref[...]
    ffn_o_b = ffn_o_b_ref[...]
    ln1_g, ln1_b = ln1_ref[0:1, :], ln1_ref[1:2, :]
    ln2_g, ln2_b = ln2_ref[0:1, :], ln2_ref[1:2, :]

    for _ in range(N_LAYERS):                                     # ALBERT shares layer parameters
        # fused Q/K/V projection: one [T,H] x [H,3H] matmul
        qkv = jnp.dot(h, qkv_w, preferred_element_type=jnp.float32) + qkv_b   # [T, 3H]
        ctx_heads = []
        for hd in range(N_HEADS):
            lo = hd * HEAD_DIM
            q = qkv[:, lo:lo + HEAD_DIM].reshape(nsb, SEQ_LEN, HEAD_DIM)
            k = qkv[:, HIDDEN + lo:HIDDEN + lo + HEAD_DIM].reshape(nsb, SEQ_LEN, HEAD_DIM)
            v = qkv[:, 2 * HIDDEN + lo:2 * HIDDEN + lo + HEAD_DIM].reshape(nsb, SEQ_LEN, HEAD_DIM)
            s = jnp.einsum("bqd,bkd->bqk", q, k,
                           preferred_element_type=jnp.float32) * scale + mask_bias
            s = s - jnp.max(s, axis=-1, keepdims=True)
            e = jnp.exp(s)
            p = e / jnp.sum(e, axis=-1, keepdims=True)
            ctx = jnp.einsum("bqk,bkd->bqd", p, v, preferred_element_type=jnp.float32)
            ctx_heads.append(ctx.reshape(T, HEAD_DIM))
        ctx = jnp.concatenate(ctx_heads, axis=1)                              # [T, H]
        h = _ln(h + jnp.dot(ctx, o_w, preferred_element_type=jnp.float32) + o_b, ln1_g, ln1_b)
        ff = jax.nn.gelu(jnp.dot(h, ffn_w, preferred_element_type=jnp.float32) + ffn_b)
        h = _ln(h + jnp.dot(ff, ffn_o_w, preferred_element_type=jnp.float32) + ffn_o_b, ln2_g, ln2_b)

    # pooler = tanh(dense(CLS)) — CLS is token 0 of every sentence
    cls = h.reshape(nsb, SEQ_LEN, HIDDEN)[:, 0, :]                            # [nsb, H]
    pooled_ref[...] = jnp.tanh(
        jnp.dot(cls, pooler_w_ref[...], preferred_element_type=jnp.float32) + pooler_b_ref[...])


def albert_encode_all(p, input_ids, segment_ids, input_mask):
    """Encode all B*NS sentences with a single fused pallas_call. Returns pooled [B*NS, HIDDEN]."""
    N, L = input_ids.shape
    assert N % ENC_GROUPS == 0
    nsb = N // ENC_GROUPS
    tblk = nsb * L

    # embedding gather stays in XLA (cheap glue); everything else runs inside the kernel
    emb = (p["word_emb"][input_ids]
           + p["pos_emb"][jnp.arange(L)][None, :, :]
           + p["tok_type_emb"][segment_ids])
    emb_flat = emb.reshape(N * L, EMBED).astype(jnp.float32)
    mask = input_mask.astype(jnp.float32)

    weights = (p["emb_ln"], p["emb_proj_w"], p["emb_proj_b"],
               p["qkv_w"], p["qkv_b"], p["attn_o_w"], p["attn_o_b"], p["ln1"],
               p["ffn_w"], p["ffn_b"], p["ffn_o_w"], p["ffn_o_b"], p["ln2"],
               p["pooler_w"], p["pooler_b"])

    def rep2d(arr):     # whole (tiny) weight resident in VMEM, same block every grid step
        return pl.BlockSpec(arr.shape, lambda i: (0, 0))

    grid_spec = pltpu.PrefetchScalarGridSpec(
        num_scalar_prefetch=0,
        grid=(ENC_GROUPS,),
        in_specs=[pl.BlockSpec((tblk, EMBED), lambda i: (i, 0)),
                  pl.BlockSpec((nsb, L), lambda i: (i, 0))]
                 + [rep2d(w) for w in weights],
        out_specs=pl.BlockSpec((nsb, HIDDEN), lambda i: (i, 0)),
    )
    return pl.pallas_call(
        _encoder_kernel,
        out_shape=jax.ShapeDtypeStruct((N, HIDDEN), jnp.float32),
        grid_spec=grid_spec,
        compiler_params=pltpu.CompilerParams(dimension_semantics=("parallel",)),
        cost_estimate=pl.CostEstimate(flops=5_000_000, transcendentals=30_000,
                                      bytes_accessed=100_000),
    )(emb_flat, mask, *weights)


# ---------------------------------------------------------------------------
# Fused conv(3/4/5) + ReLU + max-pool + concat + fc1 head kernel
# ---------------------------------------------------------------------------
def _head_kernel(xp_ref, w_ref, b_ref, vmask_ref, fcw_ref, fcb_ref, logits_ref, feat_ref):
    """xp_ref   : [B*Sp, H]  sentence axis pre-padded with MAX_PAD zero rows per batch element
       w_ref    : [5*H, 3*OUT_CH]  conv weights zero-padded to 5 taps (conv-k in tap slots 5-k..4)
       b_ref    : [1, 3*OUT_CH]
       vmask_ref: [NUM_WIN, 3*OUT_CH]  1.0 where a window position is a valid conv-k output
       fcw/fcb  : fc1 weight (transposed) / bias."""
    Sp = NUM_SENT + 2 * MAX_PAD
    B = logits_ref.shape[0]
    xp = xp_ref[...]

    # build all 5-tap sliding windows and evaluate the three convs with ONE matmul
    wins = []
    for bi in range(B):
        base = bi * Sp
        wins.append(jnp.concatenate(
            [xp[base + dk: base + dk + NUM_WIN, :] for dk in range(5)], axis=1))   # [NUM_WIN, 5H]
    xw = jnp.concatenate(wins, axis=0)                                             # [B*NUM_WIN, 5H]

    act = jnp.maximum(
        jnp.dot(xw, w_ref[...], preferred_element_type=jnp.float32) + b_ref[...], 0.0)

    vmask = vmask_ref[...]
    feats = []
    for bi in range(B):
        a = act[bi * NUM_WIN:(bi + 1) * NUM_WIN, :] * vmask      # mask positions past conv-k length
        feats.append(jnp.max(a, axis=0, keepdims=True))          # global max-pool (ReLU output >= 0)
    feat = jnp.concatenate(feats, axis=0)                        # [B, 3*OUT_CH]

    feat_ref[...] = feat
    # dropout is identity at inference; fc1
    logits_ref[...] = (jnp.dot(feat, fcw_ref[...], preferred_element_type=jnp.float32)
                       + fcb_ref[...])


def conv_head(x, p):
    """x: [B, NUM_SENT, HIDDEN] pooled sentence embeddings (== NCHW [B,1,NS,H], channel squeezed)."""
    B = x.shape[0]
    xp = jnp.pad(x, ((0, 0), (MAX_PAD, MAX_PAD), (0, 0)))
    xp = xp.reshape(B * (NUM_SENT + 2 * MAX_PAD), HIDDEN)
    vmem = pl.BlockSpec(memory_space=pltpu.MemorySpace.VMEM)
    return pl.pallas_call(
        _head_kernel,
        out_shape=(jax.ShapeDtypeStruct((B, NUM_LABELS), jnp.float32),
                   jax.ShapeDtypeStruct((B, C3), jnp.float32)),
        in_specs=[vmem] * 6,
        out_specs=(vmem, vmem),
        cost_estimate=pl.CostEstimate(flops=200_000, transcendentals=0, bytes_accessed=30_000),
    )(xp, p["head_w"], p["head_b"], p["head_valid"], p["fc1_wT"], p["fc1_b"])


# ---------------------------------------------------------------------------
# Full forward (mirrors HierarchicalAlbert_old.forward)
# ---------------------------------------------------------------------------
@jax.jit
def hierarchical_albert_forward(p, input_ids, segment_ids, input_mask):
    B, NS, L = input_ids.shape
    # The PyTorch permute(1,0,2) + per-sentence loop + stack + permute is equivalent to flattening
    # the (batch, sentence) axes, encoding once, and unflattening — each sentence is independent.
    ids = input_ids.reshape(B * NS, L)
    seg = segment_ids.reshape(B * NS, L)
    msk = input_mask.reshape(B * NS, L)

    pooled = albert_encode_all(p, ids, seg, msk)     # [B*NS, H]
    x = pooled.reshape(B, NS, HIDDEN)                # [B, NS, H]
    logits, feat = conv_head(x, p)                   # dropout = identity (inference)
    return logits, feat


# ---------------------------------------------------------------------------
# Deterministic parameter init
# ---------------------------------------------------------------------------
def init_params(key):
    ks = iter(jax.random.split(key, 40))

    def rnd(shape, scale=0.02):
        return (scale * jax.random.normal(next(ks), shape)).astype(jnp.float32)

    def ones_zeros(dim):
        return jnp.stack([jnp.ones((dim,), jnp.float32), jnp.zeros((dim,), jnp.float32)])

    p = {
        # embeddings
        "word_emb": rnd((VOCAB, EMBED)),
        "pos_emb": rnd((MAX_POS, EMBED)),
        "tok_type_emb": rnd((2, EMBED)),
        "emb_ln": ones_zeros(EMBED),                          # [2, E] = [gamma; beta]
        "emb_proj_w": rnd((EMBED, HIDDEN)),
        "emb_proj_b": jnp.zeros((1, HIDDEN), jnp.float32),
        # shared transformer layer (Q/K/V fused into one [H, 3H] weight)
        "qkv_w": jnp.concatenate([rnd((HIDDEN, HIDDEN)) for _ in range(3)], axis=1),
        "qkv_b": jnp.zeros((1, 3 * HIDDEN), jnp.float32),
        "attn_o_w": rnd((HIDDEN, HIDDEN)),
        "attn_o_b": jnp.zeros((1, HIDDEN), jnp.float32),
        "ln1": ones_zeros(HIDDEN),
        "ffn_w": rnd((HIDDEN, INTERMEDIATE)),
        "ffn_b": jnp.zeros((1, INTERMEDIATE), jnp.float32),
        "ffn_o_w": rnd((INTERMEDIATE, HIDDEN)),
        "ffn_o_b": jnp.zeros((1, HIDDEN), jnp.float32),
        "ln2": ones_zeros(HIDDEN),
        # pooler
        "pooler_w": rnd((HIDDEN, HIDDEN)),
        "pooler_b": jnp.zeros((1, HIDDEN), jnp.float32),
    }

    # conv head: Conv2d(1, OUT_CH, (k, HIDDEN), padding=(k-1, 0)) for k in (3, 4, 5),
    # packed into one tap-stacked [5*H, 3*OUT_CH] weight; conv-k occupies tap slots (5-k)..4 so all
    # three share the same 5-row sliding window over the MAX_PAD-padded sentence axis.
    w_stack = jnp.zeros((5, HIDDEN, C3), jnp.float32)
    biases = []
    for ci, k in enumerate(KSIZES):
        w = rnd((OUT_CH, 1, k, HIDDEN), scale=0.1)            # PyTorch layout [C_out, 1, k, H]
        wT = jnp.transpose(w[:, 0], (1, 2, 0))                # [k, H, C_out]
        w_stack = w_stack.at[5 - k:5, :, ci * OUT_CH:(ci + 1) * OUT_CH].set(wT)
        biases.append(rnd((1, OUT_CH), scale=0.1))
    p["head_w"] = w_stack.reshape(5 * HIDDEN, C3)
    p["head_b"] = jnp.concatenate(biases, axis=1)             # [1, 3*OUT_CH]

    # validity mask: window position j is a real conv-k output iff j < NUM_SENT + k - 1
    pos = jnp.arange(NUM_WIN)[:, None]
    lim = jnp.concatenate([jnp.full((1, OUT_CH), NUM_SENT + k - 1) for k in KSIZES], axis=1)
    p["head_valid"] = (pos < lim).astype(jnp.float32)         # [NUM_WIN, 3*OUT_CH]

    # fc1: Linear(3 * OUT_CH, NUM_LABELS); stored transposed for y = x @ W^T + b
    fc_w = rnd((NUM_LABELS, C3), scale=0.1)
    p["fc1_wT"] = fc_w.T
    p["fc1_b"] = rnd((1, NUM_LABELS), scale=0.1)
    return p


if __name__ == "__main__":
    key = jax.random.PRNGKey(0)
    k_params, k_ids = jax.random.split(key)
    params = init_params(k_params)

    input_ids = jax.random.randint(k_ids, (BATCH, NUM_SENT, SEQ_LEN), 0, VOCAB, dtype=jnp.int32)
    segment_ids = jnp.zeros((BATCH, NUM_SENT, SEQ_LEN), jnp.int32)
    input_mask = jnp.ones((BATCH, NUM_SENT, SEQ_LEN), jnp.int32)

    logits, feat = hierarchical_albert_forward(params, input_ids, segment_ids, input_mask)
    jax.block_until_ready((logits, feat))

    assert logits.shape == (BATCH, NUM_LABELS), logits.shape
    assert feat.shape == (BATCH, C3), feat.shape
    print("KERNEL_OK")
</pallas_src>

<mosaic_0001>
module attributes {stable_mosaic.version = 11 : i64} {
  func.func @_encoder_kernel(%arg0: i32, %arg1: memref<64x16xf32, #tpu.memory_space<vmem>>, %arg2: memref<8x8xf32, #tpu.memory_space<vmem>>, %arg3: memref<2x16xf32, #tpu.memory_space<vmem>>, %arg4: memref<16x32xf32, #tpu.memory_space<vmem>>, %arg5: memref<1x32xf32, #tpu.memory_space<vmem>>, %arg6: memref<32x96xf32, #tpu.memory_space<vmem>>, %arg7: memref<1x96xf32, #tpu.memory_space<vmem>>, %arg8: memref<32x32xf32, #tpu.memory_space<vmem>>, %arg9: memref<1x32xf32, #tpu.memory_space<vmem>>, %arg10: memref<2x32xf32, #tpu.memory_space<vmem>>, %arg11: memref<32x64xf32, #tpu.memory_space<vmem>>, %arg12: memref<1x64xf32, #tpu.memory_space<vmem>>, %arg13: memref<64x32xf32, #tpu.memory_space<vmem>>, %arg14: memref<1x32xf32, #tpu.memory_space<vmem>>, %arg15: memref<2x32xf32, #tpu.memory_space<vmem>>, %arg16: memref<32x32xf32, #tpu.memory_space<vmem>>, %arg17: memref<1x32xf32, #tpu.memory_space<vmem>>, %arg18: memref<8x32xf32, #tpu.memory_space<vmem>>) attributes {dimension_semantics = [#tpu.dimension_semantics<parallel>], iteration_bounds = array<i64: 2>, scalar_prefetch = 0 : i64, scratch_operands = 0 : i64, tpu.core_type = #tpu.core_type<tc>, window_params = [{transform_indices = @transform_0, window_bounds = array<i64: 64, 16>}, {transform_indices = @transform_1, window_bounds = array<i64: 8, 8>}, {pipeline_mode = #tpu.pipeline_mode<synchronous>, transform_indices = @transform_2, window_bounds = array<i64: 2, 16>}, {pipeline_mode = #tpu.pipeline_mode<synchronous>, transform_indices = @transform_3, window_bounds = array<i64: 16, 32>}, {pipeline_mode = #tpu.pipeline_mode<synchronous>, transform_indices = @transform_4, window_bounds = array<i64: 1, 32>}, {pipeline_mode = #tpu.pipeline_mode<synchronous>, transform_indices = @transform_5, window_bounds = array<i64: 32, 96>}, {pipeline_mode = #tpu.pipeline_mode<synchronous>, transform_indices = @transform_6, window_bounds = array<i64: 1, 96>}, {pipeline_mode = #tpu.pipeline_mode<synchronous>, transform_indices = @transform_7, window_bounds = array<i64: 32, 32>}, {pipeline_mode = #tpu.pipeline_mode<synchronous>, transform_indices = @transform_8, window_bounds = array<i64: 1, 32>}, {pipeline_mode = #tpu.pipeline_mode<synchronous>, transform_indices = @transform_9, window_bounds = array<i64: 2, 32>}, {pipeline_mode = #tpu.pipeline_mode<synchronous>, transform_indices = @transform_10, window_bounds = array<i64: 32, 64>}, {pipeline_mode = #tpu.pipeline_mode<synchronous>, transform_indices = @transform_11, window_bounds = array<i64: 1, 64>}, {pipeline_mode = #tpu.pipeline_mode<synchronous>, transform_indices = @transform_12, window_bounds = array<i64: 64, 32>}, {pipeline_mode = #tpu.pipeline_mode<synchronous>, transform_indices = @transform_13, window_bounds = array<i64: 1, 32>}, {pipeline_mode = #tpu.pipeline_mode<synchronous>, transform_indices = @transform_14, window_bounds = array<i64: 2, 32>}, {pipeline_mode = #tpu.pipeline_mode<synchronous>, transform_indices = @transform_15, window_bounds = array<i64: 32, 32>}, {pipeline_mode = #tpu.pipeline_mode<synchronous>, transform_indices = @transform_16, window_bounds = array<i64: 1, 32>}, {transform_indices = @transform_17, window_bounds = array<i64: 8, 32>}]} {
    %c0 = arith.constant 0 : index
    %c0_0 = arith.constant 0 : index
    %0 = vector.load %arg1[%c0, %c0_0] : memref<64x16xf32, #tpu.memory_space<vmem>>, vector<64x16xf32>
    %c0_1 = arith.constant 0 : index
    %c0_2 = arith.constant 0 : index
    %1 = vector.load %arg3[%c0_1, %c0_2] : memref<2x16xf32, #tpu.memory_space<vmem>>, vector<1x16xf32>
    %c1 = arith.constant 1 : index
    %c0_3 = arith.constant 0 : index
    %2 = vector.load %arg3[%c1, %c0_3] : memref<2x16xf32, #tpu.memory_space<vmem>>, vector<1x16xf32>
    %cst = arith.constant dense<0.000000e+00> : vector<64xf32>
    %3 = vector.multi_reduction <add>, %0, %cst [1] : vector<64x16xf32> to vector<64xf32>
    %4 = vector.shape_cast %3 : vector<64xf32> to vector<64x1xf32>
    %cst_4 = arith.constant 1.600000e+01 : f32
    %5 = vector.broadcast %cst_4 : f32 to vector<64x1xf32>
    %6 = arith.divf %4, %5 : vector<64x1xf32>
    %7 = vector.broadcast %6 : vector<64x1xf32> to vector<64x16xf32>
    %8 = arith.subf %0, %7 : vector<64x16xf32>
    %9 = arith.mulf %8, %8 : vector<64x16xf32>
    %cst_5 = arith.constant dense<0.000000e+00> : vector<64xf32>
    %10 = vector.multi_reduction <add>, %9, %cst_5 [1] : vector<64x16xf32> to vector<64xf32>
    %11 = vector.shape_cast %10 : vector<64xf32> to vector<64x1xf32>
    %cst_6 = arith.constant 1.600000e+01 : f32
    %12 = vector.broadcast %cst_6 : f32 to vector<64x1xf32>
    %13 = arith.divf %11, %12 : vector<64x1xf32>
    %14 = vector.broadcast %6 : vector<64x1xf32> to vector<64x16xf32>
    %15 = arith.subf %0, %14 : vector<64x16xf32>
    %cst_7 = arith.constant 9.99999996E-13 : f32
    %16 = vector.broadcast %cst_7 : f32 to vector<64x1xf32>
    %17 = arith.addf %13, %16 : vector<64x1xf32>
    %18 = math.rsqrt %17 : vector<64x1xf32>
    %19 = vector.broadcast %18 : vector<64x1xf32> to vector<64x16xf32>
    %20 = arith.mulf %15, %19 : vector<64x16xf32>
    %21 = vector.broadcast %1 : vector<1x16xf32> to vector<64x16xf32>
    %22 = arith.mulf %20, %21 : vector<64x16xf32>
    %23 = vector.broadcast %2 : vector<1x16xf32> to vector<64x16xf32>
    %24 = arith.addf %22, %23 : vector<64x16xf32>
    %c0_8 = arith.constant 0 : index
    %c0_9 = arith.constant 0 : index
    %25 = vector.load %arg4[%c0_8, %c0_9] : memref<16x32xf32, #tpu.memory_space<vmem>>, vector<16x32xf32>
    %cst_10 = arith.constant dense<0.000000e+00> : vector<64x32xf32>
    %26 = tpu.matmul %24, %25, %cst_10 {dimension_numbers = #tpu.dot_dimension_numbers<[1], [0], [0], [1], [0, 0, 1, 1], [], []>} : vector<64x16xf32>, vector<16x32xf32>, vector<64x32xf32> -> vector<64x32xf32>
    %c0_11 = arith.constant 0 : index
    %c0_12 = arith.constant 0 : index
    %27 = vector.load %arg5[%c0_11, %c0_12] : memref<1x32xf32, #tpu.memory_space<vmem>>, vector<1x32xf32>
    %28 = vector.broadcast %27 : vector<1x32xf32> to vector<64x32xf32>
    %29 = arith.addf %26, %28 : vector<64x32xf32>
    %c0_13 = arith.constant 0 : index
    %c0_14 = arith.constant 0 : index
    %30 = vector.load %arg2[%c0_13, %c0_14] : memref<8x8xf32, #tpu.memory_space<vmem>>, vector<8x8xf32>
    %cst_15 = arith.constant 1.000000e+00 : f32
    %31 = vector.broadcast %cst_15 : f32 to vector<8x8xf32>
    %32 = arith.subf %31, %30 : vector<8x8xf32>
    %33 = vector.shape_cast %32 : vector<8x8xf32> to vector<8x1x8xf32>
    %cst_16 = arith.constant -1.000000e+09 : f32
    %34 = vector.broadcast %cst_16 : f32 to vector<8x1x8xf32>
    %35 = arith.mulf %33, %34 : vector<8x1x8xf32>
    %cst_17 = arith.constant 8.000000e+00 : f32
    %36 = math.sqrt %cst_17 : f32
    %cst_18 = arith.constant 1.000000e+00 : f32
    %37 = arith.divf %cst_18, %36 : f32
    %c0_19 = arith.constant 0 : index
    %c0_20 = arith.constant 0 : index
    %38 = vector.load %arg6[%c0_19, %c0_20] : memref<32x96xf32, #tpu.memory_space<vmem>>, vector<32x96xf32>
    %c0_21 = arith.constant 0 : index
    %c0_22 = arith.constant 0 : index
    %39 = vector.load %arg7[%c0_21, %c0_22] : memref<1x96xf32, #tpu.memory_space<vmem>>, vector<1x96xf32>
    %c0_23 = arith.constant 0 : index
    %c0_24 = arith.constant 0 : index
    %40 = vector.load %arg8[%c0_23, %c0_24] : memref<32x32xf32, #tpu.memory_space<vmem>>, vector<32x32xf32>
    %c0_25 = arith.constant 0 : index
    %c0_26 = arith.constant 0 : index
    %41 = vector.load %arg9[%c0_25, %c0_26] : memref<1x32xf32, #tpu.memory_space<vmem>>, vector<1x32xf32>
    %c0_27 = arith.constant 0 : index
    %c0_28 = arith.constant 0 : index
    %42 = vector.load %arg11[%c0_27, %c0_28] : memref<32x64xf32, #tpu.memory_space<vmem>>, vector<32x64xf32>
    %c0_29 = arith.constant 0 : index
    %c0_30 = arith.constant 0 : index
    %43 = vector.load %arg12[%c0_29, %c0_30] : memref<1x64xf32, #tpu.memory_space<vmem>>, vector<1x64xf32>
    %c0_31 = arith.constant 0 : index
    %c0_32 = arith.constant 0 : index
    %44 = vector.load %arg13[%c0_31, %c0_32] : memref<64x32xf32, #tpu.memory_space<vmem>>, vector<64x32xf32>
    %c0_33 = arith.constant 0 : index
    %c0_34 = arith.constant 0 : index
    %45 = vector.load %arg14[%c0_33, %c0_34] : memref<1x32xf32, #tpu.memory_space<vmem>>, vector<1x32xf32>
    %c0_35 = arith.constant 0 : index
    %c0_36 = arith.constant 0 : index
    %46 = vector.load %arg10[%c0_35, %c0_36] : memref<2x32xf32, #tpu.memory_space<vmem>>, vector<1x32xf32>
    %c1_37 = arith.constant 1 : index
    %c0_38 = arith.constant 0 : index
    %47 = vector.load %arg10[%c1_37, %c0_38] : memref<2x32xf32, #tpu.memory_space<vmem>>, vector<1x32xf32>
    %c0_39 = arith.constant 0 : index
    %c0_40 = arith.constant 0 : index
    %48 = vector.load %arg15[%c0_39, %c0_40] : memref<2x32xf32, #tpu.memory_space<vmem>>, vector<1x32xf32>
    %c1_41 = arith.constant 1 : index
    %c0_42 = arith.constant 0 : index
    %49 = vector.load %arg15[%c1_41, %c0_42] : memref<2x32xf32, #tpu.memory_space<vmem>>, vector<1x32xf32>
    %cst_43 = arith.constant dense<0.000000e+00> : vector<64x96xf32>
    %50 = tpu.matmul %29, %38, %cst_43 {dimension_numbers = #tpu.dot_dimension_numbers<[1], [0], [0], [1], [0, 0, 1, 1], [], []>} : vector<64x32xf32>, vector<32x96xf32>, vector<64x96xf32> -> vector<64x96xf32>
    %51 = vector.broadcast %39 : vector<1x96xf32> to vector<64x96xf32>
    %52 = arith.addf %50, %51 : vector<64x96xf32>
    %53 = vector.extract_strided_slice %52 {offsets = [0, 0], sizes = [64, 8], strides = [1, 1]} : vector<64x96xf32> to vector<64x8xf32>
    %54 = vector.shape_cast %53 : vector<64x8xf32> to vector<8x8x8xf32>
    %55 = vector.extract_strided_slice %52 {offsets = [0, 32], sizes = [64, 8], strides = [1, 1]} : vector<64x96xf32> to vector<64x8xf32>
    %56 = vector.shape_cast %55 : vector<64x8xf32> to vector<8x8x8xf32>
    %57 = vector.extract_strided_slice %52 {offsets = [0, 64], sizes = [64, 8], strides = [1, 1]} : vector<64x96xf32> to vector<64x8xf32>
    %58 = vector.shape_cast %57 : vector<64x8xf32> to vector<8x8x8xf32>
    "tpu.trace_start"() <{level = 10 : i32, message = "bqd,bkd->bqk"}> : () -> ()
    %cst_44 = arith.constant dense<0.000000e+00> : vector<8x8x8xf32>
    %59 = tpu.matmul %54, %56, %cst_44 {dimension_numbers = #tpu.dot_dimension_numbers<[2], [2], [1], [1], [0, 0, 0, 1, 1, 1], [0], [0]>} : vector<8x8x8xf32>, vector<8x8x8xf32>, vector<8x8x8xf32> -> vector<8x8x8xf32>
    "tpu.trace_stop"() : () -> ()
    %60 = vector.broadcast %37 : f32 to vector<8x8x8xf32>
    %61 = arith.mulf %59, %60 : vector<8x8x8xf32>
    %62 = vector.broadcast %35 : vector<8x1x8xf32> to vector<8x8x8xf32>
    %63 = arith.addf %61, %62 : vector<8x8x8xf32>
    %cst_45 = arith.constant dense<0xFF800000> : vector<8x8xf32>
    %64 = vector.multi_reduction <maximumf>, %63, %cst_45 [2] : vector<8x8x8xf32> to vector<8x8xf32>
    %65 = vector.shape_cast %64 : vector<8x8xf32> to vector<8x8x1xf32>
    %66 = vector.broadcast %65 : vector<8x8x1xf32> to vector<8x8x8xf32>
    %67 = arith.subf %63, %66 : vector<8x8x8xf32>
    %68 = math.exp %67 : vector<8x8x8xf32>
    %cst_46 = arith.constant dense<0.000000e+00> : vector<8x8xf32>
    %69 = vector.multi_reduction <add>, %68, %cst_46 [2] : vector<8x8x8xf32> to vector<8x8xf32>
    %70 = vector.shape_cast %69 : vector<8x8xf32> to vector<8x8x1xf32>
    %71 = vector.broadcast %70 : vector<8x8x1xf32> to vector<8x8x8xf32>
    %72 = arith.divf %68, %71 : vector<8x8x8xf32>
    "tpu.trace_start"() <{level = 10 : i32, message = "bqk,bkd->bqd"}> : () -> ()
    %cst_47 = arith.constant dense<0.000000e+00> : vector<8x8x8xf32>
    %73 = tpu.matmul %72, %58, %cst_47 {dimension_numbers = #tpu.dot_dimension_numbers<[2], [1], [1], [2], [0, 0, 0, 1, 1, 2], [0], [0]>} : vector<8x8x8xf32>, vector<8x8x8xf32>, vector<8x8x8xf32> -> vector<8x8x8xf32>
    "tpu.trace_stop"() : () -> ()
    %74 = vector.shape_cast %73 : vector<8x8x8xf32> to vector<64x8xf32>
    %75 = vector.extract_strided_slice %52 {offsets = [0, 8], sizes = [64, 8], strides = [1, 1]} : vector<64x96xf32> to vector<64x8xf32>
    %76 = vector.shape_cast %75 : vector<64x8xf32> to vector<8x8x8xf32>
    %77 = vector.extract_strided_slice %52 {offsets = [0, 40], sizes = [64, 8], strides = [1, 1]} : vector<64x96xf32> to vector<64x8xf32>
    %78 = vector.shape_cast %77 : vector<64x8xf32> to vector<8x8x8xf32>
    %79 = vector.extract_strided_slice %52 {offsets = [0, 72], sizes = [64, 8], strides = [1, 1]} : vector<64x96xf32> to vector<64x8xf32>
    %80 = vector.shape_cast %79 : vector<64x8xf32> to vector<8x8x8xf32>
    "tpu.trace_start"() <{level = 10 : i32, message = "bqd,bkd->bqk"}> : () -> ()
    %cst_48 = arith.constant dense<0.000000e+00> : vector<8x8x8xf32>
    %81 = tpu.matmul %76, %78, %cst_48 {dimension_numbers = #tpu.dot_dimension_numbers<[2], [2], [1], [1], [0, 0, 0, 1, 1, 1], [0], [0]>} : vector<8x8x8xf32>, vector<8x8x8xf32>, vector<8x8x8xf32> -> vector<8x8x8xf32>
    "tpu.trace_stop"() : () -> ()
    %82 = vector.broadcast %37 : f32 to vector<8x8x8xf32>
    %83 = arith.mulf %81, %82 : vector<8x8x8xf32>
    %84 = vector.broadcast %35 : vector<8x1x8xf32> to vector<8x8x8xf32>
    %85 = arith.addf %83, %84 : vector<8x8x8xf32>
    %cst_49 = arith.constant dense<0xFF800000> : vector<8x8xf32>
    %86 = vector.multi_reduction <maximumf>, %85, %cst_49 [2] : vector<8x8x8xf32> to vector<8x8xf32>
    %87 = vector.shape_cast %86 : vector<8x8xf32> to vector<8x8x1xf32>
    %88 = vector.broadcast %87 : vector<8x8x1xf32> to vector<8x8x8xf32>
    %89 = arith.subf %85, %88 : vector<8x8x8xf32>
    %90 = math.exp %89 : vector<8x8x8xf32>
    %cst_50 = arith.constant dense<0.000000e+00> : vector<8x8xf32>
    %91 = vector.multi_reduction <add>, %90, %cst_50 [2] : vector<8x8x8xf32> to vector<8x8xf32>
    %92 = vector.shape_cast %91 : vector<8x8xf32> to vector<8x8x1xf32>
    %93 = vector.broadcast %92 : vector<8x8x1xf32> to vector<8x8x8xf32>
    %94 = arith.divf %90, %93 : vector<8x8x8xf32>
    "tpu.trace_start"() <{level = 10 : i32, message = "bqk,bkd->bqd"}> : () -> ()
    %cst_51 = arith.constant dense<0.000000e+00> : vector<8x8x8xf32>
    %95 = tpu.matmul %94, %80, %cst_51 {dimension_numbers = #tpu.dot_dimension_numbers<[2], [1], [1], [2], [0, 0, 0, 1, 1, 2], [0], [0]>} : vector<8x8x8xf32>, vector<8x8x8xf32>, vector<8x8x8xf32> -> vector<8x8x8xf32>
    "tpu.trace_stop"() : () -> ()
    %96 = vector.shape_cast %95 : vector<8x8x8xf32> to vector<64x8xf32>
    %97 = vector.extract_strided_slice %52 {offsets = [0, 16], sizes = [64, 8], strides = [1, 1]} : vector<64x96xf32> to vector<64x8xf32>
    %98 = vector.shape_cast %97 : vector<64x8xf32> to vector<8x8x8xf32>
    %99 = vector.extract_strided_slice %52 {offsets = [0, 48], sizes = [64, 8], strides = [1, 1]} : vector<64x96xf32> to vector<64x8xf32>
    %100 = vector.shape_cast %99 : vector<64x8xf32> to vector<8x8x8xf32>
    %101 = vector.extract_strided_slice %52 {offsets = [0, 80], sizes = [64, 8], strides = [1, 1]} : vector<64x96xf32> to vector<64x8xf32>
    %102 = vector.shape_cast %101 : vector<64x8xf32> to vector<8x8x8xf32>
    "tpu.trace_start"() <{level = 10 : i32, message = "bqd,bkd->bqk"}> : () -> ()
    %cst_52 = arith.constant dense<0.000000e+00> : vector<8x8x8xf32>
    %103 = tpu.matmul %98, %100, %cst_52 {dimension_numbers = #tpu.dot_dimension_numbers<[2], [2], [1], [1], [0, 0, 0, 1, 1, 1], [0], [0]>} : vector<8x8x8xf32>, vector<8x8x8xf32>, vector<8x8x8xf32> -> vector<8x8x8xf32>
    "tpu.trace_stop"() : () -> ()
    %104 = vector.broadcast %37 : f32 to vector<8x8x8xf32>
    %105 = arith.mulf %103, %104 : vector<8x8x8xf32>
    %106 = vector.broadcast %35 : vector<8x1x8xf32> to vector<8x8x8xf32>
    %107 = arith.addf %105, %106 : vector<8x8x8xf32>
    %cst_53 = arith.constant dense<0xFF800000> : vector<8x8xf32>
    %108 = vector.multi_reduction <maximumf>, %107, %cst_53 [2] : vector<8x8x8xf32> to vector<8x8xf32>
    %109 = vector.shape_cast %108 : vector<8x8xf32> to vector<8x8x1xf32>
    %110 = vector.broadcast %109 : vector<8x8x1xf32> to vector<8x8x8xf32>
    %111 = arith.subf %107, %110 : vector<8x8x8xf32>
    %112 = math.exp %111 : vector<8x8x8xf32>
    %cst_54 = arith.constant dense<0.000000e+00> : vector<8x8xf32>
    %113 = vector.multi_reduction <add>, %112, %cst_54 [2] : vector<8x8x8xf32> to vector<8x8xf32>
    %114 = vector.shape_cast %113 : vector<8x8xf32> to vector<8x8x1xf32>
    %115 = vector.broadcast %114 : vector<8x8x1xf32> to vector<8x8x8xf32>
    %116 = arith.divf %112, %115 : vector<8x8x8xf32>
    "tpu.trace_start"() <{level = 10 : i32, message = "bqk,bkd->bqd"}> : () -> ()
    %cst_55 = arith.constant dense<0.000000e+00> : vector<8x8x8xf32>
    %117 = tpu.matmul %116, %102, %cst_55 {dimension_numbers = #tpu.dot_dimension_numbers<[2], [1], [1], [2], [0, 0, 0, 1, 1, 2], [0], [0]>} : vector<8x8x8xf32>, vector<8x8x8xf32>, vector<8x8x8xf32> -> vector<8x8x8xf32>
    "tpu.trace_stop"() : () -> ()
    %118 = vector.shape_cast %117 : vector<8x8x8xf32> to vector<64x8xf32>
    %119 = vector.extract_strided_slice %52 {offsets = [0, 24], sizes = [64, 8], strides = [1, 1]} : vector<64x96xf32> to vector<64x8xf32>
    %120 = vector.shape_cast %119 : vector<64x8xf32> to vector<8x8x8xf32>
    %121 = vector.extract_strided_slice %52 {offsets = [0, 56], sizes = [64, 8], strides = [1, 1]} : vector<64x96xf32> to vector<64x8xf32>
    %122 = vector.shape_cast %121 : vector<64x8xf32> to vector<8x8x8xf32>
    %123 = vector.extract_strided_slice %52 {offsets = [0, 88], sizes = [64, 8], strides = [1, 1]} : vector<64x96xf32> to vector<64x8xf32>
    %124 = vector.shape_cast %123 : vector<64x8xf32> to vector<8x8x8xf32>
    "tpu.trace_start"() <{level = 10 : i32, message = "bqd,bkd->bqk"}> : () -> ()
    %cst_56 = arith.constant dense<0.000000e+00> : vector<8x8x8xf32>
    %125 = tpu.matmul %120, %122, %cst_56 {dimension_numbers = #tpu.dot_dimension_numbers<[2], [2], [1], [1], [0, 0, 0, 1, 1, 1], [0], [0]>} : vector<8x8x8xf32>, vector<8x8x8xf32>, vector<8x8x8xf32> -> vector<8x8x8xf32>
    "tpu.trace_stop"() : () -> ()
    %126 = vector.broadcast %37 : f32 to vector<8x8x8xf32>
    %127 = arith.mulf %125, %126 : vector<8x8x8xf32>
    %128 = vector.broadcast %35 : vector<8x1x8xf32> to vector<8x8x8xf32>
    %129 = arith.addf %127, %128 : vector<8x8x8xf32>
    %cst_57 = arith.constant dense<0xFF800000> : vector<8x8xf32>
    %130 = vector.multi_reduction <maximumf>, %129, %cst_57 [2] : vector<8x8x8xf32> to vector<8x8xf32>
    %131 = vector.shape_cast %130 : vector<8x8xf32> to vector<8x8x1xf32>
    %132 = vector.broadcast %131 : vector<8x8x1xf32> to vector<8x8x8xf32>
    %133 = arith.subf %129, %132 : vector<8x8x8xf32>
    %134 = math.exp %133 : vector<8x8x8xf32>
    %cst_58 = arith.constant dense<0.000000e+00> : vector<8x8xf32>
    %135 = vector.multi_reduction <add>, %134, %cst_58 [2] : vector<8x8x8xf32> to vector<8x8xf32>
    %136 = vector.shape_cast %135 : vector<8x8xf32> to vector<8x8x1xf32>
    %137 = vector.broadcast %136 : vector<8x8x1xf32> to vector<8x8x8xf32>
    %138 = arith.divf %134, %137 : vector<8x8x8xf32>
    "tpu.trace_start"() <{level = 10 : i32, message = "bqk,bkd->bqd"}> : () -> ()
    %cst_59 = arith.constant dense<0.000000e+00> : vector<8x8x8xf32>
    %139 = tpu.matmul %138, %124, %cst_59 {dimension_numbers = #tpu.dot_dimension_numbers<[2], [1], [1], [2], [0, 0, 0, 1, 1, 2], [0], [0]>} : vector<8x8x8xf32>, vector<8x8x8xf32>, vector<8x8x8xf32> -> vector<8x8x8xf32>
    "tpu.trace_stop"() : () -> ()
    %140 = vector.shape_cast %139 : vector<8x8x8xf32> to vector<64x8xf32>
    %141 = tpu.concatenate %74, %96, %118, %140 in 1 : vector<64x8xf32>, vector<64x8xf32>, vector<64x8xf32>, vector<64x8xf32> -> vector<64x32xf32>
    %cst_60 = arith.constant dense<0.000000e+00> : vector<64x32xf32>
    %142 = tpu.matmul %141, %40, %cst_60 {dimension_numbers = #tpu.dot_dimension_numbers<[1], [0], [0], [1], [0, 0, 1, 1], [], []>} : vector<64x32xf32>, vector<32x32xf32>, vector<64x32xf32> -> vector<64x32xf32>
    %143 = arith.addf %29, %142 : vector<64x32xf32>
    %144 = vector.broadcast %41 : vector<1x32xf32> to vector<64x32xf32>
    %145 = arith.addf %143, %144 : vector<64x32xf32>
    %cst_61 = arith.constant dense<0.000000e+00> : vector<64xf32>
    %146 = vector.multi_reduction <add>, %145, %cst_61 [1] : vector<64x32xf32> to vector<64xf32>
    %147 = vector.shape_cast %146 : vector<64xf32> to vector<64x1xf32>
    %cst_62 = arith.constant 3.200000e+01 : f32
    %148 = vector.broadcast %cst_62 : f32 to vector<64x1xf32>
    %149 = arith.divf %147, %148 : vector<64x1xf32>
    %150 = vector.broadcast %149 : vector<64x1xf32> to vector<64x32xf32>
    %151 = arith.subf %145, %150 : vector<64x32xf32>
    %152 = arith.mulf %151, %151 : vector<64x32xf32>
    %cst_63 = arith.constant dense<0.000000e+00> : vector<64xf32>
    %153 = vector.multi_reduction <add>, %152, %cst_63 [1] : vector<64x32xf32> to vector<64xf32>
    %154 = vector.shape_cast %153 : vector<64xf32> to vector<64x1xf32>
    %cst_64 = arith.constant 3.200000e+01 : f32
    %155 = vector.broadcast %cst_64 : f32 to vector<64x1xf32>
    %156 = arith.divf %154, %155 : vector<64x1xf32>
    %157 = vector.broadcast %149 : vector<64x1xf32> to vector<64x32xf32>
    %158 = arith.subf %145, %157 : vector<64x32xf32>
    %cst_65 = arith.constant 9.99999996E-13 : f32
    %159 = vector.broadcast %cst_65 : f32 to vector<64x1xf32>
    %160 = arith.addf %156, %159 : vector<64x1xf32>
    %161 = math.rsqrt %160 : vector<64x1xf32>
    %162 = vector.broadcast %161 : vector<64x1xf32> to vector<64x32xf32>
    %163 = arith.mulf %158, %162 : vector<64x32xf32>
    %164 = vector.broadcast %46 : vector<1x32xf32> to vector<64x32xf32>
    %165 = arith.mulf %163, %164 : vector<64x32xf32>
    %166 = vector.broadcast %47 : vector<1x32xf32> to vector<64x32xf32>
    %167 = arith.addf %165, %166 : vector<64x32xf32>
    %cst_66 = arith.constant dense<0.000000e+00> : vector<64x64xf32>
    %168 = tpu.matmul %167, %42, %cst_66 {dimension_numbers = #tpu.dot_dimension_numbers<[1], [0], [0], [1], [0, 0, 1, 1], [], []>} : vector<64x32xf32>, vector<32x64xf32>, vector<64x64xf32> -> vector<64x64xf32>
    %169 = vector.broadcast %43 : vector<1x64xf32> to vector<64x64xf32>
    %170 = arith.addf %168, %169 : vector<64x64xf32>
    %171 = arith.mulf %170, %170 : vector<64x64xf32>
    %172 = arith.mulf %170, %171 : vector<64x64xf32>
    %cst_67 = arith.constant 4.471500e-02 : f32
    %173 = vector.broadcast %cst_67 : f32 to vector<64x64xf32>
    %174 = arith.mulf %173, %172 : vector<64x64xf32>
    %175 = arith.addf %170, %174 : vector<64x64xf32>
    %cst_68 = arith.constant 0.797884583 : f32
    %176 = vector.broadcast %cst_68 : f32 to vector<64x64xf32>
    %177 = arith.mulf %176, %175 : vector<64x64xf32>
    %178 = math.tanh %177 : vector<64x64xf32>
    %cst_69 = arith.constant 1.000000e+00 : f32
    %179 = vector.broadcast %cst_69 : f32 to vector<64x64xf32>
    %180 = arith.addf %179, %178 : vector<64x64xf32>
    %cst_70 = arith.constant 5.000000e-01 : f32
    %181 = vector.broadcast %cst_70 : f32 to vector<64x64xf32>
    %182 = arith.mulf %181, %180 : vector<64x64xf32>
    %183 = arith.mulf %170, %182 : vector<64x64xf32>
    %cst_71 = arith.constant dense<0.000000e+00> : vector<64x32xf32>
    %184 = tpu.matmul %183, %44, %cst_71 {dimension_numbers = #tpu.dot_dimension_numbers<[1], [0], [0], [1], [0, 0, 1, 1], [], []>} : vector<64x64xf32>, vector<64x32xf32>, vector<64x32xf32> -> vector<64x32xf32>
    %185 = arith.addf %167, %184 : vector<64x32xf32>
    %186 = vector.broadcast %45 : vector<1x32xf32> to vector<64x32xf32>
    %187 = arith.addf %185, %186 : vector<64x32xf32>
    %cst_72 = arith.constant dense<0.000000e+00> : vector<64xf32>
    %188 = vector.multi_reduction <add>, %187, %cst_72 [1] : vector<64x32xf32> to vector<64xf32>
    %189 = vector.shape_cast %188 : vector<64xf32> to vector<64x1xf32>
    %cst_73 = arith.constant 3.200000e+01 : f32
    %190 = vector.broadcast %cst_73 : f32 to vector<64x1xf32>
    %191 = arith.divf %189, %190 : vector<64x1xf32>
    %192 = vector.broadcast %191 : vector<64x1xf32> to vector<64x32xf32>
    %193 = arith.subf %187, %192 : vector<64x32xf32>
    %194 = arith.mulf %193, %193 : vector<64x32xf32>
    %cst_74 = arith.constant dense<0.000000e+00> : vector<64xf32>
    %195 = vector.multi_reduction <add>, %194, %cst_74 [1] : vector<64x32xf32> to vector<64xf32>
    %196 = vector.shape_cast %195 : vector<64xf32> to vector<64x1xf32>
    %cst_75 = arith.constant 3.200000e+01 : f32
    %197 = vector.broadcast %cst_75 : f32 to vector<64x1xf32>
    %198 = arith.divf %196, %197 : vector<64x1xf32>
    %199 = vector.broadcast %191 : vector<64x1xf32> to vector<64x32xf32>
    %200 = arith.subf %187, %199 : vector<64x32xf32>
    %cst_76 = arith.constant 9.99999996E-13 : f32
    %201 = vector.broadcast %cst_76 : f32 to vector<64x1xf32>
    %202 = arith.addf %198, %201 : vector<64x1xf32>
    %203 = math.rsqrt %202 : vector<64x1xf32>
    %204 = vector.broadcast %203 : vector<64x1xf32> to vector<64x32xf32>
    %205 = arith.mulf %200, %204 : vector<64x32xf32>
    %206 = vector.broadcast %48 : vector<1x32xf32> to vector<64x32xf32>
    %207 = arith.mulf %205, %206 : vector<64x32xf32>
    %208 = vector.broadcast %49 : vector<1x32xf32> to vector<64x32xf32>
    %209 = arith.addf %207, %208 : vector<64x32xf32>
    %cst_77 = arith.constant dense<0.000000e+00> : vector<64x96xf32>
    %210 = tpu.matmul %209, %38, %cst_77 {dimension_numbers = #tpu.dot_dimension_numbers<[1], [0], [0], [1], [0, 0, 1, 1], [], []>} : vector<64x32xf32>, vector<32x96xf32>, vector<64x96xf32> -> vector<64x96xf32>
    %211 = vector.broadcast %39 : vector<1x96xf32> to vector<64x96xf32>
    %212 = arith.addf %210, %211 : vector<64x96xf32>
    %213 = vector.extract_strided_slice %212 {offsets = [0, 0], sizes = [64, 8], strides = [1, 1]} : vector<64x96xf32> to vector<64x8xf32>
    %214 = vector.shape_cast %213 : vector<64x8xf32> to vector<8x8x8xf32>
    %215 = vector.extract_strided_slice %212 {offsets = [0, 32], sizes = [64, 8], strides = [1, 1]} : vector<64x96xf32> to vector<64x8xf32>
    %216 = vector.shape_cast %215 : vector<64x8xf32> to vector<8x8x8xf32>
    %217 = vector.extract_strided_slice %212 {offsets = [0, 64], sizes = [64, 8], strides = [1, 1]} : vector<64x96xf32> to vector<64x8xf32>
    %218 = vector.shape_cast %217 : vector<64x8xf32> to vector<8x8x8xf32>
    "tpu.trace_start"() <{level = 10 : i32, message = "bqd,bkd->bqk"}> : () -> ()
    %cst_78 = arith.constant dense<0.000000e+00> : vector<8x8x8xf32>
    %219 = tpu.matmul %214, %216, %cst_78 {dimension_numbers = #tpu.dot_dimension_numbers<[2], [2], [1], [1], [0, 0, 0, 1, 1, 1], [0], [0]>} : vector<8x8x8xf32>, vector<8x8x8xf32>, vector<8x8x8xf32> -> vector<8x8x8xf32>
    "tpu.trace_stop"() : () -> ()
    %220 = vector.broadcast %37 : f32 to vector<8x8x8xf32>
    %221 = arith.mulf %219, %220 : vector<8x8x8xf32>
    %222 = vector.broadcast %35 : vector<8x1x8xf32> to vector<8x8x8xf32>
    %223 = arith.addf %221, %222 : vector<8x8x8xf32>
    %cst_79 = arith.constant dense<0xFF800000> : vector<8x8xf32>
    %224 = vector.multi_reduction <maximumf>, %223, %cst_79 [2] : vector<8x8x8xf32> to vector<8x8xf32>
    %225 = vector.shape_cast %224 : vector<8x8xf32> to vector<8x8x1xf32>
    %226 = vector.broadcast %225 : vector<8x8x1xf32> to vector<8x8x8xf32>
    %227 = arith.subf %223, %226 : vector<8x8x8xf32>
    %228 = math.exp %227 : vector<8x8x8xf32>
    %cst_80 = arith.constant dense<0.000000e+00> : vector<8x8xf32>
    %229 = vector.multi_reduction <add>, %228, %cst_80 [2] : vector<8x8x8xf32> to vector<8x8xf32>
    %230 = vector.shape_cast %229 : vector<8x8xf32> to vector<8x8x1xf32>
    %231 = vector.broadcast %230 : vector<8x8x1xf32> to vector<8x8x8xf32>
    %232 = arith.divf %228, %231 : vector<8x8x8xf32>
    "tpu.trace_start"() <{level = 10 : i32, message = "bqk,bkd->bqd"}> : () -> ()
    %cst_81 = arith.constant dense<0.000000e+00> : vector<8x8x8xf32>
    %233 = tpu.matmul %232, %218, %cst_81 {dimension_numbers = #tpu.dot_dimension_numbers<[2], [1], [1], [2], [0, 0, 0, 1, 1, 2], [0], [0]>} : vector<8x8x8xf32>, vector<8x8x8xf32>, vector<8x8x8xf32> -> vector<8x8x8xf32>
    "tpu.trace_stop"() : () -> ()
    %234 = vector.shape_cast %233 : vector<8x8x8xf32> to vector<64x8xf32>
    %235 = vector.extract_strided_slice %212 {offsets = [0, 8], sizes = [64, 8], strides = [1, 1]} : vector<64x96xf32> to vector<64x8xf32>
    %236 = vector.shape_cast %235 : vector<64x8xf32> to vector<8x8x8xf32>
    %237 = vector.extract_strided_slice %212 {offsets = [0, 40], sizes = [64, 8], strides = [1, 1]} : vector<64x96xf32> to vector<64x8xf32>
    %238 = vector.shape_cast %237 : vector<64x8xf32> to vector<8x8x8xf32>
    %239 = vector.extract_strided_slice %212 {offsets = [0, 72], sizes = [64, 8], strides = [1, 1]} : vector<64x96xf32> to vector<64x8xf32>
    %240 = vector.shape_cast %239 : vector<64x8xf32> to vector<8x8x8xf32>
    "tpu.trace_start"() <{level = 10 : i32, message = "bqd,bkd->bqk"}> : () -> ()
    %cst_82 = arith.constant dense<0.000000e+00> : vector<8x8x8xf32>
    %241 = tpu.matmul %236, %238, %cst_82 {dimension_numbers = #tpu.dot_dimension_numbers<[2], [2], [1], [1], [0, 0, 0, 1, 1, 1], [0], [0]>} : vector<8x8x8xf32>, vector<8x8x8xf32>, vector<8x8x8xf32> -> vector<8x8x8xf32>
    "tpu.trace_stop"() : () -> ()
    %242 = vector.broadcast %37 : f32 to vector<8x8x8xf32>
    %243 = arith.mulf %241, %242 : vector<8x8x8xf32>
    %244 = vector.broadcast %35 : vector<8x1x8xf32> to vector<8x8x8xf32>
    %245 = arith.addf %243, %244 : vector<8x8x8xf32>
    %cst_83 = arith.constant dense<0xFF800000> : vector<8x8xf32>
    %246 = vector.multi_reduction <maximumf>, %245, %cst_83 [2] : vector<8x8x8xf32> to vector<8x8xf32>
    %247 = vector.shape_cast %246 : vector<8x8xf32> to vector<8x8x1xf32>
    %248 = vector.broadcast %247 : vector<8x8x1xf32> to vector<8x8x8xf32>
    %249 = arith.subf %245, %248 : vector<8x8x8xf32>
    %250 = math.exp %249 : vector<8x8x8xf32>
    %cst_84 = arith.constant dense<0.000000e+00> : vector<8x8xf32>
    %251 = vector.multi_reduction <add>, %250, %cst_84 [2] : vector<8x8x8xf32> to vector<8x8xf32>
    %252 = vector.shape_cast %251 : vector<8x8xf32> to vector<8x8x1xf32>
    %253 = vector.broadcast %252 : vector<8x8x1xf32> to vector<8x8x8xf32>
    %254 = arith.divf %250, %253 : vector<8x8x8xf32>
    "tpu.trace_start"() <{level = 10 : i32, message = "bqk,bkd->bqd"}> : () -> ()
    %cst_85 = arith.constant dense<0.000000e+00> : vector<8x8x8xf32>
    %255 = tpu.matmul %254, %240, %cst_85 {dimension_numbers = #tpu.dot_dimension_numbers<[2], [1], [1], [2], [0, 0, 0, 1, 1, 2], [0], [0]>} : vector<8x8x8xf32>, vector<8x8x8xf32>, vector<8x8x8xf32> -> vector<8x8x8xf32>
    "tpu.trace_stop"() : () -> ()
    %256 = vector.shape_cast %255 : vector<8x8x8xf32> to vector<64x8xf32>
    %257 = vector.extract_strided_slice %212 {offsets = [0, 16], sizes = [64, 8], strides = [1, 1]} : vector<64x96xf32> to vector<64x8xf32>
    %258 = vector.shape_cast %257 : vector<64x8xf32> to vector<8x8x8xf32>
    %259 = vector.extract_strided_slice %212 {offsets = [0, 48], sizes = [64, 8], strides = [1, 1]} : vector<64x96xf32> to vector<64x8xf32>
    %260 = vector.shape_cast %259 : vector<64x8xf32> to vector<8x8x8xf32>
    %261 = vector.extract_strided_slice %212 {offsets = [0, 80], sizes = [64, 8], strides = [1, 1]} : vector<64x96xf32> to vector<64x8xf32>
    %262 = vector.shape_cast %261 : vector<64x8xf32> to vector<8x8x8xf32>
    "tpu.trace_start"() <{level = 10 : i32, message = "bqd,bkd->bqk"}> : () -> ()
    %cst_86 = arith.constant dense<0.000000e+00> : vector<8x8x8xf32>
    %263 = tpu.matmul %258, %260, %cst_86 {dimension_numbers = #tpu.dot_dimension_numbers<[2], [2], [1], [1], [0, 0, 0, 1, 1, 1], [0], [0]>} : vector<8x8x8xf32>, vector<8x8x8xf32>, vector<8x8x8xf32> -> vector<8x8x8xf32>
    "tpu.trace_stop"() : () -> ()
    %264 = vector.broadcast %37 : f32 to vector<8x8x8xf32>
    %265 = arith.mulf %263, %264 : vector<8x8x8xf32>
    %266 = vector.broadcast %35 : vector<8x1x8xf32> to vector<8x8x8xf32>
    %267 = arith.addf %265, %266 : vector<8x8x8xf32>
    %cst_87 = arith.constant dense<0xFF800000> : vector<8x8xf32>
    %268 = vector.multi_reduction <maximumf>, %267, %cst_87 [2] : vector<8x8x8xf32> to vector<8x8xf32>
    %269 = vector.shape_cast %268 : vector<8x8xf32> to vector<8x8x1xf32>
    %270 = vector.broadcast %269 : vector<8x8x1xf32> to vector<8x8x8xf32>
    %271 = arith.subf %267, %270 : vector<8x8x8xf32>
    %272 = math.exp %271 : vector<8x8x8xf32>
    %cst_88 = arith.constant dense<0.000000e+00> : vector<8x8xf32>
    %273 = vector.multi_reduction <add>, %272, %cst_88 [2] : vector<8x8x8xf32> to vector<8x8xf32>
    %274 = vector.shape_cast %273 : vector<8x8xf32> to vector<8x8x1xf32>
    %275 = vector.broadcast %274 : vector<8x8x1xf32> to vector<8x8x8xf32>
    %276 = arith.divf %272, %275 : vector<8x8x8xf32>
    "tpu.trace_start"() <{level = 10 : i32, message = "bqk,bkd->bqd"}> : () -> ()
    %cst_89 = arith.constant dense<0.000000e+00> : vector<8x8x8xf32>
    %277 = tpu.matmul %276, %262, %cst_89 {dimension_numbers = #tpu.dot_dimension_numbers<[2], [1], [1], [2], [0, 0, 0, 1, 1, 2], [0], [0]>} : vector<8x8x8xf32>, vector<8x8x8xf32>, vector<8x8x8xf32> -> vector<8x8x8xf32>
    "tpu.trace_stop"() : () -> ()
    %278 = vector.shape_cast %277 : vector<8x8x8xf32> to vector<64x8xf32>
    %279 = vector.extract_strided_slice %212 {offsets = [0, 24], sizes = [64, 8], strides = [1, 1]} : vector<64x96xf32> to vector<64x8xf32>
    %280 = vector.shape_cast %279 : vector<64x8xf32> to vector<8x8x8xf32>
    %281 = vector.extract_strided_slice %212 {offsets = [0, 56], sizes = [64, 8], strides = [1, 1]} : vector<64x96xf32> to vector<64x8xf32>
    %282 = vector.shape_cast %281 : vector<64x8xf32> to vector<8x8x8xf32>
    %283 = vector.extract_strided_slice %212 {offsets = [0, 88], sizes = [64, 8], strides = [1, 1]} : vector<64x96xf32> to vector<64x8xf32>
    %284 = vector.shape_cast %283 : vector<64x8xf32> to vector<8x8x8xf32>
    "tpu.trace_start"() <{level = 10 : i32, message = "bqd,bkd->bqk"}> : () -> ()
    %cst_90 = arith.constant dense<0.000000e+00> : vector<8x8x8xf32>
    %285 = tpu.matmul %280, %282, %cst_90 {dimension_numbers = #tpu.dot_dimension_numbers<[2], [2], [1], [1], [0, 0, 0, 1, 1, 1], [0], [0]>} : vector<8x8x8xf32>, vector<8x8x8xf32>, vector<8x8x8xf32> -> vector<8x8x8xf32>
    "tpu.trace_stop"() : () -> ()
    %286 = vector.broadcast %37 : f32 to vector<8x8x8xf32>
    %287 = arith.mulf %285, %286 : vector<8x8x8xf32>
    %288 = vector.broadcast %35 : vector<8x1x8xf32> to vector<8x8x8xf32>
    %289 = arith.addf %287, %288 : vector<8x8x8xf32>
    %cst_91 = arith.constant dense<0xFF800000> : vector<8x8xf32>
    %290 = vector.multi_reduction <maximumf>, %289, %cst_91 [2] : vector<8x8x8xf32> to vector<8x8xf32>
    %291 = vector.shape_cast %290 : vector<8x8xf32> to vector<8x8x1xf32>
    %292 = vector.broadcast %291 : vector<8x8x1xf32> to vector<8x8x8xf32>
    %293 = arith.subf %289, %292 : vector<8x8x8xf32>
    %294 = math.exp %293 : vector<8x8x8xf32>
    %cst_92 = arith.constant dense<0.000000e+00> : vector<8x8xf32>
    %295 = vector.multi_reduction <add>, %294, %cst_92 [2] : vector<8x8x8xf32> to vector<8x8xf32>
    %296 = vector.shape_cast %295 : vector<8x8xf32> to vector<8x8x1xf32>
    %297 = vector.broadcast %296 : vector<8x8x1xf32> to vector<8x8x8xf32>
    %298 = arith.divf %294, %297 : vector<8x8x8xf32>
    "tpu.trace_start"() <{level = 10 : i32, message = "bqk,bkd->bqd"}> : () -> ()
    %cst_93 = arith.constant dense<0.000000e+00> : vector<8x8x8xf32>
    %299 = tpu.matmul %298, %284, %cst_93 {dimension_numbers = #tpu.dot_dimension_numbers<[2], [1], [1], [2], [0, 0, 0, 1, 1, 2], [0], [0]>} : vector<8x8x8xf32>, vector<8x8x8xf32>, vector<8x8x8xf32> -> vector<8x8x8xf32>
    "tpu.trace_stop"() : () -> ()
    %300 = vector.shape_cast %299 : vector<8x8x8xf32> to vector<64x8xf32>
    %301 = tpu.concatenate %234, %256, %278, %300 in 1 : vector<64x8xf32>, vector<64x8xf32>, vector<64x8xf32>, vector<64x8xf32> -> vector<64x32xf32>
    %cst_94 = arith.constant dense<0.000000e+00> : vector<64x32xf32>
    %302 = tpu.matmul %301, %40, %cst_94 {dimension_numbers = #tpu.dot_dimension_numbers<[1], [0], [0], [1], [0, 0, 1, 1], [], []>} : vector<64x32xf32>, vector<32x32xf32>, vector<64x32xf32> -> vector<64x32xf32>
    %303 = arith.addf %209, %302 : vector<64x32xf32>
    %304 = vector.broadcast %41 : vector<1x32xf32> to vector<64x32xf32>
    %305 = arith.addf %303, %304 : vector<64x32xf32>
    %cst_95 = arith.constant dense<0.000000e+00> : vector<64xf32>
    %306 = vector.multi_reduction <add>, %305, %cst_95 [1] : vector<64x32xf32> to vector<64xf32>
    %307 = vector.shape_cast %306 : vector<64xf32> to vector<64x1xf32>
    %cst_96 = arith.constant 3.200000e+01 : f32
    %308 = vector.broadcast %cst_96 : f32 to vector<64x1xf32>
    %309 = arith.divf %307, %308 : vector<64x1xf32>
    %310 = vector.broadcast %309 : vector<64x1xf32> to vector<64x32xf32>
    %311 = arith.subf %305, %310 : vector<64x32xf32>
    %312 = arith.mulf %311, %311 : vector<64x32xf32>
    %cst_97 = arith.constant dense<0.000000e+00> : vector<64xf32>
    %313 = vector.multi_reduction <add>, %312, %cst_97 [1] : vector<64x32xf32> to vector<64xf32>
    %314 = vector.shape_cast %313 : vector<64xf32> to vector<64x1xf32>
    %cst_98 = arith.constant 3.200000e+01 : f32
    %315 = vector.broadcast %cst_98 : f32 to vector<64x1xf32>
    %316 = arith.divf %314, %315 : vector<64x1xf32>
    %317 = vector.broadcast %309 : vector<64x1xf32> to vector<64x32xf32>
    %318 = arith.subf %305, %317 : vector<64x32xf32>
    %cst_99 = arith.constant 9.99999996E-13 : f32
    %319 = vector.broadcast %cst_99 : f32 to vector<64x1xf32>
    %320 = arith.addf %316, %319 : vector<64x1xf32>
    %321 = math.rsqrt %320 : vector<64x1xf32>
    %322 = vector.broadcast %321 : vector<64x1xf32> to vector<64x32xf32>
    %323 = arith.mulf %318, %322 : vector<64x32xf32>
    %324 = vector.broadcast %46 : vector<1x32xf32> to vector<64x32xf32>
    %325 = arith.mulf %323, %324 : vector<64x32xf32>
    %326 = vector.broadcast %47 : vector<1x32xf32> to vector<64x32xf32>
    %327 = arith.addf %325, %326 : vector<64x32xf32>
    %cst_100 = arith.constant dense<0.000000e+00> : vector<64x64xf32>
    %328 = tpu.matmul %327, %42, %cst_100 {dimension_numbers = #tpu.dot_dimension_numbers<[1], [0], [0], [1], [0, 0, 1, 1], [], []>} : vector<64x32xf32>, vector<32x64xf32>, vector<64x64xf32> -> vector<64x64xf32>
    %329 = vector.broadcast %43 : vector<1x64xf32> to vector<64x64xf32>
    %330 = arith.addf %328, %329 : vector<64x64xf32>
    %331 = arith.mulf %330, %330 : vector<64x64xf32>
    %332 = arith.mulf %330, %331 : vector<64x64xf32>
    %cst_101 = arith.constant 4.471500e-02 : f32
    %333 = vector.broadcast %cst_101 : f32 to vector<64x64xf32>
    %334 = arith.mulf %333, %332 : vector<64x64xf32>
    %335 = arith.addf %330, %334 : vector<64x64xf32>
    %cst_102 = arith.constant 0.797884583 : f32
    %336 = vector.broadcast %cst_102 : f32 to vector<64x64xf32>
    %337 = arith.mulf %336, %335 : vector<64x64xf32>
    %338 = math.tanh %337 : vector<64x64xf32>
    %cst_103 = arith.constant 1.000000e+00 : f32
    %339 = vector.broadcast %cst_103 : f32 to vector<64x64xf32>
    %340 = arith.addf %339, %338 : vector<64x64xf32>
    %cst_104 = arith.constant 5.000000e-01 : f32
    %341 = vector.broadcast %cst_104 : f32 to vector<64x64xf32>
    %342 = arith.mulf %341, %340 : vector<64x64xf32>
    %343 = arith.mulf %330, %342 : vector<64x64xf32>
    %cst_105 = arith.constant dense<0.000000e+00> : vector<64x32xf32>
    %344 = tpu.matmul %343, %44, %cst_105 {dimension_numbers = #tpu.dot_dimension_numbers<[1], [0], [0], [1], [0, 0, 1, 1], [], []>} : vector<64x64xf32>, vector<64x32xf32>, vector<64x32xf32> -> vector<64x32xf32>
    %345 = arith.addf %327, %344 : vector<64x32xf32>
    %346 = vector.broadcast %45 : vector<1x32xf32> to vector<64x32xf32>
    %347 = arith.addf %345, %346 : vector<64x32xf32>
    %cst_106 = arith.constant dense<0.000000e+00> : vector<64xf32>
    %348 = vector.multi_reduction <add>, %347, %cst_106 [1] : vector<64x32xf32> to vector<64xf32>
    %349 = vector.shape_cast %348 : vector<64xf32> to vector<64x1xf32>
    %cst_107 = arith.constant 3.200000e+01 : f32
    %350 = vector.broadcast %cst_107 : f32 to vector<64x1xf32>
    %351 = arith.divf %349, %350 : vector<64x1xf32>
    %352 = vector.broadcast %351 : vector<64x1xf32> to vector<64x32xf32>
    %353 = arith.subf %347, %352 : vector<64x32xf32>
    %354 = arith.mulf %353, %353 : vector<64x32xf32>
    %cst_108 = arith.constant dense<0.000000e+00> : vector<64xf32>
    %355 = vector.multi_reduction <add>, %354, %cst_108 [1] : vector<64x32xf32> to vector<64xf32>
    %356 = vector.shape_cast %355 : vector<64xf32> to vector<64x1xf32>
    %cst_109 = arith.constant 3.200000e+01 : f32
    %357 = vector.broadcast %cst_109 : f32 to vector<64x1xf32>
    %358 = arith.divf %356, %357 : vector<64x1xf32>
    %359 = vector.broadcast %351 : vector<64x1xf32> to vector<64x32xf32>
    %360 = arith.subf %347, %359 : vector<64x32xf32>
    %cst_110 = arith.constant 9.99999996E-13 : f32
    %361 = vector.broadcast %cst_110 : f32 to vector<64x1xf32>
    %362 = arith.addf %358, %361 : vector<64x1xf32>
    %363 = math.rsqrt %362 : vector<64x1xf32>
    %364 = vector.broadcast %363 : vector<64x1xf32> to vector<64x32xf32>
    %365 = arith.mulf %360, %364 : vector<64x32xf32>
    %366 = vector.broadcast %48 : vector<1x32xf32> to vector<64x32xf32>
    %367 = arith.mulf %365, %366 : vector<64x32xf32>
    %368 = vector.broadcast %49 : vector<1x32xf32> to vector<64x32xf32>
    %369 = arith.addf %367, %368 : vector<64x32xf32>
    %370 = vector.shape_cast %369 : vector<64x32xf32> to vector<8x8x32xf32>
    %371 = vector.extract_strided_slice %370 {offsets = [0, 0, 0], sizes = [8, 1, 32], strides = [1, 1, 1]} : vector<8x8x32xf32> to vector<8x1x32xf32>
    %372 = vector.shape_cast %371 : vector<8x1x32xf32> to vector<8x32xf32>
    %c0_111 = arith.constant 0 : index
    %c0_112 = arith.constant 0 : index
    %373 = vector.load %arg16[%c0_111, %c0_112] : memref<32x32xf32, #tpu.memory_space<vmem>>, vector<32x32xf32>
    %cst_113 = arith.constant dense<0.000000e+00> : vector<8x32xf32>
    %374 = tpu.matmul %372, %373, %cst_113 {dimension_numbers = #tpu.dot_dimension_numbers<[1], [0], [0], [1], [0, 0, 1, 1], [], []>} : vector<8x32xf32>, vector<32x32xf32>, vector<8x32xf32> -> vector<8x32xf32>
    %c0_114 = arith.constant 0 : index
    %c0_115 = arith.constant 0 : index
    %375 = vector.load %arg17[%c0_114, %c0_115] : memref<1x32xf32, #tpu.memory_space<vmem>>, vector<1x32xf32>
    %376 = vector.broadcast %375 : vector<1x32xf32> to vector<8x32xf32>
    %377 = arith.addf %374, %376 : vector<8x32xf32>
    %378 = math.tanh %377 : vector<8x32xf32>
    %c0_116 = arith.constant 0 : index
    %c0_117 = arith.constant 0 : index
    %379 = vector.load %arg18[%c0_116, %c0_117] : memref<8x32xf32, #tpu.memory_space<vmem>>, vector<8x32xf32>
    tpu.vector_store %arg18[%c0_116, %c0_117], %378 {strides = array<i32>} : memref<8x32xf32, #tpu.memory_space<vmem>>, vector<8x32xf32>,
    return
  }
  func.func @transform_0(%arg0: i32) -> (i32, i32) {
    %c0_i32 = arith.constant 0 : i32
    %c0_i32_0 = arith.constant 0 : i32
    return %arg0, %c0_i32 : i32, i32
  }
  func.func @transform_1(%arg0: i32) -> (i32, i32) {
    %c0_i32 = arith.constant 0 : i32
    %c0_i32_0 = arith.constant 0 : i32
    return %arg0, %c0_i32 : i32, i32
  }
  func.func @transform_2(%arg0: i32) -> (i32, i32) {
    %c0_i32 = arith.constant 0 : i32
    %c0_i32_0 = arith.constant 0 : i32
    %c0_i32_1 = arith.constant 0 : i32
    return %c0_i32, %c0_i32_0 : i32, i32
  }
  func.func @transform_3(%arg0: i32) -> (i32, i32) {
    %c0_i32 = arith.constant 0 : i32
    %c0_i32_0 = arith.constant 0 : i32
    %c0_i32_1 = arith.constant 0 : i32
    return %c0_i32, %c0_i32_0 : i32, i32
  }
  func.func @transform_4(%arg0: i32) -> (i32, i32) {
    %c0_i32 = arith.constant 0 : i32
    %c0_i32_0 = arith.constant 0 : i32
    %c0_i32_1 = arith.constant 0 : i32
    return %c0_i32, %c0_i32_0 : i32, i32
  }
  func.func @transform_5(%arg0: i32) -> (i32, i32) {
    %c0_i32 = arith.constant 0 : i32
    %c0_i32_0 = arith.constant 0 : i32
    %c0_i32_1 = arith.constant 0 : i32
    return %c0_i32, %c0_i32_0 : i32, i32
  }
  func.func @transform_6(%arg0: i32) -> (i32, i32) {
    %c0_i32 = arith.constant 0 : i32
    %c0_i32_0 = arith.constant 0 : i32
    %c0_i32_1 = arith.constant 0 : i32
    return %c0_i32, %c0_i32_0 : i32, i32
  }
  func.func @transform_7(%arg0: i32) -> (i32, i32) {
    %c0_i32 = arith.constant 0 : i32
    %c0_i32_0 = arith.constant 0 : i32
    %c0_i32_1 = arith.constant 0 : i32
    return %c0_i32, %c0_i32_0 : i32, i32
  }
  func.func @transform_8(%arg0: i32) -> (i32, i32) {
    %c0_i32 = arith.constant 0 : i32
    %c0_i32_0 = arith.constant 0 : i32
    %c0_i32_1 = arith.constant 0 : i32
    return %c0_i32, %c0_i32_0 : i32, i32
  }
  func.func @transform_9(%arg0: i32) -> (i32, i32) {
    %c0_i32 = arith.constant 0 : i32
    %c0_i32_0 = arith.constant 0 : i32
    %c0_i32_1 = arith.constant 0 : i32
    return %c0_i32, %c0_i32_0 : i32, i32
  }
  func.func @transform_10(%arg0: i32) -> (i32, i32) {
    %c0_i32 = arith.constant 0 : i32
    %c0_i32_0 = arith.constant 0 : i32
    %c0_i32_1 = arith.constant 0 : i32
    return %c0_i32, %c0_i32_0 : i32, i32
  }
  func.func @transform_11(%arg0: i32) -> (i32, i32) {
    %c0_i32 = arith.constant 0 : i32
    %c0_i32_0 = arith.constant 0 : i32
    %c0_i32_1 = arith.constant 0 : i32
    return %c0_i32, %c0_i32_0 : i32, i32
  }
  func.func @transform_12(%arg0: i32) -> (i32, i32) {
    %c0_i32 = arith.constant 0 : i32
    %c0_i32_0 = arith.constant 0 : i32
    %c0_i32_1 = arith.constant 0 : i32
    return %c0_i32, %c0_i32_0 : i32, i32
  }
  func.func @transform_13(%arg0: i32) -> (i32, i32) {
    %c0_i32 = arith.constant 0 : i32
    %c0_i32_0 = arith.constant 0 : i32
    %c0_i32_1 = arith.constant 0 : i32
    return %c0_i32, %c0_i32_0 : i32, i32
  }
  func.func @transform_14(%arg0: i32) -> (i32, i32) {
    %c0_i32 = arith.constant 0 : i32
    %c0_i32_0 = arith.constant 0 : i32
    %c0_i32_1 = arith.constant 0 : i32
    return %c0_i32, %c0_i32_0 : i32, i32
  }
  func.func @transform_15(%arg0: i32) -> (i32, i32) {
    %c0_i32 = arith.constant 0 : i32
    %c0_i32_0 = arith.constant 0 : i32
    %c0_i32_1 = arith.constant 0 : i32
    return %c0_i32, %c0_i32_0 : i32, i32
  }
  func.func @transform_16(%arg0: i32) -> (i32, i32) {
    %c0_i32 = arith.constant 0 : i32
    %c0_i32_0 = arith.constant 0 : i32
    %c0_i32_1 = arith.constant 0 : i32
    return %c0_i32, %c0_i32_0 : i32, i32
  }
  func.func @transform_17(%arg0: i32) -> (i32, i32) {
    %c0_i32 = arith.constant 0 : i32
    %c0_i32_0 = arith.constant 0 : i32
    return %arg0, %c0_i32 : i32, i32
  }
}

module attributes {stable_mosaic.version = 11 : i64} {
  func.func @_head_kernel(%arg0: memref<32x32xf32, #tpu.memory_space<vmem>>, %arg1: memref<160x24xf32, #tpu.memory_space<vmem>>, %arg2: memref<1x24xf32, #tpu.memory_space<vmem>>, %arg3: memref<12x24xf32, #tpu.memory_space<vmem>>, %arg4: memref<24x4xf32, #tpu.memory_space<vmem>>, %arg5: memref<1x4xf32, #tpu.memory_space<vmem>>, %arg6: memref<2x4xf32, #tpu.memory_space<vmem>>, %arg7: memref<2x24xf32, #tpu.memory_space<vmem>>) attributes {dimension_semantics = [], scalar_prefetch = 0 : i64, scratch_operands = 0 : i64, tpu.core_type = #tpu.core_type<tc>} {
    %c0 = arith.constant 0 : index
    %c0_0 = arith.constant 0 : index
    %0 = vector.load %arg0[%c0, %c0_0] : memref<32x32xf32, #tpu.memory_space<vmem>>, vector<32x32xf32>
    %1 = vector.extract_strided_slice %0 {offsets = [0, 0], sizes = [12, 32], strides = [1, 1]} : vector<32x32xf32> to vector<12x32xf32>
    %2 = vector.extract_strided_slice %0 {offsets = [1, 0], sizes = [12, 32], strides = [1, 1]} : vector<32x32xf32> to vector<12x32xf32>
    %3 = vector.extract_strided_slice %0 {offsets = [2, 0], sizes = [12, 32], strides = [1, 1]} : vector<32x32xf32> to vector<12x32xf32>
    %4 = vector.extract_strided_slice %0 {offsets = [3, 0], sizes = [12, 32], strides = [1, 1]} : vector<32x32xf32> to vector<12x32xf32>
    %5 = vector.extract_strided_slice %0 {offsets = [4, 0], sizes = [12, 32], strides = [1, 1]} : vector<32x32xf32> to vector<12x32xf32>
    %6 = tpu.concatenate %1, %2, %3, %4, %5 in 1 : vector<12x32xf32>, vector<12x32xf32>, vector<12x32xf32>, vector<12x32xf32>, vector<12x32xf32> -> vector<12x160xf32>
    %7 = vector.extract_strided_slice %0 {offsets = [16, 0], sizes = [12, 32], strides = [1, 1]} : vector<32x32xf32> to vector<12x32xf32>
    %8 = vector.extract_strided_slice %0 {offsets = [17, 0], sizes = [12, 32], strides = [1, 1]} : vector<32x32xf32> to vector<12x32xf32>
    %9 = vector.extract_strided_slice %0 {offsets = [18, 0], sizes = [12, 32], strides = [1, 1]} : vector<32x32xf32> to vector<12x32xf32>
    %10 = vector.extract_strided_slice %0 {offsets = [19, 0], sizes = [12, 32], strides = [1, 1]} : vector<32x32xf32> to vector<12x32xf32>
    %11 = vector.extract_strided_slice %0 {offsets = [20, 0], sizes = [12, 32], strides = [1, 1]} : vector<32x32xf32> to vector<12x32xf32>
    %12 = tpu.concatenate %7, %8, %9, %10, %11 in 1 : vector<12x32xf32>, vector<12x32xf32>, vector<12x32xf32>, vector<12x32xf32>, vector<12x32xf32> -> vector<12x160xf32>
    %13 = tpu.concatenate %6, %12 in 0 : vector<12x160xf32>, vector<12x160xf32> -> vector<24x160xf32>
    %c0_1 = arith.constant 0 : index
    %c0_2 = arith.constant 0 : index
    %14 = vector.load %arg1[%c0_1, %c0_2] : memref<160x24xf32, #tpu.memory_space<vmem>>, vector<160x24xf32>
    %cst = arith.constant dense<0.000000e+00> : vector<24x24xf32>
    %15 = tpu.matmul %13, %14, %cst {dimension_numbers = #tpu.dot_dimension_numbers<[1], [0], [0], [1], [0, 0, 1, 1], [], []>} : vector<24x160xf32>, vector<160x24xf32>, vector<24x24xf32> -> vector<24x24xf32>
    %c0_3 = arith.constant 0 : index
    %c0_4 = arith.constant 0 : index
    %16 = vector.load %arg2[%c0_3, %c0_4] : memref<1x24xf32, #tpu.memory_space<vmem>>, vector<1x24xf32>
    %17 = vector.broadcast %16 : vector<1x24xf32> to vector<24x24xf32>
    %18 = arith.addf %15, %17 : vector<24x24xf32>
    %cst_5 = arith.constant 0.000000e+00 : f32
    %19 = vector.broadcast %cst_5 : f32 to vector<24x24xf32>
    %20 = arith.maximumf %18, %19 : vector<24x24xf32>
    %c0_6 = arith.constant 0 : index
    %c0_7 = arith.constant 0 : index
    %21 = vector.load %arg3[%c0_6, %c0_7] : memref<12x24xf32, #tpu.memory_space<vmem>>, vector<12x24xf32>
    %22 = vector.extract_strided_slice %20 {offsets = [0, 0], sizes = [12, 24], strides = [1, 1]} : vector<24x24xf32> to vector<12x24xf32>
    %23 = arith.mulf %22, %21 : vector<12x24xf32>
    %cst_8 = arith.constant dense<0xFF800000> : vector<24xf32>
    %24 = vector.multi_reduction <maximumf>, %23, %cst_8 [0] : vector<12x24xf32> to vector<24xf32>
    %25 = vector.shape_cast %24 : vector<24xf32> to vector<1x24xf32>
    %26 = vector.extract_strided_slice %20 {offsets = [12, 0], sizes = [12, 24], strides = [1, 1]} : vector<24x24xf32> to vector<12x24xf32>
    %27 = arith.mulf %26, %21 : vector<12x24xf32>
    %cst_9 = arith.constant dense<0xFF800000> : vector<24xf32>
    %28 = vector.multi_reduction <maximumf>, %27, %cst_9 [0] : vector<12x24xf32> to vector<24xf32>
    %29 = vector.shape_cast %28 : vector<24xf32> to vector<1x24xf32>
    %30 = tpu.concatenate %25, %29 in 0 : vector<1x24xf32>, vector<1x24xf32> -> vector<2x24xf32>
    %c0_10 = arith.constant 0 : index
    %c0_11 = arith.constant 0 : index
    %31 = vector.load %arg7[%c0_10, %c0_11] : memref<2x24xf32, #tpu.memory_space<vmem>>, vector<2x24xf32>
    tpu.vector_store %arg7[%c0_10, %c0_11], %30 {strides = array<i32>} : memref<2x24xf32, #tpu.memory_space<vmem>>, vector<2x24xf32>,
    %c0_12 = arith.constant 0 : index
    %c0_13 = arith.constant 0 : index
    %32 = vector.load %arg4[%c0_12, %c0_13] : memref<24x4xf32, #tpu.memory_space<vmem>>, vector<24x4xf32>
    %cst_14 = arith.constant dense<0.000000e+00> : vector<2x4xf32>
    %33 = tpu.matmul %30, %32, %cst_14 {dimension_numbers = #tpu.dot_dimension_numbers<[1], [0], [0], [1], [0, 0, 1, 1], [], []>} : vector<2x24xf32>, vector<24x4xf32>, vector<2x4xf32> -> vector<2x4xf32>
    %c0_15 = arith.constant 0 : index
    %c0_16 = arith.constant 0 : index
    %34 = vector.load %arg5[%c0_15, %c0_16] : memref<1x4xf32, #tpu.memory_space<vmem>>, vector<1x4xf32>
    %35 = vector.broadcast %34 : vector<1x4xf32> to vector<2x4xf32>
    %36 = arith.addf %33, %35 : vector<2x4xf32>
    %c0_17 = arith.constant 0 : index
    %c0_18 = arith.constant 0 : index
    %37 = vector.load %arg6[%c0_17, %c0_18] : memref<2x4xf32, #tpu.memory_space<vmem>>, vector<2x4xf32>
    tpu.vector_store %arg6[%c0_17, %c0_18], %36 {strides = array<i32>} : memref<2x4xf32, #tpu.memory_space<vmem>>, vector<2x4xf32>,
    return
  }
}

</mosaic_0001>

<bundles_post_ra>
// kernel: hierarchical_albert_forward.3
= control target key start
LH: loop header
LB: loop body
LE: loop exit
PB: predicated region body
PF: predicated region fallthrough
CT: control target
= control target key end

     0   :  { %13 = vsyncpa [#allocation3], 0  ;;  %vm33_vm0 = vcmask 1046528   ;;  %vm43_vm1 = vcmask 1045504   ;;  %vm53_vm2 = vcmask 1044480   ;;  %s529_s16 = smov 32   ;;  %s757_s0 = inlined_call_operand.vmem [shape: f32[32,32], index: 0, kind: input, shape index: {}]   ;;  %s758_s1 = inlined_call_operand.vmem [shape: f32[160,24], index: 1, kind: input, shape index: {}]   ;;  %s759_s2 = inlined_call_operand.vmem [shape: f32[1,24], index: 2, kind: input, shape index: {}]   ;;  %s760_s3 = inlined_call_operand.vmem [shape: f32[12,24], index: 3, kind: input, shape index: {}]   ;;  %s761_s4 = inlined_call_operand.vmem [shape: f32[24,4], index: 4, kind: input, shape index: {}]   ;;  %s762_s5 = inlined_call_operand.vmem [shape: f32[1,4], index: 5, kind: input, shape index: {}]   ;;  %s763_s6 = inlined_call_operand.hbm [shape: f32[2,4], index: 6, kind: output, shape index: {0}]   ;;  %s764_s7 = inlined_call_operand.hbm [shape: f32[2,24], index: 7, kind: output, shape index: {1}]  }
   0x1   :  { %v580_v0 = vld [vmem:[%s757_s0] sm:$0xff]  ;;  %v585_v1 = vld [vmem:[%s757_s0 + $0x8] sm:$0xff]  ;;  %v590_v2 = vld [vmem:[%s757_s0 + $0x10] sm:$0xff]  ;;  %v530_v29 = vmov 0.0|0.0  }
   0x2   :  { %v595_v3 = vld [vmem:[%s757_s0 + $0x18] sm:$0xff]  ;;  %v34_v4 = vrot.slane %v580_v0, 1  ;;  %v35_v5 = vrot.slane %v585_v1, 1  ;;  %v79_v6 = vrot.slane %v590_v2, 1  ;;  %v44_v7 = vrot.slane %v580_v0, 2  ;;  %v128_v15 = vld [vmem:[%s758_s1] sm:$0xff]  ;;  %415 = vmatprep.subr.bf16.mxu0 %v530_v29  ;;  %445 = vmatprep.subr.bf16.mxu1 %v530_v29 }
   0x3   :  { %v80_v8 = vrot.slane %v595_v3, 1  ;;  %v45_v9 = vrot.slane %v585_v1, 2  ;;  %v88_v10 = vrot.slane %v590_v2, 2  ;;  %v89_v11 = vrot.slane %v595_v3, 2  ;;  %v129_v16 = vld [vmem:[%s758_s1 + $0x8] sm:$0xff]  ;;  %v130_v23 = vld [vmem:[%s758_s1 + $0x10] sm:$0xff] }
   0x4   :  { %v36_v12 = vsel %vm33_vm0, %v34_v4, %v35_v5  ;;  %v54_v13 = vrot.slane %v580_v0, 3  ;;  %v55_v14 = vrot.slane %v585_v1, 3  ;;  %v97_v22 = vrot.slane %v590_v2, 3  ;;  %v131_v24 = vld [vmem:[%s758_s1 + $0x18] sm:$0xff]  ;;  %v132_v33 = vld [vmem:[%s758_s1 + $0x20] sm:$0xff]  ;;  %v133_v34 = vld [vmem:[%s758_s1 + $0x28] sm:$0xff] }
   0x5   :  { %v81_v17 = vsel %vm33_vm0, %v79_v6, %v80_v8  ;;  %v456_v18 = vpack.i.bf16 %v80_v8, %v35_v5  ;;  %v46_v19 = vsel %vm43_vm1, %v44_v7, %v45_v9  ;;  %v90_v20 = vsel %vm43_vm1, %v88_v10, %v89_v11 }
   0x6   :  { %v461_v21 = vpack.i.bf16 %v81_v17, %v36_v12  ;;  %v56_v25 = vsel %vm53_vm2, %v54_v13, %v55_v14  ;;  %v98_v26 = vrot.slane %v595_v3, 3  ;;  %v416_v27 = vpack.c.bf16 %v129_v16, %v128_v15 }
   0x7   :  { %457 = vrot.lane.b32.xlu1 %v456_v18, %s529_s16  ;;  %v466_v28 = vpack.i.bf16 %v90_v20, %v46_v19  ;;  %v419_v31 = vpack.c.bf16 %v131_v24, %v130_v23 }
   0x8   :  { %462 = vrot.lane.b32.xlu0 %v461_v21, %s529_s16  ;;  %v99_v30 = vsel %vm53_vm2, %v97_v22, %v98_v26  ;;  %417 = vmatpush1.bf16.msra.mxu0 %v416_v27 }
   0x9   :  { %v476_v32 = vpack.i.bf16 %v99_v30, %v56_v25  ;;  %418 = vmatprep.subr.bf16.mxu0 %v530_v29 }
   0xa   :  { %14 = vsyncpa [#allocation5], 0  ;;  %vm63_vm3 = vcmask 1043456   ;;  %v64_v35 = vrot.slane %v580_v0, 4  ;;  %v65_v36 = vrot.slane %v585_v1, 4  ;;  %s531_s21 = smov 64   ;;  %v471_v37 = vpack.i.bf16 %v89_v11, %v45_v9 }
   0xb   :  { %s532_s22 = smov 96   ;;  %v422_v38 = vpack.c.bf16 %v133_v34, %v132_v33  ;;  %vm68_vm4 = vcmask 261120   ;;  %v134_v40 = vld [vmem:[%s758_s1 + $0x30] sm:$0xff]  ;;  %v135_v41 = vld [vmem:[%s758_s1 + $0x38] sm:$0xff]  ;;  %v136_v43 = vld [vmem:[%s758_s1 + $0x40] sm:$0xff]  ;;  %v106_v61 = vrot.slane %v590_v2, 4 }
   0xc   :  { %467 = vrot.lane.b32.xlu0 %v466_v28, %s531_s21  ;;  %477 = vrot.lane.b32.xlu1 %v476_v32, %s532_s22  ;;  %v66_v39 = vsel %vm63_vm3, %v64_v35, %v65_v36  ;;  %v425_v42 = vpack.c.bf16 %v135_v41, %v134_v40  ;;  %v137_v44 = vld [vmem:[%s758_s1 + $0x48] sm:$0xff]  ;;  %v138_v46 = vld [vmem:[%s758_s1 + $0x50] sm:$0xff]  ;;  %v107_v62 = vrot.slane %v595_v3, 4  ;;  %vm71_vm5 = vcmask 523264  }
   0xd   :  { %420 = vmatpush1.bf16.msra.mxu0 %v419_v31  ;;  %397 = vmatprep.mubr.msk.f32.mxu0 %vm68_vm4, %v66_v39  ;;  %v428_v45 = vpack.c.bf16 %v137_v44, %v136_v43  ;;  %v139_v47 = vld [vmem:[%s758_s1 + $0x58] sm:$0xff]  ;;  %v140_v49 = vld [vmem:[%s758_s1 + $0x60] sm:$0xff]  ;;  %v141_v50 = vld [vmem:[%s758_s1 + $0x68] sm:$0xff]  ;;  %vm74_vm6 = vcmask 785408   ;;  %vm533_vm7 = vmmov 0   ;;  %v534_v40 = vmov 0.0  }
   0xe   :  { %421 = vmatprep.subr.bf16.mxu0 %v530_v29  ;;  %v431_v48 = vpack.c.bf16 %v139_v47, %v138_v46  ;;  %v434_v51 = vpack.c.bf16 %v141_v50, %v140_v49  ;;  %v142_v52 = vld [vmem:[%s758_s1 + $0x70] sm:$0xff]  ;;  %v143_v53 = vld [vmem:[%s758_s1 + $0x78] sm:$0xff]  ;;  %v144_v55 = vld [vmem:[%s758_s1 + $0x80] sm:$0xff]  ;;  %v108_v5 = vsel %vm63_vm3, %v106_v61, %v107_v62  ;;  %v121_v25 = vrot.slane %v107_v62, 4  ;;  %412 = vmatprep.mubr.msk.f32.mxu1 %vm533_vm7, %v534_v40 }
   0xf   :  { %v437_v54 = vpack.c.bf16 %v143_v53, %v142_v52  ;;  %v145_v56 = vld [vmem:[%s758_s1 + $0x88] sm:$0xff]  ;;  %v146_v58 = vld [vmem:[%s758_s1 + $0x90] sm:$0xff]  ;;  %v147_v59 = vld [vmem:[%s758_s1 + $0x98] sm:$0xff]  ;;  %v118_v8 = vrot.slane %v108_v5, 4  ;;  %vm251_vm8 = vcmask 191488   ;;  %vm249_vm9 = vcmask 195584  }
  0x10   :  { %472 = vrot.lane.b32.xlu0 %v471_v37, %s531_s21  ;;  %59 = vrot.lane.b32.xlu1 %v55_v14, %s532_s22  ;;  %v440_v57 = vpack.c.bf16 %v145_v56, %v144_v55  ;;  %v443_v60 = vpack.c.bf16 %v147_v59, %v146_v58  ;;  %v283_v37 = vld [vmem:[%s761_s4] sm:$0xff]  ;;  %v285_v41 = vld [vmem:[%s761_s4 + $0x10] sm:$0xff]  ;;  %vm269_vm10 = vcmask 195588   ;;  %vm279_vm11 = vcmask 1040384  }
  0x11   :  { %423 = vmatpush1.bf16.msra.mxu0 %v422_v38  ;;  %v127_v21 = vsel %vm63_vm3, %v65_v36, %v118_v8  ;;  %v122_v34 = vsel %vm63_vm3, %v118_v8, %v121_v25  ;;  %v284_v38 = vld [vmem:[%s761_s4 + $0x8] sm:$0xff]  ;;  %vm281_vm12 = vcmask 189440  }
  0x12   :  { %424 = vmatprep.subr.bf16.mxu0 %v530_v29  ;;  %v446_v39 = vpack.c.bf16 %v284_v38, %v283_v37  ;;  %v246_v47 = vld [vmem:[%s760_s3 + $0x8] sm:$0xf] }
  0x13   :  { %v263_v52 = vrot.slane %v246_v47, 4 }
  0x14   :  { %102 = vrot.lane.b32.xlu0 %v98_v26, %s532_s22  ;;  %447 = vmatpush3.bf16.msra.mxu1 %v446_v39 }
  0x15   :  { %426 = vmatpush1.bf16.msra.mxu0 %v425_v42  ;;  %410 = vmatprep.subr.mxu1 %v534_v40  ;;  %v396_v42 = vld [vmem:[%s759_s2] ss:$0 sm:$0xff]  ;;  %s535_s2 = smov [#allocation4]  }
  0x16   :  { %427 = vmatprep.subr.bf16.mxu0 %v530_v29 }
  0x18   :  { %411 = vmatpush3.msra.mxu1 %v285_v41 }
  0x19   :  { %429 = vmatpush1.bf16.msra.mxu0 %v428_v45 }
  0x1a   :  { %430 = vmatprep.subr.bf16.mxu0 %v530_v29 }
  0x1d   :  { %432 = vmatpush1.bf16.msra.mxu0 %v431_v48  ;;  %v245_v48 = vld [vmem:[%s760_s3] sm:$0xff]  ;;  %s384_s3 = sshll.u32 %s535_s2, 4  ;;  %s385_s3 = int_to_ptr.vmem [resolvable:$true] %s384_s3 }
  0x1e   :  { %433 = vmatprep.subr.bf16.mxu0 %v530_v29  ;;  %v262_v55 = vrot.slane %v245_v48, 4  ;;  %s481_s4 = scalar_lea.vmem %s385_s3, 32  ;;  %p486_p1 = scmp.lt.s32.totalorder %s385_s3, %s385_s3 }
  0x1f   :  { %p482_p0 = scmp.ne.s32.totalorder %s385_s3, %s481_s4  ;;  %p487_p2 = scmp.lt.s32.totalorder %s481_s4, %s481_s4 }
  0x21   :  { %435 = vmatpush1.bf16.msra.mxu0 %v434_v51  ;;  %p488_p3 = por %p487_p2, %p486_p1 }
  0x22   :  { %436 = vmatprep.subr.bf16.mxu0 %v530_v29 }
  0x23   :  { %p489_p4 = pnand %p488_p3, %p482_p0 }
  0x25   :  { %438 = vmatpush1.bf16.msra.mxu0 %v437_v54 }
  0x26   :  { %439 = vmatprep.subr.bf16.mxu0 %v530_v29 }
  0x29   :  { %441 = vmatpush1.bf16.msra.mxu0 %v440_v57 }
  0x2a   :  { %442 = vmatprep.subr.bf16.mxu0 %v530_v29 }
  0x2d   :  { %444 = vmatpush1.bf16.msra.mxu0 %v443_v60  ;;  %v264_v60 = vsel %vm63_vm3, %v262_v55, %v263_v52 }
  0x79   :  { %v458_v63 = vpop.permute.xlu1 %457 }
  0x7a   :  { %v463_v4 = vpop.permute.xlu0 %462  ;;  %v460_v16 = vunpack.i.h.bf16 %v458_v63  ;;  %v459_v17 = vunpack.i.l.bf16 %v458_v63 }
  0x7b   :  { %v465_v6 = vunpack.i.h.bf16 %v463_v4  ;;  %v464_v7 = vunpack.i.l.bf16 %v463_v4 }
  0x7c   :  { %v110_v28 = vsel %vm68_vm4, %v595_v3, %v460_v16 }
  0x7d   :  { %v109_v15 = vsel %vm68_vm4, %v590_v2, %v465_v6  ;;  %v69_v18 = vsel %vm68_vm4, %v580_v0, %v464_v7  ;;  %v70_v0 = vsel %vm68_vm4, %v585_v1, %v459_v17 }
  0x7e   :  { %v468_v9 = vpop.permute.xlu0 %467  ;;  %v478_v10 = vpop.permute.xlu1 %477 }
  0x7f   :  { %v470_v11 = vunpack.i.h.bf16 %v468_v9  ;;  %v469_v12 = vunpack.i.l.bf16 %v468_v9  ;;  %v480_v13 = vunpack.i.h.bf16 %v478_v10  ;;  %v479_v14 = vunpack.i.l.bf16 %v478_v10 }
  0x81   :  { %v111_v19 = vsel %vm71_vm5, %v109_v15, %v470_v11  ;;  %v72_v20 = vsel %vm71_vm5, %v69_v18, %v469_v12 }
  0x82   :  { %v473_v22 = vpop.permute.xlu0 %472  ;;  %v75_v23 = vsel %vm74_vm6, %v72_v20, %v479_v14  ;;  %v113_v24 = vsel %vm74_vm6, %v111_v19, %v480_v13  ;;  %v60_v27 = vpop.permute.xlu1 %59 }
  0x83   :  { %v475_v2 = vunpack.i.h.bf16 %v473_v22  ;;  %v474_v26 = vunpack.i.l.bf16 %v473_v22  ;;  %227 = vmatmul.mubr.f32.vlgmr.msra.gmra.mrb[0].mxu0 %v75_v23  ;;  %v117_v31 = vrot.slane %v113_v24, 4 }
  0x84   :  { %398 = vmatprep.mubr.msk.f32.mxu0 %vm68_vm4, %v127_v21 }
  0x85   :  { %v73_v29 = vsel %vm71_vm5, %v70_v0, %v474_v26  ;;  %v112_v30 = vsel %vm71_vm5, %v110_v28, %v475_v2 }
  0x86   :  { %v76_v32 = vsel %vm74_vm6, %v73_v29, %v60_v27  ;;  %v103_v33 = vpop.permute.xlu0 %102 }
  0x87   :  { %v114_v35 = vsel %vm74_vm6, %v112_v30, %v103_v33  ;;  %v126_v36 = vsel %vm63_vm3, %v76_v32, %v117_v31 }
  0x88   :  { %v119_v1 = vrot.slane %v114_v35, 4  ;;  %232 = vmatmul.mubr.f32.gmra.mrb[2].mxu0 %v126_v36 }
  0x89   :  { %399 = vmatprep.mubr.msk.f32.mxu0 %vm68_vm4, %v122_v34 }
  0x8a   :  { %v120_v3 = vsel %vm63_vm3, %v117_v31, %v119_v1 }
  0x8c   :  { %237 = vmatmul.mubr.f32.gmra.mrb[4].mxu0 %v120_v3 }
 0x156   :  { %v228_v43 = vpop.f32.mrb[0].mxu0 }
 0x157   :  { %v229_v44 = vadd.f32 %v396_v42, %v228_v43  ;;  %v230_v45 = vpop.f32.mrb[1].mxu0 }
 0x159   :  { %v242_v46 = vmax.f32 %v229_v44, 0.0 }
 0x15b   :  { %v233_v49 = vpop.f32.mrb[2].mxu0  ;;  %v247_v53 = vmul.f32 %v245_v48, %v242_v46 }
 0x15c   :  { %v234_v50 = vadd.f32 %v396_v42, %v233_v49  ;;  %v235_v51 = vpop.f32.mrb[3].mxu0 }
 0x15d   :  { %v250_v4 = vsel %vm249_vm9, %v247_v53, -inf }
 0x15e   :  { %v243_v54 = vmax.f32 %v234_v50, 0.0 }
 0x15f   :  { %v238_v56 = vpop.f32.mrb[4].mxu0 }
 0x160   :  { %v248_v57 = vmul.f32 %v246_v47, %v243_v54  ;;  %v239_v58 = vadd.f32 %v396_v42, %v238_v56  ;;  %v240_v59 = vpop.f32.mrb[5].mxu0  ;;  %v267_v62 = vmul.f32 %v262_v55, %v243_v54 }
 0x162   :  { %v252_v61 = vsel %vm251_vm8, %v248_v57, -inf  ;;  %v244_v63 = vmax.f32 %v239_v58, 0.0  ;;  %v270_v8 = vsel %vm269_vm10, %v267_v62, -inf }
 0x163   :  { %v253_v5 = vmax.f32 %v250_v4, %v252_v61 }
 0x164   :  { %v268_v6 = vmul.f32 %v264_v60, %v244_v63 }
 0x165   :  { %v254_v7 = vrot.slane %v253_v5, 4 }
 0x166   :  { %v271_v9 = vsel %vm249_vm9, %v268_v6, -inf }
 0x167   :  { %v255_v10 = vmax.f32 %v253_v5, %v254_v7  ;;  %v272_v11 = vmax.f32 %v270_v8, %v271_v9 }
 0x169   :  { %v256_v12 = vrot.slane %v255_v10, 2  ;;  %v273_v13 = vrot.slane %v272_v11, 4 }
 0x16b   :  { %v257_v14 = vmax.f32 %v255_v10, %v256_v12  ;;  %v274_v15 = vmax.f32 %v272_v11, %v273_v13 }
 0x16d   :  { %v275_v16 = vrot.slane %v274_v15, 2  ;;  %v258_v17 = vrot.slane %v257_v14, 1 }
 0x16f   :  { %v276_v18 = vmax.f32 %v274_v15, %v275_v16  ;;  %v259_v20 = vmax.f32 %v257_v14, %v258_v17 }
 0x171   :  { %v277_v19 = vrot.slane %v276_v18, 1 }
 0x173   :  { %v278_v21 = vmax.f32 %v276_v18, %v277_v19 }
 0x175   :  { %v280_v22 = vsel %vm279_vm11, %v259_v20, %v278_v21 }
 0x176   :  { %413 = vmatmul.mubr.msk.f32.vlgmr.msra.gmra.mrb[0].mxu1 %vm249_vm9, %v280_v22  ;;  %282 = vst.msk [vmem:[#allocation4] sm:$0x3] %vm281_vm12, %v280_v22 }
 0x177   :  { %492 = shalt.err (!%p489_p4)
}
 0x178   :  { %s493_s16 = scalar_lea.hbm %s764_s7, 32 }
 0x179   :  { %p494_p5 = scmp.ne.s32.totalorder %s764_s7, %s493_s16  ;;  %p497_p6 = scmp.lt.u32.totalorder %s493_s16, %s764_s7 }
 0x17b   :  { %p499_p7 = pnand %p497_p6, %p494_p5 }
 0x17d   :  { %502 = shalt.err (!%p499_p7)
}
 0x17e   :  { %387 = dma.vmem_to_hbm [thread:$0]  %s385_s3, 32, %s764_s7, [#allocation5]   ;;  %v400_v23 = vld [vmem:[%s762_s5] ss:$0 sm:$0xff]  ;;  %vm366_vm13 = vcmask 25600  }
 0x17f   :  { %s536_s25 = smov [#allocation2]  }
 0x180   :  { %s374_s26 = sshll.u32 %s536_s25, 4  ;;  %s375_s26 = int_to_ptr.vmem [resolvable:$true] %s374_s26 }
 0x181   :  { %s503_s1 = scalar_lea.vmem %s375_s26, 32  ;;  %p508_p9 = scmp.lt.s32.totalorder %s375_s26, %s375_s26 }
 0x182   :  { %p504_p8 = scmp.ne.s32.totalorder %s375_s26, %s503_s1  ;;  %p509_p10 = scmp.lt.s32.totalorder %s503_s1, %s503_s1 }
 0x184   :  { %p510_p11 = por %p509_p10, %p508_p9 }
 0x186   :  { %p511_p12 = pnand %p510_p11, %p504_p8 }
 0x249   :  { %v362_v24 = vpop.f32.mrb[0].mxu1 }
 0x24a   :  { %v363_v25 = vadd.f32 %v400_v23, %v362_v24  ;;  %v414_v2 = vpop.f32.mrb[1].mxu1 }
 0x24c   :  { %367 = vst.msk [vmem:[#allocation2] sm:$0x3] %vm366_vm13, %v363_v25 }
 0x24d   :  { %514 = shalt.err (!%p511_p12)
}
 0x24e   :  { %s515_s28 = scalar_lea.hbm %s763_s6, 32 }
 0x24f   :  { %p516_p13 = scmp.ne.s32.totalorder %s763_s6, %s515_s28  ;;  %p519_p0 = scmp.lt.u32.totalorder %s515_s28, %s763_s6 }
 0x251   :  { %p521_p1 = pnand %p519_p0, %p516_p13 }
 0x253   :  { %524 = shalt.err (!%p521_p1)
}
 0x254   :  { %377 = dma.vmem_to_hbm [thread:$0]  %s375_s26, 32, %s763_s6, [#allocation3]  }
 0x255   :  { %525 = dma.done.wait [#allocation3], 32  }
 0x256   :  { %526 = vsyncadd [#allocation3], 4294967264 }
 0x257   :  { %527 = dma.done.wait [#allocation5], 32  }
 0x258   :  { %528 = vsyncadd [#allocation5], 4294967264 }
 0x259   :  { %394 = vsyncpa [#allocation3], 1 }
 0x25a   :  { %395 = vsyncpa [#allocation5], 1 }

// kernel: hierarchical_albert_forward.2
= control target key start
LH: loop header
LB: loop body
LE: loop exit
PB: predicated region body
PF: predicated region fallthrough
CT: control target
= control target key end

     0   :  { %s15964_s24 = smov 0   ;;  %s18611_s0 = inlined_call_operand.vmem [shape: f32[128,16], index: 0, kind: input, shape index: {}]   ;;  %s18612_s1 = inlined_call_operand.vmem [shape: f32[16,8], index: 1, kind: input, shape index: {}]   ;;  %s18613_s2 = inlined_call_operand.vmem [shape: f32[2,16], index: 2, kind: input, shape index: {}]   ;;  %s18614_s3 = inlined_call_operand.vmem [shape: f32[16,32], index: 3, kind: input, shape index: {}]   ;;  %s18615_s4 = inlined_call_operand.vmem [shape: f32[1,32], index: 4, kind: input, shape index: {}]   ;;  %s18616_s5 = inlined_call_operand.vmem [shape: f32[32,96], index: 5, kind: input, shape index: {}]   ;;  %s18617_s6 = inlined_call_operand.vmem [shape: f32[1,96], index: 6, kind: input, shape index: {}]   ;;  %s18618_s7 = inlined_call_operand.vmem [shape: f32[32,32], index: 7, kind: input, shape index: {}]   ;;  %s18619_s8 = inlined_call_operand.vmem [shape: f32[1,32], index: 8, kind: input, shape index: {}]   ;;  %s18620_s9 = inlined_call_operand.vmem [shape: f32[2,32], index: 9, kind: input, shape index: {}]   ;;  %s18621_s10 = inlined_call_operand.vmem [shape: f32[32,64], index: 10, kind: input, shape index: {}]   ;;  %s18622_s11 = inlined_call_operand.vmem [shape: f32[1,64], index: 11, kind: input, shape index: {}]   ;;  %s18623_s12 = inlined_call_operand.vmem [shape: f32[64,32], index: 12, kind: input, shape index: {}]   ;;  %s18624_s13 = inlined_call_operand.vmem [shape: f32[1,32], index: 13, kind: input, shape index: {}]   ;;  %s18625_s14 = inlined_call_operand.vmem [shape: f32[2,32], index: 14, kind: input, shape index: {}]   ;;  %s18626_s15 = inlined_call_operand.vmem [shape: f32[32,32], index: 15, kind: input, shape index: {}]   ;;  %s18627_s16 = inlined_call_operand.vmem [shape: f32[1,32], index: 16, kind: input, shape index: {}]   ;;  %s18628_s17 = inlined_call_operand.vmem [shape: f32[16,32], index: 17, kind: output, shape index: {}]  }
   0x1   :  { %18674 = sst [smem:[#allocation21_spill]] %s18611_s0 }
   0x2   :  { %18675 = sst [smem:[#allocation22_spill]] %s18612_s1 }
   0x3 LB: > { %s15970_s25 = sadd.s32 4294967295, %s15854_s24   ;;  %p13848_p0 = scmp.ge.s32.totalorder %s15854_s24, 1  ;;  %s15854_s24 = sphi %s15964_s24, %s27_s24  }
   0x4   : > { %p497_p1 = scmp.lt.s32.totalorder %s15854_s24, 3 }
   0x6   : > { %p498_p2 = pnand %p13848_p0, %p497_p1 }
   0x8   : > { %501 = sbr.rel (%p498_p2) target bundleno = 9379 (0x24a3), region = 88 }
   0xf   : > { %s13849_s26 = sshll.u32 %s15970_s25, 3  ;;  %vm576_vm0 = vcmask 130048   ;;  %s18676_s0 = sld [smem:[#allocation21_spill]]  ;;  %v706_v56 = vld [vmem:[%s18614_s3] sm:$0xff]  ;;  %v707_v57 = vld [vmem:[%s18614_s3 + $0x8] sm:$0xff]  ;;  %vm946_vm1 = vcmask 261120  }
  0x10   : > { %p553_p3 = scmp.lt.s32.totalorder %s13849_s26, 15  ;;  %v15350_v58 = vpack.c.bf16 %v707_v57, %v706_v56  ;;  %v912_v59 = vld [vmem:[%s18616_s5] sm:$0xff]  ;;  %v913_v60 = vld [vmem:[%s18616_s5 + $0x8] sm:$0xff]  ;;  %vm15857_vm2 = vmmov 0   ;;  %vm1079_vm3 = vcmask 64512   ;;  %p558_p4 = scmp.lt.s32.totalorder %s15970_s25, 1 }
  0x11   : > { %v16038_v61 = vpack.c.bf16 %v913_v60, %v912_v59  ;;  %s15860_s18 = smov 64   ;;  %s15861_s19 = smov 88   ;;  %vm6573_vm4 = vcmask 195584   ;;  %vm7069_vm5 = vcmask 523264   ;;  %vm13685_vm6 = vcmask 1041409  }
  0x12   : > { %s18744_s26 = smov (!%p553_p3, %s13849_s26), 15  ;;  %15351 = vmatprep.subr.bf16.mxu0 %v15350_v58  ;;  %s18746_s25 = smov (!%p558_p4, %s15970_s25), 1  ;;  %vm13688_vm7 = vcmask 1042434   ;;  %vm13691_vm8 = vcmask 1043459   ;;  %vm13694_vm9 = vcmask 1044484   ;;  %vm13697_vm10 = vcmask 1045509  }
  0x13   : > { %s13850_s27 = sshll.u32 %s18744_s26, 3  ;;  %15353 = vmatpush3.bf16.msra.mxu0 %v15350_v58  ;;  %18677 = vst [vmem:[#allocation2_spill] sm:$0xff] %v16038_v61  ;;  %15440 = vmatprep.subr.bf16.mxu1 %v16038_v61  ;;  %v915_v58 = vld [vmem:[%s18616_s5 + $0x18] sm:$0xff]  ;;  %s15858_s26 = smov 96   ;;  %vm13700_vm11 = vcmask 1046534   ;;  %vm13703_vm12 = vcmask 1047559  }
  0x14   : > { %15355 = vmatprep.subr.bf16.mxu0 %v16038_v61  ;;  %15442 = vmatpush3.bf16.msra.mxu1 %v16038_v61  ;;  %s15862_s1 = smov 120   ;;  %s18656_s20 = smov 56  }
  0x15   : > { %s556_s30 = scalar_lea.vmem %s18676_s0, %s13850_s27  ;;  %s18641_s27 = sshll.u32 %s18746_s25, 3 }
  0x16   : > { %v566_v0 = vld [vmem:[%s556_s30] sm:$0xff]  ;;  %v568_v1 = vld [vmem:[%s556_s30 + $0x10] sm:$0xff]  ;;  %v567_v2 = vld [vmem:[%s556_s30 + $0x8] sm:$0xff]  ;;  %s18685_s0 = sld [smem:[#allocation22_spill]]  ;;  %s18654_s21 = smov 80  }
  0x17   : > { %v577_v3 = vsel %vm576_vm0, %v566_v0, 0.0  ;;  %v583_v4 = vsel %vm576_vm0, %v568_v1, 0.0  ;;  %v569_v5 = vld [vmem:[%s556_s30 + $0x18] sm:$0xff]  ;;  %v580_v6 = vsel %vm576_vm0, %v567_v2, 0.0  ;;  %v570_v8 = vld [vmem:[%s556_s30 + $0x20] sm:$0xff]  ;;  %v571_v9 = vld [vmem:[%s556_s30 + $0x28] sm:$0xff] }
  0x18   : > { %578 = vadd.xlane.f32.xlu0 %v577_v3  ;;  %584 = vadd.xlane.f32.xlu1 %v583_v4  ;;  %v586_v7 = vsel %vm576_vm0, %v569_v5, 0.0  ;;  %v589_v10 = vsel %vm576_vm0, %v570_v8, 0.0  ;;  %v592_v11 = vsel %vm576_vm0, %v571_v9, 0.0  ;;  %v572_v12 = vld [vmem:[%s556_s30 + $0x30] sm:$0xff]  ;;  %v573_v13 = vld [vmem:[%s556_s30 + $0x38] sm:$0xff]  ;;  %s18652_s22 = smov 112  }
  0x19   : > { %v595_v14 = vsel %vm576_vm0, %v572_v12, 0.0  ;;  %v598_v15 = vsel %vm576_vm0, %v573_v13, 0.0  ;;  %s18650_s23 = smov 48   ;;  %s18648_s28 = smov 72  }
  0x1a   : > { %s18646_s29 = smov 104  }
  0x1c   : > { %581 = vadd.xlane.f32.xlu0 %v580_v6  ;;  %587 = vadd.xlane.f32.xlu1 %v586_v7  ;;  %s561_s30 = scalar_lea.vmem %s18685_s0, %s18641_s27  ;;  %s18644_s0 = smov 40  }
  0x1d   : > { %s15871_s27 = smov 16  }
  0x20   : > { %590 = vadd.xlane.f32.xlu0 %v589_v10  ;;  %593 = vadd.xlane.f32.xlu1 %v592_v11 }
  0x24   : > { %596 = vadd.xlane.f32.xlu0 %v595_v14  ;;  %599 = vadd.xlane.f32.xlu1 %v598_v15 }
  0xa5   : > { %v579_v16 = vpop.xlane.xlu0 %578  ;;  %v585_v17 = vpop.xlane.xlu1 %584 }
  0xa6   : > { %v602_v18 = vmul.f32 0.0625, %v579_v16  ;;  %v604_v19 = vmul.f32 0.0625, %v585_v17 }
  0xa8   : > { %v15986_v20 = vsub.f32 %v566_v0, %v602_v18  ;;  %v15988_v21 = vsub.f32 %v568_v1, %v604_v19 }
  0xa9   : > { %v582_v22 = vpop.xlane.xlu0 %581  ;;  %v588_v23 = vpop.xlane.xlu1 %587 }
  0xaa   : > { %v603_v24 = vmul.f32 0.0625, %v582_v22  ;;  %v605_v25 = vmul.f32 0.0625, %v588_v23  ;;  %v618_v26 = vmul.f32 %v15986_v20, %v15986_v20  ;;  %v620_v27 = vmul.f32 %v15988_v21, %v15988_v21  ;;  %v13853_v22 = vld [vmem:[%s18613_s2] ss:$0 sm:$0xff] }
  0xac   : > { %v15994_v28 = vsub.f32 %v567_v2, %v603_v24  ;;  %v15996_v29 = vsub.f32 %v569_v5, %v605_v25  ;;  %v626_v30 = vsel %vm576_vm0, %v618_v26, 0.0  ;;  %v632_v33 = vsel %vm576_vm0, %v620_v27, 0.0  ;;  %v13854_v26 = vld [vmem:[%s18613_s2 + $0x1] ss:$0 sm:$0xff] }
  0xad   : > { %627 = vadd.xlane.f32.xlu0 %v626_v30  ;;  %v591_v31 = vpop.xlane.xlu0 %590  ;;  %v594_v32 = vpop.xlane.xlu1 %593 }
  0xae   : > { %v606_v34 = vmul.f32 0.0625, %v591_v31  ;;  %v607_v35 = vmul.f32 0.0625, %v594_v32  ;;  %v619_v36 = vmul.f32 %v15994_v28, %v15994_v28  ;;  %v621_v37 = vmul.f32 %v15996_v29, %v15996_v29 }
  0xb0   : > { %v16004_v38 = vsub.f32 %v570_v8, %v606_v34  ;;  %v16006_v39 = vsub.f32 %v571_v9, %v607_v35  ;;  %v629_v40 = vsel %vm576_vm0, %v619_v36, 0.0  ;;  %v635_v43 = vsel %vm576_vm0, %v621_v37, 0.0 }
  0xb1   : > { %633 = vadd.xlane.f32.xlu0 %v632_v33  ;;  %630 = vadd.xlane.f32.xlu1 %v629_v40  ;;  %v597_v41 = vpop.xlane.xlu0 %596  ;;  %v600_v42 = vpop.xlane.xlu1 %599 }
  0xb2   : > { %v608_v44 = vmul.f32 0.0625, %v597_v41  ;;  %v609_v45 = vmul.f32 0.0625, %v600_v42  ;;  %v622_v46 = vmul.f32 %v16004_v38, %v16004_v38  ;;  %v623_v47 = vmul.f32 %v16006_v39, %v16006_v39 }
  0xb4   : > { %v16014_v48 = vsub.f32 %v572_v12, %v608_v44  ;;  %v16016_v49 = vsub.f32 %v573_v13, %v609_v45  ;;  %v638_v50 = vsel %vm576_vm0, %v622_v46, 0.0  ;;  %v641_v51 = vsel %vm576_vm0, %v623_v47, 0.0 }
  0xb5   : > { %636 = vadd.xlane.f32.xlu1 %v635_v43  ;;  %639 = vadd.xlane.f32.xlu0 %v638_v50 }
  0xb6   : > { %v624_v52 = vmul.f32 %v16014_v48, %v16014_v48  ;;  %v625_v53 = vmul.f32 %v16016_v49, %v16016_v49 }
  0xb8   : > { %v644_v54 = vsel %vm576_vm0, %v624_v52, 0.0  ;;  %v647_v55 = vsel %vm576_vm0, %v625_v53, 0.0 }
  0xb9   : > { %642 = vadd.xlane.f32.xlu1 %v641_v51  ;;  %645 = vadd.xlane.f32.xlu0 %v644_v54 }
  0xbd   : > { %648 = vadd.xlane.f32.xlu1 %v647_v55 }
 0x13a   : > { %v628_v62 = vpop.xlane.xlu0 %627 }
 0x13b   : > { %v650_v63 = vmul.f32 0.0625, %v628_v62 }
 0x13d   : > { %v658_v0 = vadd.f32 1e-12, %v650_v63 }
 0x13e   : > { %v631_v1 = vpop.xlane.xlu1 %630  ;;  %v634_v2 = vpop.xlane.xlu0 %633 }
 0x13f   : > { %15470 = vrsqrt.f32 %v658_v0  ;;  %v651_v3 = vmul.f32 0.0625, %v631_v1  ;;  %v652_v4 = vmul.f32 0.0625, %v634_v2 }
 0x141   : > { %v659_v5 = vadd.f32 1e-12, %v651_v3  ;;  %v660_v6 = vadd.f32 1e-12, %v652_v4 }
 0x142   : > { %v637_v7 = vpop.xlane.xlu1 %636  ;;  %v640_v8 = vpop.xlane.xlu0 %639 }
 0x143   : > { %15472 = vrsqrt.f32 %v659_v5  ;;  %v653_v9 = vmul.f32 0.0625, %v637_v7  ;;  %v654_v10 = vmul.f32 0.0625, %v640_v8 }
 0x144   : > { %15474 = vrsqrt.f32 %v660_v6 }
 0x145   : > { %v661_v11 = vadd.f32 1e-12, %v653_v9  ;;  %v662_v12 = vadd.f32 1e-12, %v654_v10 }
 0x146   : > { %v643_v13 = vpop.xlane.xlu1 %642  ;;  %v646_v14 = vpop.xlane.xlu0 %645 }
 0x147   : > { %15476 = vrsqrt.f32 %v661_v11  ;;  %v655_v15 = vmul.f32 0.0625, %v643_v13  ;;  %v656_v16 = vmul.f32 0.0625, %v646_v14  ;;  %v18629_v13 = vmov 0.0   ;;  %v13864_v14 = vld [vmem:[%s18617_s6] ss:$0 sm:$0xff] }
 0x148   : > { %15478 = vrsqrt.f32 %v662_v12 }
 0x149   : > { %v15471_v17 = vpop.eup %15470  ;;  %v663_v18 = vadd.f32 1e-12, %v655_v15  ;;  %v664_v19 = vadd.f32 1e-12, %v656_v16 }
 0x14a   : > { %v649_v23 = vpop.xlane.xlu1 %648  ;;  %v674_v24 = vmul.f32 %v15471_v17, %v15986_v20 }
 0x14b   : > { %15480 = vrsqrt.f32 %v663_v18  ;;  %v657_v25 = vmul.f32 0.0625, %v649_v23 }
 0x14c   : > { %15482 = vrsqrt.f32 %v664_v19  ;;  %v686_v27 = vmul.f32 %v13853_v22, %v674_v24 }
 0x14d   : > { %v15473_v30 = vpop.eup %15472  ;;  %v665_v31 = vadd.f32 1e-12, %v657_v25 }
 0x14e   : > { %v15475_v32 = vpop.eup %15474  ;;  %v698_v33 = vadd.f32 %v13854_v26, %v686_v27  ;;  %v675_v34 = vmul.f32 %v15473_v30, %v15994_v28 }
 0x14f   : > { %15484 = vrsqrt.f32 %v665_v31  ;;  %v676_v35 = vmul.f32 %v15475_v32, %v15988_v21 }
 0x150   : > { %14511 = vmatprep.mubr.msk.f32.mxu0 %vm576_vm0, %v698_v33  ;;  %v687_v20 = vmul.f32 %v13853_v22, %v675_v34 }
 0x151   : > { %v15477_v36 = vpop.eup %15476  ;;  %v688_v37 = vmul.f32 %v13853_v22, %v676_v35 }
 0x152   : > { %v15479_v40 = vpop.eup %15478  ;;  %v699_v41 = vadd.f32 %v13854_v26, %v687_v20  ;;  %v677_v42 = vmul.f32 %v15477_v36, %v15996_v29 }
 0x153   : > { %v700_v43 = vadd.f32 %v13854_v26, %v688_v37  ;;  %v678_v44 = vmul.f32 %v15479_v40, %v16004_v38 }
 0x154   : > { %14512 = vmatmul.mubr.msk.f32.vlgmr.msra.gmra.mrb[0].mxu0 %vm576_vm0, %v699_v41  ;;  %v689_v45 = vmul.f32 %v13853_v22, %v677_v42 }
 0x155   : > { %v15481_v46 = vpop.eup %15480  ;;  %14514 = vmatprep.mubr.msk.f32.mxu0 %vm576_vm0, %v700_v43  ;;  %v690_v28 = vmul.f32 %v13853_v22, %v678_v44  ;;  %15357 = vmatpush3.bf16.msra.mxu0 %v16038_v61  ;;  %v15859_v44 = vmov 1966171168  }
 0x156   : > { %v15483_v21 = vpop.eup %15482  ;;  %v701_v47 = vadd.f32 %v13854_v26, %v689_v45  ;;  %v679_v50 = vmul.f32 %v15481_v46, %v16006_v39  ;;  %v849_v45 = vunpack.c.l.s4 %v15859_v44  ;;  %v851_v46 = vlaneseq }
 0x157   : > { %v702_v51 = vadd.f32 %v13854_v26, %v690_v28  ;;  %v680_v52 = vmul.f32 %v15483_v21, %v16014_v48  ;;  %v914_v48 = vld [vmem:[%s18616_s5 + $0x10] sm:$0xff]  ;;  %v844_v28 = vld [vmem:[%s561_s30] sm:$0xff]  ;;  %s18642_s30 = smov 8  }
 0x158   : > { %14515 = vmatmul.mubr.msk.f32.gmra.mrb[2].mxu0 %vm576_vm0, %v701_v47  ;;  %v691_v29 = vmul.f32 %v13853_v22, %v679_v50  ;;  %v16072_v59 = vpack.c.bf16 %v915_v58, %v914_v48  ;;  %v845_v21 = vsub.f32 1.0, %v844_v28  ;;  %v850_v47 = vunpack.c.0.s8 %v849_v45 }
 0x159   : > { %v15485_v38 = vpop.eup %15484  ;;  %14517 = vmatprep.mubr.msk.f32.mxu0 %vm576_vm0, %v702_v51  ;;  %v692_v53 = vmul.f32 %v13853_v22, %v680_v52  ;;  %v852_v50 = vshrl.u32 %v851_v46, 7 }
 0x15a   : > { %v703_v54 = vadd.f32 %v13854_v26, %v691_v29  ;;  %v681_v55 = vmul.f32 %v15485_v38, %v16016_v49  ;;  %18678 = vst [vmem:[#allocation3_spill] sm:$0xff] %v16072_v59  ;;  %15359 = vmatprep.subr.bf16.mxu0 %v16072_v59  ;;  %15441 = vmatprep.subr.bf16.mxu1 %v16072_v59  ;;  %v13855_v49 = vld [vmem:[%s18615_s4] ss:$0 sm:$0xff] }
 0x15b   : > { %v704_v56 = vadd.f32 %v13854_v26, %v692_v53  ;;  %15361 = vmatpush3.bf16.msra.mxu0 %v16072_v59  ;;  %15443 = vmatpush3.bf16.msra.mxu1 %v16072_v59  ;;  %v847_v51 = vcombine.high %v845_v21, %v845_v21  ;;  %v853_v52 = vsub.s32 %v850_v47, %v852_v50 }
 0x15c   : > { %14518 = vmatmul.mubr.msk.f32.gmra.mrb[4].mxu0 %vm576_vm0, %v703_v54  ;;  %v693_v57 = vmul.f32 %v13853_v22, %v681_v55  ;;  %14543 = vmatprep.subr.mxu0 %v18629_v13  ;;  %v1711_v55 = vsub.s32 0, %v852_v50 }
 0x15d   : > { %14520 = vmatprep.mubr.msk.f32.mxu0 %vm576_vm0, %v704_v56  ;;  %14553 = vmatprep.subr.mxu1 %v18629_v13  ;;  %v861_v29 = vrot.slane %v847_v51, %v853_v52 }
 0x15e   : > { %v705_v39 = vadd.f32 %v13854_v26, %v693_v57 }
 0x15f   : > { %v863_v38 = vcombine.high %v861_v29, %v861_v29 }
 0x160   : > { %14521 = vmatmul.mubr.msk.f32.gmra.mrb[6].mxu0 %vm576_vm0, %v705_v39  ;;  %v854_v39 = vrot.slane %v845_v21, %v853_v52 }
 0x161   : > { %v891_v53 = vrot.slane %v863_v38, %v853_v52 }
 0x162   : > { %v870_v48 = vrot.slane %v854_v39, %v853_v52  ;;  %v862_v58 = vcombine.high %v854_v39, %v854_v39 }
 0x163   : > { %v895_v54 = vcombine.high %v891_v53, %v891_v53  ;;  %v909_v45 = vmul.f32 -1e+09, %v891_v53 }
 0x165   : > { %v911_v56 = vmul.f32 -1e+09, %v895_v54  ;;  %v16240_v53 = vrot.slane %v909_v45, %v1711_v55 }
 0x167   : > { %v16212_v57 = vrot.slane %v911_v56, %v1711_v55 }
 0x227   : > { %v14513_v60 = vpop.f32.mrb[0].mxu0 }
 0x228   : > { %v805_v62 = vpop.f32.mrb[1].mxu0  ;;  %v16083_v0 = vadd.f32 %v14513_v60, %v13855_v49  ;;  %v884_v60 = vrot.slane %v862_v58, %v853_v52 }
 0x229   : > { %v16081_v63 = vadd.f32 %v13855_v49, %v805_v62  ;;  %v892_v62 = vcombine.high %v870_v48, %v870_v48 }
 0x22b   : > { %v14516_v1 = vpop.f32.mrb[2].mxu0  ;;  %14531 = vmatprep.mubr.msk.f32.mxu0 %vm946_vm1, %v16081_v63 }
 0x22c   : > { %v815_v2 = vpop.f32.mrb[3].mxu0  ;;  %14532 = vmatmul.mubr.msk.f32.vlgmr.msra.gmra.mrb[8].mxu0 %vm946_vm1, %v16083_v0  ;;  %v16091_v4 = vadd.f32 %v14516_v1, %v13855_v49 }
 0x22d   : > { %v16089_v3 = vadd.f32 %v13855_v49, %v815_v2  ;;  %14545 = vmatprep.mubr.msk.f32.mxu0 %vm15857_vm2, %v18629_v13  ;;  %v905_v2 = vmul.f32 -1e+09, %v884_v60 }
 0x22e   : > { %18680 = vst [vmem:[#allocation5_spill] sm:$0xff] %v16091_v4 }
 0x22f   : > { %18679 = vst [vmem:[#allocation4_spill] sm:$0xff] %v16089_v3  ;;  %v14519_v5 = vpop.f32.mrb[4].mxu0  ;;  %14534 = vmatprep.mubr.msk.f32.mxu1 %vm946_vm1, %v16089_v3 }
 0x230   : > { %v825_v6 = vpop.f32.mrb[5].mxu0  ;;  %14535 = vmatmul.mubr.msk.f32.vlgmr.msra.gmra.mrb[0].mxu1 %vm946_vm1, %v16091_v4  ;;  %v16099_v8 = vadd.f32 %v14519_v5, %v13855_v49  ;;  %v906_v5 = vmul.f32 -1e+09, %v892_v62 }
 0x231   : > { %v16097_v7 = vadd.f32 %v13855_v49, %v825_v6  ;;  %v894_v6 = vcombine.high %v884_v60, %v884_v60 }
 0x232   : > { %18682 = vst [vmem:[#allocation7_spill] sm:$0xff] %v16099_v8 }
 0x233   : > { %18681 = vst [vmem:[#allocation6_spill] sm:$0xff] %v16097_v7  ;;  %v14522_v9 = vpop.f32.mrb[6].mxu0  ;;  %14537 = vmatprep.mubr.msk.f32.mxu1 %vm946_vm1, %v16097_v7 }
 0x234   : > { %v835_v10 = vpop.f32.mrb[7].mxu0  ;;  %14538 = vmatmul.mubr.msk.f32.gmra.mrb[2].mxu1 %vm946_vm1, %v16099_v8  ;;  %v16107_v12 = vadd.f32 %v14522_v9, %v13855_v49 }
 0x235   : > { %v16105_v11 = vadd.f32 %v13855_v49, %v835_v10  ;;  %v904_v49 = vmul.f32 -1e+09, %v870_v48  ;;  %v877_v10 = vrot.slane %v861_v29, %v853_v52 }
 0x236   : > { %18684 = vst [vmem:[#allocation9_spill] sm:$0xff] %v16107_v12 }
 0x237   : > { %18683 = vst [vmem:[#allocation8_spill] sm:$0xff] %v16105_v11  ;;  %14540 = vmatprep.mubr.msk.f32.mxu1 %vm946_vm1, %v16105_v11  ;;  %v16214_v1 = vrot.slane %v904_v49, %v1711_v55 }
 0x238   : > { %14541 = vmatmul.mubr.msk.f32.gmra.mrb[4].mxu1 %vm946_vm1, %v16107_v12 }
 0x239   : > { %14555 = vmatprep.mubr.msk.f32.mxu1 %vm15857_vm2, %v18629_v13 }
 0x2ff   : > { %v14533_v15 = vpop.f32.mrb[8].mxu0 }
 0x300   : > { %v16122_v16 = vadd.f32 %v14533_v15, %v13864_v14  ;;  %v1037_v17 = vpop.f32.mrb[9].mxu0 }
 0x301   : > { %v16124_v18 = vadd.f32 %v13864_v14, %v1037_v17 }
 0x302   : > { %1155 = vrot.lane.b32.xlu1 %v16122_v16, %s15858_s26 }
 0x303   : > { %v14536_v19 = vpop.f32.mrb[0].mxu1  ;;  %1077 = vrot.lane.b32.xlu0 %v16124_v18, %s15858_s26 }
 0x304   : > { %v1047_v22 = vpop.f32.mrb[1].mxu1  ;;  %v16134_v26 = vadd.f32 %v14536_v19, %v13864_v14  ;;  %v16219_v19 = vrot.slane %v905_v2, %v1711_v55 }
 0x305   : > { %v16130_v23 = vadd.f32 %v13864_v14, %v1047_v22  ;;  %v16221_v22 = vrot.slane %v906_v5, %v1711_v55 }
 0x307   : > { %v14539_v24 = vpop.f32.mrb[2].mxu1  ;;  %1232 = vrot.lane.b32.xlu1 %v16130_v23, %s15858_s26 }
 0x308   : > { %v1057_v25 = vpop.f32.mrb[3].mxu1  ;;  %v16142_v32 = vadd.f32 %v14539_v24, %v13864_v14  ;;  %v907_v24 = vmul.f32 -1e+09, %v894_v6 }
 0x309   : > { %v16136_v27 = vadd.f32 %v13864_v14, %v1057_v25 }
 0x30a   : > { %v16231_v44 = vrot.slane %v907_v24, %v1711_v55 }
 0x30b   : > { %1309 = vrot.lane.b32.xlu1 %v16134_v26, %s15858_s26  ;;  %1386 = vrot.lane.b32.xlu0 %v16136_v27, %s15858_s26  ;;  %v14542_v30 = vpop.f32.mrb[4].mxu1 }
 0x30c   : > { %v1067_v31 = vpop.f32.mrb[5].mxu1  ;;  %v16150_v34 = vadd.f32 %v14542_v30, %v13864_v14 }
 0x30d   : > { %v16144_v33 = vadd.f32 %v13864_v14, %v1067_v31  ;;  %v908_v31 = vmul.f32 -1e+09, %v877_v10 }
 0x30f   : > { %1463 = vrot.lane.b32.xlu1 %v16142_v32, %s15858_s26  ;;  %1540 = vrot.lane.b32.xlu0 %v16144_v33, %s15858_s26  ;;  %v16233_v51 = vrot.slane %v908_v31, %v1711_v55 }
 0x313   : > { %1617 = vrot.lane.b32.xlu1 %v16150_v34, %s15858_s26 }
 0x374   : > { %v1156_v35 = vpop.permute.xlu1 %1155 }
 0x375   : > { %v1078_v20 = vpop.permute.xlu0 %1077 }
 0x376   : > { %14544 = vmatpush3.xpose.msk.msra.mxu0 %vm1079_vm3, %v1078_v20 }
 0x377   : > { %14548 = vmatprep.subr.mxu0 %v18629_v13 }
 0x379   : > { %v1233_v36 = vpop.permute.xlu1 %1232  ;;  %14546 = vmatmul.mubr.msk.f32.vlgmr.msra.gmra.mrb[10].mxu0 %vm1079_vm3, %v16124_v18 }
 0x37a   : > { %14549 = vmatpush3.xpose.msk.msra.mxu0 %vm1079_vm3, %v1156_v35  ;;  %14554 = vmatpush3.xpose.msk.msra.mxu1 %vm1079_vm3, %v1233_v36 }
 0x37b   : > { %14550 = vmatprep.mubr.msk.f32.mxu0 %vm15857_vm2, %v18629_v13  ;;  %14563 = vmatprep.subr.mxu1 %v18629_v13 }
 0x37c   : > { %14558 = vmatprep.subr.mxu0 %v18629_v13 }
 0x37d   : > { %v1310_v37 = vpop.permute.xlu1 %1309  ;;  %14551 = vmatmul.mubr.msk.f32.vlgmr.msra.gmra.mrb[12].mxu0 %vm1079_vm3, %v16122_v16  ;;  %v1387_v40 = vpop.permute.xlu0 %1386  ;;  %14556 = vmatmul.mubr.msk.f32.vlgmr.msra.gmra.mrb[6].mxu1 %vm1079_vm3, %v16130_v23 }
 0x37e   : > { %14559 = vmatpush3.xpose.msk.msra.mxu0 %vm1079_vm3, %v1310_v37  ;;  %14564 = vmatpush3.xpose.msk.msra.mxu1 %vm1079_vm3, %v1387_v40 }
 0x37f   : > { %14560 = vmatprep.mubr.msk.f32.mxu0 %vm15857_vm2, %v18629_v13  ;;  %14565 = vmatprep.mubr.msk.f32.mxu1 %vm15857_vm2, %v18629_v13 }
 0x380   : > { %14568 = vmatprep.subr.mxu0 %v18629_v13  ;;  %14573 = vmatprep.subr.mxu1 %v18629_v13 }
 0x381   : > { %v1464_v41 = vpop.permute.xlu1 %1463  ;;  %14561 = vmatmul.mubr.msk.f32.vlgmr.msra.gmra.mrb[14].mxu0 %vm1079_vm3, %v16134_v26  ;;  %14566 = vmatmul.mubr.msk.f32.vlgmr.msra.gmra.mrb[8].mxu1 %vm1079_vm3, %v16136_v27  ;;  %v1541_v42 = vpop.permute.xlu0 %1540 }
 0x382   : > { %14569 = vmatpush3.xpose.msk.msra.mxu0 %vm1079_vm3, %v1464_v41  ;;  %14574 = vmatpush3.xpose.msk.msra.mxu1 %vm1079_vm3, %v1541_v42  ;;  %v893_v41 = vcombine.high %v877_v10, %v877_v10 }
 0x383   : > { %14570 = vmatprep.mubr.msk.f32.mxu0 %vm15857_vm2, %v18629_v13  ;;  %14575 = vmatprep.mubr.msk.f32.mxu1 %vm15857_vm2, %v18629_v13 }
 0x384   : > { %14578 = vmatprep.subr.mxu0 %v18629_v13  ;;  %14583 = vmatprep.subr.mxu1 %v18629_v13  ;;  %v910_v54 = vmul.f32 -1e+09, %v893_v41 }
 0x385   : > { %14571 = vmatmul.mubr.msk.f32.vlgmr.msra.gmra.mrb[16].mxu0 %vm1079_vm3, %v16142_v32  ;;  %v1618_v43 = vpop.permute.xlu1 %1617  ;;  %14576 = vmatmul.mubr.msk.f32.vlgmr.msra.gmra.mrb[10].mxu1 %vm1079_vm3, %v16144_v33 }
 0x386   : > { %14579 = vmatpush3.xpose.msk.msra.mxu0 %vm1079_vm3, %v1618_v43  ;;  %14580 = vmatprep.mubr.msk.f32.mxu0 %vm15857_vm2, %v18629_v13  ;;  %v16244_v6 = vrot.slane %v910_v54, %v1711_v55 }
 0x387   : > { %14588 = vmatprep.subr.mxu0 %v18629_v13  ;;  %14585 = vmatprep.mubr.msk.f32.mxu1 %vm15857_vm2, %v18629_v13 }
 0x389   : > { %14581 = vmatmul.mubr.msk.f32.vlgmr.msra.gmra.mrb[18].mxu0 %vm1079_vm3, %v16150_v34 }
 0x38a   : > { %14590 = vmatprep.mubr.msk.f32.mxu0 %vm15857_vm2, %v18629_v13 }
 0x44c   : > { %v1150_v9 = vpop.f32.mrb[10].mxu0 }
 0x44d   : > { %v1693_v14 = vmul.f32 0.35355338, %v1150_v9  ;;  %v14547_v15 = vpop.f32.mrb[11].mxu0 }
 0x44f   : > { %v16217_v17 = vadd.f32 %v16214_v1, %v1693_v14 }
 0x450   : > { %v1227_v25 = vpop.f32.mrb[12].mxu0  ;;  %v1304_v30 = vpop.f32.mrb[6].mxu1 }
 0x451   : > { %v1694_v35 = vmul.f32 0.35355338, %v1227_v25  ;;  %v1695_v20 = vmul.f32 0.35355338, %v1304_v30  ;;  %v14552_v36 = vpop.f32.mrb[13].mxu0  ;;  %v14557_v37 = vpop.f32.mrb[7].mxu1 }
 0x452   : > { %v1757_v40 = vsel %vm1079_vm3, %v16217_v17, -inf }
 0x453   : > { %1758 = vmax.xlane.f32.xlu0 %v1757_v40  ;;  %v16226_v42 = vadd.f32 %v16219_v19, %v1694_v35  ;;  %v16229_v43 = vadd.f32 %v16221_v22, %v1695_v20 }
 0x454   : > { %v1381_v46 = vpop.f32.mrb[14].mxu0  ;;  %v1458_v28 = vpop.f32.mrb[8].mxu1 }
 0x455   : > { %v1696_v21 = vmul.f32 0.35355338, %v1381_v46  ;;  %v14562_v47 = vpop.f32.mrb[15].mxu0  ;;  %v14567_v50 = vpop.f32.mrb[9].mxu1  ;;  %v1697_v52 = vmul.f32 0.35355338, %v1458_v28 }
 0x456   : > { %v1760_v29 = vsel %vm1079_vm3, %v16226_v42, -inf  ;;  %v1763_v38 = vsel %vm1079_vm3, %v16229_v43, -inf }
 0x457   : > { %1761 = vmax.xlane.f32.xlu1 %v1760_v29  ;;  %1764 = vmax.xlane.f32.xlu0 %v1763_v38  ;;  %v1752_v56 = vadd.f32 %v16231_v44, %v1696_v21  ;;  %v1753_v5 = vadd.f32 %v16233_v51, %v1697_v52 }
 0x458   : > { %v1535_v39 = vpop.f32.mrb[16].mxu0  ;;  %v1612_v48 = vpop.f32.mrb[10].mxu1 }
 0x459   : > { %v1698_v58 = vmul.f32 0.35355338, %v1535_v39  ;;  %v14572_v49 = vpop.f32.mrb[17].mxu0  ;;  %v14577_v60 = vpop.f32.mrb[11].mxu1  ;;  %v1699_v62 = vmul.f32 0.35355338, %v1612_v48 }
 0x45a   : > { %v1766_v2 = vsel %vm1079_vm3, %v1752_v56, -inf  ;;  %v1769_v24 = vsel %vm1079_vm3, %v1753_v5, -inf }
 0x45b   : > { %1767 = vmax.xlane.f32.xlu0 %v1766_v2  ;;  %v1754_v9 = vadd.f32 %v16240_v53, %v1698_v58  ;;  %v1755_v25 = vadd.f32 %v16244_v6, %v1699_v62 }
 0x45c   : > { %v1689_v10 = vpop.f32.mrb[18].mxu0 }
 0x45d   : > { %v14582_v14 = vpop.f32.mrb[19].mxu0  ;;  %v1772_v15 = vsel %vm1079_vm3, %v1754_v9, -inf  ;;  %v1775_v30 = vsel %vm1079_vm3, %v1755_v25, -inf  ;;  %v1700_v55 = vmul.f32 0.35355338, %v1689_v10 }
 0x45e   : > { %1773 = vmax.xlane.f32.xlu1 %v1772_v15 }
 0x45f   : > { %1770 = vmax.xlane.f32.xlu0 %v1769_v24  ;;  %v16278_v31 = vadd.f32 %v16212_v57, %v1700_v55 }
 0x461   : > { %v1778_v35 = vsel %vm1079_vm3, %v16278_v31, -inf }
 0x463   : > { %1776 = vmax.xlane.f32.xlu0 %v1775_v30 }
 0x46f   : > { %1921 = vrot.lane.b32.xlu1 %v16122_v16, %s15860_s18 }
 0x473   : > { %1997 = vrot.lane.b32.xlu1 %v16130_v23, %s15860_s18 }
 0x477   : > { %2073 = vrot.lane.b32.xlu1 %v16134_v26, %s15860_s18 }
 0x479   : > { %1845 = vrot.lane.b32.xlu0 %v16124_v18, %s15860_s18 }
 0x47b   : > { %2225 = vrot.lane.b32.xlu1 %v16142_v32, %s15860_s18 }
 0x47d   : > { %2149 = vrot.lane.b32.xlu0 %v16136_v27, %s15860_s18 }
 0x47f   : > { %2377 = vrot.lane.b32.xlu1 %v16150_v34, %s15860_s18 }
 0x481   : > { %2301 = vrot.lane.b32.xlu0 %v16144_v33, %s15860_s18 }
 0x483   : > { %2533 = vrot.lane.b32.xlu1 %v16122_v16, %s15861_s19 }
 0x485   : > { %2455 = vrot.lane.b32.xlu0 %v16124_v18, %s15861_s19 }
 0x487   : > { %2531 = vrot.lane.b32.xlu1 %v16122_v16, %s15862_s1 }
 0x489   : > { %2453 = vrot.lane.b32.xlu0 %v16124_v18, %s15862_s1 }
 0x48d   : > { %2611 = vrot.lane.b32.xlu0 %v16130_v23, %s15861_s19 }
 0x4ab   : > { %1779 = vmax.xlane.f32.xlu1 %v1778_v35 }
 0x4bc   : > { %2689 = vrot.lane.b32.xlu1 %v16134_v26, %s15861_s19 }
 0x4e0   : > { %v1759_v20 = vpop.xlane.xlu0 %1758 }
 0x4e1   : > { %v1781_v36 = vsub.f32 %v16217_v17, %v1759_v20 }
 0x4e3   : > { %v1789_v37 = vmul.f32 1.442695, %v1781_v36 }
 0x4e4   : > { %v1762_v40 = vpop.xlane.xlu1 %1761  ;;  %v1765_v41 = vpop.xlane.xlu0 %1764 }
 0x4e5   : > { %15486 = vpow2.f32 %v1789_v37  ;;  %v1782_v45 = vsub.f32 %v16226_v42, %v1762_v40  ;;  %v1783_v46 = vsub.f32 %v16229_v43, %v1765_v41 }
 0x4e7   : > { %v1791_v28 = vmul.f32 1.442695, %v1782_v45  ;;  %v1793_v21 = vmul.f32 1.442695, %v1783_v46 }
 0x4e8   : > { %v1768_v47 = vpop.xlane.xlu0 %1767 }
 0x4e9   : > { %15488 = vpow2.f32 %v1791_v28  ;;  %v1784_v50 = vsub.f32 %v1752_v56, %v1768_v47 }
 0x4ea   : > { %15490 = vpow2.f32 %v1793_v21 }
 0x4eb   : > { %v1795_v52 = vmul.f32 1.442695, %v1784_v50  ;;  %v1774_v29 = vpop.xlane.xlu1 %1773 }
 0x4ec   : > { %v1786_v38 = vsub.f32 %v1754_v9, %v1774_v29  ;;  %v1771_v54 = vpop.xlane.xlu0 %1770 }
 0x4ed   : > { %15492 = vpow2.f32 %v1795_v52  ;;  %v1785_v17 = vsub.f32 %v1753_v5, %v1771_v54 }
 0x4ee   : > { %v1799_v39 = vmul.f32 1.442695, %v1786_v38 }
 0x4ef   : > { %v16287_v48 = vpop.eup %15486  ;;  %v1797_v58 = vmul.f32 1.442695, %v1785_v17  ;;  %v1922_v49 = vpop.permute.xlu1 %1921 }
 0x4f0   : > { %15494 = vpow2.f32 %v1799_v39  ;;  %v1777_v42 = vpop.xlane.xlu0 %1776  ;;  %14589 = vmatpush3.msra.mxu0 %v1922_v49  ;;  %v1805_v43 = vsel %vm1079_vm3, %v16287_v48, 0.0 }
 0x4f1   : > { %15496 = vpow2.f32 %v1797_v58  ;;  %v1787_v56 = vsub.f32 %v1755_v25, %v1777_v42  ;;  %1806 = vadd.xlane.f32.xlu0 %v1805_v43  ;;  %14598 = vmatprep.subr.mxu0 %v18629_v13 }
 0x4f3   : > { %v16292_v60 = vpop.eup %15488  ;;  %v1801_v62 = vmul.f32 1.442695, %v1787_v56  ;;  %v1998_v36 = vpop.permute.xlu1 %1997 }
 0x4f4   : > { %v16294_v2 = vpop.eup %15490  ;;  %v1846_v5 = vpop.permute.xlu0 %1845  ;;  %v1808_v9 = vsel %vm1079_vm3, %v16292_v60, 0.0 }
 0x4f5   : > { %15498 = vpow2.f32 %v1801_v62  ;;  %1809 = vadd.xlane.f32.xlu1 %v1808_v9  ;;  %v1811_v10 = vsel %vm1079_vm3, %v16294_v2, 0.0  ;;  %14584 = vmatpush3.msra.mxu1 %v1846_v5 }
 0x4f6   : > { %1812 = vadd.xlane.f32.xlu0 %v1811_v10  ;;  %14593 = vmatprep.subr.mxu1 %v18629_v13 }
 0x4f7   : > { %v16301_v14 = vpop.eup %15492  ;;  %v2074_v37 = vpop.permute.xlu1 %2073 }
 0x4f8   : > { %v1814_v15 = vsel %vm1079_vm3, %v16301_v14, 0.0  ;;  %v2150_v29 = vpop.permute.xlu0 %2149 }
 0x4f9   : > { %1815 = vadd.xlane.f32.xlu1 %v1814_v15 }
 0x4fa   : > { %v16305_v24 = vpop.eup %15494 }
 0x4fb   : > { %v16307_v25 = vpop.eup %15496  ;;  %v1820_v30 = vsel %vm1079_vm3, %v16305_v24, 0.0  ;;  %v2226_v40 = vpop.permute.xlu1 %2225 }
 0x4fc   : > { %v1817_v55 = vsel %vm1079_vm3, %v16307_v25, 0.0 }
 0x4fd   : > { %1821 = vadd.xlane.f32.xlu1 %v1820_v30  ;;  %1818 = vadd.xlane.f32.xlu0 %v1817_v55 }
 0x4ff   : > { %v16313_v35 = vpop.eup %15498  ;;  %v16329_v41 = vpop.permute.xlu1 %2377 }
 0x500   : > { %v1823_v20 = vsel %vm1079_vm3, %v16313_v35, 0.0 }
 0x501   : > { %1824 = vadd.xlane.f32.xlu0 %v1823_v20 }
 0x503   : > { %v16331_v45 = vpop.permute.xlu1 %2533 }
 0x507   : > { %v16333_v46 = vpop.permute.xlu1 %2531 }
 0x50e   : > { %2687 = vrot.lane.b32.xlu1 %v16134_v26, %s15862_s1 }
 0x517   : > { %2609 = vrot.lane.b32.xlu0 %v16130_v23, %s15862_s1 }
 0x51b   : > { %2767 = vrot.lane.b32.xlu0 %v16136_v27, %s15861_s19 }
 0x51f   : > { %2765 = vrot.lane.b32.xlu0 %v16136_v27, %s15862_s1 }
 0x523   : > { %2923 = vrot.lane.b32.xlu0 %v16144_v33, %s15861_s19 }
 0x527   : > { %2921 = vrot.lane.b32.xlu0 %v16144_v33, %s15862_s1 }
 0x538   : > { %v1780_v28 = vpop.xlane.xlu1 %1779 }
 0x539   : > { %v1788_v21 = vsub.f32 %v16278_v31, %v1780_v28  ;;  %v2302_v31 = vpop.permute.xlu0 %2301 }
 0x53b   : > { %v1803_v47 = vmul.f32 1.442695, %v1788_v21 }
 0x53c   : > { %v16348_v39 = vpop.permute.xlu1 %2689 }
 0x53d   : > { %15500 = vpow2.f32 %v1803_v47  ;;  %v2456_v38 = vpop.permute.xlu0 %2455 }
 0x541   : > { %v2454_v54 = vpop.permute.xlu0 %2453 }
 0x545   : > { %v2612_v17 = vpop.permute.xlu0 %2611 }
 0x547   : > { %v16336_v50 = vpop.eup %15500 }
 0x548   : > { %v1826_v52 = vsel %vm1079_vm3, %v16336_v50, 0.0 }
 0x549   : > { %1827 = vadd.xlane.f32.xlu1 %v1826_v52 }
 0x55a   : > { %2845 = vrot.lane.b32.xlu1 %v16142_v32, %s15861_s19 }
 0x55e   : > { %2843 = vrot.lane.b32.xlu1 %v16142_v32, %s15862_s1 }
 0x562   : > { %3001 = vrot.lane.b32.xlu1 %v16150_v34, %s15861_s19 }
 0x566   : > { %2999 = vrot.lane.b32.xlu1 %v16150_v34, %s15862_s1 }
 0x57e   : > { %v1807_v58 = vpop.xlane.xlu0 %1806 }
 0x57f   : > { %15502 = vrcp.f32 %v1807_v58 }
 0x582   : > { %v1810_v49 = vpop.xlane.xlu1 %1809 }
 0x583   : > { %15504 = vrcp.f32 %v1810_v49  ;;  %v1813_v42 = vpop.xlane.xlu0 %1812 }
 0x584   : > { %15506 = vrcp.f32 %v1813_v42 }
 0x586   : > { %v1816_v43 = vpop.xlane.xlu1 %1815 }
 0x587   : > { %15508 = vrcp.f32 %v1816_v43 }
 0x589   : > { %v15503_v56 = vpop.eup %15502 }
 0x58a   : > { %v1822_v62 = vpop.xlane.xlu1 %1821  ;;  %v1819_v5 = vpop.xlane.xlu0 %1818  ;;  %v1830_v9 = vmul.f32 %v15503_v56, %v16287_v48 }
 0x58b   : > { %15510 = vrcp.f32 %v1822_v62 }
 0x58c   : > { %15512 = vrcp.f32 %v1819_v5  ;;  %14586 = vmatmul.mubr.msk.f32.vlgmr.msra.gmra.mrb[12].mxu1 %vm1079_vm3, %v1830_v9 }
 0x58d   : > { %v15505_v10 = vpop.eup %15504  ;;  %14594 = vmatpush3.msra.mxu1 %v1998_v36  ;;  %14595 = vmatprep.mubr.msk.f32.mxu1 %vm15857_vm2, %v18629_v13 }
 0x58e   : > { %v15507_v15 = vpop.eup %15506  ;;  %v1825_v30 = vpop.xlane.xlu0 %1824  ;;  %14603 = vmatprep.subr.mxu1 %v18629_v13  ;;  %v1832_v55 = vmul.f32 %v15505_v10, %v16292_v60 }
 0x58f   : > { %15514 = vrcp.f32 %v1825_v30  ;;  %v1834_v20 = vmul.f32 %v15507_v15, %v16294_v2  ;;  %v2688_v47 = vpop.permute.xlu1 %2687 }
 0x590   : > { %14591 = vmatmul.mubr.msk.f32.vlgmr.msra.gmra.mrb[20].mxu0 %vm1079_vm3, %v1832_v55 }
 0x591   : > { %v15509_v48 = vpop.eup %15508  ;;  %14596 = vmatmul.mubr.msk.f32.vlgmr.msra.gmra.mrb[14].mxu1 %vm1079_vm3, %v1834_v20  ;;  %14599 = vmatpush3.msra.mxu0 %v2074_v37 }
 0x592   : > { %14604 = vmatpush3.msra.mxu1 %v2150_v29  ;;  %14600 = vmatprep.mubr.msk.f32.mxu0 %vm15857_vm2, %v18629_v13  ;;  %v1836_v36 = vmul.f32 %v15509_v48, %v16301_v14  ;;  %v2610_v14 = vpop.permute.xlu0 %2609 }
 0x593   : > { %14608 = vmatprep.subr.mxu0 %v18629_v13  ;;  %14605 = vmatprep.mubr.msk.f32.mxu1 %vm15857_vm2, %v18629_v13 }
 0x594   : > { %14601 = vmatmul.mubr.msk.f32.vlgmr.msra.gmra.mrb[22].mxu0 %vm1079_vm3, %v1836_v36  ;;  %14613 = vmatprep.subr.mxu1 %v18629_v13 }
 0x595   : > { %v15511_v60 = vpop.eup %15510  ;;  %14609 = vmatpush3.msra.mxu0 %v2226_v40  ;;  %14610 = vmatprep.mubr.msk.f32.mxu0 %vm15857_vm2, %v18629_v13 }
 0x596   : > { %v15513_v2 = vpop.eup %15512  ;;  %14618 = vmatprep.subr.mxu0 %v18629_v13  ;;  %v1840_v37 = vmul.f32 %v15511_v60, %v16305_v24  ;;  %v2768_v24 = vpop.permute.xlu0 %2767 }
 0x597   : > { %v1838_v28 = vmul.f32 %v15513_v2, %v16307_v25 }
 0x598   : > { %14611 = vmatmul.mubr.msk.f32.vlgmr.msra.gmra.mrb[24].mxu0 %vm1079_vm3, %v1840_v37 }
 0x599   : > { %v15515_v21 = vpop.eup %15514  ;;  %14606 = vmatmul.mubr.msk.f32.vlgmr.msra.gmra.mrb[16].mxu1 %vm1079_vm3, %v1838_v28  ;;  %14619 = vmatpush3.msra.mxu0 %v16329_v41 }
 0x59a   : > { %14614 = vmatpush3.msra.mxu1 %v2302_v31  ;;  %14615 = vmatprep.mubr.msk.f32.mxu1 %vm15857_vm2, %v18629_v13  ;;  %v1842_v40 = vmul.f32 %v15515_v21, %v16313_v35  ;;  %v2766_v25 = vpop.permute.xlu0 %2765 }
 0x59b   : > { %14623 = vmatprep.subr.mxu1 %v18629_v13  ;;  %14620 = vmatprep.mubr.msk.f32.mxu0 %vm15857_vm2, %v18629_v13 }
 0x59c   : > { %14628 = vmatprep.subr.mxu0 %v18629_v13 }
 0x59d   : > { %14616 = vmatmul.mubr.msk.f32.vlgmr.msra.gmra.mrb[18].mxu1 %vm1079_vm3, %v1842_v40 }
 0x59e   : > { %14625 = vmatprep.mubr.msk.f32.mxu1 %vm15857_vm2, %v18629_v13  ;;  %v2924_v35 = vpop.permute.xlu0 %2923 }
 0x5a1   : > { %14624 = vmatpush3.xpose.msk.msra.mxu1 %vm1079_vm3, %v2456_v38 }
 0x5a2   : > { %14633 = vmatprep.subr.mxu1 %v18629_v13  ;;  %v2922_v41 = vpop.permute.xlu0 %2921 }
 0x5a4   : > { %14626 = vmatmul.mubr.msk.f32.vlgmr.msra.gmra.mrb[20].mxu1 %vm1079_vm3, %v2454_v54 }
 0x5a5   : > { %14634 = vmatpush3.xpose.msk.msra.mxu1 %vm1079_vm3, %v2612_v17  ;;  %14635 = vmatprep.mubr.msk.f32.mxu1 %vm15857_vm2, %v18629_v13 }
 0x5a6   : > { %14643 = vmatprep.subr.mxu1 %v18629_v13 }
 0x5a8   : > { %14636 = vmatmul.mubr.msk.f32.vlgmr.msra.gmra.mrb[22].mxu1 %vm1079_vm3, %v2610_v14 }
 0x5a9   : > { %14644 = vmatpush3.xpose.msk.msra.mxu1 %vm1079_vm3, %v2768_v24  ;;  %14645 = vmatprep.mubr.msk.f32.mxu1 %vm15857_vm2, %v18629_v13 }
 0x5aa   : > { %14653 = vmatprep.subr.mxu1 %v18629_v13 }
 0x5ac   : > { %14646 = vmatmul.mubr.msk.f32.vlgmr.msra.gmra.mrb[24].mxu1 %vm1079_vm3, %v2766_v25 }
 0x5ad   : > { %14654 = vmatpush3.xpose.msk.msra.mxu1 %vm1079_vm3, %v2924_v35  ;;  %14655 = vmatprep.mubr.msk.f32.mxu1 %vm15857_vm2, %v18629_v13 }
 0x5ae   : > { %14663 = vmatprep.subr.mxu1 %v18629_v13 }
 0x5b0   : > { %14656 = vmatmul.mubr.msk.f32.vlgmr.msra.gmra.mrb[26].mxu1 %vm1079_vm3, %v2922_v41 }
 0x5b1   : > { %14665 = vmatprep.mubr.msk.f32.mxu1 %vm15857_vm2, %v18629_v13 }
 0x5d6   : > { %v1828_v52 = vpop.xlane.xlu1 %1827 }
 0x5d7   : > { %15516 = vrcp.f32 %v1828_v52 }
 0x5da   : > { %v2846_v31 = vpop.permute.xlu1 %2845 }
 0x5de   : > { %v2844_v54 = vpop.permute.xlu1 %2843 }
 0x5e1   : > { %v15517_v29 = vpop.eup %15516 }
 0x5e2   : > { %v1844_v38 = vmul.f32 %v15517_v29, %v16336_v50 }
 0x5e4   : > { %14621 = vmatmul.mubr.msk.f32.vlgmr.msra.gmra.mrb[26].mxu0 %vm1079_vm3, %v1844_v38 }
 0x5e5   : > { %14629 = vmatpush3.xpose.msk.msra.mxu0 %vm1079_vm3, %v16331_v45  ;;  %14630 = vmatprep.mubr.msk.f32.mxu0 %vm15857_vm2, %v18629_v13  ;;  %v3002_v45 = vpop.permute.xlu1 %3001 }
 0x5e6   : > { %14638 = vmatprep.subr.mxu0 %v18629_v13 }
 0x5e8   : > { %14631 = vmatmul.mubr.msk.f32.vlgmr.msra.gmra.mrb[28].mxu0 %vm1079_vm3, %v16333_v46 }
 0x5e9   : > { %14639 = vmatpush3.xpose.msk.msra.mxu0 %vm1079_vm3, %v16348_v39  ;;  %14640 = vmatprep.mubr.msk.f32.mxu0 %vm15857_vm2, %v18629_v13  ;;  %v3000_v46 = vpop.permute.xlu1 %2999 }
 0x5ea   : > { %14648 = vmatprep.subr.mxu0 %v18629_v13 }
 0x5ec   : > { %14641 = vmatmul.mubr.msk.f32.vlgmr.msra.gmra.mrb[30].mxu0 %vm1079_vm3, %v2688_v47 }
 0x5ed   : > { %14649 = vmatpush3.xpose.msk.msra.mxu0 %vm1079_vm3, %v2846_v31  ;;  %14650 = vmatprep.mubr.msk.f32.mxu0 %vm15857_vm2, %v18629_v13 }
 0x5ee   : > { %14658 = vmatprep.subr.mxu0 %v18629_v13 }
 0x5f0   : > { %14651 = vmatmul.mubr.msk.f32.vlgmr.msra.gmra.mrb[32].mxu0 %vm1079_vm3, %v2844_v54 }
 0x5f1   : > { %14659 = vmatpush3.xpose.msk.msra.mxu0 %vm1079_vm3, %v3002_v45  ;;  %14660 = vmatprep.mubr.msk.f32.mxu0 %vm15857_vm2, %v18629_v13 }
 0x5f2   : > { %14668 = vmatprep.subr.mxu0 %v18629_v13 }
 0x5f4   : > { %14661 = vmatmul.mubr.msk.f32.vlgmr.msra.gmra.mrb[34].mxu0 %vm1079_vm3, %v3000_v46 }
 0x5f5   : > { %14670 = vmatprep.mubr.msk.f32.mxu0 %vm15857_vm2, %v18629_v13 }
 0x65f   : > { %v16432_v50 = vpop.f32.mrb[12].mxu1 }
 0x660   : > { %v14587_v17 = vpop.f32.mrb[13].mxu1 }
 0x663   : > { %v16434_v39 = vpop.f32.mrb[20].mxu0 }
 0x664   : > { %v16436_v58 = vpop.f32.mrb[14].mxu1  ;;  %v14592_v49 = vpop.f32.mrb[21].mxu0 }
 0x665   : > { %v14597_v42 = vpop.f32.mrb[15].mxu1 }
 0x667   : > { %v16438_v43 = vpop.f32.mrb[22].mxu0 }
 0x668   : > { %v14602_v56 = vpop.f32.mrb[23].mxu0 }
 0x66b   : > { %v16440_v62 = vpop.f32.mrb[24].mxu0 }
 0x66c   : > { %v16442_v5 = vpop.f32.mrb[16].mxu1  ;;  %v14612_v9 = vpop.f32.mrb[25].mxu0 }
 0x66d   : > { %v14607_v10 = vpop.f32.mrb[17].mxu1 }
 0x670   : > { %v16444_v15 = vpop.f32.mrb[18].mxu1 }
 0x671   : > { %v14617_v30 = vpop.f32.mrb[19].mxu1 }
 0x677   : > { %v2527_v55 = vpop.f32.mrb[20].mxu1 }
 0x678   : > { %v3077_v20 = vmul.f32 0.35355338, %v2527_v55  ;;  %v14627_v48 = vpop.f32.mrb[21].mxu1 }
 0x67a   : > { %v3085_v36 = vadd.f32 %v3077_v20, %v16214_v1 }
 0x67b   : > { %v2683_v60 = vpop.f32.mrb[22].mxu1 }
 0x67c   : > { %v3079_v2 = vmul.f32 0.35355338, %v2683_v60  ;;  %v14637_v37 = vpop.f32.mrb[23].mxu1  ;;  %v3093_v14 = vsel %vm1079_vm3, %v3085_v36, -inf }
 0x67d   : > { %3094 = vmax.xlane.f32.xlu0 %v3093_v14 }
 0x67e   : > { %v3087_v28 = vadd.f32 %v3079_v2, %v16221_v22 }
 0x67f   : > { %v2839_v21 = vpop.f32.mrb[24].mxu1 }
 0x680   : > { %v14647_v40 = vpop.f32.mrb[25].mxu1  ;;  %v3099_v24 = vsel %vm1079_vm3, %v3087_v28, -inf  ;;  %v3081_v45 = vmul.f32 0.35355338, %v2839_v21 }
 0x681   : > { %3100 = vmax.xlane.f32.xlu0 %v3099_v24 }
 0x682   : > { %v3089_v20 = vadd.f32 %v3081_v45, %v16233_v51 }
 0x683   : > { %v2995_v25 = vpop.f32.mrb[26].mxu1 }
 0x684   : > { %v14657_v35 = vpop.f32.mrb[27].mxu1  ;;  %v3083_v9 = vmul.f32 0.35355338, %v2995_v25  ;;  %v3105_v14 = vsel %vm1079_vm3, %v3089_v20, -inf }
 0x686   : > { %v3091_v21 = vadd.f32 %v3083_v9, %v16244_v6 }
 0x688   : > { %v3111_v40 = vsel %vm1079_vm3, %v3091_v21, -inf }
 0x6b7   : > { %v16450_v41 = vpop.f32.mrb[26].mxu0 }
 0x6b8   : > { %v14622_v47 = vpop.f32.mrb[27].mxu0 }
 0x6bb   : > { %v2605_v52 = vpop.f32.mrb[28].mxu0 }
 0x6bc   : > { %v3078_v29 = vmul.f32 0.35355338, %v2605_v52  ;;  %v14632_v31 = vpop.f32.mrb[29].mxu0 }
 0x6be   : > { %v3086_v38 = vadd.f32 %v3078_v29, %v16219_v19 }
 0x6bf   : > { %v2761_v54 = vpop.f32.mrb[30].mxu0 }
 0x6c0   : > { %v3080_v46 = vmul.f32 0.35355338, %v2761_v54  ;;  %v14642_v17 = vpop.f32.mrb[31].mxu0  ;;  %v3096_v49 = vsel %vm1079_vm3, %v3086_v38, -inf }
 0x6c1   : > { %3097 = vmax.xlane.f32.xlu1 %v3096_v49 }
 0x6c2   : > { %v3088_v42 = vadd.f32 %v3080_v46, %v16231_v44 }
 0x6c3   : > { %v2917_v56 = vpop.f32.mrb[32].mxu0 }
 0x6c4   : > { %v3082_v10 = vmul.f32 0.35355338, %v2917_v56  ;;  %v14652_v30 = vpop.f32.mrb[33].mxu0  ;;  %v3102_v55 = vsel %vm1079_vm3, %v3088_v42, -inf }
 0x6c5   : > { %3103 = vmax.xlane.f32.xlu0 %v3102_v55 }
 0x6c6   : > { %v3090_v48 = vadd.f32 %v3082_v10, %v16240_v53 }
 0x6c7   : > { %v3073_v60 = vpop.f32.mrb[34].mxu0 }
 0x6c8   : > { %v14662_v2 = vpop.f32.mrb[35].mxu0  ;;  %v3108_v37 = vsel %vm1079_vm3, %v3090_v48, -inf  ;;  %v3084_v35 = vmul.f32 0.35355338, %v3073_v60 }
 0x6c9   : > { %3109 = vmax.xlane.f32.xlu1 %v3108_v37  ;;  %3106 = vmax.xlane.f32.xlu0 %v3105_v14 }
 0x6ca   : > { %v16489_v54 = vadd.f32 %v3084_v35, %v16212_v57 }
 0x6cc   : > { %v3114_v45 = vsel %vm1079_vm3, %v16489_v54, -inf }
 0x6cd   : > { %3112 = vmax.xlane.f32.xlu0 %v3111_v40 }
 0x6da   : > { %3257 = vrot.lane.b32.xlu1 %v16122_v16, %s18656_s20 }
 0x6de   : > { %3333 = vrot.lane.b32.xlu1 %v16130_v23, %s18656_s20 }
 0x6e2   : > { %3409 = vrot.lane.b32.xlu1 %v16134_v26, %s18656_s20 }
 0x6e3   : > { %3181 = vrot.lane.b32.xlu0 %v16124_v18, %s18656_s20 }
 0x6e6   : > { %3561 = vrot.lane.b32.xlu1 %v16142_v32, %s18656_s20 }
 0x6e7   : > { %3485 = vrot.lane.b32.xlu0 %v16136_v27, %s18656_s20 }
 0x6ea   : > { %3713 = vrot.lane.b32.xlu1 %v16150_v34, %s18656_s20 }
 0x6eb   : > { %3637 = vrot.lane.b32.xlu0 %v16144_v33, %s18656_s20  ;;  %s18718_s20 = smov 72  }
 0x6ee   : > { %3869 = vrot.lane.b32.xlu1 %v16122_v16, %s18654_s21 }
 0x6ef   : > { %3791 = vrot.lane.b32.xlu0 %v16124_v18, %s18654_s21 }
 0x6f2   : > { %3867 = vrot.lane.b32.xlu1 %v16122_v16, %s18652_s22 }
 0x6f3   : > { %3789 = vrot.lane.b32.xlu0 %v16124_v18, %s18652_s22 }
 0x6f7   : > { %3947 = vrot.lane.b32.xlu0 %v16130_v23, %s18654_s21 }
 0x70a   : > { %v3095_v24 = vpop.xlane.xlu0 %3094 }
 0x70b   : > { %v3117_v25 = vsub.f32 %v3085_v36, %v3095_v24 }
 0x70d   : > { %v3125_v47 = vmul.f32 1.442695, %v3117_v25 }
 0x70e   : > { %v3101_v52 = vpop.xlane.xlu0 %3100 }
 0x70f   : > { %15518 = vpow2.f32 %v3125_v47  ;;  %v3119_v29 = vsub.f32 %v3087_v28, %v3101_v52 }
 0x711   : > { %v3129_v31 = vmul.f32 1.442695, %v3119_v29 }
 0x713   : > { %15520 = vpow2.f32 %v3129_v31 }
 0x716   : > { %3115 = vmax.xlane.f32.xlu1 %v3114_v45 }
 0x719   : > { %v16493_v46 = vpop.eup %15518 }
 0x71a   : > { %v3141_v17 = vsel %vm1079_vm3, %v16493_v46, 0.0 }
 0x71b   : > { %3142 = vadd.xlane.f32.xlu0 %v3141_v17 }
 0x71d   : > { %v16497_v36 = vpop.eup %15520 }
 0x71e   : > { %v3147_v28 = vsel %vm1079_vm3, %v16497_v36, 0.0 }
 0x71f   : > { %3148 = vadd.xlane.f32.xlu0 %v3147_v28 }
 0x727   : > { %4025 = vrot.lane.b32.xlu1 %v16134_v26, %s18654_s21 }
 0x74e   : > { %v3098_v49 = vpop.xlane.xlu1 %3097 }
 0x74f   : > { %v3118_v56 = vsub.f32 %v3086_v38, %v3098_v49 }
 0x751   : > { %v3127_v9 = vmul.f32 1.442695, %v3118_v56 }
 0x752   : > { %v3104_v10 = vpop.xlane.xlu0 %3103 }
 0x753   : > { %15522 = vpow2.f32 %v3127_v9  ;;  %v3120_v30 = vsub.f32 %v3088_v42, %v3104_v10 }
 0x755   : > { %v3131_v55 = vmul.f32 1.442695, %v3120_v30 }
 0x756   : > { %v3110_v60 = vpop.xlane.xlu1 %3109  ;;  %v3107_v2 = vpop.xlane.xlu0 %3106 }
 0x757   : > { %15524 = vpow2.f32 %v3131_v55  ;;  %v3122_v37 = vsub.f32 %v3090_v48, %v3110_v60  ;;  %v3121_v14 = vsub.f32 %v3089_v20, %v3107_v2 }
 0x759   : > { %v3135_v40 = vmul.f32 1.442695, %v3122_v37  ;;  %v3133_v24 = vmul.f32 1.442695, %v3121_v14 }
 0x75a   : > { %v3258_v25 = vpop.permute.xlu1 %3257  ;;  %v3113_v35 = vpop.xlane.xlu0 %3112 }
 0x75b   : > { %15526 = vpow2.f32 %v3135_v40  ;;  %v3123_v47 = vsub.f32 %v3091_v21, %v3113_v35  ;;  %14669 = vmatpush3.msra.mxu0 %v3258_v25 }
 0x75c   : > { %15528 = vpow2.f32 %v3133_v24  ;;  %14678 = vmatprep.subr.mxu0 %v18629_v13 }
 0x75d   : > { %v16504_v38 = vpop.eup %15522  ;;  %v3137_v52 = vmul.f32 1.442695, %v3123_v47 }
 0x75e   : > { %v3182_v42 = vpop.permute.xlu0 %3181  ;;  %v3144_v29 = vsel %vm1079_vm3, %v16504_v38, 0.0  ;;  %v3334_v56 = vpop.permute.xlu1 %3333 }
 0x75f   : > { %15530 = vpow2.f32 %v3137_v52  ;;  %3145 = vadd.xlane.f32.xlu1 %v3144_v29  ;;  %14664 = vmatpush3.msra.mxu1 %v3182_v42 }
 0x760   : > { %14673 = vmatprep.subr.mxu1 %v18629_v13 }
 0x761   : > { %v16509_v20 = vpop.eup %15524 }
 0x762   : > { %v3150_v48 = vsel %vm1079_vm3, %v16509_v20, 0.0  ;;  %v3410_v9 = vpop.permute.xlu1 %3409  ;;  %v3486_v10 = vpop.permute.xlu0 %3485 }
 0x763   : > { %3151 = vadd.xlane.f32.xlu1 %v3150_v48 }
 0x765   : > { %v16513_v21 = vpop.eup %15526 }
 0x766   : > { %v16515_v31 = vpop.eup %15528  ;;  %v3156_v45 = vsel %vm1079_vm3, %v16513_v21, 0.0  ;;  %v3562_v30 = vpop.permute.xlu1 %3561 }
 0x767   : > { %3157 = vadd.xlane.f32.xlu1 %v3156_v45  ;;  %v3153_v17 = vsel %vm1079_vm3, %v16515_v31, 0.0  ;;  %v16535_v55 = vpop.permute.xlu0 %3637 }
 0x768   : > { %3154 = vadd.xlane.f32.xlu0 %v3153_v17 }
 0x769   : > { %v16521_v28 = vpop.eup %15530 }
 0x76a   : > { %v3159_v49 = vsel %vm1079_vm3, %v16521_v28, 0.0  ;;  %v16539_v60 = vpop.permute.xlu1 %3713 }
 0x76b   : > { %v16541_v2 = vpop.permute.xlu0 %3791 }
 0x76c   : > { %3160 = vadd.xlane.f32.xlu0 %v3159_v49 }
 0x76e   : > { %v16543_v37 = vpop.permute.xlu1 %3869 }
 0x76f   : > { %v16545_v14 = vpop.permute.xlu0 %3789 }
 0x772   : > { %v16547_v40 = vpop.permute.xlu1 %3867 }
 0x773   : > { %v16549_v25 = vpop.permute.xlu0 %3947 }
 0x778   : > { %4023 = vrot.lane.b32.xlu1 %v16134_v26, %s18652_s22 }
 0x782   : > { %3945 = vrot.lane.b32.xlu0 %v16130_v23, %s18652_s22 }
 0x786   : > { %4103 = vrot.lane.b32.xlu0 %v16136_v27, %s18654_s21 }
 0x78a   : > { %4101 = vrot.lane.b32.xlu0 %v16136_v27, %s18652_s22 }
 0x78e   : > { %4259 = vrot.lane.b32.xlu0 %v16144_v33, %s18654_s21 }
 0x792   : > { %4257 = vrot.lane.b32.xlu0 %v16144_v33, %s18652_s22 }
 0x7a3   : > { %v3116_v24 = vpop.xlane.xlu1 %3115 }
 0x7a4   : > { %v3124_v35 = vsub.f32 %v16489_v54, %v3116_v24 }
 0x7a6   : > { %v3139_v47 = vmul.f32 1.442695, %v3124_v35 }
 0x7a8   : > { %15532 = vpow2.f32 %v3139_v47  ;;  %v3143_v52 = vpop.xlane.xlu0 %3142 }
 0x7a9   : > { %15534 = vrcp.f32 %v3143_v52 }
 0x7ac   : > { %v3149_v42 = vpop.xlane.xlu0 %3148 }
 0x7ad   : > { %15536 = vrcp.f32 %v3149_v42 }
 0x7b2   : > { %v16552_v29 = vpop.eup %15532 }
 0x7b3   : > { %v15535_v48 = vpop.eup %15534  ;;  %v3162_v45 = vsel %vm1079_vm3, %v16552_v29, 0.0 }
 0x7b4   : > { %v3166_v17 = vmul.f32 %v15535_v48, %v16493_v46  ;;  %3163 = vadd.xlane.f32.xlu1 %v3162_v45  ;;  %v16574_v46 = vpop.permute.xlu1 %4025 }
 0x7b6   : > { %14666 = vmatmul.mubr.msk.f32.vlgmr.msra.gmra.mrb[28].mxu1 %vm1079_vm3, %v3166_v17 }
 0x7b7   : > { %v15537_v49 = vpop.eup %15536  ;;  %14674 = vmatpush3.msra.mxu1 %v3334_v56  ;;  %14675 = vmatprep.mubr.msk.f32.mxu1 %vm15857_vm2, %v18629_v13 }
 0x7b8   : > { %14683 = vmatprep.subr.mxu1 %v18629_v13  ;;  %v3170_v54 = vmul.f32 %v15537_v49, %v16497_v36 }
 0x7ba   : > { %14676 = vmatmul.mubr.msk.f32.vlgmr.msra.gmra.mrb[30].mxu1 %vm1079_vm3, %v3170_v54 }
 0x7bb   : > { %14684 = vmatpush3.msra.mxu1 %v3486_v10  ;;  %14685 = vmatprep.mubr.msk.f32.mxu1 %vm15857_vm2, %v18629_v13 }
 0x7bc   : > { %14693 = vmatprep.subr.mxu1 %v18629_v13 }
 0x7c5   : > { %4181 = vrot.lane.b32.xlu1 %v16142_v32, %s18654_s21 }
 0x7c9   : > { %4179 = vrot.lane.b32.xlu1 %v16142_v32, %s18652_s22 }
 0x7cd   : > { %4337 = vrot.lane.b32.xlu1 %v16150_v34, %s18654_s21  ;;  %s18719_s21 = smov 104  }
 0x7d1   : > { %4335 = vrot.lane.b32.xlu1 %v16150_v34, %s18652_s22  ;;  %s18721_s22 = smov 8  }
 0x7ec   : > { %v3146_v36 = vpop.xlane.xlu1 %3145 }
 0x7ed   : > { %15538 = vrcp.f32 %v3146_v36 }
 0x7f0   : > { %v3152_v56 = vpop.xlane.xlu1 %3151 }
 0x7f1   : > { %15540 = vrcp.f32 %v3152_v56 }
 0x7f4   : > { %v3158_v10 = vpop.xlane.xlu1 %3157 }
 0x7f5   : > { %15542 = vrcp.f32 %v3158_v10  ;;  %v3155_v24 = vpop.xlane.xlu0 %3154 }
 0x7f6   : > { %15544 = vrcp.f32 %v3155_v24 }
 0x7f7   : > { %v15539_v35 = vpop.eup %15538 }
 0x7f8   : > { %v3168_v47 = vmul.f32 %v15539_v35, %v16504_v38 }
 0x7f9   : > { %v3161_v52 = vpop.xlane.xlu0 %3160 }
 0x7fa   : > { %15546 = vrcp.f32 %v3161_v52  ;;  %14671 = vmatmul.mubr.msk.f32.vlgmr.msra.gmra.mrb[36].mxu0 %vm1079_vm3, %v3168_v47 }
 0x7fb   : > { %v15541_v42 = vpop.eup %15540  ;;  %14679 = vmatpush3.msra.mxu0 %v3410_v9  ;;  %14680 = vmatprep.mubr.msk.f32.mxu0 %vm15857_vm2, %v18629_v13 }
 0x7fc   : > { %14688 = vmatprep.subr.mxu0 %v18629_v13  ;;  %v3172_v48 = vmul.f32 %v15541_v42, %v16509_v20 }
 0x7fd   : > { %v3946_v9 = vpop.permute.xlu0 %3945 }
 0x7fe   : > { %14681 = vmatmul.mubr.msk.f32.vlgmr.msra.gmra.mrb[38].mxu0 %vm1079_vm3, %v3172_v48 }
 0x7ff   : > { %v15543_v45 = vpop.eup %15542  ;;  %14689 = vmatpush3.msra.mxu0 %v3562_v30  ;;  %14690 = vmatprep.mubr.msk.f32.mxu0 %vm15857_vm2, %v18629_v13 }
 0x800   : > { %v15545_v38 = vpop.eup %15544  ;;  %14698 = vmatprep.subr.mxu0 %v18629_v13  ;;  %v3176_v17 = vmul.f32 %v15543_v45, %v16513_v21 }
 0x801   : > { %v3174_v49 = vmul.f32 %v15545_v38, %v16515_v31  ;;  %v4104_v21 = vpop.permute.xlu0 %4103 }
 0x802   : > { %14691 = vmatmul.mubr.msk.f32.vlgmr.msra.gmra.mrb[40].mxu0 %vm1079_vm3, %v3176_v17 }
 0x803   : > { %14686 = vmatmul.mubr.msk.f32.vlgmr.msra.gmra.mrb[32].mxu1 %vm1079_vm3, %v3174_v49  ;;  %14699 = vmatpush3.msra.mxu0 %v16539_v60  ;;  %v4024_v60 = vpop.permute.xlu1 %4023 }
 0x804   : > { %v15547_v20 = vpop.eup %15546  ;;  %14694 = vmatpush3.msra.mxu1 %v16535_v55  ;;  %14695 = vmatprep.mubr.msk.f32.mxu1 %vm15857_vm2, %v18629_v13 }
 0x805   : > { %v3178_v30 = vmul.f32 %v15547_v20, %v16521_v28  ;;  %14703 = vmatprep.subr.mxu1 %v18629_v13  ;;  %14700 = vmatprep.mubr.msk.f32.mxu0 %vm15857_vm2, %v18629_v13  ;;  %v4102_v31 = vpop.permute.xlu0 %4101 }
 0x806   : > { %14708 = vmatprep.subr.mxu0 %v18629_v13 }
 0x807   : > { %14696 = vmatmul.mubr.msk.f32.vlgmr.msra.gmra.mrb[34].mxu1 %vm1079_vm3, %v3178_v30 }
 0x808   : > { %14705 = vmatprep.mubr.msk.f32.mxu1 %vm15857_vm2, %v18629_v13 }
 0x809   : > { %v4260_v28 = vpop.permute.xlu0 %4259 }
 0x80b   : > { %14704 = vmatpush3.xpose.msk.msra.mxu1 %vm1079_vm3, %v16541_v2 }
 0x80c   : > { %14713 = vmatprep.subr.mxu1 %v18629_v13 }
 0x80d   : > { %v4258_v55 = vpop.permute.xlu0 %4257 }
 0x80e   : > { %14706 = vmatmul.mubr.msk.f32.vlgmr.msra.gmra.mrb[36].mxu1 %vm1079_vm3, %v16545_v14 }
 0x80f   : > { %14714 = vmatpush3.xpose.msk.msra.mxu1 %vm1079_vm3, %v16549_v25  ;;  %14715 = vmatprep.mubr.msk.f32.mxu1 %vm15857_vm2, %v18629_v13 }
 0x810   : > { %14723 = vmatprep.subr.mxu1 %v18629_v13 }
 0x812   : > { %14716 = vmatmul.mubr.msk.f32.vlgmr.msra.gmra.mrb[38].mxu1 %vm1079_vm3, %v3946_v9 }
 0x813   : > { %14724 = vmatpush3.xpose.msk.msra.mxu1 %vm1079_vm3, %v4104_v21  ;;  %14725 = vmatprep.mubr.msk.f32.mxu1 %vm15857_vm2, %v18629_v13 }
 0x814   : > { %14733 = vmatprep.subr.mxu1 %v18629_v13 }
 0x816   : > { %14726 = vmatmul.mubr.msk.f32.vlgmr.msra.gmra.mrb[40].mxu1 %vm1079_vm3, %v4102_v31 }
 0x817   : > { %14734 = vmatpush3.xpose.msk.msra.mxu1 %vm1079_vm3, %v4260_v28  ;;  %14735 = vmatprep.mubr.msk.f32.mxu1 %vm15857_vm2, %v18629_v13 }
 0x818   : > { %14743 = vmatprep.subr.mxu1 %v18629_v13 }
 0x81a   : > { %14736 = vmatmul.mubr.msk.f32.vlgmr.msra.gmra.mrb[42].mxu1 %vm1079_vm3, %v4258_v55 }
 0x81b   : > { %14745 = vmatprep.mubr.msk.f32.mxu1 %vm15857_vm2, %v18629_v13 }
 0x841   : > { %v3164_v2 = vpop.xlane.xlu1 %3163 }
 0x842   : > { %15548 = vrcp.f32 %v3164_v2 }
 0x845   : > { %v4182_v25 = vpop.permute.xlu1 %4181 }
 0x849   : > { %v4180_v36 = vpop.permute.xlu1 %4179 }
 0x84c   : > { %v15549_v14 = vpop.eup %15548 }
 0x84d   : > { %v3180_v54 = vmul.f32 %v15549_v14, %v16552_v29 }
 0x84f   : > { %14701 = vmatmul.mubr.msk.f32.vlgmr.msra.gmra.mrb[42].mxu0 %vm1079_vm3, %v3180_v54 }
 0x850   : > { %14709 = vmatpush3.xpose.msk.msra.mxu0 %vm1079_vm3, %v16543_v37  ;;  %14710 = vmatprep.mubr.msk.f32.mxu0 %vm15857_vm2, %v18629_v13  ;;  %v4338_v37 = vpop.permute.xlu1 %4337 }
 0x851   : > { %14718 = vmatprep.subr.mxu0 %v18629_v13 }
 0x853   : > { %14711 = vmatmul.mubr.msk.f32.vlgmr.msra.gmra.mrb[44].mxu0 %vm1079_vm3, %v16547_v40 }
 0x854   : > { %14719 = vmatpush3.xpose.msk.msra.mxu0 %vm1079_vm3, %v16574_v46  ;;  %14720 = vmatprep.mubr.msk.f32.mxu0 %vm15857_vm2, %v18629_v13  ;;  %v4336_v40 = vpop.permute.xlu1 %4335 }
 0x855   : > { %14728 = vmatprep.subr.mxu0 %v18629_v13 }
 0x857   : > { %14721 = vmatmul.mubr.msk.f32.vlgmr.msra.gmra.mrb[46].mxu0 %vm1079_vm3, %v4024_v60 }
 0x858   : > { %14729 = vmatpush3.xpose.msk.msra.mxu0 %vm1079_vm3, %v4182_v25  ;;  %14730 = vmatprep.mubr.msk.f32.mxu0 %vm15857_vm2, %v18629_v13 }
 0x859   : > { %14738 = vmatprep.subr.mxu0 %v18629_v13 }
 0x85b   : > { %14731 = vmatmul.mubr.msk.f32.vlgmr.msra.gmra.mrb[48].mxu0 %vm1079_vm3, %v4180_v36 }
 0x85c   : > { %14739 = vmatpush3.xpose.msk.msra.mxu0 %vm1079_vm3, %v4338_v37  ;;  %14740 = vmatprep.mubr.msk.f32.mxu0 %vm15857_vm2, %v18629_v13 }
 0x85d   : > { %14748 = vmatprep.subr.mxu0 %v18629_v13 }
 0x85f   : > { %14741 = vmatmul.mubr.msk.f32.vlgmr.msra.gmra.mrb[50].mxu0 %vm1079_vm3, %v4336_v40 }
 0x860   : > { %14750 = vmatprep.mubr.msk.f32.mxu0 %vm15857_vm2, %v18629_v13 }
 0x889   : > { %v16652_v29 = vpop.f32.mrb[28].mxu1 }
 0x88a   : > { %v14667_v46 = vpop.f32.mrb[29].mxu1 }
 0x88d   : > { %v16654_v56 = vpop.f32.mrb[30].mxu1 }
 0x88e   : > { %v14677_v10 = vpop.f32.mrb[31].mxu1 }
 0x8cd   : > { %v16656_v24 = vpop.f32.mrb[36].mxu0 }
 0x8ce   : > { %v14672_v35 = vpop.f32.mrb[37].mxu0 }
 0x8d1   : > { %v16658_v47 = vpop.f32.mrb[38].mxu0 }
 0x8d2   : > { %v14682_v52 = vpop.f32.mrb[39].mxu0 }
 0x8d5   : > { %v16660_v42 = vpop.f32.mrb[40].mxu0 }
 0x8d6   : > { %v16662_v48 = vpop.f32.mrb[32].mxu1  ;;  %v14692_v45 = vpop.f32.mrb[41].mxu0 }
 0x8d7   : > { %v14687_v38 = vpop.f32.mrb[33].mxu1 }
 0x8da   : > { %v16664_v17 = vpop.f32.mrb[34].mxu1 }
 0x8db   : > { %v14697_v9 = vpop.f32.mrb[35].mxu1 }
 0x8e1   : > { %v3863_v49 = vpop.f32.mrb[36].mxu1 }
 0x8e2   : > { %v4413_v20 = vmul.f32 0.35355338, %v3863_v49  ;;  %v14707_v30 = vpop.f32.mrb[37].mxu1 }
 0x8e4   : > { %v4421_v21 = vadd.f32 %v4413_v20, %v16214_v1 }
 0x8e5   : > { %v4019_v31 = vpop.f32.mrb[38].mxu1 }
 0x8e6   : > { %v4415_v28 = vmul.f32 0.35355338, %v4019_v31  ;;  %v14717_v55 = vpop.f32.mrb[39].mxu1  ;;  %v4429_v60 = vsel %vm1079_vm3, %v4421_v21, -inf }
 0x8e7   : > { %4430 = vmax.xlane.f32.xlu0 %v4429_v60 }
 0x8e8   : > { %v4423_v2 = vadd.f32 %v4415_v28, %v16221_v22 }
 0x8e9   : > { %v4175_v14 = vpop.f32.mrb[40].mxu1 }
 0x8ea   : > { %v14727_v25 = vpop.f32.mrb[41].mxu1  ;;  %v4435_v54 = vsel %vm1079_vm3, %v4423_v2, -inf  ;;  %v4417_v9 = vmul.f32 0.35355338, %v4175_v14 }
 0x8eb   : > { %4436 = vmax.xlane.f32.xlu0 %v4435_v54 }
 0x8ec   : > { %v16676_v55 = vadd.f32 %v4417_v9, %v16233_v51 }
 0x8ed   : > { %v4331_v36 = vpop.f32.mrb[42].mxu1 }
 0x8ee   : > { %v14737_v37 = vpop.f32.mrb[43].mxu1  ;;  %v4419_v60 = vmul.f32 0.35355338, %v4331_v36 }
 0x922   : > { %v16670_v40 = vpop.f32.mrb[42].mxu0 }
 0x923   : > { %v14702_v46 = vpop.f32.mrb[43].mxu0 }
 0x926   : > { %v3941_v10 = vpop.f32.mrb[44].mxu0 }
 0x927   : > { %v4414_v35 = vmul.f32 0.35355338, %v3941_v10  ;;  %v14712_v52 = vpop.f32.mrb[45].mxu0  ;;  %v16681_v10 = vadd.f32 %v4419_v60, %v16244_v6 }
 0x929   : > { %v4422_v45 = vadd.f32 %v4414_v35, %v16219_v19  ;;  %v4447_v36 = vsel %vm1079_vm3, %v16681_v10, -inf }
 0x92a   : > { %v4097_v38 = vpop.f32.mrb[46].mxu0 }
 0x92b   : > { %v4416_v49 = vmul.f32 0.35355338, %v4097_v38  ;;  %v14722_v20 = vpop.f32.mrb[47].mxu0  ;;  %v4432_v30 = vsel %vm1079_vm3, %v4422_v45, -inf  ;;  %v4441_v38 = vsel %vm1079_vm3, %v16676_v55, -inf }
 0x92c   : > { %4433 = vmax.xlane.f32.xlu1 %v4432_v30 }
 0x92d   : > { %v4424_v31 = vadd.f32 %v4416_v49, %v16231_v44 }
 0x92e   : > { %v4253_v28 = vpop.f32.mrb[48].mxu0 }
 0x92f   : > { %v4418_v25 = vmul.f32 0.35355338, %v4253_v28  ;;  %v14732_v54 = vpop.f32.mrb[49].mxu0  ;;  %v4438_v37 = vsel %vm1079_vm3, %v4424_v31, -inf }
 0x930   : > { %4439 = vmax.xlane.f32.xlu0 %v4438_v37 }
 0x931   : > { %v4426_v46 = vadd.f32 %v4418_v25, %v16240_v53 }
 0x932   : > { %v4409_v14 = vpop.f32.mrb[50].mxu0 }
 0x933   : > { %v14742_v35 = vpop.f32.mrb[51].mxu0  ;;  %v4444_v52 = vsel %vm1079_vm3, %v4426_v46, -inf  ;;  %v4420_v30 = vmul.f32 0.35355338, %v4409_v14 }
 0x934   : > { %4445 = vmax.xlane.f32.xlu1 %v4444_v52  ;;  %4442 = vmax.xlane.f32.xlu0 %v4441_v38 }
 0x935   : > { %v16715_v54 = vadd.f32 %v4420_v30, %v16212_v57 }
 0x937   : > { %v4450_v37 = vsel %vm1079_vm3, %v16715_v54, -inf }
 0x938   : > { %4448 = vmax.xlane.f32.xlu0 %v4447_v36 }
 0x945   : > { %4593 = vrot.lane.b32.xlu1 %v16122_v16, %s18650_s23 }
 0x949   : > { %4669 = vrot.lane.b32.xlu1 %v16130_v23, %s18650_s23 }
 0x94d   : > { %4745 = vrot.lane.b32.xlu1 %v16134_v26, %s18650_s23 }
 0x94e   : > { %4517 = vrot.lane.b32.xlu0 %v16124_v18, %s18650_s23 }
 0x951   : > { %4897 = vrot.lane.b32.xlu1 %v16142_v32, %s18650_s23 }
 0x952   : > { %4821 = vrot.lane.b32.xlu0 %v16136_v27, %s18650_s23 }
 0x955   : > { %5049 = vrot.lane.b32.xlu1 %v16150_v34, %s18650_s23 }
 0x956   : > { %4973 = vrot.lane.b32.xlu0 %v16144_v33, %s18650_s23 }
 0x959   : > { %5205 = vrot.lane.b32.xlu1 %v16122_v16, %s18648_s28 }
 0x95a   : > { %5127 = vrot.lane.b32.xlu0 %v16124_v18, %s18648_s28 }
 0x95d   : > { %5203 = vrot.lane.b32.xlu1 %v16122_v16, %s18646_s29 }
 0x95e   : > { %5125 = vrot.lane.b32.xlu0 %v16124_v18, %s18646_s29 }
 0x962   : > { %5283 = vrot.lane.b32.xlu0 %v16130_v23, %s18648_s28 }
 0x974   : > { %v4431_v9 = vpop.xlane.xlu0 %4430 }
 0x975   : > { %v4453_v49 = vsub.f32 %v4421_v21, %v4431_v9 }
 0x977   : > { %v4461_v20 = vmul.f32 1.442695, %v4453_v49 }
 0x978   : > { %v4437_v28 = vpop.xlane.xlu0 %4436 }
 0x979   : > { %15550 = vpow2.f32 %v4461_v20  ;;  %v4455_v60 = vsub.f32 %v4423_v2, %v4437_v28 }
 0x97b   : > { %v4465_v25 = vmul.f32 1.442695, %v4455_v60 }
 0x97d   : > { %15552 = vpow2.f32 %v4465_v25 }
 0x981   : > { %4451 = vmax.xlane.f32.xlu1 %v4450_v37 }
 0x983   : > { %v16719_v35 = vpop.eup %15550 }
 0x984   : > { %v4477_v52 = vsel %vm1079_vm3, %v16719_v35, 0.0 }
 0x985   : > { %4478 = vadd.xlane.f32.xlu0 %v4477_v52 }
 0x987   : > { %v16723_v21 = vpop.eup %15552 }
 0x988   : > { %v4483_v2 = vsel %vm1079_vm3, %v16723_v21, 0.0 }
 0x989   : > { %4484 = vadd.xlane.f32.xlu0 %v4483_v2 }
 0x992   : > { %5361 = vrot.lane.b32.xlu1 %v16134_v26, %s18648_s28 }
 0x9b9   : > { %v4434_v14 = vpop.xlane.xlu1 %4433 }
 0x9ba   : > { %v4454_v38 = vsub.f32 %v4422_v45, %v4434_v14  ;;  %v18686_v45 = vmov 0.0  }
 0x9bc   : > { %v4463_v36 = vmul.f32 1.442695, %v4454_v38 }
 0x9bd   : > { %v4440_v9 = vpop.xlane.xlu0 %4439 }
 0x9be   : > { %15554 = vpow2.f32 %v4463_v36  ;;  %v4456_v49 = vsub.f32 %v4424_v31, %v4440_v9 }
 0x9c0   : > { %v4467_v20 = vmul.f32 1.442695, %v4456_v49 }
 0x9c1   : > { %v4446_v30 = vpop.xlane.xlu1 %4445  ;;  %v4443_v28 = vpop.xlane.xlu0 %4442 }
 0x9c2   : > { %15556 = vpow2.f32 %v4467_v20  ;;  %v4458_v60 = vsub.f32 %v4426_v46, %v4446_v30  ;;  %v4457_v25 = vsub.f32 %v16676_v55, %v4443_v28 }
 0x9c4   : > { %v4471_v37 = vmul.f32 1.442695, %v4458_v60  ;;  %v4469_v52 = vmul.f32 1.442695, %v4457_v25 }
 0x9c5   : > { %v4594_v13 = vpop.permute.xlu1 %4593  ;;  %v4449_v2 = vpop.xlane.xlu0 %4448 }
 0x9c6   : > { %15558 = vpow2.f32 %v4471_v37  ;;  %v4459_v59 = vsub.f32 %v16681_v10, %v4449_v2  ;;  %14749 = vmatpush3.msra.mxu0 %v4594_v13 }
 0x9c7   : > { %15560 = vpow2.f32 %v4469_v52  ;;  %14758 = vmatprep.subr.mxu0 %v18686_v45 }
 0x9c8   : > { %v16732_v14 = vpop.eup %15554  ;;  %v4473_v31 = vmul.f32 1.442695, %v4459_v59 }
 0x9c9   : > { %v4518_v38 = vpop.permute.xlu0 %4517  ;;  %v4480_v46 = vsel %vm1079_vm3, %v16732_v14, 0.0  ;;  %v4670_v30 = vpop.permute.xlu1 %4669 }
 0x9ca   : > { %15562 = vpow2.f32 %v4473_v31  ;;  %4481 = vadd.xlane.f32.xlu1 %v4480_v46  ;;  %14744 = vmatpush3.msra.mxu1 %v4518_v38 }
 0x9cb   : > { %14753 = vmatprep.subr.mxu1 %v18686_v45 }
 0x9cc   : > { %v16737_v55 = vpop.eup %15556 }
 0x9cd   : > { %v4486_v13 = vsel %vm1079_vm3, %v16737_v55, 0.0  ;;  %v4746_v28 = vpop.permute.xlu1 %4745  ;;  %v4822_v60 = vpop.permute.xlu0 %4821 }
 0x9ce   : > { %4487 = vadd.xlane.f32.xlu1 %v4486_v13 }
 0x9d0   : > { %v16741_v10 = vpop.eup %15558 }
 0x9d1   : > { %v16743_v36 = vpop.eup %15560  ;;  %v4492_v59 = vsel %vm1079_vm3, %v16741_v10, 0.0  ;;  %v4898_v25 = vpop.permute.xlu1 %4897 }
 0x9d2   : > { %4493 = vadd.xlane.f32.xlu1 %v4492_v59  ;;  %v4489_v9 = vsel %vm1079_vm3, %v16743_v36, 0.0  ;;  %v16763_v37 = vpop.permute.xlu0 %4973 }
 0x9d3   : > { %4490 = vadd.xlane.f32.xlu0 %v4489_v9 }
 0x9d4   : > { %v16749_v49 = vpop.eup %15562 }
 0x9d5   : > { %v4495_v20 = vsel %vm1079_vm3, %v16749_v49, 0.0  ;;  %v16767_v52 = vpop.permute.xlu1 %5049 }
 0x9d6   : > { %v16769_v2 = vpop.permute.xlu0 %5127 }
 0x9d7   : > { %4496 = vadd.xlane.f32.xlu0 %v4495_v20 }
 0x9d9   : > { %v16771_v31 = vpop.permute.xlu1 %5205 }
 0x9da   : > { %v16773_v38 = vpop.permute.xlu0 %5125 }
 0x9dd   : > { %v16775_v46 = vpop.permute.xlu1 %5203 }
 0x9de   : > { %v16777_v13 = vpop.permute.xlu0 %5283 }
 0x9e3   : > { %5359 = vrot.lane.b32.xlu1 %v16134_v26, %s18646_s29 }
 0x9ed   : > { %5281 = vrot.lane.b32.xlu0 %v16130_v23, %s18646_s29 }
 0x9f1   : > { %5439 = vrot.lane.b32.xlu0 %v16136_v27, %s18648_s28 }
 0x9f5   : > { %5437 = vrot.lane.b32.xlu0 %v16136_v27, %s18646_s29 }
 0x9f9   : > { %5595 = vrot.lane.b32.xlu0 %v16144_v33, %s18648_s28 }
 0x9fd   : > { %5593 = vrot.lane.b32.xlu0 %v16144_v33, %s18646_s29 }
 0xa0e   : > { %v4452_v59 = vpop.xlane.xlu1 %4451 }
 0xa0f   : > { %v4460_v9 = vsub.f32 %v16715_v54, %v4452_v59 }
 0xa11   : > { %v4475_v20 = vmul.f32 1.442695, %v4460_v9 }
 0xa12   : > { %v4479_v61 = vpop.xlane.xlu0 %4478 }
 0xa13   : > { %15564 = vpow2.f32 %v4475_v20 }
 0xa14   : > { %15566 = vrcp.f32 %v4479_v61 }
 0xa16   : > { %v4485_v11 = vpop.xlane.xlu0 %4484 }
 0xa17   : > { %15568 = vrcp.f32 %v4485_v11 }
 0xa1d   : > { %v16780_v12 = vpop.eup %15564 }
 0xa1e   : > { %v15567_v7 = vpop.eup %15566  ;;  %v4498_v8 = vsel %vm1079_vm3, %v16780_v12, 0.0 }
 0xa1f   : > { %v4502_v3 = vmul.f32 %v15567_v7, %v16719_v35  ;;  %4499 = vadd.xlane.f32.xlu1 %v4498_v8 }
 0xa21   : > { %v15569_v4 = vpop.eup %15568  ;;  %14746 = vmatmul.mubr.msk.f32.vlgmr.msra.gmra.mrb[44].mxu1 %vm1079_vm3, %v4502_v3  ;;  %v16802_v3 = vpop.permute.xlu1 %5361 }
 0xa22   : > { %14754 = vmatpush3.msra.mxu1 %v4670_v30  ;;  %14755 = vmatprep.mubr.msk.f32.mxu1 %vm15857_vm2, %v18686_v45  ;;  %v4506_v61 = vmul.f32 %v15569_v4, %v16723_v21 }
 0xa23   : > { %14763 = vmatprep.subr.mxu1 %v18686_v45 }
 0xa25   : > { %14756 = vmatmul.mubr.msk.f32.vlgmr.msra.gmra.mrb[46].mxu1 %vm1079_vm3, %v4506_v61 }
 0xa26   : > { %14764 = vmatpush3.msra.mxu1 %v4822_v60  ;;  %14765 = vmatprep.mubr.msk.f32.mxu1 %vm15857_vm2, %v18686_v45 }
 0xa27   : > { %14773 = vmatprep.subr.mxu1 %v18686_v45 }
 0xa30   : > { %5517 = vrot.lane.b32.xlu1 %v16142_v32, %s18648_s28 }
 0xa34   : > { %5515 = vrot.lane.b32.xlu1 %v16142_v32, %s18646_s29 }
 0xa38   : > { %5673 = vrot.lane.b32.xlu1 %v16150_v34, %s18648_s28  ;;  %s18658_s28 = smov 24  }
 0xa3c   : > { %5671 = vrot.lane.b32.xlu1 %v16150_v34, %s18646_s29 }
 0xa57   : > { %v4482_v4 = vpop.xlane.xlu1 %4481 }
 0xa58   : > { %15570 = vrcp.f32 %v4482_v4 }
 0xa5b   : > { %v4488_v7 = vpop.xlane.xlu1 %4487 }
 0xa5c   : > { %15572 = vrcp.f32 %v4488_v7 }
 0xa5f   : > { %v4494_v8 = vpop.xlane.xlu1 %4493 }
 0xa60   : > { %15574 = vrcp.f32 %v4494_v8  ;;  %v4491_v11 = vpop.xlane.xlu0 %4490 }
 0xa61   : > { %15576 = vrcp.f32 %v4491_v11 }
 0xa62   : > { %v15571_v54 = vpop.eup %15570 }
 0xa63   : > { %v4504_v35 = vmul.f32 %v15571_v54, %v16732_v14 }
 0xa64   : > { %v4497_v21 = vpop.xlane.xlu0 %4496 }
 0xa65   : > { %15578 = vrcp.f32 %v4497_v21  ;;  %14751 = vmatmul.mubr.msk.f32.vlgmr.msra.gmra.mrb[52].mxu0 %vm1079_vm3, %v4504_v35 }
 0xa66   : > { %v15573_v30 = vpop.eup %15572  ;;  %14759 = vmatpush3.msra.mxu0 %v4746_v28  ;;  %14760 = vmatprep.mubr.msk.f32.mxu0 %vm15857_vm2, %v18686_v45 }
 0xa67   : > { %14768 = vmatprep.subr.mxu0 %v18686_v45  ;;  %v4508_v60 = vmul.f32 %v15573_v30, %v16737_v55 }
 0xa68   : > { %v5282_v28 = vpop.permute.xlu0 %5281 }
 0xa69   : > { %14761 = vmatmul.mubr.msk.f32.vlgmr.msra.gmra.mrb[54].mxu0 %vm1079_vm3, %v4508_v60 }
 0xa6a   : > { %v15575_v59 = vpop.eup %15574  ;;  %14769 = vmatpush3.msra.mxu0 %v4898_v25  ;;  %14770 = vmatprep.mubr.msk.f32.mxu0 %vm15857_vm2, %v18686_v45 }
 0xa6b   : > { %v15577_v14 = vpop.eup %15576  ;;  %14778 = vmatprep.subr.mxu0 %v18686_v45  ;;  %v4512_v9 = vmul.f32 %v15575_v59, %v16741_v10 }
 0xa6c   : > { %v4510_v20 = vmul.f32 %v15577_v14, %v16743_v36  ;;  %v5440_v10 = vpop.permute.xlu0 %5439 }
 0xa6d   : > { %14771 = vmatmul.mubr.msk.f32.vlgmr.msra.gmra.mrb[56].mxu0 %vm1079_vm3, %v4512_v9 }
 0xa6e   : > { %14766 = vmatmul.mubr.msk.f32.vlgmr.msra.gmra.mrb[48].mxu1 %vm1079_vm3, %v4510_v20  ;;  %14779 = vmatpush3.msra.mxu0 %v16767_v52  ;;  %v5360_v52 = vpop.permute.xlu1 %5359 }
 0xa6f   : > { %v15579_v55 = vpop.eup %15578  ;;  %14774 = vmatpush3.msra.mxu1 %v16763_v37  ;;  %14775 = vmatprep.mubr.msk.f32.mxu1 %vm15857_vm2, %v18686_v45 }
 0xa70   : > { %v4514_v25 = vmul.f32 %v15579_v55, %v16749_v49  ;;  %14783 = vmatprep.subr.mxu1 %v18686_v45  ;;  %14780 = vmatprep.mubr.msk.f32.mxu0 %vm15857_vm2, %v18686_v45  ;;  %v5438_v36 = vpop.permute.xlu0 %5437 }
 0xa71   : > { %14788 = vmatprep.subr.mxu0 %v18686_v45 }
 0xa72   : > { %14776 = vmatmul.mubr.msk.f32.vlgmr.msra.gmra.mrb[50].mxu1 %vm1079_vm3, %v4514_v25 }
 0xa73   : > { %14785 = vmatprep.mubr.msk.f32.mxu1 %vm15857_vm2, %v18686_v45 }
 0xa74   : > { %v5596_v49 = vpop.permute.xlu0 %5595 }
 0xa76   : > { %14784 = vmatpush3.xpose.msk.msra.mxu1 %vm1079_vm3, %v16769_v2 }
 0xa77   : > { %14793 = vmatprep.subr.mxu1 %v18686_v45 }
 0xa78   : > { %v5594_v37 = vpop.permute.xlu0 %5593 }
 0xa79   : > { %14786 = vmatmul.mubr.msk.f32.vlgmr.msra.gmra.mrb[52].mxu1 %vm1079_vm3, %v16773_v38 }
 0xa7a   : > { %14794 = vmatpush3.xpose.msk.msra.mxu1 %vm1079_vm3, %v16777_v13  ;;  %14795 = vmatprep.mubr.msk.f32.mxu1 %vm15857_vm2, %v18686_v45 }
 0xa7b   : > { %14803 = vmatprep.subr.mxu1 %v18686_v45 }
 0xa7d   : > { %14796 = vmatmul.mubr.msk.f32.vlgmr.msra.gmra.mrb[54].mxu1 %vm1079_vm3, %v5282_v28 }
 0xa7e   : > { %14804 = vmatpush3.xpose.msk.msra.mxu1 %vm1079_vm3, %v5440_v10  ;;  %14805 = vmatprep.mubr.msk.f32.mxu1 %vm15857_vm2, %v18686_v45 }
 0xa7f   : > { %14813 = vmatprep.subr.mxu1 %v18686_v45 }
 0xa81   : > { %14806 = vmatmul.mubr.msk.f32.vlgmr.msra.gmra.mrb[56].mxu1 %vm1079_vm3, %v5438_v36 }
 0xa82   : > { %14814 = vmatpush3.xpose.msk.msra.mxu1 %vm1079_vm3, %v5596_v49  ;;  %14815 = vmatprep.mubr.msk.f32.mxu1 %vm15857_vm2, %v18686_v45 }
 0xa83   : > { %14823 = vmatprep.subr.mxu1 %v18686_v45 }
 0xa85   : > { %14816 = vmatmul.mubr.msk.f32.vlgmr.msra.gmra.mrb[58].mxu1 %vm1079_vm3, %v5594_v37 }
 0xa86   : > { %14825 = vmatprep.mubr.msk.f32.mxu1 %vm15857_vm2, %v18686_v45 }
 0xaac   : > { %v4500_v2 = vpop.xlane.xlu1 %4499 }
 0xaad   : > { %15580 = vrcp.f32 %v4500_v2 }
 0xab0   : > { %v5518_v13 = vpop.permute.xlu1 %5517 }
 0xab4   : > { %v5516_v4 = vpop.permute.xlu1 %5515 }
 0xab7   : > { %v15581_v38 = vpop.eup %15580 }
 0xab8   : > { %v4516_v61 = vmul.f32 %v15581_v38, %v16780_v12  ;;  %v5674_v12 = vpop.permute.xlu1 %5673 }
 0xaba   : > { %14781 = vmatmul.mubr.msk.f32.vlgmr.msra.gmra.mrb[58].mxu0 %vm1079_vm3, %v4516_v61 }
 0xabb   : > { %14789 = vmatpush3.xpose.msk.msra.mxu0 %vm1079_vm3, %v16771_v31  ;;  %14790 = vmatprep.mubr.msk.f32.mxu0 %vm15857_vm2, %v18686_v45 }
 0xabc   : > { %14798 = vmatprep.subr.mxu0 %v18686_v45  ;;  %v5672_v31 = vpop.permute.xlu1 %5671 }
 0xabe   : > { %14791 = vmatmul.mubr.msk.f32.vlgmr.msra.gmra.mrb[60].mxu0 %vm1079_vm3, %v16775_v46 }
 0xabf   : > { %14799 = vmatpush3.xpose.msk.msra.mxu0 %vm1079_vm3, %v16802_v3  ;;  %14800 = vmatprep.mubr.msk.f32.mxu0 %vm15857_vm2, %v18686_v45 }
 0xac0   : > { %14808 = vmatprep.subr.mxu0 %v18686_v45 }
 0xac2   : > { %14801 = vmatmul.mubr.msk.f32.vlgmr.msra.gmra.mrb[62].mxu0 %vm1079_vm3, %v5360_v52 }
 0xac3   : > { %14809 = vmatpush3.xpose.msk.msra.mxu0 %vm1079_vm3, %v5518_v13  ;;  %14810 = vmatprep.mubr.msk.f32.mxu0 %vm15857_vm2, %v18686_v45 }
 0xac4   : > { %14818 = vmatprep.subr.mxu0 %v18686_v45 }
 0xac6   : > { %14811 = vmatmul.mubr.msk.f32.vlgmr.msra.gmra.mrb[64].mxu0 %vm1079_vm3, %v5516_v4 }
 0xac7   : > { %14819 = vmatpush3.xpose.msk.msra.mxu0 %vm1079_vm3, %v5674_v12  ;;  %14820 = vmatprep.mubr.msk.f32.mxu0 %vm15857_vm2, %v18686_v45 }
 0xac8   : > { %14828 = vmatprep.subr.mxu0 %v18686_v45 }
 0xaca   : > { %14821 = vmatmul.mubr.msk.f32.vlgmr.msra.gmra.mrb[66].mxu0 %vm1079_vm3, %v5672_v31 }
 0xacb   : > { %14830 = vmatprep.mubr.msk.f32.mxu0 %vm15857_vm2, %v18686_v45 }
 0xaf4   : > { %v16880_v46 = vpop.f32.mrb[44].mxu1 }
 0xaf5   : > { %v14747_v3 = vpop.f32.mrb[45].mxu1 }
 0xaf8   : > { %v16882_v7 = vpop.f32.mrb[46].mxu1 }
 0xaf9   : > { %v14757_v8 = vpop.f32.mrb[47].mxu1 }
 0xb38   : > { %v16884_v11 = vpop.f32.mrb[52].mxu0 }
 0xb39   : > { %v14752_v54 = vpop.f32.mrb[53].mxu0 }
 0xb3c   : > { %v16886_v35 = vpop.f32.mrb[54].mxu0 }
 0xb3d   : > { %v14762_v21 = vpop.f32.mrb[55].mxu0 }
 0xb40   : > { %v16888_v30 = vpop.f32.mrb[56].mxu0 }
 0xb41   : > { %v16890_v60 = vpop.f32.mrb[48].mxu1  ;;  %v14772_v59 = vpop.f32.mrb[57].mxu0 }
 0xb42   : > { %v14767_v14 = vpop.f32.mrb[49].mxu1 }
 0xb45   : > { %v16892_v9 = vpop.f32.mrb[50].mxu1 }
 0xb46   : > { %v14777_v28 = vpop.f32.mrb[51].mxu1 }
 0xb4c   : > { %v5199_v20 = vpop.f32.mrb[52].mxu1 }
 0xb4d   : > { %v5749_v55 = vmul.f32 0.35355338, %v5199_v20  ;;  %v14787_v25 = vpop.f32.mrb[53].mxu1 }
 0xb4f   : > { %v5757_v10 = vadd.f32 %v5749_v55, %v16214_v1 }
 0xb50   : > { %v5355_v36 = vpop.f32.mrb[54].mxu1 }
 0xb51   : > { %v5751_v49 = vmul.f32 0.35355338, %v5355_v36  ;;  %v14797_v37 = vpop.f32.mrb[55].mxu1  ;;  %v5765_v52 = vsel %vm1079_vm3, %v5757_v10, -inf }
 0xb52   : > { %5766 = vmax.xlane.f32.xlu0 %v5765_v52 }
 0xb53   : > { %v5759_v2 = vadd.f32 %v5751_v49, %v16221_v22 }
 0xb54   : > { %v5511_v38 = vpop.f32.mrb[56].mxu1 }
 0xb55   : > { %v14807_v13 = vpop.f32.mrb[57].mxu1  ;;  %v5771_v61 = vsel %vm1079_vm3, %v5759_v2, -inf  ;;  %v5753_v28 = vmul.f32 0.35355338, %v5511_v38 }
 0xb56   : > { %5772 = vmax.xlane.f32.xlu0 %v5771_v61 }
 0xb57   : > { %v5761_v37 = vadd.f32 %v5753_v28, %v16233_v51 }
 0xb58   : > { %v5667_v4 = vpop.f32.mrb[58].mxu1 }
 0xb59   : > { %v14817_v12 = vpop.f32.mrb[59].mxu1  ;;  %v5755_v52 = vmul.f32 0.35355338, %v5667_v4 }
 0xb5b   : > { %v5763_v38 = vadd.f32 %v5755_v52, %v16244_v6 }
 0xb8d   : > { %v16898_v31 = vpop.f32.mrb[58].mxu0 }
 0xb8e   : > { %v14782_v3 = vpop.f32.mrb[59].mxu0 }
 0xb91   : > { %v5277_v8 = vpop.f32.mrb[60].mxu0 }
 0xb92   : > { %v5750_v54 = vmul.f32 0.35355338, %v5277_v8  ;;  %v14792_v21 = vpop.f32.mrb[61].mxu0 }
 0xb94   : > { %v5758_v59 = vadd.f32 %v5750_v54, %v16219_v19 }
 0xb95   : > { %v5433_v14 = vpop.f32.mrb[62].mxu0 }
 0xb96   : > { %v5752_v20 = vmul.f32 0.35355338, %v5433_v14  ;;  %v14802_v55 = vpop.f32.mrb[63].mxu0  ;;  %v5768_v25 = vsel %vm1079_vm3, %v5758_v59, -inf }
 0xb97   : > { %5769 = vmax.xlane.f32.xlu1 %v5768_v25  ;;  %v5783_v55 = vsel %vm1079_vm3, %v5763_v38, -inf }
 0xb98   : > { %v5760_v36 = vadd.f32 %v5752_v20, %v16231_v44  ;;  %v5777_v20 = vsel %vm1079_vm3, %v5761_v37, -inf }
 0xb99   : > { %v5589_v49 = vpop.f32.mrb[64].mxu0 }
 0xb9a   : > { %v5754_v13 = vmul.f32 0.35355338, %v5589_v49  ;;  %v14812_v61 = vpop.f32.mrb[65].mxu0  ;;  %v5774_v12 = vsel %vm1079_vm3, %v5760_v36, -inf }
 0xb9b   : > { %5775 = vmax.xlane.f32.xlu0 %v5774_v12 }
 0xb9c   : > { %v5762_v3 = vadd.f32 %v5754_v13, %v16240_v53 }
 0xb9d   : > { %v5745_v8 = vpop.f32.mrb[66].mxu0 }
 0xb9e   : > { %v5756_v54 = vmul.f32 0.35355338, %v5745_v8  ;;  %v14822_v21 = vpop.f32.mrb[67].mxu0  ;;  %v5780_v14 = vsel %vm1079_vm3, %v5762_v3, -inf }
 0xb9f   : > { %5781 = vmax.xlane.f32.xlu1 %v5780_v14  ;;  %5778 = vmax.xlane.f32.xlu0 %v5777_v20 }
 0xba0   : > { %v5764_v4 = vadd.f32 %v5756_v54, %v16212_v57 }
 0xba2   : > { %v5786_v28 = vsel %vm1079_vm3, %v5764_v4, -inf }
 0xba3   : > { %5787 = vmax.xlane.f32.xlu1 %v5786_v28  ;;  %5784 = vmax.xlane.f32.xlu0 %v5783_v55 }
 0xbb4   : > { %5929 = vrot.lane.b32.xlu1 %v16122_v16, %s18644_s0 }
 0xbb8   : > { %6005 = vrot.lane.b32.xlu1 %v16130_v23, %s18644_s0 }
 0xbb9   : > { %5853 = vrot.lane.b32.xlu0 %v16124_v18, %s18644_s0 }
 0xbbc   : > { %6081 = vrot.lane.b32.xlu1 %v16134_v26, %s18644_s0 }
 0xbbd   : > { %6157 = vrot.lane.b32.xlu0 %v16136_v27, %s18644_s0 }
 0xbc0   : > { %6233 = vrot.lane.b32.xlu1 %v16142_v32, %s18644_s0 }
 0xbdf   : > { %v5767_v25 = vpop.xlane.xlu0 %5766 }
 0xbe0   : > { %v5789_v49 = vsub.f32 %v5757_v10, %v5767_v25 }
 0xbe2   : > { %v5797_v52 = vmul.f32 1.442695, %v5789_v49 }
 0xbe3   : > { %v5773_v13 = vpop.xlane.xlu0 %5772 }
 0xbe4   : > { %15582 = vpow2.f32 %v5797_v52  ;;  %v5791_v16 = vsub.f32 %v5759_v2, %v5773_v13 }
 0xbe6   : > { %v5801_v61 = vmul.f32 1.442695, %v5791_v16 }
 0xbe8   : > { %15584 = vpow2.f32 %v5801_v61 }
 0xbee   : > { %v16924_v23 = vpop.eup %15582 }
 0xbef   : > { %v5813_v18 = vsel %vm1079_vm3, %v16924_v23, 0.0 }
 0xbf0   : > { %5814 = vadd.xlane.f32.xlu0 %v5813_v18 }
 0xbf2   : > { %v16928_v26 = vpop.eup %15584 }
 0xbf3   : > { %v5819_v27 = vsel %vm1079_vm3, %v16928_v26, 0.0 }
 0xbf4   : > { %5820 = vadd.xlane.f32.xlu0 %v5819_v27 }
 0xc24   : > { %v5770_v32 = vpop.xlane.xlu1 %5769 }
 0xc25   : > { %v5790_v10 = vsub.f32 %v5758_v59, %v5770_v32 }
 0xc27   : > { %v5799_v12 = vmul.f32 1.442695, %v5790_v10 }
 0xc28   : > { %v5776_v8 = vpop.xlane.xlu0 %5775 }
 0xc29   : > { %15586 = vpow2.f32 %v5799_v12  ;;  %v5792_v2 = vsub.f32 %v5760_v36, %v5776_v8 }
 0xc2b   : > { %v5803_v54 = vmul.f32 1.442695, %v5792_v2 }
 0xc2c   : > { %v5782_v21 = vpop.xlane.xlu1 %5781  ;;  %v5779_v14 = vpop.xlane.xlu0 %5778 }
 0xc2d   : > { %15588 = vpow2.f32 %v5803_v54  ;;  %v5794_v20 = vsub.f32 %v5762_v3, %v5782_v21  ;;  %v5793_v28 = vsub.f32 %v5761_v37, %v5779_v14 }
 0xc2f   : > { %v5807_v55 = vmul.f32 1.442695, %v5794_v20  ;;  %v5805_v25 = vmul.f32 1.442695, %v5793_v28 }
 0xc30   : > { %v5788_v49 = vpop.xlane.xlu1 %5787  ;;  %v5785_v52 = vpop.xlane.xlu0 %5784 }
 0xc31   : > { %15590 = vpow2.f32 %v5807_v55  ;;  %v5796_v13 = vsub.f32 %v5764_v4, %v5788_v49  ;;  %v5795_v16 = vsub.f32 %v5763_v38, %v5785_v52 }
 0xc32   : > { %15592 = vpow2.f32 %v5805_v25 }
 0xc33   : > { %v16932_v61 = vpop.eup %15586  ;;  %v5811_v59 = vmul.f32 1.442695, %v5796_v13  ;;  %v5809_v18 = vmul.f32 1.442695, %v5795_v16 }
 0xc34   : > { %v5930_v27 = vpop.permute.xlu1 %5929  ;;  %v5854_v36 = vpop.permute.xlu0 %5853  ;;  %v5816_v32 = vsel %vm1079_vm3, %v16932_v61, 0.0 }
 0xc35   : > { %15594 = vpow2.f32 %v5811_v59  ;;  %5817 = vadd.xlane.f32.xlu1 %v5816_v32  ;;  %14824 = vmatpush3.msra.mxu1 %v5854_v36  ;;  %v918_v36 = vld [vmem:[%s18618_s7 + $0x8] sm:$0xff]  ;;  %v919_v32 = vld [vmem:[%s18618_s7 + $0x10] sm:$0xff] }
 0xc36   : > { %15596 = vpow2.f32 %v5809_v18  ;;  %14829 = vmatpush3.msra.mxu0 %v5930_v27  ;;  %14833 = vmatprep.subr.mxu1 %v18686_v45  ;;  %v917_v27 = vld [vmem:[%s18618_s7] sm:$0xff] }
 0xc37   : > { %v16937_v37 = vpop.eup %15588  ;;  %14838 = vmatprep.subr.mxu0 %v18686_v45 }
 0xc38   : > { %v5822_v3 = vsel %vm1079_vm3, %v16937_v37, 0.0 }
 0xc39   : > { %5823 = vadd.xlane.f32.xlu1 %v5822_v3  ;;  %v920_v3 = vld [vmem:[%s18618_s7 + $0x18] sm:$0xff] }
 0xc3b   : > { %v16942_v38 = vpop.eup %15590 }
 0xc3c   : > { %v16944_v4 = vpop.eup %15592  ;;  %v5828_v10 = vsel %vm1079_vm3, %v16942_v38, 0.0 }
 0xc3d   : > { %5829 = vadd.xlane.f32.xlu1 %v5828_v10  ;;  %v5825_v12 = vsel %vm1079_vm3, %v16944_v4, 0.0 }
 0xc3e   : > { %5826 = vadd.xlane.f32.xlu0 %v5825_v12 }
 0xc3f   : > { %v16950_v8 = vpop.eup %15594 }
 0xc40   : > { %v16952_v2 = vpop.eup %15596  ;;  %v5834_v54 = vsel %vm1079_vm3, %v16950_v8, 0.0 }
 0xc41   : > { %5835 = vadd.xlane.f32.xlu1 %v5834_v54  ;;  %v5831_v21 = vsel %vm1079_vm3, %v16952_v2, 0.0 }
 0xc42   : > { %5832 = vadd.xlane.f32.xlu0 %v5831_v21 }
 0xc52   : > { %6385 = vrot.lane.b32.xlu1 %v16150_v34, %s18644_s0 }
 0xc56   : > { %6471 = vrot.lane.b32.xlu1 %v16656_v24, %s18642_s30 }
 0xc58   : > { %6309 = vrot.lane.b32.xlu0 %v16144_v33, %s18644_s0  ;;  %v6158_v33 = vpop.permute.xlu0 %6157 }
 0xc5a   : > { %6503 = vrot.lane.b32.xlu1 %v16884_v11, %s15871_s27 }
 0xc5c   : > { %6469 = vrot.lane.b32.xlu0 %v16652_v29, %s18642_s30 }
 0xc5e   : > { %6475 = vrot.lane.b32.xlu1 %v16658_v47, %s18642_s30  ;;  %v6006_v47 = vpop.permute.xlu1 %6005 }
 0xc60   : > { %6501 = vrot.lane.b32.xlu0 %v16880_v46, %s15871_s27 }
 0xc62   : > { %6507 = vrot.lane.b32.xlu1 %v16886_v35, %s15871_s27 }
 0xc64   : > { %6473 = vrot.lane.b32.xlu0 %v16654_v56, %s18642_s30 }
 0xc66   : > { %6479 = vrot.lane.b32.xlu1 %v16660_v42, %s18642_s30 }
 0xc68   : > { %6505 = vrot.lane.b32.xlu0 %v16882_v7, %s15871_s27 }
 0xc6a   : > { %6511 = vrot.lane.b32.xlu1 %v16888_v30, %s15871_s27 }
 0xc6c   : > { %6477 = vrot.lane.b32.xlu0 %v16662_v48, %s18642_s30 }
 0xc6e   : > { %6483 = vrot.lane.b32.xlu1 %v16670_v40, %s18642_s30 }
 0xc70   : > { %6509 = vrot.lane.b32.xlu0 %v16890_v60, %s15871_s27 }
 0xc74   : > { %6481 = vrot.lane.b32.xlu0 %v16664_v17, %s18642_s30  ;;  %v6082_v17 = vpop.permute.xlu1 %6081 }
 0xc78   : > { %v6234_v40 = vpop.permute.xlu1 %6233 }
 0xc7d   : > { %v5815_v34 = vpop.xlane.xlu0 %5814 }
 0xc7e   : > { %15598 = vrcp.f32 %v5815_v34 }
 0xc81   : > { %v5821_v29 = vpop.xlane.xlu0 %5820 }
 0xc82   : > { %15600 = vrcp.f32 %v5821_v29 }
 0xc88   : > { %v15599_v56 = vpop.eup %15598 }
 0xc89   : > { %v5838_v24 = vmul.f32 %v15599_v56, %v16924_v23 }
 0xc8b   : > { %14826 = vmatmul.mubr.msk.f32.vlgmr.msra.gmra.mrb[60].mxu1 %vm1079_vm3, %v5838_v24 }
 0xc8c   : > { %v15601_v42 = vpop.eup %15600  ;;  %14834 = vmatpush3.msra.mxu1 %v6006_v47  ;;  %14835 = vmatprep.mubr.msk.f32.mxu1 %vm15857_vm2, %v18686_v45 }
 0xc8d   : > { %14843 = vmatprep.subr.mxu1 %v18686_v45  ;;  %v5842_v48 = vmul.f32 %v15601_v42, %v16928_v26 }
 0xc8f   : > { %14836 = vmatmul.mubr.msk.f32.vlgmr.msra.gmra.mrb[62].mxu1 %vm1079_vm3, %v5842_v48 }
 0xc90   : > { %14844 = vmatpush3.msra.mxu1 %v6158_v33  ;;  %14845 = vmatprep.mubr.msk.f32.mxu1 %vm15857_vm2, %v18686_v45 }
 0xc91   : > { %14853 = vmatprep.subr.mxu1 %v18686_v45 }
 0xcc2   : > { %v5818_v46 = vpop.xlane.xlu1 %5817 }
 0xcc3   : > { %15602 = vrcp.f32 %v5818_v46 }
 0xcc6   : > { %v5824_v7 = vpop.xlane.xlu1 %5823 }
 0xcc7   : > { %15604 = vrcp.f32 %v5824_v7 }
 0xcca   : > { %v5830_v11 = vpop.xlane.xlu1 %5829 }
 0xccb   : > { %15606 = vrcp.f32 %v5830_v11  ;;  %v5827_v35 = vpop.xlane.xlu0 %5826 }
 0xccc   : > { %15608 = vrcp.f32 %v5827_v35 }
 0xccd   : > { %v15603_v30 = vpop.eup %15602 }
 0xcce   : > { %v5836_v60 = vpop.xlane.xlu1 %5835  ;;  %v5840_v23 = vmul.f32 %v15603_v30, %v16932_v61 }
 0xccf   : > { %15610 = vrcp.f32 %v5836_v60  ;;  %v5833_v26 = vpop.xlane.xlu0 %5832 }
 0xcd0   : > { %15612 = vrcp.f32 %v5833_v26  ;;  %14831 = vmatmul.mubr.msk.f32.vlgmr.msra.gmra.mrb[68].mxu0 %vm1079_vm3, %v5840_v23 }
 0xcd1   : > { %v15605_v14 = vpop.eup %15604  ;;  %14839 = vmatpush3.msra.mxu0 %v6082_v17  ;;  %14840 = vmatprep.mubr.msk.f32.mxu0 %vm15857_vm2, %v18686_v45 }
 0xcd2   : > { %14848 = vmatprep.subr.mxu0 %v18686_v45  ;;  %v5844_v20 = vmul.f32 %v15605_v14, %v16937_v37  ;;  %v6386_v52 = vpop.permute.xlu1 %6385  ;;  %v17031_v37 = vpack.c.bf16 %v918_v36, %v917_v27 }
 0xcd3   : > { %v6310_v16 = vpop.permute.xlu0 %6309 }
 0xcd4   : > { %14841 = vmatmul.mubr.msk.f32.vlgmr.msra.gmra.mrb[70].mxu0 %vm1079_vm3, %v5844_v20 }
 0xcd5   : > { %v15607_v28 = vpop.eup %15606  ;;  %14849 = vmatpush3.msra.mxu0 %v6234_v40  ;;  %14850 = vmatprep.mubr.msk.f32.mxu0 %vm15857_vm2, %v18686_v45 }
 0xcd6   : > { %v15609_v55 = vpop.eup %15608  ;;  %14858 = vmatprep.subr.mxu0 %v18686_v45  ;;  %v5848_v25 = vmul.f32 %v15607_v28, %v16942_v38  ;;  %v17036_v38 = vpack.c.bf16 %v920_v3, %v919_v32 }
 0xcd7   : > { %v5846_v49 = vmul.f32 %v15609_v55, %v16944_v4  ;;  %v6470_v34 = vpop.permute.xlu0 %6469 }
 0xcd8   : > { %14851 = vmatmul.mubr.msk.f32.vlgmr.msra.gmra.mrb[72].mxu0 %vm1079_vm3, %v5848_v25  ;;  %v6557_v23 = vsel %vm1079_vm3, %v16432_v50, %v6470_v34 }
 0xcd9   : > { %v15611_v13 = vpop.eup %15610  ;;  %14846 = vmatmul.mubr.msk.f32.vlgmr.msra.gmra.mrb[64].mxu1 %vm1079_vm3, %v5846_v49  ;;  %14859 = vmatpush3.msra.mxu0 %v6386_v52 }
 0xcda   : > { %v15613_v61 = vpop.eup %15612  ;;  %14854 = vmatpush3.msra.mxu1 %v6310_v16  ;;  %14855 = vmatprep.mubr.msk.f32.mxu1 %vm15857_vm2, %v18686_v45  ;;  %v5852_v59 = vmul.f32 %v15611_v13, %v16950_v8 }
 0xcdb   : > { %14860 = vmatprep.mubr.msk.f32.mxu0 %vm15857_vm2, %v18686_v45  ;;  %v5850_v18 = vmul.f32 %v15613_v61, %v16952_v2  ;;  %15363 = vmatprep.subr.bf16.mxu1 %v17031_v37  ;;  %v6502_v42 = vpop.permute.xlu0 %6501 }
 0xcdc   : > { %14861 = vmatmul.mubr.msk.f32.vlgmr.msra.gmra.mrb[74].mxu0 %vm1079_vm3, %v5852_v59 }
 0xcdd   : > { %14856 = vmatmul.mubr.msk.f32.vlgmr.msra.gmra.mrb[66].mxu1 %vm1079_vm3, %v5850_v18 }
 0xcde   : > { %15365 = vmatpush3.bf16.msra.mxu1 %v17031_v37 }
 0xcdf   : > { %15367 = vmatprep.subr.bf16.mxu1 %v17036_v38  ;;  %v6474_v7 = vpop.permute.xlu0 %6473 }
 0xce0   : > { %v6559_v61 = vsel %vm1079_vm3, %v16436_v58, %v6474_v7 }
 0xce2   : > { %15369 = vmatpush3.bf16.msra.mxu1 %v17036_v38 }
 0xce3   : > { %v6506_v11 = vpop.permute.xlu0 %6505 }
 0xce4   : > { %v6567_v18 = vsel %vm576_vm0, %v6559_v61, %v6506_v11 }
 0xce7   : > { %v6478_v35 = vpop.permute.xlu0 %6477 }
 0xceb   : > { %v6510_v30 = vpop.permute.xlu0 %6509 }
 0xcef   : > { %v6482_v60 = vpop.permute.xlu0 %6481 }
 0xd5e   : > { %v5925_v4 = vpop.f32.mrb[60].mxu1 }
 0xd5f   : > { %6533 = vrot.lane.b32.xlu0 %v5925_v4, %s18658_s28  ;;  %v14827_v10 = vpop.f32.mrb[61].mxu1 }
 0xd60   : > { %v6561_v10 = vsel %vm1079_vm3, %v16442_v5, %v6478_v35  ;;  %v6563_v5 = vsel %vm1079_vm3, %v16444_v15, %v6482_v60 }
 0xd62   : > { %v6077_v12 = vpop.f32.mrb[62].mxu1 }
 0xd63   : > { %6537 = vrot.lane.b32.xlu0 %v6077_v12, %s18658_s28  ;;  %v14837_v8 = vpop.f32.mrb[63].mxu1 }
 0xda3   : > { %v6001_v2 = vpop.f32.mrb[68].mxu0 }
 0xda4   : > { %v14832_v54 = vpop.f32.mrb[69].mxu0  ;;  %6535 = vrot.lane.b32.xlu1 %v6001_v2, %s18658_s28 }
 0xda7   : > { %v6153_v21 = vpop.f32.mrb[70].mxu0 }
 0xda8   : > { %6539 = vrot.lane.b32.xlu1 %v6153_v21, %s18658_s28  ;;  %v14842_v33 = vpop.f32.mrb[71].mxu0 }
 0xdab   : > { %v6305_v29 = vpop.f32.mrb[72].mxu0 }
 0xdac   : > { %v6229_v56 = vpop.f32.mrb[64].mxu1  ;;  %6543 = vrot.lane.b32.xlu1 %v6305_v29, %s18658_s28  ;;  %v14852_v24 = vpop.f32.mrb[73].mxu0 }
 0xdad   : > { %6541 = vrot.lane.b32.xlu0 %v6229_v56, %s18658_s28  ;;  %v14847_v47 = vpop.f32.mrb[65].mxu1 }
 0xdaf   : > { %v6457_v48 = vpop.f32.mrb[74].mxu0 }
 0xdb0   : > { %v6381_v17 = vpop.f32.mrb[66].mxu1  ;;  %6515 = vrot.lane.b32.xlu1 %v16898_v31, %s15871_s27  ;;  %v14862_v40 = vpop.f32.mrb[75].mxu0  ;;  %v6565_v31 = vsel %vm576_vm0, %v6557_v23, %v6502_v42 }
 0xdb1   : > { %6513 = vrot.lane.b32.xlu0 %v16892_v9, %s15871_s27  ;;  %v14857_v46 = vpop.f32.mrb[67].mxu1  ;;  %v6472_v9 = vpop.permute.xlu1 %6471 }
 0xdb2   : > { %v6558_v13 = vsel %vm1079_vm3, %v16434_v39, %v6472_v9 }
 0xdb4   : > { %6547 = vrot.lane.b32.xlu1 %v6457_v48, %s18658_s28 }
 0xdb5   : > { %6545 = vrot.lane.b32.xlu0 %v6381_v17, %s18658_s28  ;;  %v6504_v20 = vpop.permute.xlu1 %6503  ;;  %s18720_s28 = smov 40  }
 0xdb6   : > { %v6566_v50 = vsel %vm576_vm0, %v6558_v13, %v6504_v20 }
 0xdb9   : > { %v6476_v28 = vpop.permute.xlu1 %6475 }
 0xdba   : > { %v6560_v32 = vsel %vm1079_vm3, %v16438_v43, %v6476_v28  ;;  %v6569_v43 = vsel %vm576_vm0, %v6561_v10, %v6510_v30  ;;  %v18687_v30 = vld [vmem:[#allocation5_spill] sm:$0xff] }
 0xdbd   : > { %v6508_v55 = vpop.permute.xlu1 %6507 }
 0xdbe   : > { %v6568_v39 = vsel %vm576_vm0, %v6560_v32, %v6508_v55 }
 0xdc1   : > { %v6480_v25 = vpop.permute.xlu1 %6479 }
 0xdc2   : > { %v6562_v58 = vsel %vm1079_vm3, %v16440_v62, %v6480_v25 }
 0xdc5   : > { %v6512_v49 = vpop.permute.xlu1 %6511 }
 0xdc6   : > { %v6570_v12 = vsel %vm576_vm0, %v6562_v58, %v6512_v49 }
 0xdc9   : > { %v6484_v52 = vpop.permute.xlu1 %6483 }
 0xdca   : > { %v6564_v62 = vsel %vm1079_vm3, %v16450_v41, %v6484_v52  ;;  %v13977_v41 = vld [vmem:[%s18619_s8] ss:$0 sm:$0xff] }
 0xdcb   : > { %v18690_v52 = vld [vmem:[#allocation6_spill] sm:$0xff] }
 0xdd1   : > { %v6534_v26 = vpop.permute.xlu0 %6533 }
 0xdd2   : > { %v6574_v14 = vsel %vm6573_vm4, %v6565_v31, %v6534_v26  ;;  %v18688_v26 = vld [vmem:[#allocation4_spill] sm:$0xff] }
 0xdd3   : > { %14871 = vmatprep.mubr.msk.f32.mxu1 %vm946_vm1, %v6574_v14 }
 0xdd5   : > { %v6538_v16 = vpop.permute.xlu0 %6537 }
 0xdd6   : > { %v6576_v36 = vsel %vm6573_vm4, %v6567_v18, %v6538_v16 }
 0xe16   : > { %v6536_v59 = vpop.permute.xlu1 %6535 }
 0xe17   : > { %v6575_v27 = vsel %vm6573_vm4, %v6566_v50, %v6536_v59 }
 0xe18   : > { %14872 = vmatmul.mubr.msk.f32.vlgmr.msra.gmra.mrb[68].mxu1 %vm946_vm1, %v6575_v27 }
 0xe19   : > { %14874 = vmatprep.mubr.msk.f32.mxu1 %vm946_vm1, %v6576_v36  ;;  %v18691_v36 = vld [vmem:[#allocation9_spill] sm:$0xff] }
 0xe1a   : > { %v6540_v3 = vpop.permute.xlu1 %6539 }
 0xe1b   : > { %v6577_v4 = vsel %vm6573_vm4, %v6568_v39, %v6540_v3  ;;  %v18692_v3 = vld [vmem:[#allocation8_spill] sm:$0xff] }
 0xe1c   : > { %14875 = vmatmul.mubr.msk.f32.gmra.mrb[70].mxu1 %vm946_vm1, %v6577_v4 }
 0xe1e   : > { %v6544_v8 = vpop.permute.xlu1 %6543 }
 0xe1f   : > { %v6579_v2 = vsel %vm6573_vm4, %v6570_v12, %v6544_v8  ;;  %v6542_v54 = vpop.permute.xlu0 %6541 }
 0xe20   : > { %v6578_v21 = vsel %vm6573_vm4, %v6569_v43, %v6542_v54 }
 0xe21   : > { %14877 = vmatprep.mubr.msk.f32.mxu1 %vm946_vm1, %v6578_v21 }
 0xe22   : > { %14878 = vmatmul.mubr.msk.f32.gmra.mrb[72].mxu1 %vm946_vm1, %v6579_v2  ;;  %v6516_v33 = vpop.permute.xlu1 %6515 }
 0xe23   : > { %v6514_v34 = vpop.permute.xlu0 %6513  ;;  %v6572_v29 = vsel %vm576_vm0, %v6564_v62, %v6516_v33 }
 0xe24   : > { %v6571_v24 = vsel %vm576_vm0, %v6563_v5, %v6514_v34 }
 0xe26   : > { %v6548_v56 = vpop.permute.xlu1 %6547 }
 0xe27   : > { %v6581_v47 = vsel %vm6573_vm4, %v6572_v29, %v6548_v56  ;;  %v6546_v42 = vpop.permute.xlu0 %6545 }
 0xe28   : > { %v6580_v48 = vsel %vm6573_vm4, %v6571_v24, %v6546_v42 }
 0xe29   : > { %14880 = vmatprep.mubr.msk.f32.mxu1 %vm946_vm1, %v6580_v48 }
 0xe2a   : > { %14881 = vmatmul.mubr.msk.f32.gmra.mrb[74].mxu1 %vm946_vm1, %v6581_v47 }
 0xeeb   : > { %v14873_v17 = vpop.f32.mrb[68].mxu1 }
 0xeec   : > { %v6712_v15 = vadd.f32 %v14873_v17, %v16083_v0  ;;  %v6672_v40 = vpop.f32.mrb[69].mxu1 }
 0xeed   : > { %v6711_v46 = vadd.f32 %v6672_v40, %v16081_v63  ;;  %v18689_v63 = vld [vmem:[#allocation7_spill] sm:$0xff] }
 0xeee   : > { %v6726_v7 = vadd.f32 %v13977_v41, %v6712_v15 }
 0xeef   : > { %v6725_v11 = vadd.f32 %v13977_v41, %v6711_v46  ;;  %v14876_v35 = vpop.f32.mrb[70].mxu1 }
 0xef0   : > { %v6714_v60 = vadd.f32 %v14876_v35, %v18687_v30  ;;  %v6682_v23 = vpop.f32.mrb[71].mxu1  ;;  %v6736_v31 = vsel %vm946_vm1, %v6726_v7, 0.0 }
 0xef1   : > { %v6713_v14 = vadd.f32 %v6682_v23, %v18688_v26  ;;  %6737 = vadd.xlane.f32.xlu1 %v6736_v31  ;;  %v6733_v9 = vsel %vm946_vm1, %v6725_v11, 0.0 }
 0xef2   : > { %v6728_v20 = vadd.f32 %v13977_v41, %v6714_v60  ;;  %6734 = vadd.xlane.f32.xlu0 %v6733_v9 }
 0xef3   : > { %v6727_v28 = vadd.f32 %v13977_v41, %v6713_v14 }
 0xef4   : > { %v6742_v0 = vsel %vm946_vm1, %v6728_v20, 0.0 }
 0xef5   : > { %v14879_v55 = vpop.f32.mrb[72].mxu1  ;;  %v6739_v61 = vsel %vm946_vm1, %v6727_v28, 0.0 }
 0xef6   : > { %v6716_v25 = vadd.f32 %v14879_v55, %v18689_v63  ;;  %v6692_v49 = vpop.f32.mrb[73].mxu1  ;;  %6743 = vadd.xlane.f32.xlu0 %v6742_v0 }
 0xef7   : > { %v6715_v13 = vadd.f32 %v6692_v49, %v18690_v52 }
 0xef8   : > { %v6730_v16 = vadd.f32 %v13977_v41, %v6716_v25 }
 0xef9   : > { %v6729_v50 = vadd.f32 %v13977_v41, %v6715_v13 }
 0xefa   : > { %6740 = vadd.xlane.f32.xlu0 %v6739_v61  ;;  %v6748_v59 = vsel %vm946_vm1, %v6730_v16, 0.0  ;;  %v922_v61 = vld [vmem:[%s18621_s10] sm:$0xff] }
 0xefb   : > { %6749 = vadd.xlane.f32.xlu1 %v6748_v59  ;;  %v6745_v27 = vsel %vm946_vm1, %v6729_v50, 0.0  ;;  %v923_v59 = vld [vmem:[%s18621_s10 + $0x8] sm:$0xff] }
 0xefd   : > { %v14882_v18 = vpop.f32.mrb[74].mxu1 }
 0xefe   : > { %v6718_v32 = vadd.f32 %v14882_v18, %v18691_v36  ;;  %v6702_v39 = vpop.f32.mrb[75].mxu1  ;;  %6746 = vadd.xlane.f32.xlu0 %v6745_v27  ;;  %v17159_v18 = vpack.c.bf16 %v923_v59, %v922_v61  ;;  %v924_v27 = vld [vmem:[%s18621_s10 + $0x10] sm:$0xff]  ;;  %v925_v36 = vld [vmem:[%s18621_s10 + $0x18] sm:$0xff]  ;;  %v18694_v59 = vld [vmem:[#allocation3_spill] sm:$0xff] }
 0xeff   : > { %v6717_v4 = vadd.f32 %v6702_v39, %v18692_v3  ;;  %v18693_v39 = vld [vmem:[#allocation2_spill] sm:$0xff] }
 0xf00   : > { %v6732_v58 = vadd.f32 %v13977_v41, %v6718_v32  ;;  %15371 = vmatprep.subr.bf16.mxu0 %v17159_v18  ;;  %v17169_v32 = vpack.c.bf16 %v925_v36, %v924_v27 }
 0xf01   : > { %v6731_v10 = vadd.f32 %v13977_v41, %v6717_v4  ;;  %15373 = vmatpush3.bf16.msra.mxu0 %v17159_v18 }
 0xf02   : > { %v6754_v12 = vsel %vm946_vm1, %v6732_v58, 0.0  ;;  %15375 = vmatprep.subr.bf16.mxu0 %v17169_v32 }
 0xf03   : > { %6755 = vadd.xlane.f32.xlu1 %v6754_v12  ;;  %v6751_v8 = vsel %vm946_vm1, %v6731_v10, 0.0 }
 0xf04   : > { %6752 = vadd.xlane.f32.xlu0 %v6751_v8 }
 0xf05   : > { %15377 = vmatpush3.bf16.msra.mxu0 %v17169_v32 }
 0xf06   : > { %15395 = vmatprep.subr.bf16.mxu0 %v18693_v39 }
 0xf7e   : > { %v6738_v43 = vpop.xlane.xlu1 %6737 }
 0xf7f   : > { %v6759_v2 = vmul.f32 0.03125, %v6738_v43  ;;  %v6735_v54 = vpop.xlane.xlu0 %6734 }
 0xf80   : > { %v6758_v21 = vmul.f32 0.03125, %v6735_v54 }
 0xf81   : > { %v17113_v33 = vsub.f32 %v6726_v7, %v6759_v2 }
 0xf82   : > { %v17115_v34 = vsub.f32 %v6725_v11, %v6758_v21 }
 0xf83   : > { %v6744_v62 = vpop.xlane.xlu0 %6743  ;;  %v6775_v5 = vmul.f32 %v17113_v33, %v17113_v33 }
 0xf84   : > { %v6761_v29 = vmul.f32 0.03125, %v6744_v62  ;;  %v6774_v56 = vmul.f32 %v17115_v34, %v17115_v34 }
 0xf85   : > { %v6785_v24 = vsel %vm946_vm1, %v6775_v5, 0.0 }
 0xf86   : > { %v17122_v47 = vsub.f32 %v6728_v20, %v6761_v29  ;;  %6786 = vadd.xlane.f32.xlu1 %v6785_v24  ;;  %v6782_v42 = vsel %vm946_vm1, %v6774_v56, 0.0 }
 0xf87   : > { %6783 = vadd.xlane.f32.xlu0 %v6782_v42  ;;  %v6741_v48 = vpop.xlane.xlu0 %6740 }
 0xf88   : > { %v6750_v41 = vpop.xlane.xlu1 %6749  ;;  %v6760_v17 = vmul.f32 0.03125, %v6741_v48  ;;  %v6777_v15 = vmul.f32 %v17122_v47, %v17122_v47 }
 0xf89   : > { %v6763_v40 = vmul.f32 0.03125, %v6750_v41 }
 0xf8a   : > { %v17127_v46 = vsub.f32 %v6727_v28, %v6760_v17  ;;  %v6791_v7 = vsel %vm946_vm1, %v6777_v15, 0.0  ;;  %v13978_v17 = vld [vmem:[%s18620_s9] ss:$0 sm:$0xff] }
 0xf8b   : > { %v17130_v11 = vsub.f32 %v6730_v16, %v6763_v40  ;;  %6792 = vadd.xlane.f32.xlu1 %v6791_v7  ;;  %v6747_v35 = vpop.xlane.xlu0 %6746 }
 0xf8c   : > { %v6762_v30 = vmul.f32 0.03125, %v6747_v35  ;;  %v6776_v60 = vmul.f32 %v17127_v46, %v17127_v46 }
 0xf8d   : > { %v6779_v23 = vmul.f32 %v17130_v11, %v17130_v11 }
 0xf8e   : > { %v17136_v31 = vsub.f32 %v6729_v50, %v6762_v30  ;;  %v6788_v26 = vsel %vm946_vm1, %v6776_v60, 0.0  ;;  %v13979_v60 = vld [vmem:[%s18620_s9 + $0x1] ss:$0 sm:$0xff] }
 0xf8f   : > { %v6797_v14 = vsel %vm946_vm1, %v6779_v23, 0.0  ;;  %6789 = vadd.xlane.f32.xlu0 %v6788_v26 }
 0xf90   : > { %v6756_v9 = vpop.xlane.xlu1 %6755  ;;  %6798 = vadd.xlane.f32.xlu1 %v6797_v14  ;;  %v6778_v20 = vmul.f32 %v17136_v31, %v17136_v31 }
 0xf91   : > { %v6765_v0 = vmul.f32 0.03125, %v6756_v9  ;;  %v6753_v28 = vpop.xlane.xlu0 %6752 }
 0xf92   : > { %v6764_v55 = vmul.f32 0.03125, %v6753_v28  ;;  %v6794_v63 = vsel %vm946_vm1, %v6778_v20, 0.0 }
 0xf93   : > { %v17143_v25 = vsub.f32 %v6732_v58, %v6765_v0  ;;  %6795 = vadd.xlane.f32.xlu0 %v6794_v63 }
 0xf94   : > { %v17145_v49 = vsub.f32 %v6731_v10, %v6764_v55 }
 0xf95   : > { %v6781_v52 = vmul.f32 %v17143_v25, %v17143_v25 }
 0xf96   : > { %v6780_v13 = vmul.f32 %v17145_v49, %v17145_v49 }
 0xf97   : > { %v6803_v16 = vsel %vm946_vm1, %v6781_v52, 0.0 }
 0xf98   : > { %6804 = vadd.xlane.f32.xlu1 %v6803_v16  ;;  %v6800_v50 = vsel %vm946_vm1, %v6780_v13, 0.0 }
 0xf99   : > { %6801 = vadd.xlane.f32.xlu0 %v6800_v50 }
0x1013   : > { %v6787_v3 = vpop.xlane.xlu1 %6786 }
0x1014   : > { %v6807_v4 = vmul.f32 0.03125, %v6787_v3  ;;  %v6784_v58 = vpop.xlane.xlu0 %6783 }
0x1015   : > { %v6806_v10 = vmul.f32 0.03125, %v6784_v58 }
0x1016   : > { %v6815_v12 = vadd.f32 1e-12, %v6807_v4 }
0x1017   : > { %v6814_v8 = vadd.f32 1e-12, %v6806_v10 }
0x1018   : > { %15614 = vrsqrt.f32 %v6815_v12  ;;  %v6793_v43 = vpop.xlane.xlu1 %6792 }
0x1019   : > { %15616 = vrsqrt.f32 %v6814_v8  ;;  %v6809_v2 = vmul.f32 0.03125, %v6793_v43 }
0x101b   : > { %v6817_v54 = vadd.f32 1e-12, %v6809_v2 }
0x101c   : > { %v6790_v21 = vpop.xlane.xlu0 %6789 }
0x101d   : > { %15618 = vrsqrt.f32 %v6817_v54  ;;  %v6799_v62 = vpop.xlane.xlu1 %6798  ;;  %v6808_v5 = vmul.f32 0.03125, %v6790_v21 }
0x101e   : > { %v6811_v29 = vmul.f32 0.03125, %v6799_v62 }
0x101f   : > { %v6816_v56 = vadd.f32 1e-12, %v6808_v5  ;;  %v929_v5 = vld [vmem:[%s18623_s12 + $0x10] sm:$0xff] }
0x1020   : > { %v6819_v24 = vadd.f32 1e-12, %v6811_v29  ;;  %v6796_v42 = vpop.xlane.xlu0 %6795  ;;  %v930_v29 = vld [vmem:[%s18623_s12 + $0x18] sm:$0xff] }
0x1021   : > { %15620 = vrsqrt.f32 %v6816_v56  ;;  %v6810_v48 = vmul.f32 0.03125, %v6796_v42  ;;  %v17240_v56 = vpack.c.bf16 %v930_v29, %v929_v5  ;;  %v932_v42 = vld [vmem:[%s18623_s12 + $0x28] sm:$0xff] }
0x1022   : > { %v15615_v41 = vpop.eup %15614  ;;  %15622 = vrsqrt.f32 %v6819_v24  ;;  %v931_v24 = vld [vmem:[%s18623_s12 + $0x20] sm:$0xff] }
0x1023   : > { %v15617_v15 = vpop.eup %15616  ;;  %v6831_v40 = vmul.f32 %v15615_v41, %v17113_v33  ;;  %v6818_v7 = vadd.f32 1e-12, %v6810_v48  ;;  %18695 = vst [vmem:[#allocation5_spill] sm:$0xff] %v17240_v56  ;;  %v17250_v48 = vpack.c.bf16 %v932_v42, %v931_v24  ;;  %v933_v41 = vld [vmem:[%s18623_s12 + $0x30] sm:$0xff] }
0x1024   : > { %v6830_v35 = vmul.f32 %v15617_v15, %v17115_v34 }
0x1025   : > { %15624 = vrsqrt.f32 %v6818_v7  ;;  %v6805_v30 = vpop.xlane.xlu1 %6804  ;;  %v6843_v23 = vmul.f32 %v13978_v17, %v6831_v40  ;;  %18696 = vst [vmem:[#allocation4_spill] sm:$0xff] %v17250_v48  ;;  %v13980_v40 = vld [vmem:[%s18622_s11] ss:$0 sm:$0xff] }
0x1026   : > { %v6813_v26 = vmul.f32 0.03125, %v6805_v30  ;;  %v6802_v14 = vpop.xlane.xlu0 %6801  ;;  %v6842_v9 = vmul.f32 %v13978_v17, %v6830_v35 }
0x1027   : > { %v15619_v20 = vpop.eup %15618  ;;  %v6812_v0 = vmul.f32 0.03125, %v6802_v14  ;;  %v17184_v33 = vadd.f32 %v13979_v60, %v6843_v23 }
0x1028   : > { %v6821_v28 = vadd.f32 1e-12, %v6813_v26  ;;  %v17182_v55 = vadd.f32 %v13979_v60, %v6842_v9  ;;  %v6833_v34 = vmul.f32 %v15619_v20, %v17122_v47 }
0x1029   : > { %v6820_v63 = vadd.f32 1e-12, %v6812_v0 }
0x102a   : > { %15626 = vrsqrt.f32 %v6821_v28  ;;  %14891 = vmatprep.mubr.msk.f32.mxu0 %vm946_vm1, %v17182_v55  ;;  %v6845_v50 = vmul.f32 %v13978_v17, %v6833_v34 }
0x102b   : > { %v15621_v52 = vpop.eup %15620  ;;  %15628 = vrsqrt.f32 %v6820_v63  ;;  %14892 = vmatmul.mubr.msk.f32.vlgmr.msra.gmra.mrb[76].mxu0 %vm946_vm1, %v17184_v33 }
0x102c   : > { %v15623_v13 = vpop.eup %15622  ;;  %v6832_v16 = vmul.f32 %v15621_v52, %v17127_v46  ;;  %15397 = vmatpush3.bf16.msra.mxu0 %v18693_v39  ;;  %v17199_v4 = vadd.f32 %v13979_v60, %v6845_v50 }
0x102d   : > { %v6835_v61 = vmul.f32 %v15623_v13, %v17130_v11  ;;  %15399 = vmatprep.subr.bf16.mxu0 %v18694_v59 }
0x102e   : > { %v6844_v47 = vmul.f32 %v13978_v17, %v6832_v16 }
0x102f   : > { %v15625_v27 = vpop.eup %15624  ;;  %v6847_v58 = vmul.f32 %v13978_v17, %v6835_v61 }
0x1030   : > { %v17195_v36 = vadd.f32 %v13979_v60, %v6844_v47  ;;  %v6834_v3 = vmul.f32 %v15625_v27, %v17136_v31  ;;  %15401 = vmatpush3.bf16.msra.mxu0 %v18694_v59 }
0x1031   : > { %14956 = vmatprep.subr.mxu0 %v18686_v45  ;;  %v17208_v12 = vadd.f32 %v13979_v60, %v6847_v58 }
0x1032   : > { %14894 = vmatprep.mubr.msk.f32.mxu0 %vm946_vm1, %v17195_v36  ;;  %v6846_v46 = vmul.f32 %v13978_v17, %v6834_v3 }
0x1033   : > { %14895 = vmatmul.mubr.msk.f32.gmra.mrb[78].mxu0 %vm946_vm1, %v17199_v4 }
0x1034   : > { %v15627_v11 = vpop.eup %15626  ;;  %v17206_v39 = vadd.f32 %v13979_v60, %v6846_v46 }
0x1035   : > { %v15629_v10 = vpop.eup %15628  ;;  %v6837_v31 = vmul.f32 %v15627_v11, %v17143_v25  ;;  %v927_v25 = vld [vmem:[%s18623_s12] sm:$0xff] }
0x1036   : > { %14897 = vmatprep.mubr.msk.f32.mxu0 %vm946_vm1, %v17206_v39  ;;  %v6836_v8 = vmul.f32 %v15629_v10, %v17145_v49  ;;  %v928_v49 = vld [vmem:[%s18623_s12 + $0x8] sm:$0xff] }
0x1037   : > { %14898 = vmatmul.mubr.msk.f32.gmra.mrb[80].mxu0 %vm946_vm1, %v17208_v12  ;;  %v6849_v43 = vmul.f32 %v13978_v17, %v6837_v31  ;;  %v17230_v62 = vpack.c.bf16 %v928_v49, %v927_v25 }
0x1038   : > { %v6848_v2 = vmul.f32 %v13978_v17, %v6836_v8  ;;  %v934_v17 = vld [vmem:[%s18623_s12 + $0x38] sm:$0xff] }
0x1039   : > { %v17218_v21 = vadd.f32 %v13979_v60, %v6849_v43  ;;  %15379 = vmatprep.subr.bf16.mxu1 %v17230_v62  ;;  %v17260_v15 = vpack.c.bf16 %v934_v17, %v933_v41 }
0x103a   : > { %v17216_v54 = vadd.f32 %v13979_v60, %v6848_v2  ;;  %15381 = vmatpush3.bf16.msra.mxu1 %v17230_v62 }
0x103b   : > { %15383 = vmatprep.subr.bf16.mxu1 %v17240_v56  ;;  %18697 = vst [vmem:[#allocation7_spill] sm:$0xff] %v17260_v15 }
0x103c   : > { %14900 = vmatprep.mubr.msk.f32.mxu0 %vm946_vm1, %v17216_v54 }
0x103d   : > { %14901 = vmatmul.mubr.msk.f32.gmra.mrb[82].mxu0 %vm946_vm1, %v17218_v21 }
0x103e   : > { %15385 = vmatpush3.bf16.msra.mxu1 %v17240_v56 }
0x103f   : > { %15387 = vmatprep.subr.bf16.mxu1 %v17250_v48 }
0x1042   : > { %15389 = vmatpush3.bf16.msra.mxu1 %v17250_v48 }
0x1043   : > { %15391 = vmatprep.subr.bf16.mxu1 %v17260_v15 }
0x1046   : > { %15393 = vmatpush3.bf16.msra.mxu1 %v17260_v15 }
0x1047   : > { %14951 = vmatprep.subr.mxu1 %v18686_v45 }
0x10fe   : > { %v14893_v7 = vpop.f32.mrb[76].mxu0 }
0x10ff   : > { %v17268_v35 = vadd.f32 %v14893_v7, %v13980_v40  ;;  %v6958_v30 = vpop.f32.mrb[77].mxu0 }
0x1100   : > { %v17270_v60 = vadd.f32 %v13980_v40, %v6958_v30 }
0x1101   : > { %v6998_v23 = vmul.f32 %v17268_v35, %v17268_v35 }
0x1102   : > { %v6997_v26 = vmul.f32 %v17270_v60, %v17270_v60 }
0x1103   : > { %v7006_v14 = vmul.f32 %v6998_v23, %v17268_v35 }
0x1104   : > { %v7005_v9 = vmul.f32 %v6997_v26, %v17270_v60 }
0x1105   : > { %v7014_v20 = vmul.f32 0.044715, %v7006_v14 }
0x1106   : > { %v7013_v0 = vmul.f32 0.044715, %v7005_v9  ;;  %v14896_v28 = vpop.f32.mrb[78].mxu0 }
0x1107   : > { %v7022_v63 = vadd.f32 %v7014_v20, %v17268_v35  ;;  %v17279_v34 = vadd.f32 %v14896_v28, %v13980_v40  ;;  %v6968_v52 = vpop.f32.mrb[79].mxu0 }
0x1108   : > { %v7021_v13 = vadd.f32 %v7013_v0, %v17270_v60  ;;  %v17282_v16 = vadd.f32 %v13980_v40, %v6968_v52 }
0x1109   : > { %v7030_v50 = vmul.f32 0.7978846, %v7022_v63  ;;  %v7000_v61 = vmul.f32 %v17279_v34, %v17279_v34 }
0x110a   : > { %v7029_v59 = vmul.f32 0.7978846, %v7021_v13  ;;  %v6999_v47 = vmul.f32 %v17282_v16, %v17282_v16  ;;  %v14899_v27 = vpop.f32.mrb[80].mxu0 }
0x110b   : > { %15630 = vtanh.f32 %v7030_v50  ;;  %v7008_v3 = vmul.f32 %v7000_v61, %v17279_v34  ;;  %v17289_v58 = vadd.f32 %v14899_v27, %v13980_v40  ;;  %v6978_v46 = vpop.f32.mrb[81].mxu0 }
0x110c   : > { %15632 = vtanh.f32 %v7029_v59  ;;  %v7007_v11 = vmul.f32 %v6999_v47, %v17282_v16  ;;  %v17292_v10 = vadd.f32 %v13980_v40, %v6978_v46 }
0x110d   : > { %v7016_v31 = vmul.f32 0.044715, %v7008_v3  ;;  %v7002_v8 = vmul.f32 %v17289_v58, %v17289_v58 }
0x110e   : > { %v7015_v43 = vmul.f32 0.044715, %v7007_v11  ;;  %v7001_v2 = vmul.f32 %v17292_v10, %v17292_v10 }
0x110f   : > { %v7024_v25 = vadd.f32 %v7016_v31, %v17279_v34  ;;  %v7010_v49 = vmul.f32 %v7002_v8, %v17289_v58 }
0x1110   : > { %v7023_v5 = vadd.f32 %v7015_v43, %v17282_v16  ;;  %v7009_v29 = vmul.f32 %v7001_v2, %v17292_v10  ;;  %v14902_v24 = vpop.f32.mrb[82].mxu0 }
0x1111   : > { %v7032_v42 = vmul.f32 0.7978846, %v7024_v25  ;;  %v7018_v41 = vmul.f32 0.044715, %v7010_v49  ;;  %v17302_v17 = vadd.f32 %v14902_v24, %v13980_v40  ;;  %v6988_v7 = vpop.f32.mrb[83].mxu0 }
0x1112   : > { %v7031_v30 = vmul.f32 0.7978846, %v7023_v5  ;;  %v7017_v23 = vmul.f32 0.044715, %v7009_v29  ;;  %v6989_v26 = vadd.f32 %v13980_v40, %v6988_v7 }
0x1113   : > { %15634 = vtanh.f32 %v7032_v42  ;;  %v7026_v14 = vadd.f32 %v7018_v41, %v17289_v58  ;;  %v7004_v9 = vmul.f32 %v17302_v17, %v17302_v17 }
0x1114   : > { %15636 = vtanh.f32 %v7031_v30  ;;  %v7025_v20 = vadd.f32 %v7017_v23, %v17292_v10  ;;  %v7003_v0 = vmul.f32 %v6989_v26, %v6989_v26 }
0x1115   : > { %v15631_v28 = vpop.eup %15630  ;;  %v7034_v63 = vmul.f32 0.7978846, %v7026_v14  ;;  %v7012_v52 = vmul.f32 %v7004_v9, %v17302_v17 }
0x1116   : > { %v15633_v13 = vpop.eup %15632  ;;  %v7046_v50 = vadd.f32 1.0, %v15631_v28  ;;  %v7033_v61 = vmul.f32 0.7978846, %v7025_v20  ;;  %v7011_v59 = vmul.f32 %v7003_v0, %v6989_v26 }
0x1117   : > { %15638 = vtanh.f32 %v7034_v63  ;;  %v7020_v40 = vmul.f32 0.044715, %v7012_v52  ;;  %v7045_v47 = vadd.f32 1.0, %v15633_v13 }
0x1118   : > { %v7054_v27 = vmul.f32 0.5, %v7046_v50  ;;  %15640 = vtanh.f32 %v7033_v61  ;;  %v7019_v3 = vmul.f32 0.044715, %v7011_v59 }
0x1119   : > { %v7028_v46 = vadd.f32 %v7020_v40, %v17302_v17  ;;  %v7053_v11 = vmul.f32 0.5, %v7045_v47 }
0x111a   : > { %v7027_v31 = vadd.f32 %v7019_v3, %v6989_v26  ;;  %v7062_v2 = vmul.f32 %v7054_v27, %v17268_v35 }
0x111b   : > { %v7036_v8 = vmul.f32 0.7978846, %v7028_v46  ;;  %v7061_v43 = vmul.f32 %v7053_v11, %v17270_v60 }
0x111c   : > { %v7035_v25 = vmul.f32 0.7978846, %v7027_v31 }
0x111d   : > { %v15635_v49 = vpop.eup %15634  ;;  %15642 = vtanh.f32 %v7036_v8  ;;  %14919 = vmatprep.mubr.msk.f32.mxu1 %vm7069_vm5, %v7061_v43 }
0x111e   : > { %v15637_v5 = vpop.eup %15636  ;;  %15644 = vtanh.f32 %v7035_v25  ;;  %14920 = vmatmul.mubr.msk.f32.vlgmr.msra.gmra.mrb[76].mxu1 %vm7069_vm5, %v7062_v2  ;;  %v7048_v29 = vadd.f32 1.0, %v15635_v49 }
0x111f   : > { %v7047_v24 = vadd.f32 1.0, %v15637_v5 }
0x1120   : > { %v7056_v42 = vmul.f32 0.5, %v7048_v29 }
0x1121   : > { %v15639_v41 = vpop.eup %15638  ;;  %v7055_v7 = vmul.f32 0.5, %v7047_v24 }
0x1122   : > { %v15641_v30 = vpop.eup %15640  ;;  %v7050_v23 = vadd.f32 1.0, %v15639_v41  ;;  %v7064_v35 = vmul.f32 %v7056_v42, %v17279_v34 }
0x1123   : > { %v7063_v60 = vmul.f32 %v7055_v7, %v17282_v16  ;;  %v7049_v14 = vadd.f32 1.0, %v15641_v30 }
0x1124   : > { %v7058_v9 = vmul.f32 0.5, %v7050_v23 }
0x1125   : > { %14922 = vmatprep.mubr.msk.f32.mxu1 %vm7069_vm5, %v7063_v60  ;;  %v7057_v20 = vmul.f32 0.5, %v7049_v14 }
0x1126   : > { %14923 = vmatmul.mubr.msk.f32.gmra.mrb[78].mxu1 %vm7069_vm5, %v7064_v35  ;;  %v7066_v52 = vmul.f32 %v7058_v9, %v17289_v58  ;;  %v13997_v58 = vld [vmem:[%s18624_s13] ss:$0 sm:$0xff] }
0x1127   : > { %v15643_v0 = vpop.eup %15642  ;;  %v7065_v28 = vmul.f32 %v7057_v20, %v17292_v10 }
0x1128   : > { %v15645_v63 = vpop.eup %15644  ;;  %v7052_v13 = vadd.f32 1.0, %v15643_v0 }
0x1129   : > { %14925 = vmatprep.mubr.msk.f32.mxu1 %vm7069_vm5, %v7065_v28  ;;  %v7051_v50 = vadd.f32 1.0, %v15645_v63 }
0x112a   : > { %14926 = vmatmul.mubr.msk.f32.gmra.mrb[80].mxu1 %vm7069_vm5, %v7066_v52  ;;  %v7060_v16 = vmul.f32 0.5, %v7052_v13 }
0x112b   : > { %v7059_v34 = vmul.f32 0.5, %v7051_v50 }
0x112c   : > { %v7068_v59 = vmul.f32 %v7060_v16, %v17302_v17 }
0x112d   : > { %v7067_v61 = vmul.f32 %v7059_v34, %v6989_v26 }
0x112f   : > { %14928 = vmatprep.mubr.msk.f32.mxu1 %vm7069_vm5, %v7067_v61 }
0x1130   : > { %14929 = vmatmul.mubr.msk.f32.gmra.mrb[82].mxu1 %vm7069_vm5, %v7068_v59 }
0x1131   : > { %14953 = vmatprep.mubr.msk.f32.mxu1 %vm15857_vm2, %v18686_v45 }
0x11f1   : > { %v14921_v10 = vpop.f32.mrb[76].mxu1 }
0x11f2   : > { %v7200_v40 = vadd.f32 %v14921_v10, %v17184_v33  ;;  %v7160_v47 = vpop.f32.mrb[77].mxu1 }
0x11f3   : > { %v7199_v27 = vadd.f32 %v7160_v47, %v17182_v55 }
0x11f4   : > { %v7214_v26 = vadd.f32 %v13997_v58, %v7200_v40 }
0x11f5   : > { %v7213_v3 = vadd.f32 %v13997_v58, %v7199_v27 }
0x11f6   : > { %v7224_v17 = vsel %vm946_vm1, %v7214_v26, 0.0 }
0x11f7   : > { %7225 = vadd.xlane.f32.xlu1 %v7224_v17  ;;  %v7221_v46 = vsel %vm946_vm1, %v7213_v3, 0.0 }
0x11f8   : > { %7222 = vadd.xlane.f32.xlu0 %v7221_v46 }
0x11f9   : > { %v14924_v11 = vpop.f32.mrb[78].mxu1 }
0x11fa   : > { %v7202_v31 = vadd.f32 %v14924_v11, %v17199_v4  ;;  %v7170_v8 = vpop.f32.mrb[79].mxu1 }
0x11fb   : > { %v7201_v43 = vadd.f32 %v7170_v8, %v17195_v36 }
0x11fc   : > { %v7216_v2 = vadd.f32 %v13997_v58, %v7202_v31 }
0x11fd   : > { %v7215_v25 = vadd.f32 %v13997_v58, %v7201_v43  ;;  %v14927_v33 = vpop.f32.mrb[80].mxu1 }
0x11fe   : > { %v7204_v49 = vadd.f32 %v14927_v33, %v17208_v12  ;;  %v7180_v55 = vpop.f32.mrb[81].mxu1  ;;  %v7230_v5 = vsel %vm946_vm1, %v7216_v2, 0.0 }
0x11ff   : > { %v7203_v29 = vadd.f32 %v7180_v55, %v17206_v39  ;;  %7231 = vadd.xlane.f32.xlu1 %v7230_v5  ;;  %v7227_v24 = vsel %vm946_vm1, %v7215_v25, 0.0 }
0x1200   : > { %v7218_v42 = vadd.f32 %v13997_v58, %v7204_v49  ;;  %7228 = vadd.xlane.f32.xlu0 %v7227_v24 }
0x1201   : > { %v7217_v41 = vadd.f32 %v13997_v58, %v7203_v29 }
0x1202   : > { %v7236_v4 = vsel %vm946_vm1, %v7218_v42, 0.0 }
0x1203   : > { %v14930_v7 = vpop.f32.mrb[82].mxu1  ;;  %7237 = vadd.xlane.f32.xlu1 %v7236_v4  ;;  %v7233_v36 = vsel %vm946_vm1, %v7217_v41, 0.0 }
0x1204   : > { %v7206_v30 = vadd.f32 %v14930_v7, %v17218_v21  ;;  %v7190_v12 = vpop.f32.mrb[83].mxu1  ;;  %7234 = vadd.xlane.f32.xlu0 %v7233_v36 }
0x1205   : > { %v7205_v23 = vadd.f32 %v7190_v12, %v17216_v54 }
0x1206   : > { %v7220_v60 = vadd.f32 %v13997_v58, %v7206_v30 }
0x1207   : > { %v7219_v39 = vadd.f32 %v13997_v58, %v7205_v23 }
0x1208   : > { %v7242_v14 = vsel %vm946_vm1, %v7220_v60, 0.0 }
0x1209   : > { %7243 = vadd.xlane.f32.xlu1 %v7242_v14  ;;  %v7239_v35 = vsel %vm946_vm1, %v7219_v39, 0.0 }
0x120a   : > { %7240 = vadd.xlane.f32.xlu0 %v7239_v35 }
0x1284   : > { %v7226_v9 = vpop.xlane.xlu1 %7225 }
0x1285   : > { %v7246_v20 = vmul.f32 0.03125, %v7226_v9  ;;  %v7223_v0 = vpop.xlane.xlu0 %7222 }
0x1286   : > { %v7245_v28 = vmul.f32 0.03125, %v7223_v0 }
0x1287   : > { %v17346_v63 = vsub.f32 %v7214_v26, %v7246_v20 }
0x1288   : > { %v17348_v52 = vsub.f32 %v7213_v3, %v7245_v28 }
0x1289   : > { %v7262_v21 = vmul.f32 %v17346_v63, %v17346_v63 }
0x128a   : > { %v7261_v54 = vmul.f32 %v17348_v52, %v17348_v52 }
0x128b   : > { %v7272_v13 = vsel %vm946_vm1, %v7262_v21, 0.0 }
0x128c   : > { %v7232_v50 = vpop.xlane.xlu1 %7231  ;;  %7273 = vadd.xlane.f32.xlu1 %v7272_v13  ;;  %v7269_v16 = vsel %vm946_vm1, %v7261_v54, 0.0 }
0x128d   : > { %v7248_v34 = vmul.f32 0.03125, %v7232_v50  ;;  %7270 = vadd.xlane.f32.xlu0 %v7269_v16  ;;  %v7229_v61 = vpop.xlane.xlu0 %7228 }
0x128e   : > { %v7247_v59 = vmul.f32 0.03125, %v7229_v61  ;;  %v13998_v61 = vld [vmem:[%s18625_s14] ss:$0 sm:$0xff] }
0x128f   : > { %v17356_v58 = vsub.f32 %v7216_v2, %v7248_v34 }
0x1290   : > { %v17358_v10 = vsub.f32 %v7215_v25, %v7247_v59  ;;  %v7238_v40 = vpop.xlane.xlu1 %7237 }
0x1291   : > { %v7250_v47 = vmul.f32 0.03125, %v7238_v40  ;;  %v7235_v27 = vpop.xlane.xlu0 %7234  ;;  %v7264_v26 = vmul.f32 %v17356_v58, %v17356_v58 }
0x1292   : > { %v7249_v3 = vmul.f32 0.03125, %v7235_v27  ;;  %v7263_v17 = vmul.f32 %v17358_v10, %v17358_v10 }
0x1293   : > { %v17364_v46 = vsub.f32 %v7218_v42, %v7250_v47  ;;  %v7278_v11 = vsel %vm946_vm1, %v7264_v26, 0.0 }
0x1294   : > { %v17367_v31 = vsub.f32 %v7217_v41, %v7249_v3  ;;  %7279 = vadd.xlane.f32.xlu1 %v7278_v11  ;;  %v7275_v8 = vsel %vm946_vm1, %v7263_v17, 0.0  ;;  %v13999_v11 = vld [vmem:[%s18625_s14 + $0x1] ss:$0 sm:$0xff] }
0x1295   : > { %7276 = vadd.xlane.f32.xlu0 %v7275_v8  ;;  %v7266_v43 = vmul.f32 %v17364_v46, %v17364_v46 }
0x1296   : > { %v7244_v2 = vpop.xlane.xlu1 %7243  ;;  %v7265_v25 = vmul.f32 %v17367_v31, %v17367_v31 }
0x1297   : > { %v7252_v33 = vmul.f32 0.03125, %v7244_v2  ;;  %v7241_v49 = vpop.xlane.xlu0 %7240  ;;  %v7284_v55 = vsel %vm946_vm1, %v7266_v43, 0.0 }
0x1298   : > { %v7251_v5 = vmul.f32 0.03125, %v7241_v49  ;;  %7285 = vadd.xlane.f32.xlu1 %v7284_v55  ;;  %v7281_v29 = vsel %vm946_vm1, %v7265_v25, 0.0 }
0x1299   : > { %v17376_v24 = vsub.f32 %v7220_v60, %v7252_v33  ;;  %7282 = vadd.xlane.f32.xlu0 %v7281_v29 }
0x129a   : > { %v17378_v42 = vsub.f32 %v7219_v39, %v7251_v5 }
0x129b   : > { %v7268_v41 = vmul.f32 %v17376_v24, %v17376_v24 }
0x129c   : > { %v7267_v4 = vmul.f32 %v17378_v42, %v17378_v42 }
0x129d   : > { %v7290_v7 = vsel %vm946_vm1, %v7268_v41, 0.0 }
0x129e   : > { %7291 = vadd.xlane.f32.xlu1 %v7290_v7  ;;  %v7287_v36 = vsel %vm946_vm1, %v7267_v4, 0.0 }
0x129f   : > { %7288 = vadd.xlane.f32.xlu0 %v7287_v36 }
0x1319   : > { %v7274_v30 = vpop.xlane.xlu1 %7273 }
0x131a   : > { %v7294_v12 = vmul.f32 0.03125, %v7274_v30  ;;  %v7271_v23 = vpop.xlane.xlu0 %7270 }
0x131b   : > { %v7293_v60 = vmul.f32 0.03125, %v7271_v23 }
0x131c   : > { %v7302_v14 = vadd.f32 1e-12, %v7294_v12 }
0x131d   : > { %v7301_v35 = vadd.f32 1e-12, %v7293_v60 }
0x131e   : > { %15646 = vrsqrt.f32 %v7302_v14 }
0x131f   : > { %15648 = vrsqrt.f32 %v7301_v35 }
0x1321   : > { %v7280_v39 = vpop.xlane.xlu1 %7279 }
0x1322   : > { %v7296_v9 = vmul.f32 0.03125, %v7280_v39  ;;  %v7277_v20 = vpop.xlane.xlu0 %7276 }
0x1323   : > { %v7295_v0 = vmul.f32 0.03125, %v7277_v20 }
0x1324   : > { %v7304_v28 = vadd.f32 1e-12, %v7296_v9 }
0x1325   : > { %v7303_v21 = vadd.f32 1e-12, %v7295_v0  ;;  %v7286_v54 = vpop.xlane.xlu1 %7285 }
0x1326   : > { %15650 = vrsqrt.f32 %v7304_v28  ;;  %v7298_v13 = vmul.f32 0.03125, %v7286_v54  ;;  %v7283_v50 = vpop.xlane.xlu0 %7282 }
0x1327   : > { %15652 = vrsqrt.f32 %v7303_v21  ;;  %v7297_v16 = vmul.f32 0.03125, %v7283_v50 }
0x1328   : > { %v15647_v34 = vpop.eup %15646  ;;  %v7306_v59 = vadd.f32 1e-12, %v7298_v13 }
0x1329   : > { %v15649_v40 = vpop.eup %15648  ;;  %v7318_v47 = vmul.f32 %v15647_v34, %v17346_v63  ;;  %v7305_v27 = vadd.f32 1e-12, %v7297_v16 }
0x132a   : > { %15654 = vrsqrt.f32 %v7306_v59  ;;  %v7317_v26 = vmul.f32 %v15649_v40, %v17348_v52 }
0x132b   : > { %v7330_v3 = vmul.f32 %v13998_v61, %v7318_v47  ;;  %15656 = vrsqrt.f32 %v7305_v27  ;;  %v7292_v17 = vpop.xlane.xlu1 %7291 }
0x132c   : > { %v7300_v8 = vmul.f32 0.03125, %v7292_v17  ;;  %v7289_v43 = vpop.xlane.xlu0 %7288  ;;  %v7329_v2 = vmul.f32 %v13998_v61, %v7317_v26 }
0x132d   : > { %v7299_v25 = vmul.f32 0.03125, %v7289_v43  ;;  %v17396_v63 = vadd.f32 %v13999_v11, %v7330_v3 }
0x132e   : > { %v7308_v33 = vadd.f32 1e-12, %v7300_v8  ;;  %v17394_v49 = vadd.f32 %v13999_v11, %v7329_v2 }
0x132f   : > { %v7307_v55 = vadd.f32 1e-12, %v7299_v25  ;;  %18699 = vst [vmem:[#allocation9_spill] sm:$0xff] %v17396_v63 }
0x1330   : > { %18698 = vst [vmem:[#allocation6_spill] sm:$0xff] %v17394_v49  ;;  %v15651_v5 = vpop.eup %15650  ;;  %15658 = vrsqrt.f32 %v7308_v33  ;;  %14939 = vmatprep.mubr.msk.f32.mxu0 %vm946_vm1, %v17394_v49 }
0x1331   : > { %v15653_v52 = vpop.eup %15652  ;;  %15660 = vrsqrt.f32 %v7307_v55  ;;  %14940 = vmatmul.mubr.msk.f32.vlgmr.msra.gmra.mrb[84].mxu0 %vm946_vm1, %v17396_v63  ;;  %v7320_v29 = vmul.f32 %v15651_v5, %v17356_v58 }
0x1332   : > { %v7319_v41 = vmul.f32 %v15653_v52, %v17358_v10 }
0x1333   : > { %v7332_v4 = vmul.f32 %v13998_v61, %v7320_v29 }
0x1334   : > { %v15655_v7 = vpop.eup %15654  ;;  %v7331_v36 = vmul.f32 %v13998_v61, %v7319_v41 }
0x1335   : > { %v15657_v30 = vpop.eup %15656  ;;  %v7322_v12 = vmul.f32 %v15655_v7, %v17364_v46  ;;  %v17408_v14 = vadd.f32 %v13999_v11, %v7332_v4 }
0x1336   : > { %v17405_v23 = vadd.f32 %v13999_v11, %v7331_v36  ;;  %v7321_v60 = vmul.f32 %v15657_v30, %v17367_v31 }
0x1337   : > { %18701 = vst [vmem:[#allocation2_spill] sm:$0xff] %v17408_v14  ;;  %v7334_v35 = vmul.f32 %v13998_v61, %v7322_v12 }
0x1338   : > { %18700 = vst [vmem:[#allocation8_spill] sm:$0xff] %v17405_v23  ;;  %14942 = vmatprep.mubr.msk.f32.mxu0 %vm946_vm1, %v17405_v23  ;;  %v7333_v39 = vmul.f32 %v13998_v61, %v7321_v60 }
0x1339   : > { %14943 = vmatmul.mubr.msk.f32.gmra.mrb[86].mxu0 %vm946_vm1, %v17408_v14  ;;  %v17416_v20 = vadd.f32 %v13999_v11, %v7334_v35 }
0x133a   : > { %v15659_v58 = vpop.eup %15658  ;;  %v17414_v10 = vadd.f32 %v13999_v11, %v7333_v39 }
0x133b   : > { %v15661_v9 = vpop.eup %15660  ;;  %18703 = vst [vmem:[#allocation10_spill] sm:$0xff] %v17416_v20  ;;  %v7324_v46 = vmul.f32 %v15659_v58, %v17376_v24 }
0x133c   : > { %18702 = vst [vmem:[#allocation3_spill] sm:$0xff] %v17414_v10  ;;  %14945 = vmatprep.mubr.msk.f32.mxu0 %vm946_vm1, %v17414_v10  ;;  %v7323_v31 = vmul.f32 %v15661_v9, %v17378_v42  ;;  %v15840_v42 = vld [vmem:[%s18617_s6] ss:$0 sm:$0xff] }
0x133d   : > { %14946 = vmatmul.mubr.msk.f32.gmra.mrb[88].mxu0 %vm946_vm1, %v17416_v20  ;;  %v7336_v0 = vmul.f32 %v13998_v61, %v7324_v46 }
0x133e   : > { %v7335_v28 = vmul.f32 %v13998_v61, %v7323_v31 }
0x133f   : > { %v17426_v54 = vadd.f32 %v13999_v11, %v7336_v0 }
0x1340   : > { %v17424_v21 = vadd.f32 %v13999_v11, %v7335_v28 }
0x1341   : > { %18705 = vst [vmem:[#allocation12_spill] sm:$0xff] %v17426_v54 }
0x1342   : > { %18704 = vst [vmem:[#allocation11_spill] sm:$0xff] %v17424_v21  ;;  %14948 = vmatprep.mubr.msk.f32.mxu0 %vm946_vm1, %v17424_v21 }
0x1343   : > { %14949 = vmatmul.mubr.msk.f32.gmra.mrb[90].mxu0 %vm946_vm1, %v17426_v54 }
0x1344   : > { %14958 = vmatprep.mubr.msk.f32.mxu0 %vm15857_vm2, %v18686_v45 }
0x1404   : > { %v14941_v24 = vpop.f32.mrb[84].mxu0 }
0x1405   : > { %v17437_v13 = vadd.f32 %v15840_v42, %v14941_v24  ;;  %v7439_v50 = vpop.f32.mrb[85].mxu0 }
0x1406   : > { %v17439_v16 = vadd.f32 %v15840_v42, %v7439_v50 }
0x1407   : > { %7556 = vrot.lane.b32.xlu1 %v17437_v13, %s15858_s26 }
0x1408   : > { %7479 = vrot.lane.b32.xlu0 %v17439_v16, %s15858_s26 }
0x140c   : > { %v14944_v34 = vpop.f32.mrb[86].mxu0 }
0x140d   : > { %v7449_v61 = vpop.f32.mrb[87].mxu0  ;;  %v17449_v27 = vadd.f32 %v15840_v42, %v14944_v34 }
0x140e   : > { %v17445_v59 = vadd.f32 %v15840_v42, %v7449_v61 }
0x1410   : > { %7633 = vrot.lane.b32.xlu1 %v17445_v59, %s15858_s26  ;;  %v14947_v40 = vpop.f32.mrb[88].mxu0 }
0x1411   : > { %v7459_v47 = vpop.f32.mrb[89].mxu0  ;;  %v17457_v3 = vadd.f32 %v15840_v42, %v14947_v40 }
0x1412   : > { %v17451_v26 = vadd.f32 %v15840_v42, %v7459_v47 }
0x1414   : > { %7710 = vrot.lane.b32.xlu1 %v17449_v27, %s15858_s26  ;;  %7787 = vrot.lane.b32.xlu0 %v17451_v26, %s15858_s26 }
0x1416   : > { %v14950_v17 = vpop.f32.mrb[90].mxu0 }
0x1417   : > { %v7469_v11 = vpop.f32.mrb[91].mxu0  ;;  %v17463_v43 = vadd.f32 %v15840_v42, %v14950_v17 }
0x1418   : > { %v17459_v8 = vadd.f32 %v15840_v42, %v7469_v11  ;;  %7864 = vrot.lane.b32.xlu1 %v17457_v3, %s15858_s26 }
0x141a   : > { %7941 = vrot.lane.b32.xlu0 %v17459_v8, %s15858_s26 }
0x141c   : > { %8018 = vrot.lane.b32.xlu1 %v17463_v43, %s15858_s26  ;;  %s18714_s26 = smov 56  }
0x1479   : > { %v7557_v2 = vpop.permute.xlu1 %7556 }
0x147a   : > { %14957 = vmatpush3.xpose.msk.msra.mxu0 %vm1079_vm3, %v7557_v2  ;;  %v7480_v25 = vpop.permute.xlu0 %7479 }
0x147b   : > { %14952 = vmatpush3.xpose.msk.msra.mxu1 %vm1079_vm3, %v7480_v25  ;;  %14966 = vmatprep.subr.mxu0 %v18686_v45 }
0x147c   : > { %14961 = vmatprep.subr.mxu1 %v18686_v45 }
0x147d   : > { %14959 = vmatmul.mubr.msk.f32.vlgmr.msra.gmra.mrb[92].mxu0 %vm1079_vm3, %v17437_v13 }
0x147e   : > { %14954 = vmatmul.mubr.msk.f32.vlgmr.msra.gmra.mrb[84].mxu1 %vm1079_vm3, %v17439_v16  ;;  %14968 = vmatprep.mubr.msk.f32.mxu0 %vm15857_vm2, %v18686_v45 }
0x147f   : > { %14963 = vmatprep.mubr.msk.f32.mxu1 %vm15857_vm2, %v18686_v45 }
0x1482   : > { %v7634_v33 = vpop.permute.xlu1 %7633 }
0x1483   : > { %14962 = vmatpush3.xpose.msk.msra.mxu1 %vm1079_vm3, %v7634_v33 }
0x1484   : > { %14971 = vmatprep.subr.mxu1 %v18686_v45 }
0x1486   : > { %v7711_v55 = vpop.permute.xlu1 %7710  ;;  %14964 = vmatmul.mubr.msk.f32.vlgmr.msra.gmra.mrb[86].mxu1 %vm1079_vm3, %v17445_v59  ;;  %v7788_v5 = vpop.permute.xlu0 %7787 }
0x1487   : > { %14967 = vmatpush3.xpose.msk.msra.mxu0 %vm1079_vm3, %v7711_v55  ;;  %14972 = vmatpush3.xpose.msk.msra.mxu1 %vm1079_vm3, %v7788_v5 }
0x1488   : > { %14973 = vmatprep.mubr.msk.f32.mxu1 %vm15857_vm2, %v18686_v45  ;;  %14976 = vmatprep.subr.mxu0 %v18686_v45 }
0x1489   : > { %14981 = vmatprep.subr.mxu1 %v18686_v45 }
0x148a   : > { %v7865_v52 = vpop.permute.xlu1 %7864  ;;  %14969 = vmatmul.mubr.msk.f32.vlgmr.msra.gmra.mrb[94].mxu0 %vm1079_vm3, %v17449_v27  ;;  %14974 = vmatmul.mubr.msk.f32.vlgmr.msra.gmra.mrb[88].mxu1 %vm1079_vm3, %v17451_v26 }
0x148b   : > { %14977 = vmatpush3.xpose.msk.msra.mxu0 %vm1079_vm3, %v7865_v52  ;;  %14978 = vmatprep.mubr.msk.f32.mxu0 %vm15857_vm2, %v18686_v45 }
0x148c   : > { %v7942_v29 = vpop.permute.xlu0 %7941  ;;  %14986 = vmatprep.subr.mxu0 %v18686_v45  ;;  %14983 = vmatprep.mubr.msk.f32.mxu1 %vm15857_vm2, %v18686_v45 }
0x148d   : > { %14982 = vmatpush3.xpose.msk.msra.mxu1 %vm1079_vm3, %v7942_v29 }
0x148e   : > { %14979 = vmatmul.mubr.msk.f32.vlgmr.msra.gmra.mrb[96].mxu0 %vm1079_vm3, %v17457_v3  ;;  %v8019_v41 = vpop.permute.xlu1 %8018  ;;  %14991 = vmatprep.subr.mxu1 %v18686_v45 }
0x148f   : > { %14987 = vmatpush3.xpose.msk.msra.mxu0 %vm1079_vm3, %v8019_v41  ;;  %14988 = vmatprep.mubr.msk.f32.mxu0 %vm15857_vm2, %v18686_v45 }
0x1490   : > { %14984 = vmatmul.mubr.msk.f32.vlgmr.msra.gmra.mrb[90].mxu1 %vm1079_vm3, %v17459_v8  ;;  %14996 = vmatprep.subr.mxu0 %v18686_v45 }
0x1491   : > { %14993 = vmatprep.mubr.msk.f32.mxu1 %vm15857_vm2, %v18686_v45 }
0x1492   : > { %14989 = vmatmul.mubr.msk.f32.vlgmr.msra.gmra.mrb[98].mxu0 %vm1079_vm3, %v17463_v43 }
0x1493   : > { %14998 = vmatprep.mubr.msk.f32.mxu0 %vm15857_vm2, %v18686_v45 }
0x1550   : > { %v7628_v4 = vpop.f32.mrb[92].mxu0 }
0x1551   : > { %v8095_v7 = vmul.f32 0.35355338, %v7628_v4  ;;  %v7551_v36 = vpop.f32.mrb[84].mxu1  ;;  %v14960_v30 = vpop.f32.mrb[93].mxu0 }
0x1552   : > { %v8094_v12 = vmul.f32 0.35355338, %v7551_v36  ;;  %v14955_v60 = vpop.f32.mrb[85].mxu1 }
0x1553   : > { %v8103_v35 = vadd.f32 %v8095_v7, %v16219_v19 }
0x1554   : > { %v8102_v39 = vadd.f32 %v8094_v12, %v16214_v1 }
0x1555   : > { %v8113_v58 = vsel %vm1079_vm3, %v8103_v35, -inf }
0x1556   : > { %8114 = vmax.xlane.f32.xlu1 %v8113_v58  ;;  %v8110_v9 = vsel %vm1079_vm3, %v8102_v39, -inf }
0x1557   : > { %8111 = vmax.xlane.f32.xlu0 %v8110_v9 }
0x1559   : > { %v7705_v46 = vpop.f32.mrb[86].mxu1 }
0x155a   : > { %v14965_v31 = vpop.f32.mrb[87].mxu1  ;;  %v8096_v0 = vmul.f32 0.35355338, %v7705_v46 }
0x155c   : > { %v17523_v40 = vadd.f32 %v8096_v0, %v16221_v22 }
0x155d   : > { %v7782_v28 = vpop.f32.mrb[94].mxu0  ;;  %v7859_v24 = vpop.f32.mrb[88].mxu1 }
0x155e   : > { %v8097_v42 = vmul.f32 0.35355338, %v7782_v28  ;;  %v14970_v50 = vpop.f32.mrb[95].mxu0  ;;  %v14975_v34 = vpop.f32.mrb[89].mxu1  ;;  %v8098_v17 = vmul.f32 0.35355338, %v7859_v24 }
0x155f   : > { %v8116_v29 = vsel %vm1079_vm3, %v17523_v40, -inf }
0x1560   : > { %v8105_v61 = vadd.f32 %v8097_v42, %v16231_v44  ;;  %v8106_v41 = vadd.f32 %v8098_v17, %v16233_v51 }
0x1561   : > { %v7936_v47 = vpop.f32.mrb[96].mxu0 }
0x1562   : > { %v8099_v11 = vmul.f32 0.35355338, %v7936_v47  ;;  %v14980_v2 = vpop.f32.mrb[97].mxu0  ;;  %v8119_v25 = vsel %vm1079_vm3, %v8105_v61, -inf  ;;  %v8122_v9 = vsel %vm1079_vm3, %v8106_v41, -inf }
0x1563   : > { %v8013_v33 = vpop.f32.mrb[90].mxu1  ;;  %8120 = vmax.xlane.f32.xlu0 %v8119_v25 }
0x1564   : > { %v8107_v55 = vadd.f32 %v8099_v11, %v16240_v53  ;;  %v14985_v5 = vpop.f32.mrb[91].mxu1  ;;  %v8100_v4 = vmul.f32 0.35355338, %v8013_v33 }
0x1565   : > { %v8090_v52 = vpop.f32.mrb[98].mxu0 }
0x1566   : > { %v8101_v7 = vmul.f32 0.35355338, %v8090_v52  ;;  %v14990_v36 = vpop.f32.mrb[99].mxu0  ;;  %v8125_v30 = vsel %vm1079_vm3, %v8107_v55, -inf  ;;  %v8108_v60 = vadd.f32 %v8100_v4, %v16244_v6 }
0x1567   : > { %8126 = vmax.xlane.f32.xlu1 %v8125_v30  ;;  %8117 = vmax.xlane.f32.xlu0 %v8116_v29 }
0x1568   : > { %v8109_v12 = vadd.f32 %v8101_v7, %v16212_v57  ;;  %v8128_v46 = vsel %vm1079_vm3, %v8108_v60, -inf }
0x156a   : > { %v8131_v58 = vsel %vm1079_vm3, %v8109_v12, -inf }
0x156b   : > { %8132 = vmax.xlane.f32.xlu1 %v8131_v58  ;;  %8123 = vmax.xlane.f32.xlu0 %v8122_v9 }
0x156f   : > { %8129 = vmax.xlane.f32.xlu0 %v8128_v46 }
0x157c   : > { %8274 = vrot.lane.b32.xlu1 %v17437_v13, %s15860_s18 }
0x1580   : > { %8350 = vrot.lane.b32.xlu1 %v17445_v59, %s15860_s18 }
0x1584   : > { %8426 = vrot.lane.b32.xlu1 %v17449_v27, %s15860_s18 }
0x1585   : > { %8198 = vrot.lane.b32.xlu0 %v17439_v16, %s15860_s18 }
0x1588   : > { %8578 = vrot.lane.b32.xlu1 %v17457_v3, %s15860_s18 }
0x1589   : > { %8502 = vrot.lane.b32.xlu0 %v17451_v26, %s15860_s18 }
0x158c   : > { %8730 = vrot.lane.b32.xlu1 %v17463_v43, %s15860_s18 }
0x158d   : > { %8654 = vrot.lane.b32.xlu0 %v17459_v8, %s15860_s18  ;;  %s18715_s18 = smov 80  }
0x1590   : > { %8886 = vrot.lane.b32.xlu1 %v17437_v13, %s15861_s19 }
0x1591   : > { %8808 = vrot.lane.b32.xlu0 %v17439_v16, %s15861_s19 }
0x1594   : > { %8884 = vrot.lane.b32.xlu1 %v17437_v13, %s15862_s1 }
0x1595   : > { %8806 = vrot.lane.b32.xlu0 %v17439_v16, %s15862_s1 }
0x1598   : > { %9042 = vrot.lane.b32.xlu1 %v17449_v27, %s15861_s19 }
0x1599   : > { %8964 = vrot.lane.b32.xlu0 %v17445_v59, %s15861_s19 }
0x15e3   : > { %v8115_v31 = vpop.xlane.xlu1 %8114 }
0x15e4   : > { %v8135_v0 = vsub.f32 %v8103_v35, %v8115_v31  ;;  %v8112_v28 = vpop.xlane.xlu0 %8111 }
0x15e5   : > { %v8134_v24 = vsub.f32 %v8102_v39, %v8112_v28 }
0x15e6   : > { %v8144_v42 = vmul.f32 1.442695, %v8135_v0 }
0x15e7   : > { %v8142_v50 = vmul.f32 1.442695, %v8134_v24 }
0x15e8   : > { %15662 = vpow2.f32 %v8144_v42 }
0x15e9   : > { %15664 = vpow2.f32 %v8142_v50 }
0x15f0   : > { %v8121_v34 = vpop.xlane.xlu0 %8120 }
0x15f1   : > { %v8137_v47 = vsub.f32 %v8105_v61, %v8121_v34 }
0x15f2   : > { %v17564_v17 = vpop.eup %15662 }
0x15f3   : > { %v17566_v11 = vpop.eup %15664  ;;  %v8148_v2 = vmul.f32 1.442695, %v8137_v47  ;;  %v8161_v25 = vsel %vm1079_vm3, %v17564_v17, 0.0 }
0x15f4   : > { %v8127_v33 = vpop.xlane.xlu1 %8126  ;;  %8162 = vadd.xlane.f32.xlu1 %v8161_v25  ;;  %v8118_v5 = vpop.xlane.xlu0 %8117  ;;  %v8158_v35 = vsel %vm1079_vm3, %v17566_v11, 0.0 }
0x15f5   : > { %15666 = vpow2.f32 %v8148_v2  ;;  %v8139_v39 = vsub.f32 %v8107_v55, %v8127_v33  ;;  %v8136_v52 = vsub.f32 %v17523_v40, %v8118_v5  ;;  %8159 = vadd.xlane.f32.xlu0 %v8158_v35 }
0x15f7   : > { %v8152_v61 = vmul.f32 1.442695, %v8139_v39  ;;  %v8146_v29 = vmul.f32 1.442695, %v8136_v52 }
0x15f8   : > { %v8133_v4 = vpop.xlane.xlu1 %8132  ;;  %v8124_v7 = vpop.xlane.xlu0 %8123 }
0x15f9   : > { %15668 = vpow2.f32 %v8152_v61  ;;  %v8141_v36 = vsub.f32 %v8109_v12, %v8133_v4  ;;  %v8138_v30 = vsub.f32 %v8106_v41, %v8124_v7 }
0x15fa   : > { %15670 = vpow2.f32 %v8146_v29 }
0x15fb   : > { %v8156_v58 = vmul.f32 1.442695, %v8141_v36  ;;  %v8150_v9 = vmul.f32 1.442695, %v8138_v30 }
0x15fc   : > { %v8275_v46 = vpop.permute.xlu1 %8274  ;;  %v8130_v31 = vpop.xlane.xlu0 %8129 }
0x15fd   : > { %15672 = vpow2.f32 %v8156_v58  ;;  %v8140_v0 = vsub.f32 %v8108_v60, %v8130_v31  ;;  %14997 = vmatpush3.msra.mxu0 %v8275_v46 }
0x15fe   : > { %15674 = vpow2.f32 %v8150_v9  ;;  %15006 = vmatprep.subr.mxu0 %v18686_v45 }
0x15ff   : > { %v17574_v40 = vpop.eup %15666  ;;  %v8154_v55 = vmul.f32 1.442695, %v8140_v0 }
0x1600   : > { %v8199_v28 = vpop.permute.xlu0 %8198  ;;  %v8167_v24 = vsel %vm1079_vm3, %v17574_v40, 0.0  ;;  %v8351_v5 = vpop.permute.xlu1 %8350 }
0x1601   : > { %15676 = vpow2.f32 %v8154_v55  ;;  %8168 = vadd.xlane.f32.xlu1 %v8167_v24  ;;  %14992 = vmatpush3.msra.mxu1 %v8199_v28 }
0x1602   : > { %15001 = vmatprep.subr.mxu1 %v18686_v45 }
0x1603   : > { %v17579_v41 = vpop.eup %15668 }
0x1604   : > { %v17581_v12 = vpop.eup %15670  ;;  %v8173_v60 = vsel %vm1079_vm3, %v17579_v41, 0.0  ;;  %v8427_v35 = vpop.permute.xlu1 %8426 }
0x1605   : > { %8174 = vadd.xlane.f32.xlu1 %v8173_v60  ;;  %v8164_v42 = vsel %vm1079_vm3, %v17581_v12, 0.0  ;;  %v8503_v52 = vpop.permute.xlu0 %8502 }
0x1606   : > { %8165 = vadd.xlane.f32.xlu0 %v8164_v42 }
0x1607   : > { %v17587_v50 = vpop.eup %15672 }
0x1608   : > { %v17589_v34 = vpop.eup %15674  ;;  %v8179_v47 = vsel %vm1079_vm3, %v17587_v50, 0.0  ;;  %v8579_v39 = vpop.permute.xlu1 %8578 }
0x1609   : > { %8180 = vadd.xlane.f32.xlu1 %v8179_v47  ;;  %v8170_v2 = vsel %vm1079_vm3, %v17589_v34, 0.0  ;;  %v17619_v29 = vpop.permute.xlu0 %8654 }
0x160a   : > { %8171 = vadd.xlane.f32.xlu0 %v8170_v2 }
0x160b   : > { %v17595_v25 = vpop.eup %15676 }
0x160c   : > { %v8176_v33 = vsel %vm1079_vm3, %v17595_v25, 0.0  ;;  %v8731_v61 = vpop.permute.xlu1 %8730 }
0x160d   : > { %v17623_v7 = vpop.permute.xlu0 %8808 }
0x160e   : > { %8177 = vadd.xlane.f32.xlu0 %v8176_v33 }
0x1610   : > { %v17621_v4 = vpop.permute.xlu1 %8886 }
0x1611   : > { %v17627_v30 = vpop.permute.xlu0 %8806 }
0x1614   : > { %v17625_v36 = vpop.permute.xlu1 %8884 }
0x1615   : > { %v17631_v9 = vpop.permute.xlu0 %8964 }
0x1618   : > { %v17629_v58 = vpop.permute.xlu1 %9042 }
0x161a   : > { %9040 = vrot.lane.b32.xlu1 %v17449_v27, %s15862_s1 }
0x161e   : > { %9198 = vrot.lane.b32.xlu1 %v17457_v3, %s15861_s19 }
0x1622   : > { %9196 = vrot.lane.b32.xlu1 %v17457_v3, %s15862_s1 }
0x1624   : > { %8962 = vrot.lane.b32.xlu0 %v17445_v59, %s15862_s1 }
0x1626   : > { %9354 = vrot.lane.b32.xlu1 %v17463_v43, %s15861_s19 }
0x1628   : > { %9120 = vrot.lane.b32.xlu0 %v17451_v26, %s15861_s19 }
0x162a   : > { %9352 = vrot.lane.b32.xlu1 %v17463_v43, %s15862_s1 }
0x162c   : > { %9118 = vrot.lane.b32.xlu0 %v17451_v26, %s15862_s1 }
0x1630   : > { %9276 = vrot.lane.b32.xlu0 %v17459_v8, %s15861_s19  ;;  %s18716_s19 = smov 112  }
0x1634   : > { %9274 = vrot.lane.b32.xlu0 %v17459_v8, %s15862_s1  ;;  %s18717_s1 = smov 48  }
0x1681   : > { %v8163_v46 = vpop.xlane.xlu1 %8162 }
0x1682   : > { %15678 = vrcp.f32 %v8163_v46  ;;  %v8160_v31 = vpop.xlane.xlu0 %8159 }
0x1683   : > { %15680 = vrcp.f32 %v8160_v31 }
0x168c   : > { %v15679_v0 = vpop.eup %15678 }
0x168d   : > { %v15681_v55 = vpop.eup %15680  ;;  %v8185_v28 = vmul.f32 %v15679_v0, %v17564_v17 }
0x168e   : > { %v8169_v24 = vpop.xlane.xlu1 %8168  ;;  %v8183_v60 = vmul.f32 %v15681_v55, %v17566_v11 }
0x168f   : > { %15682 = vrcp.f32 %v8169_v24  ;;  %14999 = vmatmul.mubr.msk.f32.vlgmr.msra.gmra.mrb[100].mxu0 %vm1079_vm3, %v8185_v28 }
0x1690   : > { %15007 = vmatpush3.msra.mxu0 %v8427_v35  ;;  %14994 = vmatmul.mubr.msk.f32.vlgmr.msra.gmra.mrb[92].mxu1 %vm1079_vm3, %v8183_v60 }
0x1691   : > { %15002 = vmatpush3.msra.mxu1 %v8351_v5  ;;  %15008 = vmatprep.mubr.msk.f32.mxu0 %vm15857_vm2, %v18686_v45 }
0x1692   : > { %v8175_v42 = vpop.xlane.xlu1 %8174  ;;  %15016 = vmatprep.subr.mxu0 %v18686_v45  ;;  %15003 = vmatprep.mubr.msk.f32.mxu1 %vm15857_vm2, %v18686_v45 }
0x1693   : > { %15684 = vrcp.f32 %v8175_v42  ;;  %v8166_v17 = vpop.xlane.xlu0 %8165  ;;  %15011 = vmatprep.subr.mxu1 %v18686_v45 }
0x1694   : > { %15686 = vrcp.f32 %v8166_v17 }
0x1696   : > { %v8181_v11 = vpop.xlane.xlu1 %8180 }
0x1697   : > { %15688 = vrcp.f32 %v8181_v11  ;;  %v8172_v47 = vpop.xlane.xlu0 %8171 }
0x1698   : > { %15690 = vrcp.f32 %v8172_v47 }
0x1699   : > { %v15683_v2 = vpop.eup %15682 }
0x169a   : > { %v8189_v33 = vmul.f32 %v15683_v2, %v17574_v40  ;;  %v9041_v31 = vpop.permute.xlu1 %9040 }
0x169b   : > { %v8178_v5 = vpop.xlane.xlu0 %8177 }
0x169c   : > { %15692 = vrcp.f32 %v8178_v5  ;;  %15009 = vmatmul.mubr.msk.f32.vlgmr.msra.gmra.mrb[102].mxu0 %vm1079_vm3, %v8189_v33 }
0x169d   : > { %v15685_v35 = vpop.eup %15684  ;;  %15017 = vmatpush3.msra.mxu0 %v8579_v39  ;;  %15018 = vmatprep.mubr.msk.f32.mxu0 %vm15857_vm2, %v18686_v45 }
0x169e   : > { %v15687_v46 = vpop.eup %15686  ;;  %15026 = vmatprep.subr.mxu0 %v18686_v45  ;;  %v8193_v0 = vmul.f32 %v15685_v35, %v17579_v41 }
0x169f   : > { %v8187_v55 = vmul.f32 %v15687_v46, %v17581_v12  ;;  %v8963_v24 = vpop.permute.xlu0 %8962  ;;  %v9199_v12 = vpop.permute.xlu1 %9198 }
0x16a0   : > { %15019 = vmatmul.mubr.msk.f32.vlgmr.msra.gmra.mrb[104].mxu0 %vm1079_vm3, %v8193_v0 }
0x16a1   : > { %v15689_v40 = vpop.eup %15688  ;;  %15004 = vmatmul.mubr.msk.f32.vlgmr.msra.gmra.mrb[94].mxu1 %vm1079_vm3, %v8187_v55  ;;  %15027 = vmatpush3.msra.mxu0 %v8731_v61 }
0x16a2   : > { %v15691_v28 = vpop.eup %15690  ;;  %15012 = vmatpush3.msra.mxu1 %v8503_v52  ;;  %15013 = vmatprep.mubr.msk.f32.mxu1 %vm15857_vm2, %v18686_v45  ;;  %v8197_v39 = vmul.f32 %v15689_v40, %v17587_v50 }
0x16a3   : > { %15021 = vmatprep.subr.mxu1 %v18686_v45  ;;  %15028 = vmatprep.mubr.msk.f32.mxu0 %vm15857_vm2, %v18686_v45  ;;  %v8191_v41 = vmul.f32 %v15691_v28, %v17589_v34  ;;  %v9121_v34 = vpop.permute.xlu0 %9120  ;;  %v9197_v61 = vpop.permute.xlu1 %9196 }
0x16a4   : > { %15029 = vmatmul.mubr.msk.f32.vlgmr.msra.gmra.mrb[106].mxu0 %vm1079_vm3, %v8197_v39  ;;  %15036 = vmatprep.subr.mxu0 %v18686_v45 }
0x16a5   : > { %15014 = vmatmul.mubr.msk.f32.vlgmr.msra.gmra.mrb[96].mxu1 %vm1079_vm3, %v8191_v41  ;;  %15038 = vmatprep.mubr.msk.f32.mxu0 %vm15857_vm2, %v18686_v45 }
0x16a6   : > { %v15693_v52 = vpop.eup %15692  ;;  %15022 = vmatpush3.msra.mxu1 %v17619_v29  ;;  %15023 = vmatprep.mubr.msk.f32.mxu1 %vm15857_vm2, %v18686_v45 }
0x16a7   : > { %v8195_v50 = vmul.f32 %v15693_v52, %v17595_v25  ;;  %15031 = vmatprep.subr.mxu1 %v18686_v45  ;;  %v9119_v25 = vpop.permute.xlu0 %9118  ;;  %v9355_v29 = vpop.permute.xlu1 %9354 }
0x16a8   : > { %15037 = vmatpush3.xpose.msk.msra.mxu0 %vm1079_vm3, %v17621_v4 }
0x16a9   : > { %15024 = vmatmul.mubr.msk.f32.vlgmr.msra.gmra.mrb[98].mxu1 %vm1079_vm3, %v8195_v50  ;;  %15046 = vmatprep.subr.mxu0 %v18686_v45 }
0x16aa   : > { %15033 = vmatprep.mubr.msk.f32.mxu1 %vm15857_vm2, %v18686_v45 }
0x16ab   : > { %15039 = vmatmul.mubr.msk.f32.vlgmr.msra.gmra.mrb[108].mxu0 %vm1079_vm3, %v17625_v36  ;;  %v9277_v4 = vpop.permute.xlu0 %9276 }
0x16ac   : > { %15047 = vmatpush3.xpose.msk.msra.mxu0 %vm1079_vm3, %v17629_v58  ;;  %15048 = vmatprep.mubr.msk.f32.mxu0 %vm15857_vm2, %v18686_v45 }
0x16ad   : > { %15032 = vmatpush3.xpose.msk.msra.mxu1 %vm1079_vm3, %v17623_v7  ;;  %15056 = vmatprep.subr.mxu0 %v18686_v45  ;;  %v9353_v7 = vpop.permute.xlu1 %9352 }
0x16ae   : > { %15041 = vmatprep.subr.mxu1 %v18686_v45 }
0x16af   : > { %15049 = vmatmul.mubr.msk.f32.vlgmr.msra.gmra.mrb[110].mxu0 %vm1079_vm3, %v9041_v31  ;;  %v9275_v36 = vpop.permute.xlu0 %9274 }
0x16b0   : > { %15034 = vmatmul.mubr.msk.f32.vlgmr.msra.gmra.mrb[100].mxu1 %vm1079_vm3, %v17627_v30  ;;  %15057 = vmatpush3.xpose.msk.msra.mxu0 %vm1079_vm3, %v9199_v12 }
0x16b1   : > { %15042 = vmatpush3.xpose.msk.msra.mxu1 %vm1079_vm3, %v17631_v9  ;;  %15043 = vmatprep.mubr.msk.f32.mxu1 %vm15857_vm2, %v18686_v45 }
0x16b2   : > { %15058 = vmatprep.mubr.msk.f32.mxu0 %vm15857_vm2, %v18686_v45  ;;  %15051 = vmatprep.subr.mxu1 %v18686_v45 }
0x16b3   : > { %15059 = vmatmul.mubr.msk.f32.vlgmr.msra.gmra.mrb[112].mxu0 %vm1079_vm3, %v9197_v61  ;;  %15066 = vmatprep.subr.mxu0 %v18686_v45 }
0x16b4   : > { %15044 = vmatmul.mubr.msk.f32.vlgmr.msra.gmra.mrb[102].mxu1 %vm1079_vm3, %v8963_v24  ;;  %15067 = vmatpush3.xpose.msk.msra.mxu0 %vm1079_vm3, %v9355_v29 }
0x16b5   : > { %15052 = vmatpush3.xpose.msk.msra.mxu1 %vm1079_vm3, %v9121_v34  ;;  %15053 = vmatprep.mubr.msk.f32.mxu1 %vm15857_vm2, %v18686_v45 }
0x16b6   : > { %15068 = vmatprep.mubr.msk.f32.mxu0 %vm15857_vm2, %v18686_v45  ;;  %15061 = vmatprep.subr.mxu1 %v18686_v45 }
0x16b7   : > { %15069 = vmatmul.mubr.msk.f32.vlgmr.msra.gmra.mrb[114].mxu0 %vm1079_vm3, %v9353_v7  ;;  %15076 = vmatprep.subr.mxu0 %v18686_v45 }
0x16b8   : > { %15054 = vmatmul.mubr.msk.f32.vlgmr.msra.gmra.mrb[104].mxu1 %vm1079_vm3, %v9119_v25  ;;  %15078 = vmatprep.mubr.msk.f32.mxu0 %vm15857_vm2, %v18686_v45 }
0x16b9   : > { %15062 = vmatpush3.xpose.msk.msra.mxu1 %vm1079_vm3, %v9277_v4  ;;  %15063 = vmatprep.mubr.msk.f32.mxu1 %vm15857_vm2, %v18686_v45 }
0x16ba   : > { %15071 = vmatprep.subr.mxu1 %v18686_v45 }
0x16bc   : > { %15064 = vmatmul.mubr.msk.f32.vlgmr.msra.gmra.mrb[106].mxu1 %vm1079_vm3, %v9275_v36 }
0x16bd   : > { %15073 = vmatprep.mubr.msk.f32.mxu1 %vm15857_vm2, %v18686_v45 }
0x1762   : > { %v17718_v30 = vpop.f32.mrb[100].mxu0 }
0x1763   : > { %18706 = vst [vmem:[#allocation13_spill] sm:$0xff] %v17718_v30  ;;  %v17720_v58 = vpop.f32.mrb[92].mxu1  ;;  %v15000_v9 = vpop.f32.mrb[101].mxu0 }
0x1764   : > { %18707 = vst [vmem:[#allocation14_spill] sm:$0xff] %v17720_v58  ;;  %v14995_v60 = vpop.f32.mrb[93].mxu1 }
0x176f   : > { %v17722_v42 = vpop.f32.mrb[102].mxu0 }
0x1770   : > { %18708 = vst [vmem:[#allocation15_spill] sm:$0xff] %v17722_v42  ;;  %v15010_v17 = vpop.f32.mrb[103].mxu0 }
0x1773   : > { %v17724_v11 = vpop.f32.mrb[104].mxu0 }
0x1774   : > { %18709 = vst [vmem:[#allocation16_spill] sm:$0xff] %v17724_v11  ;;  %v17726_v47 = vpop.f32.mrb[94].mxu1  ;;  %v15020_v2 = vpop.f32.mrb[105].mxu0 }
0x1775   : > { %18710 = vst [vmem:[#allocation17_spill] sm:$0xff] %v17726_v47  ;;  %v15005_v33 = vpop.f32.mrb[95].mxu1 }
0x1777   : > { %v17728_v5 = vpop.f32.mrb[106].mxu0 }
0x1778   : > { %18711 = vst [vmem:[#allocation18_spill] sm:$0xff] %v17728_v5  ;;  %v17730_v35 = vpop.f32.mrb[96].mxu1  ;;  %v15030_v46 = vpop.f32.mrb[107].mxu0 }
0x1779   : > { %18712 = vst [vmem:[#allocation19_spill] sm:$0xff] %v17730_v35  ;;  %v15015_v31 = vpop.f32.mrb[97].mxu1 }
0x177c   : > { %v17732_v0 = vpop.f32.mrb[98].mxu1 }
0x177d   : > { %18713 = vst [vmem:[#allocation20_spill] sm:$0xff] %v17732_v0  ;;  %v15025_v55 = vpop.f32.mrb[99].mxu1 }
0x177e   : > { %v8958_v40 = vpop.f32.mrb[108].mxu0 }
0x177f   : > { %v9431_v28 = vmul.f32 0.35355338, %v8958_v40  ;;  %v15040_v39 = vpop.f32.mrb[109].mxu0 }
0x1781   : > { %v9439_v24 = vadd.f32 %v9431_v28, %v16219_v19 }
0x1782   : > { %v9114_v41 = vpop.f32.mrb[110].mxu0 }
0x1783   : > { %v8880_v12 = vpop.f32.mrb[100].mxu1  ;;  %v15050_v52 = vpop.f32.mrb[111].mxu0  ;;  %v9449_v50 = vsel %vm1079_vm3, %v9439_v24, -inf  ;;  %v9433_v61 = vmul.f32 0.35355338, %v9114_v41 }
0x1784   : > { %v9430_v34 = vmul.f32 0.35355338, %v8880_v12  ;;  %v15035_v25 = vpop.f32.mrb[101].mxu1  ;;  %9450 = vmax.xlane.f32.xlu1 %v9449_v50 }
0x1785   : > { %v9441_v60 = vadd.f32 %v9433_v61, %v16231_v44 }
0x1786   : > { %v9438_v29 = vadd.f32 %v9430_v34, %v16214_v1  ;;  %v9270_v4 = vpop.f32.mrb[112].mxu0 }
0x1787   : > { %v9036_v7 = vpop.f32.mrb[102].mxu1  ;;  %v9435_v36 = vmul.f32 0.35355338, %v9270_v4  ;;  %v15060_v9 = vpop.f32.mrb[113].mxu0  ;;  %v9455_v50 = vsel %vm1079_vm3, %v9441_v60, -inf }
0x1788   : > { %v9432_v17 = vmul.f32 0.35355338, %v9036_v7  ;;  %v15045_v2 = vpop.f32.mrb[103].mxu1  ;;  %v9446_v33 = vsel %vm1079_vm3, %v9438_v29, -inf }
0x1789   : > { %v9443_v46 = vadd.f32 %v9435_v36, %v16240_v53  ;;  %9447 = vmax.xlane.f32.xlu0 %v9446_v33 }
0x178a   : > { %v9426_v31 = vpop.f32.mrb[114].mxu0  ;;  %v9440_v41 = vadd.f32 %v9432_v17, %v16221_v22 }
0x178b   : > { %v9192_v55 = vpop.f32.mrb[104].mxu1  ;;  %v9437_v40 = vmul.f32 0.35355338, %v9426_v31  ;;  %v15070_v28 = vpop.f32.mrb[115].mxu0  ;;  %v9461_v39 = vsel %vm1079_vm3, %v9443_v46, -inf }
0x178c   : > { %v9434_v12 = vmul.f32 0.35355338, %v9192_v55  ;;  %v15055_v52 = vpop.f32.mrb[105].mxu1  ;;  %9462 = vmax.xlane.f32.xlu1 %v9461_v39  ;;  %v9452_v9 = vsel %vm1079_vm3, %v9440_v41, -inf }
0x178d   : > { %v9445_v34 = vadd.f32 %v9437_v40, %v16212_v57  ;;  %9456 = vmax.xlane.f32.xlu0 %v9455_v50 }
0x178e   : > { %v9442_v4 = vadd.f32 %v9434_v12, %v16233_v51 }
0x178f   : > { %v9348_v61 = vpop.f32.mrb[106].mxu1  ;;  %v9467_v25 = vsel %vm1079_vm3, %v9445_v34, -inf }
0x1790   : > { %v9436_v7 = vmul.f32 0.35355338, %v9348_v61  ;;  %v15065_v36 = vpop.f32.mrb[107].mxu1  ;;  %9468 = vmax.xlane.f32.xlu1 %v9467_v25  ;;  %v9458_v2 = vsel %vm1079_vm3, %v9442_v4, -inf }
0x1791   : > { %9453 = vmax.xlane.f32.xlu0 %v9452_v9 }
0x1792   : > { %v9444_v17 = vadd.f32 %v9436_v7, %v16244_v6 }
0x1794   : > { %v9464_v33 = vsel %vm1079_vm3, %v9444_v17, -inf }
0x1795   : > { %9459 = vmax.xlane.f32.xlu0 %v9458_v2 }
0x1799   : > { %9465 = vmax.xlane.f32.xlu0 %v9464_v33 }
0x17a1   : > { %9610 = vrot.lane.b32.xlu1 %v17437_v13, %s18714_s26 }
0x17a5   : > { %9686 = vrot.lane.b32.xlu1 %v17445_v59, %s18714_s26 }
0x17a9   : > { %9762 = vrot.lane.b32.xlu1 %v17449_v27, %s18714_s26 }
0x17ad   : > { %9914 = vrot.lane.b32.xlu1 %v17457_v3, %s18714_s26 }
0x17af   : > { %9534 = vrot.lane.b32.xlu0 %v17439_v16, %s18714_s26 }
0x17b1   : > { %10066 = vrot.lane.b32.xlu1 %v17463_v43, %s18714_s26 }
0x17b3   : > { %9838 = vrot.lane.b32.xlu0 %v17451_v26, %s18714_s26 }
0x17b5   : > { %10222 = vrot.lane.b32.xlu1 %v17437_v13, %s18715_s18 }
0x17b7   : > { %9990 = vrot.lane.b32.xlu0 %v17459_v8, %s18714_s26 }
0x17b9   : > { %10220 = vrot.lane.b32.xlu1 %v17437_v13, %s18716_s19 }
0x17bb   : > { %10144 = vrot.lane.b32.xlu0 %v17439_v16, %s18715_s18 }
0x17bd   : > { %10378 = vrot.lane.b32.xlu1 %v17449_v27, %s18715_s18 }
0x17bf   : > { %10142 = vrot.lane.b32.xlu0 %v17439_v16, %s18716_s19 }
0x17c3   : > { %10300 = vrot.lane.b32.xlu0 %v17445_v59, %s18715_s18 }
0x1811   : > { %v9451_v31 = vpop.xlane.xlu1 %9450 }
0x1812   : > { %v9471_v55 = vsub.f32 %v9439_v24, %v9451_v31 }
0x1814   : > { %v9480_v40 = vmul.f32 1.442695, %v9471_v55 }
0x1816   : > { %15694 = vpow2.f32 %v9480_v40  ;;  %v9448_v28 = vpop.xlane.xlu0 %9447 }
0x1817   : > { %v9470_v39 = vsub.f32 %v9438_v29, %v9448_v28 }
0x1819   : > { %v9478_v12 = vmul.f32 1.442695, %v9470_v39  ;;  %v9463_v52 = vpop.xlane.xlu1 %9462 }
0x181a   : > { %v9475_v50 = vsub.f32 %v9443_v46, %v9463_v52  ;;  %v9457_v61 = vpop.xlane.xlu0 %9456 }
0x181b   : > { %15696 = vpow2.f32 %v9478_v12  ;;  %v9473_v25 = vsub.f32 %v9441_v60, %v9457_v61 }
0x181c   : > { %v9488_v7 = vmul.f32 1.442695, %v9475_v50 }
0x181d   : > { %v9484_v36 = vmul.f32 1.442695, %v9473_v25  ;;  %v9469_v9 = vpop.xlane.xlu1 %9468 }
0x181e   : > { %v9477_v2 = vsub.f32 %v9445_v34, %v9469_v9  ;;  %v9454_v33 = vpop.xlane.xlu0 %9453 }
0x181f   : > { %15698 = vpow2.f32 %v9484_v36  ;;  %v9472_v21 = vsub.f32 %v9440_v41, %v9454_v33 }
0x1820   : > { %v17778_v54 = vpop.eup %15694  ;;  %15700 = vpow2.f32 %v9488_v7  ;;  %v9492_v24 = vmul.f32 1.442695, %v9477_v2 }
0x1821   : > { %v9482_v31 = vmul.f32 1.442695, %v9472_v21  ;;  %v9611_v55 = vpop.permute.xlu1 %9610  ;;  %v9497_v29 = vsel %vm1079_vm3, %v17778_v54, 0.0 }
0x1822   : > { %v9460_v46 = vpop.xlane.xlu0 %9459  ;;  %9498 = vadd.xlane.f32.xlu1 %v9497_v29  ;;  %15077 = vmatpush3.msra.mxu0 %v9611_v55 }
0x1823   : > { %15702 = vpow2.f32 %v9482_v31  ;;  %v9474_v60 = vsub.f32 %v9442_v4, %v9460_v46  ;;  %15086 = vmatprep.subr.mxu0 %v18686_v45 }
0x1824   : > { %15704 = vpow2.f32 %v9492_v24 }
0x1825   : > { %v17783_v34 = vpop.eup %15696  ;;  %v9486_v41 = vmul.f32 1.442695, %v9474_v60  ;;  %v9687_v31 = vpop.permute.xlu1 %9686 }
0x1826   : > { %v9466_v40 = vpop.xlane.xlu0 %9465  ;;  %v9494_v28 = vsel %vm1079_vm3, %v17783_v34, 0.0 }
0x1827   : > { %15706 = vpow2.f32 %v9486_v41  ;;  %v9476_v21 = vsub.f32 %v9444_v17, %v9466_v40  ;;  %9495 = vadd.xlane.f32.xlu0 %v9494_v28 }
0x1829   : > { %v17787_v39 = vpop.eup %15698  ;;  %v9490_v12 = vmul.f32 1.442695, %v9476_v21  ;;  %v9763_v55 = vpop.permute.xlu1 %9762 }
0x182a   : > { %v9535_v52 = vpop.permute.xlu0 %9534  ;;  %v9503_v4 = vsel %vm1079_vm3, %v17787_v39, 0.0  ;;  %v17791_v50 = vpop.eup %15700 }
0x182b   : > { %15708 = vpow2.f32 %v9490_v12  ;;  %9504 = vadd.xlane.f32.xlu1 %v9503_v4  ;;  %15072 = vmatpush3.msra.mxu1 %v9535_v52  ;;  %v9509_v17 = vsel %vm1079_vm3, %v17791_v50, 0.0 }
0x182c   : > { %15081 = vmatprep.subr.mxu1 %v18686_v45 }
0x182d   : > { %v17794_v61 = vpop.eup %15702  ;;  %v9915_v29 = vpop.permute.xlu1 %9914 }
0x182e   : > { %v9500_v25 = vsel %vm1079_vm3, %v17794_v61, 0.0  ;;  %v17800_v7 = vpop.eup %15704  ;;  %v9839_v46 = vpop.permute.xlu0 %9838 }
0x182f   : > { %9510 = vadd.xlane.f32.xlu1 %v9509_v17  ;;  %9501 = vadd.xlane.f32.xlu0 %v9500_v25  ;;  %v9515_v9 = vsel %vm1079_vm3, %v17800_v7, 0.0 }
0x1831   : > { %v17802_v36 = vpop.eup %15706  ;;  %v10067_v60 = vpop.permute.xlu1 %10066 }
0x1832   : > { %v9506_v2 = vsel %vm1079_vm3, %v17802_v36, 0.0  ;;  %v17856_v41 = vpop.permute.xlu0 %9990 }
0x1833   : > { %9516 = vadd.xlane.f32.xlu1 %v9515_v9  ;;  %9507 = vadd.xlane.f32.xlu0 %v9506_v2 }
0x1835   : > { %v17808_v33 = vpop.eup %15708  ;;  %v17858_v40 = vpop.permute.xlu1 %10222 }
0x1836   : > { %v9512_v24 = vsel %vm1079_vm3, %v17808_v33, 0.0  ;;  %v17860_v28 = vpop.permute.xlu0 %10144 }
0x1837   : > { %9513 = vadd.xlane.f32.xlu0 %v9512_v24 }
0x1839   : > { %v17862_v21 = vpop.permute.xlu1 %10220 }
0x183a   : > { %v17864_v12 = vpop.permute.xlu0 %10142 }
0x183d   : > { %v17866_v52 = vpop.permute.xlu1 %10378 }
0x183e   : > { %v17868_v17 = vpop.permute.xlu0 %10300 }
0x1844   : > { %10376 = vrot.lane.b32.xlu1 %v17449_v27, %s18716_s19 }
0x1848   : > { %10534 = vrot.lane.b32.xlu1 %v17457_v3, %s18715_s18 }
0x184c   : > { %10532 = vrot.lane.b32.xlu1 %v17457_v3, %s18716_s19 }
0x184d   : > { %10298 = vrot.lane.b32.xlu0 %v17445_v59, %s18716_s19 }
0x1850   : > { %10690 = vrot.lane.b32.xlu1 %v17463_v43, %s18715_s18 }
0x1851   : > { %10456 = vrot.lane.b32.xlu0 %v17451_v26, %s18715_s18 }
0x1854   : > { %10688 = vrot.lane.b32.xlu1 %v17463_v43, %s18716_s19 }
0x1855   : > { %10454 = vrot.lane.b32.xlu0 %v17451_v26, %s18716_s19 }
0x1858   : > { %10946 = vrot.lane.b32.xlu1 %v17437_v13, %s18717_s1 }
0x1859   : > { %10612 = vrot.lane.b32.xlu0 %v17459_v8, %s18715_s18 }
0x185c   : > { %11022 = vrot.lane.b32.xlu1 %v17445_v59, %s18717_s1 }
0x185d   : > { %10610 = vrot.lane.b32.xlu0 %v17459_v8, %s18716_s19 }
0x1860   : > { %11098 = vrot.lane.b32.xlu1 %v17449_v27, %s18717_s1 }
0x1861   : > { %10870 = vrot.lane.b32.xlu0 %v17439_v16, %s18717_s1 }
0x1864   : > { %11250 = vrot.lane.b32.xlu1 %v17457_v3, %s18717_s1 }
0x1865   : > { %11174 = vrot.lane.b32.xlu0 %v17451_v26, %s18717_s1 }
0x1868   : > { %11402 = vrot.lane.b32.xlu1 %v17463_v43, %s18717_s1 }
0x1869   : > { %11326 = vrot.lane.b32.xlu0 %v17459_v8, %s18717_s1 }
0x186c   : > { %11558 = vrot.lane.b32.xlu1 %v17437_v13, %s18718_s20 }
0x186d   : > { %11480 = vrot.lane.b32.xlu0 %v17439_v16, %s18718_s20 }
0x1870   : > { %11556 = vrot.lane.b32.xlu1 %v17437_v13, %s18719_s21 }
0x1871   : > { %11478 = vrot.lane.b32.xlu0 %v17439_v16, %s18719_s21 }
0x18af   : > { %v9499_v4 = vpop.xlane.xlu1 %9498 }
0x18b0   : > { %15710 = vrcp.f32 %v9499_v4 }
0x18b4   : > { %v9496_v25 = vpop.xlane.xlu0 %9495 }
0x18b5   : > { %15712 = vrcp.f32 %v9496_v25 }
0x18b8   : > { %v9505_v9 = vpop.xlane.xlu1 %9504 }
0x18b9   : > { %15714 = vrcp.f32 %v9505_v9 }
0x18ba   : > { %v15711_v2 = vpop.eup %15710 }
0x18bb   : > { %v9521_v24 = vmul.f32 %v15711_v2, %v17778_v54 }
0x18bc   : > { %v9511_v10 = vpop.xlane.xlu1 %9510  ;;  %v9502_v20 = vpop.xlane.xlu0 %9501 }
0x18bd   : > { %15716 = vrcp.f32 %v9511_v10  ;;  %15079 = vmatmul.mubr.msk.f32.vlgmr.msra.gmra.mrb[116].mxu0 %vm1079_vm3, %v9521_v24 }
0x18be   : > { %15718 = vrcp.f32 %v9502_v20  ;;  %15087 = vmatpush3.msra.mxu0 %v9763_v55  ;;  %15088 = vmatprep.mubr.msk.f32.mxu0 %vm15857_vm2, %v18686_v45 }
0x18bf   : > { %v15713_v23 = vpop.eup %15712  ;;  %15096 = vmatprep.subr.mxu0 %v18686_v45 }
0x18c0   : > { %v9517_v4 = vpop.xlane.xlu1 %9516  ;;  %v9508_v25 = vpop.xlane.xlu0 %9507  ;;  %v9519_v9 = vmul.f32 %v15713_v23, %v17783_v34 }
0x18c1   : > { %15720 = vrcp.f32 %v9517_v4 }
0x18c2   : > { %15722 = vrcp.f32 %v9508_v25  ;;  %15074 = vmatmul.mubr.msk.f32.vlgmr.msra.gmra.mrb[108].mxu1 %vm1079_vm3, %v9519_v9 }
0x18c3   : > { %v15715_v54 = vpop.eup %15714  ;;  %15082 = vmatpush3.msra.mxu1 %v9687_v31  ;;  %15083 = vmatprep.mubr.msk.f32.mxu1 %vm15857_vm2, %v18686_v45 }
0x18c4   : > { %v10377_v10 = vpop.permute.xlu1 %10376  ;;  %v9514_v20 = vpop.xlane.xlu0 %9513  ;;  %v9525_v55 = vmul.f32 %v15715_v54, %v17787_v39  ;;  %15091 = vmatprep.subr.mxu1 %v18686_v45 }
0x18c5   : > { %15724 = vrcp.f32 %v9514_v20 }
0x18c6   : > { %15089 = vmatmul.mubr.msk.f32.vlgmr.msra.gmra.mrb[118].mxu0 %vm1079_vm3, %v9525_v55 }
0x18c7   : > { %v15717_v2 = vpop.eup %15716  ;;  %15097 = vmatpush3.msra.mxu0 %v9915_v29  ;;  %15098 = vmatprep.mubr.msk.f32.mxu0 %vm15857_vm2, %v18686_v45 }
0x18c8   : > { %v15719_v23 = vpop.eup %15718  ;;  %v10299_v34 = vpop.permute.xlu0 %10298  ;;  %15106 = vmatprep.subr.mxu0 %v18686_v45  ;;  %v9529_v31 = vmul.f32 %v15717_v2, %v17791_v50 }
0x18c9   : > { %v10535_v24 = vpop.permute.xlu1 %10534  ;;  %v9523_v4 = vmul.f32 %v15719_v23, %v17794_v61 }
0x18ca   : > { %15099 = vmatmul.mubr.msk.f32.vlgmr.msra.gmra.mrb[120].mxu0 %vm1079_vm3, %v9529_v31 }
0x18cb   : > { %v15721_v39 = vpop.eup %15720  ;;  %15084 = vmatmul.mubr.msk.f32.vlgmr.msra.gmra.mrb[110].mxu1 %vm1079_vm3, %v9523_v4  ;;  %15107 = vmatpush3.msra.mxu0 %v10067_v60 }
0x18cc   : > { %v15723_v25 = vpop.eup %15722  ;;  %15092 = vmatpush3.msra.mxu1 %v9839_v46  ;;  %15093 = vmatprep.mubr.msk.f32.mxu1 %vm15857_vm2, %v18686_v45  ;;  %v9533_v29 = vmul.f32 %v15721_v39, %v17800_v7  ;;  %v10457_v61 = vpop.permute.xlu0 %10456 }
0x18cd   : > { %15101 = vmatprep.subr.mxu1 %v18686_v45  ;;  %15108 = vmatprep.mubr.msk.f32.mxu0 %vm15857_vm2, %v18686_v45  ;;  %v9527_v50 = vmul.f32 %v15723_v25, %v17802_v36  ;;  %v10533_v9 = vpop.permute.xlu1 %10532 }
0x18ce   : > { %15109 = vmatmul.mubr.msk.f32.vlgmr.msra.gmra.mrb[122].mxu0 %vm1079_vm3, %v9533_v29  ;;  %15116 = vmatprep.subr.mxu0 %v18686_v45 }
0x18cf   : > { %v15725_v60 = vpop.eup %15724  ;;  %15094 = vmatmul.mubr.msk.f32.vlgmr.msra.gmra.mrb[112].mxu1 %vm1079_vm3, %v9527_v50  ;;  %15118 = vmatprep.mubr.msk.f32.mxu0 %vm15857_vm2, %v18686_v45 }
0x18d0   : > { %15102 = vmatpush3.msra.mxu1 %v17856_v41  ;;  %15103 = vmatprep.mubr.msk.f32.mxu1 %vm15857_vm2, %v18686_v45  ;;  %v9531_v7 = vmul.f32 %v15725_v60, %v17808_v33  ;;  %v10455_v36 = vpop.permute.xlu0 %10454 }
0x18d1   : > { %15111 = vmatprep.subr.mxu1 %v18686_v45  ;;  %v10691_v46 = vpop.permute.xlu1 %10690 }
0x18d2   : > { %15117 = vmatpush3.xpose.msk.msra.mxu0 %vm1079_vm3, %v17858_v40 }
0x18d3   : > { %15104 = vmatmul.mubr.msk.f32.vlgmr.msra.gmra.mrb[114].mxu1 %vm1079_vm3, %v9531_v7  ;;  %15126 = vmatprep.subr.mxu0 %v18686_v45 }
0x18d4   : > { %15113 = vmatprep.mubr.msk.f32.mxu1 %vm15857_vm2, %v18686_v45  ;;  %v10613_v33 = vpop.permute.xlu0 %10612 }
0x18d5   : > { %15119 = vmatmul.mubr.msk.f32.vlgmr.msra.gmra.mrb[124].mxu0 %vm1079_vm3, %v17862_v21  ;;  %v10689_v41 = vpop.permute.xlu1 %10688 }
0x18d6   : > { %15127 = vmatpush3.xpose.msk.msra.mxu0 %vm1079_vm3, %v17866_v52  ;;  %15128 = vmatprep.mubr.msk.f32.mxu0 %vm15857_vm2, %v18686_v45 }
0x18d7   : > { %15112 = vmatpush3.xpose.msk.msra.mxu1 %vm1079_vm3, %v17860_v28  ;;  %15136 = vmatprep.subr.mxu0 %v18686_v45 }
0x18d8   : > { %15121 = vmatprep.subr.mxu1 %v18686_v45  ;;  %v10611_v40 = vpop.permute.xlu0 %10610 }
0x18d9   : > { %15129 = vmatmul.mubr.msk.f32.vlgmr.msra.gmra.mrb[126].mxu0 %vm1079_vm3, %v10377_v10  ;;  %v10947_v28 = vpop.permute.xlu1 %10946 }
0x18da   : > { %15114 = vmatmul.mubr.msk.f32.vlgmr.msra.gmra.mrb[116].mxu1 %vm1079_vm3, %v17864_v12  ;;  %15137 = vmatpush3.xpose.msk.msra.mxu0 %vm1079_vm3, %v10535_v24 }
0x18db   : > { %15122 = vmatpush3.xpose.msk.msra.mxu1 %vm1079_vm3, %v17868_v17  ;;  %15123 = vmatprep.mubr.msk.f32.mxu1 %vm15857_vm2, %v18686_v45 }
0x18dc   : > { %15138 = vmatprep.mubr.msk.f32.mxu0 %vm15857_vm2, %v18686_v45  ;;  %15146 = vmatprep.subr.mxu0 %v18686_v45  ;;  %v10871_v21 = vpop.permute.xlu0 %10870 }
0x18dd   : > { %15139 = vmatmul.mubr.msk.f32.vlgmr.msra.gmra.mrb[128].mxu0 %vm1079_vm3, %v10533_v9  ;;  %15131 = vmatprep.subr.mxu1 %v18686_v45 }
0x18de   : > { %15124 = vmatmul.mubr.msk.f32.vlgmr.msra.gmra.mrb[118].mxu1 %vm1079_vm3, %v10299_v34  ;;  %15147 = vmatpush3.xpose.msk.msra.mxu0 %vm1079_vm3, %v10691_v46 }
0x18df   : > { %15132 = vmatpush3.xpose.msk.msra.mxu1 %vm1079_vm3, %v10457_v61  ;;  %15133 = vmatprep.mubr.msk.f32.mxu1 %vm15857_vm2, %v18686_v45 }
0x18e0   : > { %15148 = vmatprep.mubr.msk.f32.mxu0 %vm15857_vm2, %v18686_v45  ;;  %15156 = vmatprep.subr.mxu0 %v18686_v45 }
0x18e1   : > { %15149 = vmatmul.mubr.msk.f32.vlgmr.msra.gmra.mrb[130].mxu0 %vm1079_vm3, %v10689_v41  ;;  %15141 = vmatprep.subr.mxu1 %v18686_v45 }
0x18e2   : > { %15134 = vmatmul.mubr.msk.f32.vlgmr.msra.gmra.mrb[120].mxu1 %vm1079_vm3, %v10455_v36  ;;  %15157 = vmatpush3.msra.mxu0 %v10947_v28 }
0x18e3   : > { %15142 = vmatpush3.xpose.msk.msra.mxu1 %vm1079_vm3, %v10613_v33  ;;  %15143 = vmatprep.mubr.msk.f32.mxu1 %vm15857_vm2, %v18686_v45 }
0x18e4   : > { %15151 = vmatprep.subr.mxu1 %v18686_v45  ;;  %15158 = vmatprep.mubr.msk.f32.mxu0 %vm15857_vm2, %v18686_v45 }
0x18e5   : > { %15166 = vmatprep.subr.mxu0 %v18686_v45 }
0x18e6   : > { %15144 = vmatmul.mubr.msk.f32.vlgmr.msra.gmra.mrb[122].mxu1 %vm1079_vm3, %v10611_v40 }
0x18e7   : > { %15152 = vmatpush3.msra.mxu1 %v10871_v21  ;;  %15153 = vmatprep.mubr.msk.f32.mxu1 %vm15857_vm2, %v18686_v45 }
0x18e8   : > { %15161 = vmatprep.subr.mxu1 %v18686_v45 }
0x1990   : > { %v17957_v12 = vpop.f32.mrb[116].mxu0 }
0x1991   : > { %v15080_v52 = vpop.f32.mrb[117].mxu0 }
0x1995   : > { %v17959_v17 = vpop.f32.mrb[108].mxu1 }
0x1996   : > { %v15075_v54 = vpop.f32.mrb[109].mxu1 }
0x1999   : > { %v17961_v10 = vpop.f32.mrb[118].mxu0 }
0x199a   : > { %v15090_v20 = vpop.f32.mrb[119].mxu0 }
0x199d   : > { %v17963_v55 = vpop.f32.mrb[120].mxu0 }
0x199e   : > { %v17965_v2 = vpop.f32.mrb[110].mxu1  ;;  %v15100_v23 = vpop.f32.mrb[121].mxu0 }
0x199f   : > { %v15085_v34 = vpop.f32.mrb[111].mxu1 }
0x19a1   : > { %v17967_v31 = vpop.f32.mrb[122].mxu0 }
0x19a2   : > { %v17969_v24 = vpop.f32.mrb[112].mxu1  ;;  %v15110_v4 = vpop.f32.mrb[123].mxu0 }
0x19a3   : > { %v15095_v39 = vpop.f32.mrb[113].mxu1 }
0x19a6   : > { %v17971_v25 = vpop.f32.mrb[114].mxu1 }
0x19a7   : > { %v15105_v29 = vpop.f32.mrb[115].mxu1 }
0x19a8   : > { %v10294_v50 = vpop.f32.mrb[124].mxu0 }
0x19a9   : > { %v10767_v61 = vmul.f32 0.35355338, %v10294_v50  ;;  %v15120_v60 = vpop.f32.mrb[125].mxu0 }
0x19ab   : > { %v10775_v9 = vadd.f32 %v10767_v61, %v16219_v19 }
0x19ac   : > { %v10450_v7 = vpop.f32.mrb[126].mxu0 }
0x19ad   : > { %v10216_v36 = vpop.f32.mrb[116].mxu1  ;;  %v15130_v46 = vpop.f32.mrb[127].mxu0  ;;  %v10785_v33 = vsel %vm1079_vm3, %v10775_v9, -inf  ;;  %v10769_v40 = vmul.f32 0.35355338, %v10450_v7 }
0x19ae   : > { %v10766_v41 = vmul.f32 0.35355338, %v10216_v36  ;;  %v15115_v28 = vpop.f32.mrb[117].mxu1  ;;  %10786 = vmax.xlane.f32.xlu1 %v10785_v33 }
0x19af   : > { %v10777_v34 = vadd.f32 %v10769_v40, %v16231_v44 }
0x19b0   : > { %v10774_v21 = vadd.f32 %v10766_v41, %v16214_v1  ;;  %v10606_v52 = vpop.f32.mrb[128].mxu0 }
0x19b1   : > { %v10372_v54 = vpop.f32.mrb[118].mxu1  ;;  %v10771_v20 = vmul.f32 0.35355338, %v10606_v52  ;;  %v15140_v23 = vpop.f32.mrb[129].mxu0  ;;  %v10791_v40 = vsel %vm1079_vm3, %v10777_v34, -inf }
0x19b2   : > { %v10768_v4 = vmul.f32 0.35355338, %v10372_v54  ;;  %v15125_v39 = vpop.f32.mrb[119].mxu1  ;;  %v10782_v29 = vsel %vm1079_vm3, %v10774_v21, -inf }
0x19b3   : > { %v10779_v50 = vadd.f32 %v10771_v20, %v16240_v53  ;;  %10783 = vmax.xlane.f32.xlu0 %v10782_v29 }
0x19b4   : > { %v10762_v61 = vpop.f32.mrb[130].mxu0  ;;  %v10776_v33 = vadd.f32 %v10768_v4, %v16221_v22 }
0x19b5   : > { %v10528_v60 = vpop.f32.mrb[120].mxu1  ;;  %v10773_v7 = vmul.f32 0.35355338, %v10762_v61  ;;  %v15150_v36 = vpop.f32.mrb[131].mxu0  ;;  %v10797_v46 = vsel %vm1079_vm3, %v10779_v50, -inf }
0x19b6   : > { %v10770_v41 = vmul.f32 0.35355338, %v10528_v60  ;;  %v15135_v28 = vpop.f32.mrb[121].mxu1  ;;  %10798 = vmax.xlane.f32.xlu1 %v10797_v46  ;;  %v10788_v4 = vsel %vm1079_vm3, %v10776_v33, -inf  ;;  %v17999_v36 = vpop.permute.xlu1 %11022 }
0x19b7   : > { %v17983_v52 = vadd.f32 %v10773_v7, %v16212_v57  ;;  %10792 = vmax.xlane.f32.xlu0 %v10791_v40  ;;  %v18005_v28 = vpop.permute.xlu0 %11174 }
0x19b8   : > { %v10778_v23 = vadd.f32 %v10770_v41, %v16233_v51 }
0x19b9   : > { %v10684_v54 = vpop.f32.mrb[122].mxu1  ;;  %v10803_v20 = vsel %vm1079_vm3, %v17983_v52, -inf }
0x19ba   : > { %v10772_v39 = vmul.f32 0.35355338, %v10684_v54  ;;  %v15145_v29 = vpop.f32.mrb[123].mxu1  ;;  %10804 = vmax.xlane.f32.xlu1 %v10803_v20  ;;  %v10794_v60 = vsel %vm1079_vm3, %v10778_v23, -inf  ;;  %v18001_v46 = vpop.permute.xlu1 %11098 }
0x19bb   : > { %10789 = vmax.xlane.f32.xlu0 %v10788_v4  ;;  %v18009_v54 = vpop.permute.xlu0 %11326 }
0x19bc   : > { %v17990_v61 = vadd.f32 %v10772_v39, %v16244_v6 }
0x19be   : > { %v10800_v7 = vsel %vm1079_vm3, %v17990_v61, -inf  ;;  %v18003_v41 = vpop.permute.xlu1 %11250 }
0x19bf   : > { %10795 = vmax.xlane.f32.xlu0 %v10794_v60  ;;  %v18013_v39 = vpop.permute.xlu0 %11480 }
0x19c2   : > { %v18007_v40 = vpop.permute.xlu1 %11402 }
0x19c3   : > { %10801 = vmax.xlane.f32.xlu0 %v10800_v7  ;;  %v18017_v60 = vpop.permute.xlu0 %11478 }
0x19c6   : > { %v18011_v20 = vpop.permute.xlu1 %11558 }
0x19ca   : > { %v18015_v29 = vpop.permute.xlu1 %11556 }
0x19cb   : > { %11714 = vrot.lane.b32.xlu1 %v17449_v27, %s18718_s20 }
0x19d9   : > { %11636 = vrot.lane.b32.xlu0 %v17445_v59, %s18718_s20 }
0x1a3b   : > { %v10787_v4 = vpop.xlane.xlu1 %10786 }
0x1a3c   : > { %v10807_v7 = vsub.f32 %v10775_v9, %v10787_v4 }
0x1a3e   : > { %v10816_v14 = vmul.f32 1.442695, %v10807_v7 }
0x1a40   : > { %15726 = vpow2.f32 %v10816_v14  ;;  %v10784_v49 = vpop.xlane.xlu0 %10783 }
0x1a41   : > { %v10806_v63 = vsub.f32 %v10774_v21, %v10784_v49 }
0x1a43   : > { %v10814_v5 = vmul.f32 1.442695, %v10806_v63  ;;  %v10799_v0 = vpop.xlane.xlu1 %10798 }
0x1a44   : > { %v10811_v11 = vsub.f32 %v10779_v50, %v10799_v0  ;;  %v10793_v15 = vpop.xlane.xlu0 %10792 }
0x1a45   : > { %15728 = vpow2.f32 %v10814_v5  ;;  %v10809_v35 = vsub.f32 %v10777_v34, %v10793_v15 }
0x1a46   : > { %v10824_v42 = vmul.f32 1.442695, %v10811_v11 }
0x1a47   : > { %v10820_v48 = vmul.f32 1.442695, %v10809_v35  ;;  %v10805_v35 = vpop.xlane.xlu1 %10804 }
0x1a48   : > { %v10790_v47 = vpop.xlane.xlu0 %10789  ;;  %v10813_v21 = vsub.f32 %v17983_v52, %v10805_v35 }
0x1a49   : > { %15730 = vpow2.f32 %v10820_v48  ;;  %v10808_v56 = vsub.f32 %v10776_v33, %v10790_v47 }
0x1a4a   : > { %v15727_v30 = vpop.eup %15726  ;;  %15732 = vpow2.f32 %v10824_v42  ;;  %v10828_v50 = vmul.f32 1.442695, %v10813_v21 }
0x1a4b   : > { %v10818_v58 = vmul.f32 1.442695, %v10808_v56  ;;  %v10833_v9 = vsel %vm1079_vm3, %v15727_v30, 0.0  ;;  %v18064_v52 = vpop.permute.xlu1 %11714 }
0x1a4c   : > { %v10796_v4 = vpop.xlane.xlu0 %10795  ;;  %10834 = vadd.xlane.f32.xlu1 %v10833_v9 }
0x1a4d   : > { %15734 = vpow2.f32 %v10818_v58  ;;  %v10810_v49 = vsub.f32 %v10778_v23, %v10796_v4 }
0x1a4f   : > { %v15729_v63 = vpop.eup %15728  ;;  %v10822_v14 = vmul.f32 1.442695, %v10810_v49 }
0x1a50   : > { %v10830_v0 = vsel %vm1079_vm3, %v15729_v63, 0.0  ;;  %v10802_v34 = vpop.xlane.xlu0 %10801 }
0x1a51   : > { %15736 = vpow2.f32 %v10822_v14  ;;  %10831 = vadd.xlane.f32.xlu0 %v10830_v0  ;;  %v10812_v33 = vsub.f32 %v17990_v61, %v10802_v34 }
0x1a52   : > { %15738 = vpow2.f32 %v10828_v50 }
0x1a53   : > { %v15731_v15 = vpop.eup %15730  ;;  %v10826_v23 = vmul.f32 1.442695, %v10812_v33 }
0x1a54   : > { %v10839_v11 = vsel %vm1079_vm3, %v15731_v15, 0.0  ;;  %v18022_v48 = vpop.eup %15732  ;;  %v18066_v14 = vpop.permute.xlu0 %11636 }
0x1a55   : > { %10840 = vadd.xlane.f32.xlu1 %v10839_v11  ;;  %v10845_v56 = vsel %vm1079_vm3, %v18022_v48, 0.0  ;;  %15740 = vpow2.f32 %v10826_v23 }
0x1a57   : > { %v18024_v42 = vpop.eup %15734 }
0x1a58   : > { %v10836_v58 = vsel %vm1079_vm3, %v18024_v42, 0.0 }
0x1a59   : > { %10846 = vadd.xlane.f32.xlu1 %v10845_v56  ;;  %10837 = vadd.xlane.f32.xlu0 %v10836_v58 }
0x1a5b   : > { %v18030_v47 = vpop.eup %15736 }
0x1a5c   : > { %v10842_v5 = vsel %vm1079_vm3, %v18030_v47, 0.0  ;;  %v18040_v7 = vpop.eup %15738 }
0x1a5d   : > { %10843 = vadd.xlane.f32.xlu0 %v10842_v5  ;;  %v10851_v9 = vsel %vm1079_vm3, %v18040_v7, 0.0 }
0x1a5f   : > { %v18044_v4 = vpop.eup %15740 }
0x1a60   : > { %v10848_v49 = vsel %vm1079_vm3, %v18044_v4, 0.0 }
0x1a6a   : > { %11712 = vrot.lane.b32.xlu1 %v17449_v27, %s18719_s21 }
0x1a73   : > { %11634 = vrot.lane.b32.xlu0 %v17445_v59, %s18719_s21 }
0x1a8e   : > { %10852 = vadd.xlane.f32.xlu1 %v10851_v9 }
0x1a92   : > { %10849 = vadd.xlane.f32.xlu0 %v10848_v49 }
0x1a9f   : > { %11870 = vrot.lane.b32.xlu1 %v17457_v3, %s18718_s20 }
0x1aa3   : > { %11868 = vrot.lane.b32.xlu1 %v17457_v3, %s18719_s21 }
0x1aa7   : > { %12026 = vrot.lane.b32.xlu1 %v17463_v43, %s18718_s20 }
0x1aa8   : > { %11792 = vrot.lane.b32.xlu0 %v17451_v26, %s18718_s20 }
0x1aab   : > { %12024 = vrot.lane.b32.xlu1 %v17463_v43, %s18719_s21 }
0x1aac   : > { %11790 = vrot.lane.b32.xlu0 %v17451_v26, %s18719_s21 }
0x1ab0   : > { %11948 = vrot.lane.b32.xlu0 %v17459_v8, %s18718_s20 }
0x1ab4   : > { %11946 = vrot.lane.b32.xlu0 %v17459_v8, %s18719_s21 }
0x1ad9   : > { %v10835_v61 = vpop.xlane.xlu1 %10834 }
0x1ada   : > { %15742 = vrcp.f32 %v10835_v61 }
0x1ade   : > { %v10832_v0 = vpop.xlane.xlu0 %10831 }
0x1adf   : > { %15744 = vrcp.f32 %v10832_v0 }
0x1ae2   : > { %v10841_v11 = vpop.xlane.xlu1 %10840 }
0x1ae3   : > { %15746 = vrcp.f32 %v10841_v11 }
0x1ae4   : > { %v15743_v56 = vpop.eup %15742 }
0x1ae5   : > { %v10857_v58 = vmul.f32 %v15743_v56, %v15727_v30 }
0x1ae6   : > { %v10847_v5 = vpop.xlane.xlu1 %10846  ;;  %v10838_v35 = vpop.xlane.xlu0 %10837 }
0x1ae7   : > { %15748 = vrcp.f32 %v10847_v5  ;;  %15159 = vmatmul.mubr.msk.f32.vlgmr.msra.gmra.mrb[132].mxu0 %vm1079_vm3, %v10857_v58 }
0x1ae8   : > { %15750 = vrcp.f32 %v10838_v35  ;;  %15167 = vmatpush3.msra.mxu0 %v18001_v46  ;;  %15168 = vmatprep.mubr.msk.f32.mxu0 %vm15857_vm2, %v18686_v45 }
0x1ae9   : > { %v15745_v21 = vpop.eup %15744  ;;  %15176 = vmatprep.subr.mxu0 %v18686_v45 }
0x1aea   : > { %v10844_v34 = vpop.xlane.xlu0 %10843  ;;  %v10855_v50 = vmul.f32 %v15745_v21, %v15729_v63 }
0x1aeb   : > { %15752 = vrcp.f32 %v10844_v34 }
0x1aec   : > { %15154 = vmatmul.mubr.msk.f32.vlgmr.msra.gmra.mrb[124].mxu1 %vm1079_vm3, %v10855_v50 }
0x1aed   : > { %v15747_v30 = vpop.eup %15746  ;;  %15162 = vmatpush3.msra.mxu1 %v17999_v36  ;;  %15163 = vmatprep.mubr.msk.f32.mxu1 %vm15857_vm2, %v18686_v45 }
0x1aee   : > { %v10861_v33 = vmul.f32 %v15747_v30, %v15731_v15  ;;  %15171 = vmatprep.subr.mxu1 %v18686_v45 }
0x1af0   : > { %15169 = vmatmul.mubr.msk.f32.vlgmr.msra.gmra.mrb[134].mxu0 %vm1079_vm3, %v10861_v33 }
0x1af1   : > { %v15749_v46 = vpop.eup %15748  ;;  %15177 = vmatpush3.msra.mxu0 %v18003_v41  ;;  %15178 = vmatprep.mubr.msk.f32.mxu0 %vm15857_vm2, %v18686_v45  ;;  %v11713_v41 = vpop.permute.xlu1 %11712 }
0x1af2   : > { %v15751_v63 = vpop.eup %15750  ;;  %v10865_v23 = vmul.f32 %v15749_v46, %v18022_v48  ;;  %15186 = vmatprep.subr.mxu0 %v18686_v45 }
0x1af3   : > { %v10859_v36 = vmul.f32 %v15751_v63, %v18024_v42 }
0x1af4   : > { %15179 = vmatmul.mubr.msk.f32.vlgmr.msra.gmra.mrb[136].mxu0 %vm1079_vm3, %v10865_v23 }
0x1af5   : > { %v15753_v15 = vpop.eup %15752  ;;  %15164 = vmatmul.mubr.msk.f32.vlgmr.msra.gmra.mrb[126].mxu1 %vm1079_vm3, %v10859_v36  ;;  %15187 = vmatpush3.msra.mxu0 %v18007_v40 }
0x1af6   : > { %v10863_v9 = vmul.f32 %v15753_v15, %v18030_v47  ;;  %15172 = vmatpush3.msra.mxu1 %v18005_v28  ;;  %15173 = vmatprep.mubr.msk.f32.mxu1 %vm15857_vm2, %v18686_v45  ;;  %v11635_v28 = vpop.permute.xlu0 %11634 }
0x1af7   : > { %15181 = vmatprep.subr.mxu1 %v18686_v45  ;;  %15188 = vmatprep.mubr.msk.f32.mxu0 %vm15857_vm2, %v18686_v45 }
0x1af8   : > { %15196 = vmatprep.subr.mxu0 %v18686_v45 }
0x1af9   : > { %15174 = vmatmul.mubr.msk.f32.vlgmr.msra.gmra.mrb[128].mxu1 %vm1079_vm3, %v10863_v9 }
0x1afa   : > { %15182 = vmatpush3.msra.mxu1 %v18009_v54  ;;  %15183 = vmatprep.mubr.msk.f32.mxu1 %vm15857_vm2, %v18686_v45 }
0x1afb   : > { %15191 = vmatprep.subr.mxu1 %v18686_v45 }
0x1b1b   : > { %v10853_v40 = vpop.xlane.xlu1 %10852 }
0x1b1c   : > { %15754 = vrcp.f32 %v10853_v40 }
0x1b1f   : > { %v10850_v48 = vpop.xlane.xlu0 %10849  ;;  %v11871_v47 = vpop.permute.xlu1 %11870 }
0x1b20   : > { %15756 = vrcp.f32 %v10850_v48 }
0x1b23   : > { %v11793_v0 = vpop.permute.xlu0 %11792  ;;  %v11869_v11 = vpop.permute.xlu1 %11868 }
0x1b26   : > { %v15755_v42 = vpop.eup %15754 }
0x1b27   : > { %v10869_v49 = vmul.f32 %v15755_v42, %v18040_v7 }
0x1b29   : > { %15189 = vmatmul.mubr.msk.f32.vlgmr.msra.gmra.mrb[138].mxu0 %vm1079_vm3, %v10869_v49 }
0x1b2a   : > { %v15757_v61 = vpop.eup %15756  ;;  %15197 = vmatpush3.xpose.msk.msra.mxu0 %vm1079_vm3, %v18011_v20  ;;  %15198 = vmatprep.mubr.msk.f32.mxu0 %vm15857_vm2, %v18686_v45  ;;  %v11791_v20 = vpop.permute.xlu0 %11790 }
0x1b2b   : > { %v10867_v54 = vmul.f32 %v15757_v61, %v18044_v4  ;;  %15206 = vmatprep.subr.mxu0 %v18686_v45 }
0x1b2d   : > { %15184 = vmatmul.mubr.msk.f32.vlgmr.msra.gmra.mrb[130].mxu1 %vm1079_vm3, %v10867_v54  ;;  %15199 = vmatmul.mubr.msk.f32.vlgmr.msra.gmra.mrb[140].mxu0 %vm1079_vm3, %v18015_v29 }
0x1b2e   : > { %15192 = vmatpush3.xpose.msk.msra.mxu1 %vm1079_vm3, %v18013_v39  ;;  %15207 = vmatpush3.xpose.msk.msra.mxu0 %vm1079_vm3, %v18064_v52  ;;  %v12027_v39 = vpop.permute.xlu1 %12026  ;;  %v11949_v29 = vpop.permute.xlu0 %11948 }
0x1b2f   : > { %15193 = vmatprep.mubr.msk.f32.mxu1 %vm15857_vm2, %v18686_v45  ;;  %15201 = vmatprep.subr.mxu1 %v18686_v45 }
0x1b30   : > { %15208 = vmatprep.mubr.msk.f32.mxu0 %vm15857_vm2, %v18686_v45  ;;  %15216 = vmatprep.subr.mxu0 %v18686_v45 }
0x1b31   : > { %15194 = vmatmul.mubr.msk.f32.vlgmr.msra.gmra.mrb[132].mxu1 %vm1079_vm3, %v18017_v60  ;;  %15209 = vmatmul.mubr.msk.f32.vlgmr.msra.gmra.mrb[142].mxu0 %vm1079_vm3, %v11713_v41 }
0x1b32   : > { %15202 = vmatpush3.xpose.msk.msra.mxu1 %vm1079_vm3, %v18066_v14  ;;  %15217 = vmatpush3.xpose.msk.msra.mxu0 %vm1079_vm3, %v11871_v47  ;;  %v12025_v60 = vpop.permute.xlu1 %12024  ;;  %v11947_v7 = vpop.permute.xlu0 %11946 }
0x1b33   : > { %15203 = vmatprep.mubr.msk.f32.mxu1 %vm15857_vm2, %v18686_v45  ;;  %15211 = vmatprep.subr.mxu1 %v18686_v45 }
0x1b34   : > { %15218 = vmatprep.mubr.msk.f32.mxu0 %vm15857_vm2, %v18686_v45  ;;  %15226 = vmatprep.subr.mxu0 %v18686_v45 }
0x1b35   : > { %15204 = vmatmul.mubr.msk.f32.vlgmr.msra.gmra.mrb[134].mxu1 %vm1079_vm3, %v11635_v28  ;;  %15219 = vmatmul.mubr.msk.f32.vlgmr.msra.gmra.mrb[144].mxu0 %vm1079_vm3, %v11869_v11 }
0x1b36   : > { %15212 = vmatpush3.xpose.msk.msra.mxu1 %vm1079_vm3, %v11793_v0  ;;  %15227 = vmatpush3.xpose.msk.msra.mxu0 %vm1079_vm3, %v12027_v39 }
0x1b37   : > { %15213 = vmatprep.mubr.msk.f32.mxu1 %vm15857_vm2, %v18686_v45  ;;  %15221 = vmatprep.subr.mxu1 %v18686_v45 }
0x1b38   : > { %15228 = vmatprep.mubr.msk.f32.mxu0 %vm15857_vm2, %v18686_v45  ;;  %15236 = vmatprep.subr.mxu0 %v18686_v45 }
0x1b39   : > { %15214 = vmatmul.mubr.msk.f32.vlgmr.msra.gmra.mrb[136].mxu1 %vm1079_vm3, %v11791_v20  ;;  %15229 = vmatmul.mubr.msk.f32.vlgmr.msra.gmra.mrb[146].mxu0 %vm1079_vm3, %v12025_v60 }
0x1b3a   : > { %15222 = vmatpush3.xpose.msk.msra.mxu1 %vm1079_vm3, %v11949_v29  ;;  %15223 = vmatprep.mubr.msk.f32.mxu1 %vm15857_vm2, %v18686_v45 }
0x1b3b   : > { %15231 = vmatprep.subr.mxu1 %v18686_v45  ;;  %15238 = vmatprep.mubr.msk.f32.mxu0 %vm15857_vm2, %v18686_v45 }
0x1b3d   : > { %15224 = vmatmul.mubr.msk.f32.vlgmr.msra.gmra.mrb[138].mxu1 %vm1079_vm3, %v11947_v7 }
0x1b3e   : > { %15233 = vmatprep.mubr.msk.f32.mxu1 %vm15857_vm2, %v18686_v45 }
0x1bba   : > { %v18155_v4 = vpop.f32.mrb[132].mxu0 }
0x1bbb   : > { %v15160_v52 = vpop.f32.mrb[133].mxu0 }
0x1bbf   : > { %v18157_v14 = vpop.f32.mrb[124].mxu1 }
0x1bc0   : > { %v15155_v56 = vpop.f32.mrb[125].mxu1 }
0x1bc3   : > { %v18159_v58 = vpop.f32.mrb[134].mxu0 }
0x1bc4   : > { %v15170_v5 = vpop.f32.mrb[135].mxu0 }
0x1bc7   : > { %v18161_v35 = vpop.f32.mrb[136].mxu0 }
0x1bc8   : > { %v18163_v21 = vpop.f32.mrb[126].mxu1  ;;  %v15180_v34 = vpop.f32.mrb[137].mxu0 }
0x1bc9   : > { %v15165_v50 = vpop.f32.mrb[127].mxu1 }
0x1bcc   : > { %v18165_v30 = vpop.f32.mrb[128].mxu1 }
0x1bcd   : > { %v15175_v33 = vpop.f32.mrb[129].mxu1 }
0x1bfc   : > { %v18167_v46 = vpop.f32.mrb[138].mxu0 }
0x1bfd   : > { %v15190_v63 = vpop.f32.mrb[139].mxu0 }
0x1c00   : > { %v18169_v23 = vpop.f32.mrb[130].mxu1  ;;  %v11630_v36 = vpop.f32.mrb[140].mxu0 }
0x1c01   : > { %v12103_v15 = vmul.f32 0.35355338, %v11630_v36  ;;  %v15185_v9 = vpop.f32.mrb[131].mxu1  ;;  %v15200_v41 = vpop.f32.mrb[141].mxu0 }
0x1c03   : > { %v12111_v28 = vadd.f32 %v12103_v15, %v16219_v19 }
0x1c04   : > { %v11552_v40 = vpop.f32.mrb[132].mxu1  ;;  %v11786_v48 = vpop.f32.mrb[142].mxu0 }
0x1c05   : > { %v12102_v42 = vmul.f32 0.35355338, %v11552_v40  ;;  %v15195_v47 = vpop.f32.mrb[133].mxu1  ;;  %v15210_v49 = vpop.f32.mrb[143].mxu0  ;;  %v12105_v61 = vmul.f32 0.35355338, %v11786_v48 }
0x1c06   : > { %v12121_v0 = vsel %vm1079_vm3, %v12111_v28, -inf }
0x1c07   : > { %v12110_v54 = vadd.f32 %v12102_v42, %v16214_v1  ;;  %12122 = vmax.xlane.f32.xlu1 %v12121_v0  ;;  %v12113_v7 = vadd.f32 %v12105_v61, %v16231_v44 }
0x1c08   : > { %v11708_v11 = vpop.f32.mrb[134].mxu1  ;;  %v11942_v20 = vpop.f32.mrb[144].mxu0 }
0x1c09   : > { %v12107_v39 = vmul.f32 0.35355338, %v11942_v20  ;;  %v15205_v29 = vpop.f32.mrb[135].mxu1  ;;  %v15220_v60 = vpop.f32.mrb[145].mxu0  ;;  %v12104_v52 = vmul.f32 0.35355338, %v11708_v11 }
0x1c0a   : > { %v12118_v19 = vsel %vm1079_vm3, %v12110_v54, -inf  ;;  %v12127_v9 = vsel %vm1079_vm3, %v12113_v7, -inf }
0x1c0b   : > { %v12115_v56 = vadd.f32 %v12107_v39, %v16240_v53  ;;  %12119 = vmax.xlane.f32.xlu0 %v12118_v19  ;;  %v12112_v1 = vadd.f32 %v12104_v52, %v16221_v22 }
0x1c0c   : > { %v11864_v5 = vpop.f32.mrb[136].mxu1  ;;  %v12098_v34 = vpop.f32.mrb[146].mxu0 }
0x1c0d   : > { %v12109_v50 = vmul.f32 0.35355338, %v12098_v34  ;;  %v15215_v33 = vpop.f32.mrb[137].mxu1  ;;  %v15230_v63 = vpop.f32.mrb[147].mxu0  ;;  %v12106_v36 = vmul.f32 0.35355338, %v11864_v5 }
0x1c0e   : > { %v12133_v15 = vsel %vm1079_vm3, %v12115_v56, -inf  ;;  %v12124_v47 = vsel %vm1079_vm3, %v12112_v1, -inf }
0x1c0f   : > { %v12117_v44 = vadd.f32 %v12109_v50, %v16212_v57  ;;  %12134 = vmax.xlane.f32.xlu1 %v12133_v15  ;;  %12128 = vmax.xlane.f32.xlu0 %v12127_v9  ;;  %v12114_v48 = vadd.f32 %v12106_v36, %v16233_v51 }
0x1c10   : > { %v12020_v41 = vpop.f32.mrb[138].mxu1 }
0x1c11   : > { %v15225_v40 = vpop.f32.mrb[139].mxu1  ;;  %v12139_v53 = vsel %vm1079_vm3, %v12117_v44, -inf  ;;  %v12108_v42 = vmul.f32 0.35355338, %v12020_v41  ;;  %v12130_v49 = vsel %vm1079_vm3, %v12114_v48, -inf }
0x1c13   : > { %12140 = vmax.xlane.f32.xlu1 %v12139_v53  ;;  %12125 = vmax.xlane.f32.xlu0 %v12124_v47  ;;  %v12116_v22 = vadd.f32 %v12108_v42, %v16244_v6 }
0x1c15   : > { %v12136_v57 = vsel %vm1079_vm3, %v12116_v22, -inf }
0x1c17   : > { %12131 = vmax.xlane.f32.xlu0 %v12130_v49 }
0x1c1b   : > { %12137 = vmax.xlane.f32.xlu0 %v12136_v57 }
0x1c24   : > { %12282 = vrot.lane.b32.xlu1 %v17437_v13, %s18720_s28 }
0x1c28   : > { %12358 = vrot.lane.b32.xlu1 %v17445_v59, %s18720_s28 }
0x1c2c   : > { %12434 = vrot.lane.b32.xlu1 %v17449_v27, %s18720_s28 }
0x1c30   : > { %12586 = vrot.lane.b32.xlu1 %v17457_v3, %s18720_s28 }
0x1c31   : > { %12206 = vrot.lane.b32.xlu0 %v17439_v16, %s18720_s28 }
0x1c35   : > { %12510 = vrot.lane.b32.xlu0 %v17451_v26, %s18720_s28 }
0x1c94   : > { %v12123_v51 = vpop.xlane.xlu1 %12122 }
0x1c95   : > { %v12143_v6 = vsub.f32 %v12111_v28, %v12123_v51 }
0x1c97   : > { %v12152_v61 = vmul.f32 1.442695, %v12143_v6 }
0x1c98   : > { %v12120_v0 = vpop.xlane.xlu0 %12119 }
0x1c99   : > { %15758 = vpow2.f32 %v12152_v61  ;;  %v12142_v13 = vsub.f32 %v12110_v54, %v12120_v0 }
0x1c9b   : > { %v12150_v11 = vmul.f32 1.442695, %v12142_v13 }
0x1c9c   : > { %v12135_v59 = vpop.xlane.xlu1 %12134  ;;  %v12129_v20 = vpop.xlane.xlu0 %12128 }
0x1c9d   : > { %15760 = vpow2.f32 %v12150_v11  ;;  %v12147_v27 = vsub.f32 %v12115_v56, %v12135_v59  ;;  %v12145_v39 = vsub.f32 %v12113_v7, %v12129_v20 }
0x1c9f   : > { %v12156_v29 = vmul.f32 1.442695, %v12145_v39  ;;  %v12160_v3 = vmul.f32 1.442695, %v12147_v27 }
0x1ca0   : > { %v12141_v60 = vpop.xlane.xlu1 %12140  ;;  %v12126_v52 = vpop.xlane.xlu0 %12125 }
0x1ca1   : > { %v12149_v16 = vsub.f32 %v12117_v44, %v12141_v60  ;;  %v12144_v19 = vsub.f32 %v12112_v1, %v12126_v52  ;;  %15762 = vpow2.f32 %v12156_v29 }
0x1ca2   : > { %15764 = vpow2.f32 %v12160_v3 }
0x1ca3   : > { %v18199_v26 = vpop.eup %15758  ;;  %v12154_v28 = vmul.f32 1.442695, %v12144_v19  ;;  %v12164_v5 = vmul.f32 1.442695, %v12149_v16 }
0x1ca4   : > { %v12283_v34 = vpop.permute.xlu1 %12282  ;;  %v12132_v54 = vpop.xlane.xlu0 %12131  ;;  %v12169_v50 = vsel %vm1079_vm3, %v18199_v26, 0.0 }
0x1ca5   : > { %v12146_v33 = vsub.f32 %v12114_v48, %v12132_v54  ;;  %12170 = vadd.xlane.f32.xlu1 %v12169_v50  ;;  %15237 = vmatpush3.msra.mxu0 %v12283_v34  ;;  %15766 = vpow2.f32 %v12154_v28 }
0x1ca6   : > { %15246 = vmatprep.subr.mxu0 %v18686_v45  ;;  %15768 = vpow2.f32 %v12164_v5 }
0x1ca7   : > { %v18204_v7 = vpop.eup %15760  ;;  %v12158_v56 = vmul.f32 1.442695, %v12146_v33 }
0x1ca8   : > { %v12138_v63 = vpop.xlane.xlu0 %12137  ;;  %v12166_v1 = vsel %vm1079_vm3, %v18204_v7, 0.0 }
0x1ca9   : > { %15770 = vpow2.f32 %v12158_v56  ;;  %v12148_v36 = vsub.f32 %v12116_v22, %v12138_v63  ;;  %12167 = vadd.xlane.f32.xlu0 %v12166_v1 }
0x1cab   : > { %v12162_v15 = vmul.f32 1.442695, %v12148_v36  ;;  %v18208_v9 = vpop.eup %15762 }
0x1cac   : > { %v12207_v44 = vpop.permute.xlu0 %12206  ;;  %v12175_v41 = vsel %vm1079_vm3, %v18208_v9, 0.0  ;;  %v18212_v40 = vpop.eup %15764 }
0x1cad   : > { %15772 = vpow2.f32 %v12162_v15  ;;  %15232 = vmatpush3.msra.mxu1 %v12207_v44  ;;  %12176 = vadd.xlane.f32.xlu1 %v12175_v41  ;;  %v12181_v48 = vsel %vm1079_vm3, %v18212_v40, 0.0 }
0x1cae   : > { %15241 = vmatprep.subr.mxu1 %v18686_v45 }
0x1caf   : > { %v18215_v53 = vpop.eup %15766 }
0x1cb0   : > { %v12172_v42 = vsel %vm1079_vm3, %v18215_v53, 0.0  ;;  %v18221_v47 = vpop.eup %15768 }
0x1cb1   : > { %12182 = vadd.xlane.f32.xlu1 %v12181_v48  ;;  %12173 = vadd.xlane.f32.xlu0 %v12172_v42  ;;  %v12187_v57 = vsel %vm1079_vm3, %v18221_v47, 0.0 }
0x1cb3   : > { %v18223_v22 = vpop.eup %15770 }
0x1cb4   : > { %v12178_v49 = vsel %vm1079_vm3, %v18223_v22, 0.0 }
0x1cb5   : > { %12188 = vadd.xlane.f32.xlu1 %v12187_v57  ;;  %12179 = vadd.xlane.f32.xlu0 %v12178_v49 }
0x1cb7   : > { %v18229_v51 = vpop.eup %15772 }
0x1cb8   : > { %v12184_v6 = vsel %vm1079_vm3, %v18229_v51, 0.0 }
0x1cb9   : > { %12185 = vadd.xlane.f32.xlu0 %v12184_v6 }
0x1cc6   : > { %12738 = vrot.lane.b32.xlu1 %v17463_v43, %s18720_s28 }
0x1cca   : > { %12824 = vrot.lane.b32.xlu1 %v17957_v12, %s18721_s22 }
0x1cce   : > { %12856 = vrot.lane.b32.xlu1 %v18155_v4, %s15871_s27 }
0x1ccf   : > { %12662 = vrot.lane.b32.xlu0 %v17459_v8, %s18720_s28  ;;  %v12359_v8 = vpop.permute.xlu1 %12358 }
0x1cd2   : > { %12828 = vrot.lane.b32.xlu1 %v17961_v10, %s18721_s22 }
0x1cd3   : > { %12822 = vrot.lane.b32.xlu0 %v17959_v17, %s18721_s22  ;;  %v12435_v43 = vpop.permute.xlu1 %12434  ;;  %v12511_v17 = vpop.permute.xlu0 %12510 }
0x1cd6   : > { %12860 = vrot.lane.b32.xlu1 %v18159_v58, %s15871_s27 }
0x1cd7   : > { %12854 = vrot.lane.b32.xlu0 %v18157_v14, %s15871_s27  ;;  %v12587_v12 = vpop.permute.xlu1 %12586 }
0x1cda   : > { %12832 = vrot.lane.b32.xlu1 %v17963_v55, %s18721_s22 }
0x1cdb   : > { %12826 = vrot.lane.b32.xlu0 %v17965_v2, %s18721_s22 }
0x1cde   : > { %12864 = vrot.lane.b32.xlu1 %v18161_v35, %s15871_s27 }
0x1cdf   : > { %12858 = vrot.lane.b32.xlu0 %v18163_v21, %s15871_s27 }
0x1ce2   : > { %12836 = vrot.lane.b32.xlu1 %v17967_v31, %s18721_s22 }
0x1ce3   : > { %12830 = vrot.lane.b32.xlu0 %v17969_v24, %s18721_s22 }
0x1ce6   : > { %12868 = vrot.lane.b32.xlu1 %v18167_v46, %s15871_s27 }
0x1ce7   : > { %12862 = vrot.lane.b32.xlu0 %v18165_v30, %s15871_s27 }
0x1ceb   : > { %12834 = vrot.lane.b32.xlu0 %v17971_v25, %s18721_s22  ;;  %s18742_s22 = sshll.u32 %s18746_s25, 3 }
0x1cec   : > { %s565_s29 = scalar_lea.vmem %s18628_s17, %s18742_s22 }
0x1cef   : > { %12866 = vrot.lane.b32.xlu0 %v18169_v23, %s15871_s27  ;;  %s18722_s27 = smov 24  }
0x1d32   : > { %v12171_v10 = vpop.xlane.xlu1 %12170 }
0x1d33   : > { %15774 = vrcp.f32 %v12171_v10 }
0x1d36   : > { %v12168_v55 = vpop.xlane.xlu0 %12167 }
0x1d37   : > { %15776 = vrcp.f32 %v12168_v55 }
0x1d3a   : > { %v12177_v2 = vpop.xlane.xlu1 %12176 }
0x1d3b   : > { %15778 = vrcp.f32 %v12177_v2 }
0x1d3d   : > { %v15775_v31 = vpop.eup %15774 }
0x1d3e   : > { %v12193_v24 = vmul.f32 %v15775_v31, %v18199_v26  ;;  %v12183_v4 = vpop.xlane.xlu1 %12182  ;;  %v12174_v14 = vpop.xlane.xlu0 %12173 }
0x1d3f   : > { %15780 = vrcp.f32 %v12183_v4 }
0x1d40   : > { %15239 = vmatmul.mubr.msk.f32.vlgmr.msra.gmra.mrb[148].mxu0 %vm1079_vm3, %v12193_v24  ;;  %15782 = vrcp.f32 %v12174_v14 }
0x1d41   : > { %v15777_v25 = vpop.eup %15776  ;;  %15247 = vmatpush3.msra.mxu0 %v12435_v43  ;;  %15248 = vmatprep.mubr.msk.f32.mxu0 %vm15857_vm2, %v18686_v45 }
0x1d42   : > { %v12191_v58 = vmul.f32 %v15777_v25, %v18204_v7  ;;  %15256 = vmatprep.subr.mxu0 %v18686_v45  ;;  %v12189_v35 = vpop.xlane.xlu1 %12188  ;;  %v12180_v21 = vpop.xlane.xlu0 %12179  ;;  %v18725_v25 = vld [vmem:[#allocation5_spill] sm:$0xff] }
0x1d43   : > { %15784 = vrcp.f32 %v12189_v35 }
0x1d44   : > { %15234 = vmatmul.mubr.msk.f32.vlgmr.msra.gmra.mrb[140].mxu1 %vm1079_vm3, %v12191_v58  ;;  %15786 = vrcp.f32 %v12180_v21  ;;  %v18726_v58 = vld [vmem:[#allocation17_spill] sm:$0xff]  ;;  %v18727_v21 = vld [vmem:[#allocation4_spill] sm:$0xff] }
0x1d45   : > { %15242 = vmatpush3.msra.mxu1 %v12359_v8  ;;  %15243 = vmatprep.mubr.msk.f32.mxu1 %vm15857_vm2, %v18686_v45  ;;  %v15779_v30 = vpop.eup %15778  ;;  %v18723_v8 = vld [vmem:[#allocation14_spill] sm:$0xff] }
0x1d46   : > { %15251 = vmatprep.subr.mxu1 %v18686_v45  ;;  %v12197_v46 = vmul.f32 %v15779_v30, %v18208_v9  ;;  %v12186_v23 = vpop.xlane.xlu0 %12185  ;;  %v12739_v59 = vpop.permute.xlu1 %12738  ;;  %v18728_v30 = vld [vmem:[#allocation15_spill] sm:$0xff] }
0x1d47   : > { %15788 = vrcp.f32 %v12186_v23 }
0x1d48   : > { %15249 = vmatmul.mubr.msk.f32.vlgmr.msra.gmra.mrb[150].mxu0 %vm1079_vm3, %v12197_v46 }
0x1d49   : > { %v15781_v61 = vpop.eup %15780  ;;  %15257 = vmatpush3.msra.mxu0 %v12587_v12  ;;  %15258 = vmatprep.mubr.msk.f32.mxu0 %vm15857_vm2, %v18686_v45 }
0x1d4a   : > { %v15783_v0 = vpop.eup %15782  ;;  %v12201_v13 = vmul.f32 %v15781_v61, %v18212_v40  ;;  %15266 = vmatprep.subr.mxu0 %v18686_v45  ;;  %v12663_v60 = vpop.permute.xlu0 %12662 }
0x1d4b   : > { %v12195_v11 = vmul.f32 %v15783_v0, %v18215_v53  ;;  %v12825_v1 = vpop.permute.xlu1 %12824 }
0x1d4c   : > { %15259 = vmatmul.mubr.msk.f32.vlgmr.msra.gmra.mrb[152].mxu0 %vm1079_vm3, %v12201_v13 }
0x1d4d   : > { %v15785_v20 = vpop.eup %15784  ;;  %15244 = vmatmul.mubr.msk.f32.vlgmr.msra.gmra.mrb[142].mxu1 %vm1079_vm3, %v12195_v11  ;;  %15267 = vmatpush3.msra.mxu0 %v12739_v59  ;;  %v18729_v59 = vld [vmem:[#allocation19_spill] sm:$0xff] }
0x1d4e   : > { %v15787_v27 = vpop.eup %15786  ;;  %v12205_v39 = vmul.f32 %v15785_v20, %v18221_v47  ;;  %15252 = vmatpush3.msra.mxu1 %v12511_v17  ;;  %15253 = vmatprep.mubr.msk.f32.mxu1 %vm15857_vm2, %v18686_v45  ;;  %v12823_v36 = vpop.permute.xlu0 %12822  ;;  %v18724_v17 = vld [vmem:[#allocation13_spill] sm:$0xff] }
0x1d4f   : > { %v12199_v29 = vmul.f32 %v15787_v27, %v18223_v22  ;;  %15261 = vmatprep.subr.mxu1 %v18686_v45  ;;  %15268 = vmatprep.mubr.msk.f32.mxu0 %vm15857_vm2, %v18686_v45  ;;  %v12857_v15 = vpop.permute.xlu1 %12856  ;;  %v12910_v43 = vsel %vm1079_vm3, %v18723_v8, %v12823_v36  ;;  %v12911_v10 = vsel %vm1079_vm3, %v18724_v17, %v12825_v1  ;;  %v18730_v27 = vld [vmem:[#allocation7_spill] sm:$0xff]  ;;  %v18735_v1 = vld [vmem:[#allocation6_spill] sm:$0xff] }
0x1d50   : > { %15269 = vmatmul.mubr.msk.f32.vlgmr.msra.gmra.mrb[154].mxu0 %vm1079_vm3, %v12205_v39  ;;  %15411 = vmatprep.subr.bf16.mxu0 %v17159_v18  ;;  %v12919_v31 = vsel %vm576_vm0, %v12911_v10, %v12857_v15  ;;  %v18731_v39 = vld [vmem:[#allocation16_spill] sm:$0xff]  ;;  %v15841_v15 = vld [vmem:[%s18619_s8] ss:$0 sm:$0xff]  ;;  %v18739_v10 = vld [vmem:[#allocation3_spill] sm:$0xff] }
0x1d51   : > { %v15789_v3 = vpop.eup %15788  ;;  %15254 = vmatmul.mubr.msk.f32.vlgmr.msra.gmra.mrb[144].mxu1 %vm1079_vm3, %v12199_v29  ;;  %15413 = vmatpush3.bf16.msra.mxu0 %v17159_v18  ;;  %v18738_v8 = vld [vmem:[#allocation10_spill] sm:$0xff] }
0x1d52   : > { %v12203_v52 = vmul.f32 %v15789_v3, %v18229_v51  ;;  %15262 = vmatpush3.msra.mxu1 %v12663_v60  ;;  %15263 = vmatprep.mubr.msk.f32.mxu1 %vm15857_vm2, %v18686_v45  ;;  %v12855_v9 = vpop.permute.xlu0 %12854 }
0x1d53   : > { %15403 = vmatprep.subr.bf16.mxu1 %v17031_v37  ;;  %15415 = vmatprep.subr.bf16.mxu0 %v17169_v32  ;;  %v12829_v44 = vpop.permute.xlu1 %12828  ;;  %v12918_v55 = vsel %vm576_vm0, %v12910_v43, %v12855_v9 }
0x1d54   : > { %v12913_v46 = vsel %vm1079_vm3, %v18728_v30, %v12829_v44 }
0x1d55   : > { %15264 = vmatmul.mubr.msk.f32.vlgmr.msra.gmra.mrb[146].mxu1 %vm1079_vm3, %v12203_v52  ;;  %15417 = vmatpush3.bf16.msra.mxu0 %v17169_v32 }
0x1d56   : > { %15405 = vmatpush3.bf16.msra.mxu1 %v17031_v37  ;;  %v12827_v41 = vpop.permute.xlu0 %12826 }
0x1d57   : > { %15407 = vmatprep.subr.bf16.mxu1 %v17036_v38  ;;  %v12861_v40 = vpop.permute.xlu1 %12860  ;;  %v12912_v35 = vsel %vm1079_vm3, %v18726_v58, %v12827_v41 }
0x1d58   : > { %v12921_v0 = vsel %vm576_vm0, %v12913_v46, %v12861_v40 }
0x1d5a   : > { %15409 = vmatpush3.bf16.msra.mxu1 %v17036_v38  ;;  %v12859_v53 = vpop.permute.xlu0 %12858 }
0x1d5b   : > { %15419 = vmatprep.subr.bf16.mxu1 %v17230_v62  ;;  %v12833_v48 = vpop.permute.xlu1 %12832  ;;  %v12920_v23 = vsel %vm576_vm0, %v12912_v35, %v12859_v53 }
0x1d5c   : > { %v12915_v29 = vsel %vm1079_vm3, %v18731_v39, %v12833_v48  ;;  %v18736_v48 = vld [vmem:[#allocation2_spill] sm:$0xff] }
0x1d5e   : > { %v12831_v42 = vpop.permute.xlu0 %12830 }
0x1d5f   : > { %v12865_v47 = vpop.permute.xlu1 %12864  ;;  %v12914_v20 = vsel %vm1079_vm3, %v18729_v59, %v12831_v42 }
0x1d60   : > { %v12923_v52 = vsel %vm576_vm0, %v12915_v29, %v12865_v47 }
0x1d62   : > { %v12863_v22 = vpop.permute.xlu0 %12862 }
0x1d63   : > { %v12837_v49 = vpop.permute.xlu1 %12836  ;;  %v12922_v3 = vsel %vm576_vm0, %v12914_v20, %v12863_v22  ;;  %v18737_v22 = vld [vmem:[#allocation8_spill] sm:$0xff] }
0x1d66   : > { %v12835_v57 = vpop.permute.xlu0 %12834 }
0x1d67   : > { %v12869_v51 = vpop.permute.xlu1 %12868 }
0x1d6a   : > { %v12867_v6 = vpop.permute.xlu0 %12866 }
0x1e13   : > { %v12354_v18 = vpop.f32.mrb[148].mxu0 }
0x1e14   : > { %v15240_v16 = vpop.f32.mrb[149].mxu0  ;;  %12888 = vrot.lane.b32.xlu1 %v12354_v18, %s18722_s27 }
0x1e17   : > { %v12278_v19 = vpop.f32.mrb[140].mxu1 }
0x1e18   : > { %12886 = vrot.lane.b32.xlu0 %v12278_v19, %s18722_s27  ;;  %v15235_v26 = vpop.f32.mrb[141].mxu1  ;;  %v18732_v19 = vld [vmem:[#allocation20_spill] sm:$0xff] }
0x1e19   : > { %v12916_v26 = vsel %vm1079_vm3, %v18732_v19, %v12835_v57 }
0x1e1b   : > { %v12506_v28 = vpop.f32.mrb[150].mxu0 }
0x1e1c   : > { %12892 = vrot.lane.b32.xlu1 %v12506_v28, %s18722_s27  ;;  %v15250_v32 = vpop.f32.mrb[151].mxu0 }
0x1e1d   : > { %v18733_v32 = vld [vmem:[#allocation18_spill] sm:$0xff] }
0x1e1f   : > { %v12658_v5 = vpop.f32.mrb[152].mxu0 }
0x1e20   : > { %v12430_v37 = vpop.f32.mrb[142].mxu1  ;;  %12896 = vrot.lane.b32.xlu1 %v12658_v5, %s18722_s27  ;;  %v15260_v34 = vpop.f32.mrb[153].mxu0  ;;  %v12917_v5 = vsel %vm1079_vm3, %v18733_v32, %v12837_v49 }
0x1e21   : > { %12890 = vrot.lane.b32.xlu0 %v12430_v37, %s18722_s27  ;;  %v15245_v38 = vpop.f32.mrb[143].mxu1  ;;  %v12924_v37 = vsel %vm576_vm0, %v12916_v26, %v12867_v6 }
0x1e22   : > { %v12925_v38 = vsel %vm576_vm0, %v12917_v5, %v12869_v51 }
0x1e23   : > { %v12810_v54 = vpop.f32.mrb[154].mxu0 }
0x1e24   : > { %v12582_v50 = vpop.f32.mrb[144].mxu1  ;;  %12900 = vrot.lane.b32.xlu1 %v12810_v54, %s18722_s27  ;;  %v15270_v33 = vpop.f32.mrb[155].mxu0 }
0x1e25   : > { %12894 = vrot.lane.b32.xlu0 %v12582_v50, %s18722_s27  ;;  %v15255_v7 = vpop.f32.mrb[145].mxu1 }
0x1e26   : > { %v18734_v7 = vld [vmem:[#allocation9_spill] sm:$0xff] }
0x1e28   : > { %v12734_v56 = vpop.f32.mrb[146].mxu1 }
0x1e29   : > { %12898 = vrot.lane.b32.xlu0 %v12734_v56, %s18722_s27  ;;  %v15265_v63 = vpop.f32.mrb[147].mxu1 }
0x1e86   : > { %v12889_v12 = vpop.permute.xlu1 %12888 }
0x1e87   : > { %v12927_v4 = vsel %vm6573_vm4, %v12919_v31, %v12889_v12 }
0x1e8a   : > { %v12887_v2 = vpop.permute.xlu0 %12886 }
0x1e8b   : > { %v12926_v24 = vsel %vm6573_vm4, %v12918_v55, %v12887_v2 }
0x1e8c   : > { %15279 = vmatprep.mubr.msk.f32.mxu1 %vm946_vm1, %v12926_v24 }
0x1e8d   : > { %15280 = vmatmul.mubr.msk.f32.vlgmr.msra.gmra.mrb[148].mxu1 %vm946_vm1, %v12927_v4  ;;  %v18740_v4 = vld [vmem:[#allocation12_spill] sm:$0xff] }
0x1e8e   : > { %15421 = vmatpush3.bf16.msra.mxu1 %v17230_v62  ;;  %v12893_v14 = vpop.permute.xlu1 %12892 }
0x1e8f   : > { %15423 = vmatprep.subr.bf16.mxu1 %v18725_v25  ;;  %v12929_v11 = vsel %vm6573_vm4, %v12921_v0, %v12893_v14 }
0x1e92   : > { %15425 = vmatpush3.bf16.msra.mxu1 %v18725_v25  ;;  %v12897_v13 = vpop.permute.xlu1 %12896 }
0x1e93   : > { %15427 = vmatprep.subr.bf16.mxu1 %v18727_v21  ;;  %v12891_v61 = vpop.permute.xlu0 %12890  ;;  %v12931_v16 = vsel %vm6573_vm4, %v12923_v52, %v12897_v13 }
0x1e94   : > { %v12928_v62 = vsel %vm6573_vm4, %v12920_v23, %v12891_v61 }
0x1e95   : > { %15282 = vmatprep.mubr.msk.f32.mxu1 %vm946_vm1, %v12928_v62 }
0x1e96   : > { %15429 = vmatpush3.bf16.msra.mxu1 %v18727_v21  ;;  %v12901_v28 = vpop.permute.xlu1 %12900  ;;  %v18741_v21 = vld [vmem:[#allocation11_spill] sm:$0xff] }
0x1e97   : > { %15283 = vmatmul.mubr.msk.f32.gmra.mrb[150].mxu1 %vm946_vm1, %v12929_v11  ;;  %15431 = vmatprep.subr.bf16.mxu1 %v18730_v27  ;;  %v12895_v60 = vpop.permute.xlu0 %12894  ;;  %v12933_v50 = vsel %vm6573_vm4, %v12925_v38, %v12901_v28 }
0x1e98   : > { %v12930_v18 = vsel %vm6573_vm4, %v12922_v3, %v12895_v60 }
0x1e99   : > { %15285 = vmatprep.mubr.msk.f32.mxu1 %vm946_vm1, %v12930_v18 }
0x1e9a   : > { %15433 = vmatpush3.bf16.msra.mxu1 %v18730_v27 }
0x1e9b   : > { %15286 = vmatmul.mubr.msk.f32.gmra.mrb[152].mxu1 %vm946_vm1, %v12931_v16  ;;  %v12899_v34 = vpop.permute.xlu0 %12898 }
0x1e9c   : > { %v12932_v54 = vsel %vm6573_vm4, %v12924_v37, %v12899_v34 }
0x1e9d   : > { %15288 = vmatprep.mubr.msk.f32.mxu1 %vm946_vm1, %v12932_v54 }
0x1e9f   : > { %15289 = vmatmul.mubr.msk.f32.gmra.mrb[154].mxu1 %vm946_vm1, %v12933_v50 }
0x1f60   : > { %v15281_v33 = vpop.f32.mrb[148].mxu1 }
0x1f61   : > { %v13064_v56 = vadd.f32 %v15281_v33, %v18734_v7  ;;  %v13024_v63 = vpop.f32.mrb[149].mxu1 }
0x1f62   : > { %v13063_v36 = vadd.f32 %v13024_v63, %v18735_v1 }
0x1f63   : > { %v13072_v9 = vadd.f32 %v15841_v15, %v13064_v56 }
0x1f64   : > { %v13071_v44 = vadd.f32 %v15841_v15, %v13063_v36 }
0x1f65   : > { %v13082_v41 = vsel %vm946_vm1, %v13072_v9, 0.0 }
0x1f66   : > { %13083 = vadd.xlane.f32.xlu1 %v13082_v41  ;;  %v13079_v40 = vsel %vm946_vm1, %v13071_v44, 0.0 }
0x1f67   : > { %13080 = vadd.xlane.f32.xlu0 %v13079_v40 }
0x1f6a   : > { %v15284_v53 = vpop.f32.mrb[150].mxu1 }
0x1f6b   : > { %v13066_v42 = vadd.f32 %v15284_v53, %v18736_v48  ;;  %v13034_v47 = vpop.f32.mrb[151].mxu1 }
0x1f6c   : > { %v13065_v49 = vadd.f32 %v13034_v47, %v18737_v22 }
0x1f6d   : > { %v13074_v57 = vadd.f32 %v15841_v15, %v13066_v42 }
0x1f6e   : > { %v15287_v51 = vpop.f32.mrb[152].mxu1  ;;  %v13073_v6 = vadd.f32 %v15841_v15, %v13065_v49 }
0x1f6f   : > { %v13068_v43 = vadd.f32 %v15287_v51, %v18738_v8  ;;  %v13044_v12 = vpop.f32.mrb[153].mxu1  ;;  %v13088_v17 = vsel %vm946_vm1, %v13074_v57, 0.0 }
0x1f70   : > { %v13067_v55 = vadd.f32 %v13044_v12, %v18739_v10  ;;  %13089 = vadd.xlane.f32.xlu0 %v13088_v17  ;;  %v13085_v58 = vsel %vm946_vm1, %v13073_v6, 0.0 }
0x1f71   : > { %v13076_v2 = vadd.f32 %v15841_v15, %v13068_v43 }
0x1f72   : > { %v15290_v31 = vpop.f32.mrb[154].mxu1  ;;  %v13075_v24 = vadd.f32 %v15841_v15, %v13067_v55 }
0x1f73   : > { %v13070_v14 = vadd.f32 %v15290_v31, %v18740_v4  ;;  %v13054_v25 = vpop.f32.mrb[155].mxu1  ;;  %v13094_v35 = vsel %vm946_vm1, %v13076_v2, 0.0 }
0x1f74   : > { %v13069_v30 = vadd.f32 %v13054_v25, %v18741_v21  ;;  %13086 = vadd.xlane.f32.xlu0 %v13085_v58  ;;  %13095 = vadd.xlane.f32.xlu1 %v13094_v35  ;;  %v13091_v61 = vsel %vm946_vm1, %v13075_v24, 0.0 }
0x1f75   : > { %v13078_v46 = vadd.f32 %v15841_v15, %v13070_v14 }
0x1f76   : > { %v13077_v23 = vadd.f32 %v15841_v15, %v13069_v30 }
0x1f77   : > { %v13100_v0 = vsel %vm946_vm1, %v13078_v46, 0.0 }
0x1f78   : > { %13092 = vadd.xlane.f32.xlu0 %v13091_v61  ;;  %13101 = vadd.xlane.f32.xlu1 %v13100_v0  ;;  %v13097_v13 = vsel %vm946_vm1, %v13077_v23, 0.0  ;;  %v15842_v0 = vld [vmem:[%s18620_s9] ss:$0 sm:$0xff] }
0x1f7c   : > { %13098 = vadd.xlane.f32.xlu0 %v13097_v13 }
0x1ff3   : > { %v13084_v62 = vpop.xlane.xlu1 %13083 }
0x1ff4   : > { %v13104_v11 = vmul.f32 0.03125, %v13084_v62  ;;  %v13081_v59 = vpop.xlane.xlu0 %13080 }
0x1ff5   : > { %v13103_v20 = vmul.f32 0.03125, %v13081_v59 }
0x1ff6   : > { %v13112_v27 = vsub.f32 %v13072_v9, %v13104_v11 }
0x1ff7   : > { %v18384_v39 = vsub.f32 %v13071_v44, %v13103_v20 }
0x1ff8   : > { %v13120_v29 = vmul.f32 %v13112_v27, %v13112_v27 }
0x1ff9   : > { %v13119_v3 = vmul.f32 %v18384_v39, %v18384_v39 }
0x1ffa   : > { %v13130_v60 = vsel %vm946_vm1, %v13120_v29, 0.0 }
0x1ffb   : > { %13131 = vadd.xlane.f32.xlu1 %v13130_v60  ;;  %v13127_v52 = vsel %vm946_vm1, %v13119_v3, 0.0 }
0x1ffc   : > { %13128 = vadd.xlane.f32.xlu0 %v13127_v52 }
0x1ffd   : > { %v13090_v18 = vpop.xlane.xlu0 %13089 }
0x1ffe   : > { %v13106_v16 = vmul.f32 0.03125, %v13090_v18 }
0x2000   : > { %v18390_v19 = vsub.f32 %v13074_v57, %v13106_v16 }
0x2001   : > { %v13096_v26 = vpop.xlane.xlu1 %13095  ;;  %v13087_v28 = vpop.xlane.xlu0 %13086 }
0x2002   : > { %v13108_v32 = vmul.f32 0.03125, %v13096_v26  ;;  %v13105_v5 = vmul.f32 0.03125, %v13087_v28  ;;  %v13122_v37 = vmul.f32 %v18390_v19, %v18390_v19 }
0x2004   : > { %v18394_v34 = vsub.f32 %v13076_v2, %v13108_v32  ;;  %v18396_v38 = vsub.f32 %v13073_v6, %v13105_v5  ;;  %v13136_v54 = vsel %vm946_vm1, %v13122_v37, 0.0 }
0x2005   : > { %v13102_v50 = vpop.xlane.xlu1 %13101  ;;  %13137 = vadd.xlane.f32.xlu1 %v13136_v54  ;;  %v13093_v33 = vpop.xlane.xlu0 %13092 }
0x2006   : > { %v13110_v7 = vmul.f32 0.03125, %v13102_v50  ;;  %v13107_v56 = vmul.f32 0.03125, %v13093_v33  ;;  %v13124_v63 = vmul.f32 %v18394_v34, %v18394_v34  ;;  %v13121_v1 = vmul.f32 %v18396_v38, %v18396_v38 }
0x2008   : > { %v18403_v36 = vsub.f32 %v13078_v46, %v13110_v7  ;;  %v18405_v15 = vsub.f32 %v13075_v24, %v13107_v56  ;;  %v13142_v9 = vsel %vm946_vm1, %v13124_v63, 0.0  ;;  %v13133_v44 = vsel %vm946_vm1, %v13121_v1, 0.0 }
0x2009   : > { %13143 = vadd.xlane.f32.xlu1 %v13142_v9  ;;  %13134 = vadd.xlane.f32.xlu0 %v13133_v44  ;;  %v13099_v41 = vpop.xlane.xlu0 %13098 }
0x200a   : > { %v13109_v40 = vmul.f32 0.03125, %v13099_v41  ;;  %v13126_v53 = vmul.f32 %v18403_v36, %v18403_v36  ;;  %v13123_v48 = vmul.f32 %v18405_v15, %v18405_v15 }
0x200c   : > { %v18413_v42 = vsub.f32 %v13077_v23, %v13109_v40  ;;  %v13148_v47 = vsel %vm946_vm1, %v13126_v53, 0.0  ;;  %v13139_v22 = vsel %vm946_vm1, %v13123_v48, 0.0 }
0x200d   : > { %13149 = vadd.xlane.f32.xlu1 %v13148_v47  ;;  %13140 = vadd.xlane.f32.xlu0 %v13139_v22  ;;  %v15844_v47 = vld [vmem:[%s18622_s11] ss:$0 sm:$0xff] }
0x200e   : > { %v13125_v49 = vmul.f32 %v18413_v42, %v18413_v42 }
0x2010   : > { %v13145_v57 = vsel %vm946_vm1, %v13125_v49, 0.0 }
0x2011   : > { %13146 = vadd.xlane.f32.xlu0 %v13145_v57 }
0x2088   : > { %v13132_v51 = vpop.xlane.xlu1 %13131 }
0x2089   : > { %v13152_v6 = vmul.f32 0.03125, %v13132_v51  ;;  %v13129_v8 = vpop.xlane.xlu0 %13128 }
0x208a   : > { %v13151_v43 = vmul.f32 0.03125, %v13129_v8 }
0x208b   : > { %v13160_v12 = vadd.f32 1e-12, %v13152_v6 }
0x208c   : > { %v13159_v17 = vadd.f32 1e-12, %v13151_v43 }
0x208d   : > { %15790 = vrsqrt.f32 %v13160_v12 }
0x208e   : > { %15792 = vrsqrt.f32 %v13159_v17 }
0x2092   : > { %v13138_v10 = vpop.xlane.xlu1 %13137 }
0x2093   : > { %v13154_v55 = vmul.f32 0.03125, %v13138_v10 }
0x2095   : > { %v13162_v2 = vadd.f32 1e-12, %v13154_v55 }
0x2096   : > { %v13144_v31 = vpop.xlane.xlu1 %13143  ;;  %v13135_v24 = vpop.xlane.xlu0 %13134 }
0x2097   : > { %v15791_v4 = vpop.eup %15790  ;;  %15794 = vrsqrt.f32 %v13162_v2  ;;  %v13156_v14 = vmul.f32 0.03125, %v13144_v31  ;;  %v13153_v25 = vmul.f32 0.03125, %v13135_v24 }
0x2098   : > { %v15793_v58 = vpop.eup %15792  ;;  %v13176_v35 = vmul.f32 %v15791_v4, %v13112_v27  ;;  %v15843_v27 = vld [vmem:[%s18620_s9 + $0x1] ss:$0 sm:$0xff] }
0x2099   : > { %v13164_v21 = vadd.f32 1e-12, %v13156_v14  ;;  %v13161_v30 = vadd.f32 1e-12, %v13153_v25  ;;  %v13175_v46 = vmul.f32 %v15793_v58, %v18384_v39 }
0x209a   : > { %v13150_v23 = vpop.xlane.xlu1 %13149  ;;  %v13141_v61 = vpop.xlane.xlu0 %13140  ;;  %v13184_v13 = vmul.f32 %v15842_v0, %v13176_v35 }
0x209b   : > { %15796 = vrsqrt.f32 %v13164_v21  ;;  %v13158_v62 = vmul.f32 0.03125, %v13150_v23  ;;  %v13155_v11 = vmul.f32 0.03125, %v13141_v61  ;;  %v13183_v59 = vmul.f32 %v15842_v0, %v13175_v46 }
0x209c   : > { %15798 = vrsqrt.f32 %v13161_v30  ;;  %v18429_v60 = vadd.f32 %v15843_v27, %v13184_v13 }
0x209d   : > { %v13166_v20 = vadd.f32 1e-12, %v13158_v62  ;;  %v13163_v29 = vadd.f32 1e-12, %v13155_v11  ;;  %v18427_v3 = vadd.f32 %v15843_v27, %v13183_v59 }
0x209e   : > { %v13147_v39 = vpop.xlane.xlu0 %13146 }
0x209f   : > { %15800 = vrsqrt.f32 %v13166_v20  ;;  %v13157_v52 = vmul.f32 0.03125, %v13147_v39  ;;  %15299 = vmatprep.mubr.msk.f32.mxu0 %vm946_vm1, %v18427_v3 }
0x20a0   : > { %15802 = vrsqrt.f32 %v13163_v29  ;;  %15300 = vmatmul.mubr.msk.f32.vlgmr.msra.gmra.mrb[156].mxu0 %vm946_vm1, %v18429_v60 }
0x20a1   : > { %v15795_v18 = vpop.eup %15794  ;;  %v13165_v16 = vadd.f32 1e-12, %v13157_v52 }
0x20a2   : > { %v13178_v26 = vmul.f32 %v15795_v18, %v18390_v19 }
0x20a3   : > { %15804 = vrsqrt.f32 %v13165_v16 }
0x20a4   : > { %v13186_v37 = vmul.f32 %v15842_v0, %v13178_v26 }
0x20a5   : > { %v15797_v28 = vpop.eup %15796 }
0x20a6   : > { %v15799_v32 = vpop.eup %15798  ;;  %v13180_v54 = vmul.f32 %v15797_v28, %v18394_v34  ;;  %v18441_v1 = vadd.f32 %v15843_v27, %v13186_v37 }
0x20a7   : > { %v13177_v5 = vmul.f32 %v15799_v32, %v18396_v38 }
0x20a8   : > { %v13188_v9 = vmul.f32 %v15842_v0, %v13180_v54 }
0x20a9   : > { %v15801_v50 = vpop.eup %15800  ;;  %v13185_v33 = vmul.f32 %v15842_v0, %v13177_v5 }
0x20aa   : > { %v15803_v7 = vpop.eup %15802  ;;  %v13182_v44 = vmul.f32 %v15801_v50, %v18403_v36  ;;  %v18451_v40 = vadd.f32 %v15843_v27, %v13188_v9 }
0x20ab   : > { %v18438_v56 = vadd.f32 %v15843_v27, %v13185_v33  ;;  %v13179_v63 = vmul.f32 %v15803_v7, %v18405_v15 }
0x20ac   : > { %v13190_v53 = vmul.f32 %v15842_v0, %v13182_v44 }
0x20ad   : > { %v15805_v19 = vpop.eup %15804  ;;  %15302 = vmatprep.mubr.msk.f32.mxu0 %vm946_vm1, %v18438_v56  ;;  %v13187_v38 = vmul.f32 %v15842_v0, %v13179_v63 }
0x20ae   : > { %15303 = vmatmul.mubr.msk.f32.gmra.mrb[158].mxu0 %vm946_vm1, %v18441_v1  ;;  %v13181_v34 = vmul.f32 %v15805_v19, %v18413_v42  ;;  %v18461_v48 = vadd.f32 %v15843_v27, %v13190_v53 }
0x20af   : > { %v18449_v41 = vadd.f32 %v15843_v27, %v13187_v38 }
0x20b0   : > { %v13189_v15 = vmul.f32 %v15842_v0, %v13181_v34 }
0x20b1   : > { %15305 = vmatprep.mubr.msk.f32.mxu0 %vm946_vm1, %v18449_v41 }
0x20b2   : > { %15306 = vmatmul.mubr.msk.f32.gmra.mrb[160].mxu0 %vm946_vm1, %v18451_v40  ;;  %v18457_v36 = vadd.f32 %v15843_v27, %v13189_v15 }
0x20b4   : > { %15308 = vmatprep.mubr.msk.f32.mxu0 %vm946_vm1, %v18457_v36 }
0x20b6   : > { %15309 = vmatmul.mubr.msk.f32.gmra.mrb[162].mxu0 %vm946_vm1, %v18461_v48 }
0x20b7   : > { %15347 = vmatprep.mubr.msk.f32.mxu0 %vm15857_vm2, %v18686_v45 }
0x2173   : > { %v15301_v42 = vpop.f32.mrb[156].mxu0 }
0x2174   : > { %v13295_v22 = vadd.f32 %v15844_v47, %v15301_v42  ;;  %v13289_v49 = vpop.f32.mrb[157].mxu0 }
0x2175   : > { %v13290_v57 = vadd.f32 %v15844_v47, %v13289_v49 }
0x2176   : > { %v13329_v51 = vmul.f32 %v13295_v22, %v13295_v22 }
0x2177   : > { %v13328_v6 = vmul.f32 %v13290_v57, %v13290_v57 }
0x2178   : > { %v13337_v8 = vmul.f32 %v13329_v51, %v13295_v22 }
0x2179   : > { %v13336_v43 = vmul.f32 %v13328_v6, %v13290_v57 }
0x217a   : > { %v13345_v12 = vmul.f32 0.044715, %v13337_v8 }
0x217b   : > { %v13344_v17 = vmul.f32 0.044715, %v13336_v43 }
0x217c   : > { %v13353_v10 = vadd.f32 %v13345_v12, %v13295_v22 }
0x217d   : > { %v13352_v55 = vadd.f32 %v13344_v17, %v13290_v57 }
0x217e   : > { %v13361_v2 = vmul.f32 0.7978846, %v13353_v10 }
0x217f   : > { %v13360_v31 = vmul.f32 0.7978846, %v13352_v55 }
0x2180   : > { %15806 = vtanh.f32 %v13361_v2 }
0x2181   : > { %15808 = vtanh.f32 %v13360_v31  ;;  %v15304_v45 = vpop.f32.mrb[158].mxu0 }
0x2182   : > { %v18470_v24 = vadd.f32 %v15844_v47, %v15304_v45  ;;  %v13299_v4 = vpop.f32.mrb[159].mxu0 }
0x2183   : > { %v18472_v14 = vadd.f32 %v15844_v47, %v13299_v4 }
0x2184   : > { %v13331_v25 = vmul.f32 %v18470_v24, %v18470_v24 }
0x2185   : > { %v13330_v58 = vmul.f32 %v18472_v14, %v18472_v14  ;;  %v15307_v35 = vpop.f32.mrb[160].mxu0 }
0x2186   : > { %v13339_v21 = vmul.f32 %v13331_v25, %v18470_v24  ;;  %v18479_v30 = vadd.f32 %v15844_v47, %v15307_v35  ;;  %v13309_v46 = vpop.f32.mrb[161].mxu0 }
0x2187   : > { %v13338_v23 = vmul.f32 %v13330_v58, %v18472_v14  ;;  %v18482_v61 = vadd.f32 %v15844_v47, %v13309_v46 }
0x2188   : > { %v13347_v0 = vmul.f32 0.044715, %v13339_v21  ;;  %v13333_v13 = vmul.f32 %v18479_v30, %v18479_v30 }
0x2189   : > { %v13346_v62 = vmul.f32 0.044715, %v13338_v23  ;;  %v13332_v11 = vmul.f32 %v18482_v61, %v18482_v61  ;;  %v15310_v59 = vpop.f32.mrb[162].mxu0 }
0x218a   : > { %v15807_v20 = vpop.eup %15806  ;;  %v13355_v29 = vadd.f32 %v13347_v0, %v18470_v24  ;;  %v13341_v27 = vmul.f32 %v13333_v13, %v18479_v30  ;;  %v18490_v39 = vadd.f32 %v15844_v47, %v15310_v59  ;;  %v13319_v52 = vpop.f32.mrb[163].mxu0 }
0x218b   : > { %v15809_v18 = vpop.eup %15808  ;;  %v13377_v16 = vadd.f32 1.0, %v15807_v20  ;;  %v13354_v26 = vadd.f32 %v13346_v62, %v18472_v14  ;;  %v13340_v28 = vmul.f32 %v13332_v11, %v18482_v61  ;;  %v13320_v32 = vadd.f32 %v15844_v47, %v13319_v52 }
0x218c   : > { %v13363_v5 = vmul.f32 0.7978846, %v13355_v29  ;;  %v13349_v37 = vmul.f32 0.044715, %v13341_v27  ;;  %v13335_v54 = vmul.f32 %v18490_v39, %v18490_v39  ;;  %v13376_v50 = vadd.f32 1.0, %v15809_v18 }
0x218d   : > { %v13385_v33 = vmul.f32 0.5, %v13377_v16  ;;  %v13362_v7 = vmul.f32 0.7978846, %v13354_v26  ;;  %v13348_v63 = vmul.f32 0.044715, %v13340_v28  ;;  %v13334_v9 = vmul.f32 %v13320_v32, %v13320_v32 }
0x218e   : > { %15810 = vtanh.f32 %v13363_v5  ;;  %v13357_v44 = vadd.f32 %v13349_v37, %v18479_v30  ;;  %v13343_v19 = vmul.f32 %v13335_v54, %v18490_v39  ;;  %v13384_v38 = vmul.f32 0.5, %v13376_v50 }
0x218f   : > { %15812 = vtanh.f32 %v13362_v7  ;;  %v13356_v34 = vadd.f32 %v13348_v63, %v18482_v61  ;;  %v13342_v15 = vmul.f32 %v13334_v9, %v13320_v32  ;;  %v13393_v49 = vmul.f32 %v13385_v33, %v13295_v22 }
0x2190   : > { %v13365_v53 = vmul.f32 0.7978846, %v13357_v44  ;;  %v13351_v42 = vmul.f32 0.044715, %v13343_v19  ;;  %v13392_v47 = vmul.f32 %v13384_v38, %v13290_v57 }
0x2191   : > { %v13364_v51 = vmul.f32 0.7978846, %v13356_v34  ;;  %v13350_v6 = vmul.f32 0.044715, %v13342_v15 }
0x2192   : > { %15814 = vtanh.f32 %v13365_v53  ;;  %v13359_v8 = vadd.f32 %v13351_v42, %v18490_v39  ;;  %15327 = vmatprep.mubr.msk.f32.mxu1 %vm7069_vm5, %v13392_v47 }
0x2193   : > { %15816 = vtanh.f32 %v13364_v51  ;;  %v13358_v43 = vadd.f32 %v13350_v6, %v13320_v32  ;;  %15328 = vmatmul.mubr.msk.f32.vlgmr.msra.gmra.mrb[156].mxu1 %vm7069_vm5, %v13393_v49 }
0x2194   : > { %v13367_v12 = vmul.f32 0.7978846, %v13359_v8 }
0x2195   : > { %v13366_v17 = vmul.f32 0.7978846, %v13358_v43 }
0x2196   : > { %15818 = vtanh.f32 %v13367_v12 }
0x2197   : > { %15820 = vtanh.f32 %v13366_v17 }
0x2198   : > { %v15811_v10 = vpop.eup %15810 }
0x2199   : > { %v15813_v55 = vpop.eup %15812  ;;  %v13379_v2 = vadd.f32 1.0, %v15811_v10 }
0x219a   : > { %v13378_v57 = vadd.f32 1.0, %v15813_v55 }
0x219b   : > { %v13387_v22 = vmul.f32 0.5, %v13379_v2 }
0x219c   : > { %v15815_v31 = vpop.eup %15814  ;;  %v13386_v45 = vmul.f32 0.5, %v13378_v57 }
0x219d   : > { %v15817_v4 = vpop.eup %15816  ;;  %v13381_v25 = vadd.f32 1.0, %v15815_v31  ;;  %v13395_v21 = vmul.f32 %v13387_v22, %v18470_v24 }
0x219e   : > { %v13394_v58 = vmul.f32 %v13386_v45, %v18472_v14  ;;  %v13380_v35 = vadd.f32 1.0, %v15817_v4 }
0x219f   : > { %v13389_v46 = vmul.f32 0.5, %v13381_v25 }
0x21a0   : > { %v15819_v23 = vpop.eup %15818  ;;  %15330 = vmatprep.mubr.msk.f32.mxu1 %vm7069_vm5, %v13394_v58  ;;  %v13388_v0 = vmul.f32 0.5, %v13380_v35 }
0x21a1   : > { %v15821_v13 = vpop.eup %15820  ;;  %15331 = vmatmul.mubr.msk.f32.gmra.mrb[158].mxu1 %vm7069_vm5, %v13395_v21  ;;  %v13383_v62 = vadd.f32 1.0, %v15819_v23  ;;  %v13397_v20 = vmul.f32 %v13389_v46, %v18479_v30  ;;  %v15845_v30 = vld [vmem:[%s18624_s13] ss:$0 sm:$0xff] }
0x21a2   : > { %v13396_v11 = vmul.f32 %v13388_v0, %v18482_v61  ;;  %v13382_v59 = vadd.f32 1.0, %v15821_v13 }
0x21a3   : > { %v13391_v29 = vmul.f32 0.5, %v13383_v62 }
0x21a4   : > { %15333 = vmatprep.mubr.msk.f32.mxu1 %vm7069_vm5, %v13396_v11  ;;  %v13390_v14 = vmul.f32 0.5, %v13382_v59 }
0x21a5   : > { %15334 = vmatmul.mubr.msk.f32.gmra.mrb[160].mxu1 %vm7069_vm5, %v13397_v20  ;;  %v13399_v27 = vmul.f32 %v13391_v29, %v18490_v39 }
0x21a6   : > { %v13398_v24 = vmul.f32 %v13390_v14, %v13320_v32 }
0x21a8   : > { %15336 = vmatprep.mubr.msk.f32.mxu1 %vm7069_vm5, %v13398_v24 }
0x21a9   : > { %15337 = vmatmul.mubr.msk.f32.gmra.mrb[162].mxu1 %vm7069_vm5, %v13399_v27 }
0x2266   : > { %v15329_v52 = vpop.f32.mrb[156].mxu1 }
0x2267   : > { %v13530_v18 = vadd.f32 %v15329_v52, %v18429_v60  ;;  %v13490_v61 = vpop.f32.mrb[157].mxu1 }
0x2268   : > { %v13529_v16 = vadd.f32 %v13490_v61, %v18427_v3 }
0x2269   : > { %v13538_v26 = vadd.f32 %v15845_v30, %v13530_v18 }
0x226a   : > { %v13537_v28 = vadd.f32 %v15845_v30, %v13529_v16 }
0x226b   : > { %v13548_v32 = vsel %vm946_vm1, %v13538_v26, 0.0 }
0x226c   : > { %13549 = vadd.xlane.f32.xlu0 %v13548_v32  ;;  %v13545_v39 = vsel %vm946_vm1, %v13537_v28, 0.0 }
0x2270   : > { %13546 = vadd.xlane.f32.xlu0 %v13545_v39 }
0x2274   : > { %v15332_v5 = vpop.f32.mrb[158].mxu1 }
0x2275   : > { %v13532_v37 = vadd.f32 %v15332_v5, %v18441_v1  ;;  %v13500_v54 = vpop.f32.mrb[159].mxu1  ;;  %v13665_v5 = vld [vmem:[%s18626_s15] sm:$0xff] }
0x2276   : > { %v13531_v60 = vadd.f32 %v13500_v54, %v18438_v56 }
0x2277   : > { %v13540_v50 = vadd.f32 %v15845_v30, %v13532_v37  ;;  %v13666_v37 = vld [vmem:[%s18626_s15 + $0x8] sm:$0xff] }
0x2278   : > { %v15335_v3 = vpop.f32.mrb[160].mxu1  ;;  %v13539_v33 = vadd.f32 %v15845_v30, %v13531_v60  ;;  %v15435_v54 = vpack.c.bf16 %v13666_v37, %v13665_v5  ;;  %v15873_v60 = vmov 0.0|0.0  }
0x2279   : > { %v13534_v7 = vadd.f32 %v15335_v3, %v18451_v40  ;;  %v13510_v63 = vpop.f32.mrb[161].mxu1  ;;  %v13554_v9 = vsel %vm946_vm1, %v13540_v50, 0.0  ;;  %15434 = vmatprep.subr.bf16.mxu0 %v15873_v60  ;;  %v13668_v3 = vld [vmem:[%s18626_s15 + $0x18] sm:$0xff] }
0x227a   : > { %v13533_v44 = vadd.f32 %v13510_v63, %v18449_v41  ;;  %13555 = vadd.xlane.f32.xlu1 %v13554_v9  ;;  %v13551_v53 = vsel %vm946_vm1, %v13539_v33, 0.0  ;;  %15436 = vmatpush3.bf16.msra.mxu0 %v15435_v54 }
0x227b   : > { %v13542_v34 = vadd.f32 %v15845_v30, %v13534_v7  ;;  %15437 = vmatprep.subr.bf16.mxu0 %v15873_v60 }
0x227c   : > { %v13541_v19 = vadd.f32 %v15845_v30, %v13533_v44  ;;  %v15338_v38 = vpop.f32.mrb[162].mxu1 }
0x227d   : > { %v13536_v15 = vadd.f32 %v15338_v38, %v18461_v48  ;;  %v13520_v1 = vpop.f32.mrb[163].mxu1  ;;  %v13560_v49 = vsel %vm946_vm1, %v13542_v34, 0.0 }
0x227e   : > { %v13535_v56 = vadd.f32 %v13520_v1, %v18457_v36  ;;  %13552 = vadd.xlane.f32.xlu1 %v13551_v53  ;;  %v13557_v42 = vsel %vm946_vm1, %v13541_v19, 0.0 }
0x227f   : > { %13558 = vadd.xlane.f32.xlu0 %v13557_v42  ;;  %v13544_v47 = vadd.f32 %v15845_v30, %v13536_v15 }
0x2280   : > { %v13543_v40 = vadd.f32 %v15845_v30, %v13535_v56 }
0x2281   : > { %v13566_v51 = vsel %vm946_vm1, %v13544_v47, 0.0 }
0x2282   : > { %13561 = vadd.xlane.f32.xlu1 %v13560_v49  ;;  %v13563_v41 = vsel %vm946_vm1, %v13543_v40, 0.0 }
0x2283   : > { %13564 = vadd.xlane.f32.xlu0 %v13563_v41 }
0x2286   : > { %13567 = vadd.xlane.f32.xlu1 %v13566_v51 }
0x22f9   : > { %v13550_v48 = vpop.xlane.xlu0 %13549 }
0x22fa   : > { %v13570_v6 = vmul.f32 0.03125, %v13550_v48 }
0x22fc   : > { %v18532_v8 = vsub.f32 %v13538_v26, %v13570_v6 }
0x22fd   : > { %v13547_v36 = vpop.xlane.xlu0 %13546 }
0x22fe   : > { %v13569_v43 = vmul.f32 0.03125, %v13547_v36  ;;  %v13586_v12 = vmul.f32 %v18532_v8, %v18532_v8 }
0x2300   : > { %v18536_v17 = vsub.f32 %v13537_v28, %v13569_v43  ;;  %v13596_v10 = vsel %vm946_vm1, %v13586_v12, 0.0 }
0x2301   : > { %13597 = vadd.xlane.f32.xlu0 %v13596_v10 }
0x2302   : > { %v13585_v55 = vmul.f32 %v18536_v17, %v18536_v17 }
0x2304   : > { %v13593_v2 = vsel %vm946_vm1, %v13585_v55, 0.0 }
0x2305   : > { %13594 = vadd.xlane.f32.xlu0 %v13593_v2 }
0x2307   : > { %v13556_v57 = vpop.xlane.xlu1 %13555 }
0x2308   : > { %v13572_v22 = vmul.f32 0.03125, %v13556_v57 }
0x230a   : > { %v18542_v31 = vsub.f32 %v13540_v50, %v13572_v22  ;;  %v13667_v50 = vld [vmem:[%s18626_s15 + $0x10] sm:$0xff] }
0x230b   : > { %v13553_v45 = vpop.xlane.xlu1 %13552 }
0x230c   : > { %v13571_v4 = vmul.f32 0.03125, %v13553_v45  ;;  %v13559_v25 = vpop.xlane.xlu0 %13558  ;;  %v13588_v58 = vmul.f32 %v18542_v31, %v18542_v31 }
0x230d   : > { %v13573_v35 = vmul.f32 0.03125, %v13559_v25 }
0x230e   : > { %v18546_v21 = vsub.f32 %v13539_v33, %v13571_v4  ;;  %v13602_v46 = vsel %vm946_vm1, %v13588_v58, 0.0  ;;  %v15438_v33 = vpack.c.bf16 %v13668_v3, %v13667_v50  ;;  %v15846_v58 = vld [vmem:[%s18625_s14] ss:$0 sm:$0xff] }
0x230f   : > { %v18549_v23 = vsub.f32 %v13541_v19, %v13573_v35  ;;  %v13562_v0 = vpop.xlane.xlu1 %13561  ;;  %13603 = vadd.xlane.f32.xlu1 %v13602_v46 }
0x2310   : > { %v13574_v13 = vmul.f32 0.03125, %v13562_v0  ;;  %v13565_v62 = vpop.xlane.xlu0 %13564  ;;  %v13587_v11 = vmul.f32 %v18546_v21, %v18546_v21  ;;  %15439 = vmatpush3.bf16.msra.mxu0 %v15438_v33 }
0x2311   : > { %v13575_v59 = vmul.f32 0.03125, %v13565_v62  ;;  %v13589_v20 = vmul.f32 %v18549_v23, %v18549_v23 }
0x2312   : > { %v18555_v29 = vsub.f32 %v13542_v34, %v13574_v13  ;;  %v13599_v14 = vsel %vm946_vm1, %v13587_v11, 0.0  ;;  %v15847_v11 = vld [vmem:[%s18625_s14 + $0x1] ss:$0 sm:$0xff] }
0x2313   : > { %v18558_v24 = vsub.f32 %v13543_v40, %v13575_v59  ;;  %13600 = vadd.xlane.f32.xlu1 %v13599_v14  ;;  %v13568_v27 = vpop.xlane.xlu1 %13567  ;;  %v13605_v52 = vsel %vm946_vm1, %v13589_v20, 0.0 }
0x2314   : > { %v13576_v18 = vmul.f32 0.03125, %v13568_v27  ;;  %13606 = vadd.xlane.f32.xlu0 %v13605_v52  ;;  %v13590_v61 = vmul.f32 %v18555_v29, %v18555_v29 }
0x2315   : > { %v13591_v16 = vmul.f32 %v18558_v24, %v18558_v24 }
0x2316   : > { %v18565_v30 = vsub.f32 %v13544_v47, %v13576_v18  ;;  %v13608_v26 = vsel %vm946_vm1, %v13590_v61, 0.0 }
0x2317   : > { %13609 = vadd.xlane.f32.xlu1 %v13608_v26  ;;  %v13611_v28 = vsel %vm946_vm1, %v13591_v16, 0.0 }
0x2318   : > { %13612 = vadd.xlane.f32.xlu0 %v13611_v28  ;;  %v13592_v32 = vmul.f32 %v18565_v30, %v18565_v30 }
0x231a   : > { %v13614_v39 = vsel %vm946_vm1, %v13592_v32, 0.0 }
0x231b   : > { %13615 = vadd.xlane.f32.xlu1 %v13614_v39 }
0x238e   : > { %v13598_v7 = vpop.xlane.xlu0 %13597 }
0x238f   : > { %v13618_v9 = vmul.f32 0.03125, %v13598_v7 }
0x2391   : > { %v13626_v19 = vadd.f32 1e-12, %v13618_v9 }
0x2392   : > { %v13595_v63 = vpop.xlane.xlu0 %13594 }
0x2393   : > { %v13617_v44 = vmul.f32 0.03125, %v13595_v63  ;;  %15822 = vrsqrt.f32 %v13626_v19 }
0x2395   : > { %v13625_v38 = vadd.f32 1e-12, %v13617_v44 }
0x2397   : > { %15824 = vrsqrt.f32 %v13625_v38 }
0x239c   : > { %v13604_v34 = vpop.xlane.xlu1 %13603 }
0x239d   : > { %v13620_v15 = vmul.f32 0.03125, %v13604_v34  ;;  %v15823_v6 = vpop.eup %15822 }
0x239e   : > { %v13642_v2 = vmul.f32 %v15823_v6, %v18532_v8 }
0x239f   : > { %v13628_v1 = vadd.f32 1e-12, %v13620_v15 }
0x23a0   : > { %v13601_v53 = vpop.xlane.xlu1 %13600  ;;  %v13650_v35 = vmul.f32 %v15846_v58, %v13642_v2 }
0x23a1   : > { %15826 = vrsqrt.f32 %v13628_v1  ;;  %v13619_v56 = vmul.f32 0.03125, %v13601_v53  ;;  %v13607_v42 = vpop.xlane.xlu0 %13606  ;;  %v15825_v12 = vpop.eup %15824 }
0x23a2   : > { %v13621_v40 = vmul.f32 0.03125, %v13607_v42  ;;  %v13641_v45 = vmul.f32 %v15825_v12, %v18536_v17  ;;  %v13658_v17 = vadd.f32 %v15847_v11, %v13650_v35 }
0x23a3   : > { %v13627_v47 = vadd.f32 1e-12, %v13619_v56 }
0x23a4   : > { %v13629_v49 = vadd.f32 1e-12, %v13621_v40  ;;  %v13610_v41 = vpop.xlane.xlu1 %13609  ;;  %v13649_v0 = vmul.f32 %v15846_v58, %v13641_v45  ;;  %v13684_v26 = vrot.slane %v13658_v17, 7 }
0x23a5   : > { %15828 = vrsqrt.f32 %v13627_v47  ;;  %v13622_v51 = vmul.f32 0.03125, %v13610_v41  ;;  %v13613_v48 = vpop.xlane.xlu0 %13612 }
0x23a6   : > { %15830 = vrsqrt.f32 %v13629_v49  ;;  %v13623_v36 = vmul.f32 0.03125, %v13613_v48  ;;  %v13657_v14 = vadd.f32 %v15847_v11, %v13649_v0 }
0x23a7   : > { %v13630_v43 = vadd.f32 1e-12, %v13622_v51 }
0x23a8   : > { %v13631_v10 = vadd.f32 1e-12, %v13623_v36  ;;  %v13616_v55 = vpop.xlane.xlu1 %13615  ;;  %v13686_v5 = vsel %vm13685_vm6, %v13684_v26, %v13657_v14 }
0x23a9   : > { %15832 = vrsqrt.f32 %v13630_v43  ;;  %v13624_v57 = vmul.f32 0.03125, %v13616_v55 }
0x23aa   : > { %15834 = vrsqrt.f32 %v13631_v10 }
0x23ab   : > { %v15827_v22 = vpop.eup %15826  ;;  %v13632_v4 = vadd.f32 1e-12, %v13624_v57 }
0x23ac   : > { %v13644_v25 = vmul.f32 %v15827_v22, %v18542_v31 }
0x23ad   : > { %15836 = vrsqrt.f32 %v13632_v4 }
0x23ae   : > { %v13652_v13 = vmul.f32 %v15846_v58, %v13644_v25 }
0x23af   : > { %v15829_v46 = vpop.eup %15828 }
0x23b0   : > { %v15831_v62 = vpop.eup %15830  ;;  %v13643_v8 = vmul.f32 %v15829_v46, %v18546_v21  ;;  %v13660_v27 = vadd.f32 %v15847_v11, %v13652_v13 }
0x23b1   : > { %v13645_v59 = vmul.f32 %v15831_v62, %v18549_v23 }
0x23b2   : > { %v13651_v31 = vmul.f32 %v15846_v58, %v13643_v8  ;;  %v13690_v37 = vrot.slane %v13660_v27, 5 }
0x23b3   : > { %v15833_v20 = vpop.eup %15832  ;;  %v13653_v52 = vmul.f32 %v15846_v58, %v13645_v59 }
0x23b4   : > { %v15835_v18 = vpop.eup %15834  ;;  %v13659_v61 = vadd.f32 %v15847_v11, %v13651_v31  ;;  %v13646_v16 = vmul.f32 %v15833_v20, %v18555_v29 }
0x23b5   : > { %v13661_v28 = vadd.f32 %v15847_v11, %v13653_v52  ;;  %v13647_v21 = vmul.f32 %v15835_v18, %v18558_v24 }
0x23b6   : > { %v13687_v32 = vrot.slane %v13659_v61, 6  ;;  %v13654_v39 = vmul.f32 %v15846_v58, %v13646_v16 }
0x23b7   : > { %v15837_v23 = vpop.eup %15836  ;;  %v13693_v54 = vrot.slane %v13661_v28, 4  ;;  %v13655_v60 = vmul.f32 %v15846_v58, %v13647_v21 }
0x23b8   : > { %v13662_v50 = vadd.f32 %v15847_v11, %v13654_v39  ;;  %v13648_v3 = vmul.f32 %v15837_v23, %v18565_v30  ;;  %v13689_v33 = vsel %vm13688_vm7, %v13687_v32, %v13686_v5  ;;  %v14128_v30 = vld [vmem:[%s18627_s16] ss:$0 sm:$0xff] }
0x23b9   : > { %v13663_v7 = vadd.f32 %v15847_v11, %v13655_v60  ;;  %v13692_v29 = vsel %vm13691_vm8, %v13690_v37, %v13689_v33 }
0x23ba   : > { %v13696_v63 = vrot.slane %v13662_v50, 3  ;;  %v13656_v9 = vmul.f32 %v15846_v58, %v13648_v3  ;;  %v13695_v24 = vsel %vm13694_vm9, %v13693_v54, %v13692_v29 }
0x23bb   : > { %v13699_v44 = vrot.slane %v13663_v7, 2 }
0x23bc   : > { %v13664_v19 = vadd.f32 %v15847_v11, %v13656_v9  ;;  %v13698_v38 = vsel %vm13697_vm10, %v13696_v63, %v13695_v24 }
0x23bd   : > { %v13701_v15 = vsel %vm13700_vm11, %v13699_v44, %v13698_v38 }
0x23be   : > { %v13702_v34 = vrot.slane %v13664_v19, 1 }
0x23c0   : > { %v13704_v1 = vsel %vm13703_vm12, %v13702_v34, %v13701_v15 }
0x23c1   : > { %15348 = vmatmul.mubr.msk.f32.vlgmr.msra.gmra.mrb[164].mxu0 %vm946_vm1, %v13704_v1 }
0x2494   : > { %v13773_v53 = vpop.f32.mrb[164].mxu0 }
0x2495   : > { %v13774_v56 = vadd.f32 %v14128_v30, %v13773_v53  ;;  %v15349_v42 = vpop.f32.mrb[165].mxu0 }
0x2497   : > { %15838 = vtanh.f32 %v13774_v56 }
0x24a1   : > { %v15839_v40 = vpop.eup %15838 }
0x24a2   : > { %13778 = vst.msk [vmem:[%s565_s29] sm:$0xff] %vm946_vm1, %v15839_v40 }
0x24a3 PF: > { %s27_s24 = sadd.s32 1, %s15854_s24  }
0x24a4   : > { %p24_p5 = scmp.ge.s32.totalorder %s27_s24, 4  }
0x24a6   :  { %26 = sbr.rel (!%p24_p5) target bundleno = 3 (0x3), region = 121 }

</bundles_post_ra>
